<compile_context>
chip_gen: v7x
topology: tpu7x:2x2x1
jax: 0.10.0
libtpu: 0.0.40
codegen_flags: <defaults>
</compile_context>

<pallas_src>
import functools
import math

import numpy as np
import jax
import jax.numpy as jnp
from jax.experimental import pallas as pl
from jax.experimental.pallas import tpu as pltpu


def _round_up(a, m):
    return ((a + m - 1) // m) * m


# --------------------------------------------------------------------------
# Pallas kernel: one grid step == TB batch rows. Everything fits in VMEM.
# --------------------------------------------------------------------------
def msta_kernel(x_ref, wkv_ref, bkv_ref, wqs_ref, bqs_ref, wp_ref, bp_ref,
                wo_ref, bo_ref, a_ref, negmask_ref, out_ref, *,
                hidden_dim, num_scales, lmax, temperature):
    H = hidden_dim
    x = x_ref[...]                                    # (TB, S, H)  compute dtype
    TB, S, _ = x.shape
    xf = x.reshape(TB * S, H)                         # free (merge leading dims)
    x_last = x[:, S - 1, :]                           # (TB, H)

    # ---- fused projections on the MXU -------------------------------------
    # k|v : one (TB*S, H) x (H, 2H) matmul, then lane-split
    kv = jnp.dot(xf, wkv_ref[...], preferred_element_type=jnp.float32) + bkv_ref[...]
    k = kv[:, :H].reshape(TB, S, H)                   # f32
    v = kv[:, H:].reshape(TB, S, H)                   # f32
    # q | scale-importance logits : one (TB, H) x (H, H+NS) matmul
    qs = jnp.dot(x_last, wqs_ref[...], preferred_element_type=jnp.float32) + bqs_ref[...]
    q = qs[:, :H]                                     # (TB, H)
    si_logits = qs[:, H:H + num_scales]               # (TB, NS)

    # fold the scalar score scales into q once
    q_base = q * (1.0 / math.sqrt(H * temperature))
    q_feat = q * (1.0 / math.sqrt(H))

    # ---- base attention over the full sequence (q-len == 1 -> VPU/XLU) ----
    scores = jnp.sum(k * q_base[:, None, :], axis=-1)                 # (TB, S)
    scores = scores - jnp.max(scores, axis=-1, keepdims=True)
    e = jnp.exp(scores)
    attn = e * pl.reciprocal(jnp.sum(e, axis=-1, keepdims=True), approx=True)
    base_ctx = jnp.sum(attn[:, :, None] * v, axis=1)                  # (TB, H)

    # ---- scale importance softmax (exact reciprocal, tiny tensor) ----------
    si_logits = si_logits - jnp.max(si_logits, axis=-1, keepdims=True)
    si_e = jnp.exp(si_logits)
    si = si_e / jnp.sum(si_e, axis=-1, keepdims=True)                 # (TB, NS)

    # ---- multi-scale pooling: pre[b, i*L+l, h] = sum_s A[i*L+l, s] * x[b,s,h]
    # Unrolled FMA over S on the VPU: no broadcast of A, no tiny batched MXU
    # pushes; accumulates in f32.
    a_all = a_ref[...]                                # (NS*L, S) f32
    pre = a_all[None, :, 0:1] * x[:, 0:1, :]          # (TB, NS*L, H) f32
    for s in range(1, S):
        pre = pre + a_all[None, :, s:s + 1] * x[:, s:s + 1, :]
    pre_c = pre.astype(wp_ref.dtype)                  # matmul operand dtype

    nm = negmask_ref[...]                             # (NS, L) additive 0/-1e30
    combined = jnp.zeros((TB, H), jnp.float32)
    for i in range(num_scales):                       # small static unroll
        pre_i = pre_c[:, i * lmax:(i + 1) * lmax, :]              # (TB, L, H)
        feat = jnp.tanh(
            jnp.dot(pre_i.reshape(TB * lmax, H), wp_ref[i],
                    preferred_element_type=jnp.float32) + bp_ref[i:i + 1, :]
        ).reshape(TB, lmax, H)                                     # (TB, L, H) f32
        sc = jnp.sum(feat * q_feat[:, None, :], axis=-1)           # (TB, L)  VPU
        sc = sc + nm[i:i + 1, :]                                   # mask pad rows
        sc = sc - jnp.max(sc, axis=-1, keepdims=True)
        ee = jnp.exp(sc)
        fattn = ee * pl.reciprocal(jnp.sum(ee, axis=-1, keepdims=True), approx=True)
        ctx = jnp.sum(fattn[:, :, None] * feat, axis=1)            # (TB, H)
        combined = combined + si[:, i:i + 1] * ctx

    fin = (base_ctx + combined).astype(wo_ref.dtype)
    out = jnp.dot(fin, wo_ref[...], preferred_element_type=jnp.float32) + bo_ref[...]
    out_ref[...] = out.astype(out_ref.dtype)          # (TB, Hpad) lane-dense store


# --------------------------------------------------------------------------
# Glue: pooling matrices, parameter init, wrapper around pallas_call
# --------------------------------------------------------------------------
def build_scale_matrices(seq_len, num_scales):
    """A_flat (NS*Lmax, S): row (i*Lmax + w) averages window w of scale i.
    neg_mask (NS, Lmax): 0 for valid windows, -1e30 for padded rows.
    Lmax padded to a multiple of 8 so in-kernel sublane slices are tile-aligned."""
    mats = []
    for i in range(num_scales):
        scale_size = max(1, seq_len // 2 ** i)
        if scale_size == 1:
            A = np.full((1, seq_len), 1.0 / seq_len, np.float32)
        else:
            rem = seq_len % scale_size
            pad = scale_size - rem if rem != 0 else 0
            padded_len = seq_len + pad
            step = max(1, scale_size // 2)
            n_win = max((padded_len - scale_size) // step + 1, 1)
            A = np.zeros((n_win, seq_len), np.float32)
            for w in range(n_win):
                start = w * step
                for t in range(start, min(start + scale_size, seq_len)):
                    A[w, t] = 1.0 / scale_size        # torch mean over scale_size
        mats.append(A)
    lmax = max(m.shape[0] for m in mats)
    lmax = max(8, ((lmax + 7) // 8) * 8)
    A_stack = np.zeros((num_scales, lmax, seq_len), np.float32)
    neg_mask = np.full((num_scales, lmax), -1e30, np.float32)
    for i, m in enumerate(mats):
        A_stack[i, :m.shape[0]] = m
        neg_mask[i, :m.shape[0]] = 0.0
    return (jnp.asarray(A_stack.reshape(num_scales * lmax, seq_len)),
            jnp.asarray(neg_mask))


def init_params(key, hidden_dim, num_scales):
    def lin(k, out_dim, in_dim):
        bound = 1.0 / math.sqrt(in_dim)
        kw, kb = jax.random.split(k)
        W = jax.random.uniform(kw, (out_dim, in_dim), jnp.float32, -bound, bound)
        b = jax.random.uniform(kb, (out_dim,), jnp.float32, -bound, bound)
        return W, b

    keys = jax.random.split(key, 5 + num_scales)
    Wq, bq = lin(keys[0], hidden_dim, hidden_dim)
    Wk, bk = lin(keys[1], hidden_dim, hidden_dim)
    Wv, bv = lin(keys[2], hidden_dim, hidden_dim)
    Wo, bo = lin(keys[3], hidden_dim, hidden_dim)
    Ws, bs = lin(keys[4], num_scales, hidden_dim)
    Wp_list, bp_list = [], []
    for i in range(num_scales):
        W, b = lin(keys[5 + i], hidden_dim, hidden_dim)
        Wp_list.append(W)
        bp_list.append(b)
    return dict(Wq=Wq, bq=bq, Wk=Wk, bk=bk, Wv=Wv, bv=bv, Wo=Wo, bo=bo,
                Ws=Ws, bs=bs, Wp=jnp.stack(Wp_list), bp=jnp.stack(bp_list))


def multi_scale_temporal_attention(x, P, A_flat, neg_mask, *, temperature=1.0,
                                   compute_dtype=jnp.bfloat16, max_tb=256):
    B, S, H = x.shape
    num_scales, lmax = neg_mask.shape
    assert A_flat.shape == (num_scales * lmax, S)
    cdt = compute_dtype

    # fused, pre-transposed weight matrices (matmul operands in compute dtype)
    Wkv = jnp.concatenate([P["Wk"].T, P["Wv"].T], axis=1).astype(cdt)       # (H, 2H)
    bkv = jnp.concatenate([P["bk"], P["bv"]]).reshape(1, 2 * H).astype(jnp.float32)
    Wqs = jnp.concatenate([P["Wq"].T, P["Ws"].T], axis=1).astype(cdt)       # (H, H+NS)
    bqs = jnp.concatenate([P["bq"], P["bs"]]).reshape(1, H + num_scales).astype(jnp.float32)
    Wp = jnp.transpose(P["Wp"], (0, 2, 1)).astype(cdt)                      # (NS, H, H)
    bp = P["bp"].astype(jnp.float32)                                        # (NS, H)
    # output projection padded to a lane-dense multiple of 128 (unmasked vst)
    Hpad = _round_up(H, 128)
    Wo = jnp.zeros((H, Hpad), jnp.float32).at[:, :H].set(P["Wo"].T).astype(cdt)
    bo = jnp.zeros((1, Hpad), jnp.float32).at[:, :H].set(P["bo"].reshape(1, H))
    A_f = A_flat.astype(jnp.float32)
    nm = neg_mask.astype(jnp.float32)

    # Batch tile: as large as VMEM comfortably allows (cap max_tb), but keep
    # >=2 grid steps whenever the batch allows so the "parallel" batch axis can
    # be sharded across the 2 TensorCores on v7x.
    B8 = _round_up(B, 8)
    TB = min(max_tb, B8)
    if TB >= B8 and B8 >= 16:
        TB = _round_up(B8 // 2, 8)
    Bp = _round_up(B, TB)

    xp = x.astype(cdt)
    if Bp != B:
        xp = jnp.pad(xp, ((0, Bp - B), (0, 0), (0, 0)))

    kernel = functools.partial(msta_kernel, hidden_dim=H, num_scales=num_scales,
                               lmax=lmax, temperature=temperature)

    consts = (Wkv, bkv, Wqs, bqs, Wp, bp, Wo, bo, A_f, nm)

    def const_spec(a):
        nd = a.ndim
        return pl.BlockSpec(a.shape, lambda b, _nd=nd: (0,) * _nd)

    in_specs = ([pl.BlockSpec((TB, S, H), lambda b: (b, 0, 0))]
                + [const_spec(a) for a in consts])

    out = pl.pallas_call(
        kernel,
        out_shape=jax.ShapeDtypeStruct((Bp, Hpad), jnp.float32),
        grid=(Bp // TB,),
        in_specs=in_specs,
        out_specs=pl.BlockSpec((TB, Hpad), lambda b: (b, 0)),
        compiler_params=pltpu.CompilerParams(dimension_semantics=("parallel",)),
    )(xp, *consts)
    return out[:B, :H]


# --------------------------------------------------------------------------
# Pure-JAX reference (mirrors the PyTorch forward directly, incl. unfold/pad)
# --------------------------------------------------------------------------
def ref_forward(x, P, num_scales, temperature):
    B, S, H = x.shape
    x_last = x[:, -1, :]
    q = x_last @ P["Wq"].T + P["bq"]
    k = x @ P["Wk"].T + P["bk"]
    v = x @ P["Wv"].T + P["bv"]
    scores = jnp.einsum("bh,bsh->bs", q, k) / math.sqrt(H * temperature)
    attn_base = jax.nn.softmax(scores, axis=-1)
    base_ctx = jnp.einsum("bs,bsh->bh", attn_base, v)
    si = jax.nn.softmax(x_last @ P["Ws"].T + P["bs"], axis=-1)

    combined = jnp.zeros((B, H), jnp.float32)
    for i in range(num_scales):
        scale_size = max(1, S // 2 ** i)
        if scale_size == 1:
            pre = x.mean(axis=1, keepdims=True)
        else:
            rem = S % scale_size
            pad = scale_size - rem if rem != 0 else 0
            xp = jnp.pad(x, ((0, 0), (0, pad), (0, 0)))
            step = max(1, scale_size // 2)
            n_win = (S + pad - scale_size) // step + 1
            pre = jnp.stack(
                [xp[:, w * step:w * step + scale_size, :].mean(axis=1)
                 for w in range(n_win)], axis=1)
        feat = jnp.tanh(pre @ P["Wp"][i].T + P["bp"][i])
        fs = jnp.einsum("bh,blh->bl", q, feat) / math.sqrt(H)
        fa = jax.nn.softmax(fs, axis=-1)
        ctx = jnp.einsum("bl,blh->bh", fa, feat)
        combined = combined + si[:, i:i + 1] * ctx
    return (base_ctx + combined) @ P["Wo"].T + P["bo"]


if __name__ == "__main__":
    B, S, H, NS = 16, 8, 32, 8
    key = jax.random.PRNGKey(0)
    kx, kp = jax.random.split(key)
    x = jax.random.normal(kx, (B, S, H), jnp.float32)
    P = init_params(kp, H, NS)
    A_flat, neg_mask = build_scale_matrices(S, NS)
    ref = np.asarray(ref_forward(x, P, NS, 1.0))

    # f32 path: verifies algorithmic exactness (approx-recip softmax only).
    out32 = multi_scale_temporal_attention(x, P, A_flat, neg_mask,
                                           temperature=1.0,
                                           compute_dtype=jnp.float32)
    out32 = np.asarray(jax.block_until_ready(out32))
    assert out32.shape == (B, H), out32.shape
    if not np.allclose(out32, ref, rtol=1e-2, atol=1e-2):
        raise AssertionError(
            f"f32 mismatch: max abs err {float(np.max(np.abs(out32 - ref)))}")

    # bf16 path (production config per perf review).
    out16 = multi_scale_temporal_attention(x, P, A_flat, neg_mask,
                                           temperature=1.0,
                                           compute_dtype=jnp.bfloat16)
    out16 = np.asarray(jax.block_until_ready(out16))
    assert out16.shape == (B, H), out16.shape
    if not np.allclose(out16, ref, rtol=5e-2, atol=5e-2):
        raise AssertionError(
            f"bf16 mismatch: max abs err {float(np.max(np.abs(out16 - ref)))}")

    print("KERNEL_OK")
</pallas_src>

<mosaic_0001>
module attributes {stable_mosaic.version = 11 : i64} {
  func.func @msta_kernel(%arg0: i32, %arg1: memref<8x8x32xf32, #tpu.memory_space<vmem>>, %arg2: memref<32x64xf32, #tpu.memory_space<vmem>>, %arg3: memref<1x64xf32, #tpu.memory_space<vmem>>, %arg4: memref<32x40xf32, #tpu.memory_space<vmem>>, %arg5: memref<1x40xf32, #tpu.memory_space<vmem>>, %arg6: memref<8x32x32xf32, #tpu.memory_space<vmem>>, %arg7: memref<8x32xf32, #tpu.memory_space<vmem>>, %arg8: memref<32x128xf32, #tpu.memory_space<vmem>>, %arg9: memref<1x128xf32, #tpu.memory_space<vmem>>, %arg10: memref<64x8xf32, #tpu.memory_space<vmem>>, %arg11: memref<8x8xf32, #tpu.memory_space<vmem>>, %arg12: memref<8x128xf32, #tpu.memory_space<vmem>>) attributes {dimension_semantics = [#tpu.dimension_semantics<parallel>], iteration_bounds = array<i64: 2>, scalar_prefetch = 0 : i64, scratch_operands = 0 : i64, tpu.core_type = #tpu.core_type<tc>, window_params = [{transform_indices = @transform_0, window_bounds = array<i64: 8, 8, 32>}, {pipeline_mode = #tpu.pipeline_mode<synchronous>, transform_indices = @transform_1, window_bounds = array<i64: 32, 64>}, {pipeline_mode = #tpu.pipeline_mode<synchronous>, transform_indices = @transform_2, window_bounds = array<i64: 1, 64>}, {pipeline_mode = #tpu.pipeline_mode<synchronous>, transform_indices = @transform_3, window_bounds = array<i64: 32, 40>}, {pipeline_mode = #tpu.pipeline_mode<synchronous>, transform_indices = @transform_4, window_bounds = array<i64: 1, 40>}, {pipeline_mode = #tpu.pipeline_mode<synchronous>, transform_indices = @transform_5, window_bounds = array<i64: 8, 32, 32>}, {pipeline_mode = #tpu.pipeline_mode<synchronous>, transform_indices = @transform_6, window_bounds = array<i64: 8, 32>}, {pipeline_mode = #tpu.pipeline_mode<synchronous>, transform_indices = @transform_7, window_bounds = array<i64: 32, 128>}, {pipeline_mode = #tpu.pipeline_mode<synchronous>, transform_indices = @transform_8, window_bounds = array<i64: 1, 128>}, {pipeline_mode = #tpu.pipeline_mode<synchronous>, transform_indices = @transform_9, window_bounds = array<i64: 64, 8>}, {pipeline_mode = #tpu.pipeline_mode<synchronous>, transform_indices = @transform_10, window_bounds = array<i64: 8, 8>}, {transform_indices = @transform_11, window_bounds = array<i64: 8, 128>}]} {
    %c0 = arith.constant 0 : index
    %c0_0 = arith.constant 0 : index
    %c0_1 = arith.constant 0 : index
    %0 = vector.load %arg1[%c0, %c0_0, %c0_1] : memref<8x8x32xf32, #tpu.memory_space<vmem>>, vector<8x8x32xf32>
    %1 = vector.shape_cast %0 : vector<8x8x32xf32> to vector<64x32xf32>
    %2 = vector.extract_strided_slice %0 {offsets = [0, 7, 0], sizes = [8, 1, 32], strides = [1, 1, 1]} : vector<8x8x32xf32> to vector<8x1x32xf32>
    %3 = vector.shape_cast %2 : vector<8x1x32xf32> to vector<8x32xf32>
    %c0_2 = arith.constant 0 : index
    %c0_3 = arith.constant 0 : index
    %4 = vector.load %arg2[%c0_2, %c0_3] : memref<32x64xf32, #tpu.memory_space<vmem>>, vector<32x64xf32>
    %cst = arith.constant dense<0.000000e+00> : vector<64x64xf32>
    %5 = tpu.matmul %1, %4, %cst {dimension_numbers = #tpu.dot_dimension_numbers<[1], [0], [0], [1], [0, 0, 1, 1], [], []>} : vector<64x32xf32>, vector<32x64xf32>, vector<64x64xf32> -> vector<64x64xf32>
    %c0_4 = arith.constant 0 : index
    %c0_5 = arith.constant 0 : index
    %6 = vector.load %arg3[%c0_4, %c0_5] : memref<1x64xf32, #tpu.memory_space<vmem>>, vector<1x64xf32>
    %7 = vector.broadcast %6 : vector<1x64xf32> to vector<64x64xf32>
    %8 = arith.addf %5, %7 : vector<64x64xf32>
    %9 = vector.extract_strided_slice %8 {offsets = [0, 0], sizes = [64, 32], strides = [1, 1]} : vector<64x64xf32> to vector<64x32xf32>
    %10 = vector.shape_cast %9 : vector<64x32xf32> to vector<8x8x32xf32>
    %11 = vector.extract_strided_slice %8 {offsets = [0, 32], sizes = [64, 32], strides = [1, 1]} : vector<64x64xf32> to vector<64x32xf32>
    %12 = vector.shape_cast %11 : vector<64x32xf32> to vector<8x8x32xf32>
    %c0_6 = arith.constant 0 : index
    %c0_7 = arith.constant 0 : index
    %13 = vector.load %arg4[%c0_6, %c0_7] : memref<32x40xf32, #tpu.memory_space<vmem>>, vector<32x40xf32>
    %cst_8 = arith.constant dense<0.000000e+00> : vector<8x40xf32>
    %14 = tpu.matmul %3, %13, %cst_8 {dimension_numbers = #tpu.dot_dimension_numbers<[1], [0], [0], [1], [0, 0, 1, 1], [], []>} : vector<8x32xf32>, vector<32x40xf32>, vector<8x40xf32> -> vector<8x40xf32>
    %c0_9 = arith.constant 0 : index
    %c0_10 = arith.constant 0 : index
    %15 = vector.load %arg5[%c0_9, %c0_10] : memref<1x40xf32, #tpu.memory_space<vmem>>, vector<1x40xf32>
    %16 = vector.broadcast %15 : vector<1x40xf32> to vector<8x40xf32>
    %17 = arith.addf %14, %16 : vector<8x40xf32>
    %18 = vector.extract_strided_slice %17 {offsets = [0, 0], sizes = [8, 32], strides = [1, 1]} : vector<8x40xf32> to vector<8x32xf32>
    %19 = vector.extract_strided_slice %17 {offsets = [0, 32], sizes = [8, 8], strides = [1, 1]} : vector<8x40xf32> to vector<8x8xf32>
    %cst_11 = arith.constant 0.176776692 : f32
    %20 = vector.broadcast %cst_11 : f32 to vector<8x32xf32>
    %21 = arith.mulf %18, %20 : vector<8x32xf32>
    %cst_12 = arith.constant 0.176776692 : f32
    %22 = vector.broadcast %cst_12 : f32 to vector<8x32xf32>
    %23 = arith.mulf %18, %22 : vector<8x32xf32>
    %24 = vector.shape_cast %21 : vector<8x32xf32> to vector<8x1x32xf32>
    %25 = vector.broadcast %24 : vector<8x1x32xf32> to vector<8x8x32xf32>
    %26 = arith.mulf %10, %25 : vector<8x8x32xf32>
    %cst_13 = arith.constant dense<0.000000e+00> : vector<8x8xf32>
    %27 = vector.multi_reduction <add>, %26, %cst_13 [2] : vector<8x8x32xf32> to vector<8x8xf32>
    %cst_14 = arith.constant dense<0xFF800000> : vector<8xf32>
    %28 = vector.multi_reduction <maximumf>, %27, %cst_14 [1] : vector<8x8xf32> to vector<8xf32>
    %29 = vector.shape_cast %28 : vector<8xf32> to vector<8x1xf32>
    %30 = vector.broadcast %29 : vector<8x1xf32> to vector<8x8xf32>
    %31 = arith.subf %27, %30 : vector<8x8xf32>
    %32 = math.exp %31 : vector<8x8xf32>
    %cst_15 = arith.constant dense<0.000000e+00> : vector<8xf32>
    %33 = vector.multi_reduction <add>, %32, %cst_15 [1] : vector<8x8xf32> to vector<8xf32>
    %34 = vector.shape_cast %33 : vector<8xf32> to vector<8x1xf32>
    %35 = tpu.reciprocal %34 {approx = true} : vector<8x1xf32> -> vector<8x1xf32>
    %36 = vector.broadcast %35 : vector<8x1xf32> to vector<8x8xf32>
    %37 = arith.mulf %32, %36 : vector<8x8xf32>
    %38 = vector.shape_cast %37 : vector<8x8xf32> to vector<8x8x1xf32>
    %39 = vector.broadcast %38 : vector<8x8x1xf32> to vector<8x8x32xf32>
    %40 = arith.mulf %39, %12 : vector<8x8x32xf32>
    %cst_16 = arith.constant dense<0.000000e+00> : vector<8x32xf32>
    %41 = vector.multi_reduction <add>, %40, %cst_16 [1] : vector<8x8x32xf32> to vector<8x32xf32>
    %cst_17 = arith.constant dense<0xFF800000> : vector<8xf32>
    %42 = vector.multi_reduction <maximumf>, %19, %cst_17 [1] : vector<8x8xf32> to vector<8xf32>
    %43 = vector.shape_cast %42 : vector<8xf32> to vector<8x1xf32>
    %44 = vector.broadcast %43 : vector<8x1xf32> to vector<8x8xf32>
    %45 = arith.subf %19, %44 : vector<8x8xf32>
    %46 = math.exp %45 : vector<8x8xf32>
    %cst_18 = arith.constant dense<0.000000e+00> : vector<8xf32>
    %47 = vector.multi_reduction <add>, %46, %cst_18 [1] : vector<8x8xf32> to vector<8xf32>
    %48 = vector.shape_cast %47 : vector<8xf32> to vector<8x1xf32>
    %49 = vector.broadcast %48 : vector<8x1xf32> to vector<8x8xf32>
    %50 = arith.divf %46, %49 : vector<8x8xf32>
    %c0_19 = arith.constant 0 : index
    %c0_20 = arith.constant 0 : index
    %51 = vector.load %arg10[%c0_19, %c0_20] : memref<64x8xf32, #tpu.memory_space<vmem>>, vector<64x8xf32>
    %52 = vector.extract_strided_slice %51 {offsets = [0, 0], sizes = [64, 1], strides = [1, 1]} : vector<64x8xf32> to vector<64x1xf32>
    %53 = vector.shape_cast %52 : vector<64x1xf32> to vector<1x64x1xf32>
    %54 = vector.extract_strided_slice %0 {offsets = [0, 0, 0], sizes = [8, 1, 32], strides = [1, 1, 1]} : vector<8x8x32xf32> to vector<8x1x32xf32>
    %55 = vector.broadcast %53 : vector<1x64x1xf32> to vector<8x64x32xf32>
    %56 = vector.broadcast %54 : vector<8x1x32xf32> to vector<8x64x32xf32>
    %57 = arith.mulf %55, %56 : vector<8x64x32xf32>
    %58 = vector.extract_strided_slice %51 {offsets = [0, 1], sizes = [64, 1], strides = [1, 1]} : vector<64x8xf32> to vector<64x1xf32>
    %59 = vector.shape_cast %58 : vector<64x1xf32> to vector<1x64x1xf32>
    %60 = vector.extract_strided_slice %0 {offsets = [0, 1, 0], sizes = [8, 1, 32], strides = [1, 1, 1]} : vector<8x8x32xf32> to vector<8x1x32xf32>
    %61 = vector.broadcast %59 : vector<1x64x1xf32> to vector<8x64x32xf32>
    %62 = vector.broadcast %60 : vector<8x1x32xf32> to vector<8x64x32xf32>
    %63 = arith.mulf %61, %62 : vector<8x64x32xf32>
    %64 = arith.addf %57, %63 : vector<8x64x32xf32>
    %65 = vector.extract_strided_slice %51 {offsets = [0, 2], sizes = [64, 1], strides = [1, 1]} : vector<64x8xf32> to vector<64x1xf32>
    %66 = vector.shape_cast %65 : vector<64x1xf32> to vector<1x64x1xf32>
    %67 = vector.extract_strided_slice %0 {offsets = [0, 2, 0], sizes = [8, 1, 32], strides = [1, 1, 1]} : vector<8x8x32xf32> to vector<8x1x32xf32>
    %68 = vector.broadcast %66 : vector<1x64x1xf32> to vector<8x64x32xf32>
    %69 = vector.broadcast %67 : vector<8x1x32xf32> to vector<8x64x32xf32>
    %70 = arith.mulf %68, %69 : vector<8x64x32xf32>
    %71 = arith.addf %64, %70 : vector<8x64x32xf32>
    %72 = vector.extract_strided_slice %51 {offsets = [0, 3], sizes = [64, 1], strides = [1, 1]} : vector<64x8xf32> to vector<64x1xf32>
    %73 = vector.shape_cast %72 : vector<64x1xf32> to vector<1x64x1xf32>
    %74 = vector.extract_strided_slice %0 {offsets = [0, 3, 0], sizes = [8, 1, 32], strides = [1, 1, 1]} : vector<8x8x32xf32> to vector<8x1x32xf32>
    %75 = vector.broadcast %73 : vector<1x64x1xf32> to vector<8x64x32xf32>
    %76 = vector.broadcast %74 : vector<8x1x32xf32> to vector<8x64x32xf32>
    %77 = arith.mulf %75, %76 : vector<8x64x32xf32>
    %78 = arith.addf %71, %77 : vector<8x64x32xf32>
    %79 = vector.extract_strided_slice %51 {offsets = [0, 4], sizes = [64, 1], strides = [1, 1]} : vector<64x8xf32> to vector<64x1xf32>
    %80 = vector.shape_cast %79 : vector<64x1xf32> to vector<1x64x1xf32>
    %81 = vector.extract_strided_slice %0 {offsets = [0, 4, 0], sizes = [8, 1, 32], strides = [1, 1, 1]} : vector<8x8x32xf32> to vector<8x1x32xf32>
    %82 = vector.broadcast %80 : vector<1x64x1xf32> to vector<8x64x32xf32>
    %83 = vector.broadcast %81 : vector<8x1x32xf32> to vector<8x64x32xf32>
    %84 = arith.mulf %82, %83 : vector<8x64x32xf32>
    %85 = arith.addf %78, %84 : vector<8x64x32xf32>
    %86 = vector.extract_strided_slice %51 {offsets = [0, 5], sizes = [64, 1], strides = [1, 1]} : vector<64x8xf32> to vector<64x1xf32>
    %87 = vector.shape_cast %86 : vector<64x1xf32> to vector<1x64x1xf32>
    %88 = vector.extract_strided_slice %0 {offsets = [0, 5, 0], sizes = [8, 1, 32], strides = [1, 1, 1]} : vector<8x8x32xf32> to vector<8x1x32xf32>
    %89 = vector.broadcast %87 : vector<1x64x1xf32> to vector<8x64x32xf32>
    %90 = vector.broadcast %88 : vector<8x1x32xf32> to vector<8x64x32xf32>
    %91 = arith.mulf %89, %90 : vector<8x64x32xf32>
    %92 = arith.addf %85, %91 : vector<8x64x32xf32>
    %93 = vector.extract_strided_slice %51 {offsets = [0, 6], sizes = [64, 1], strides = [1, 1]} : vector<64x8xf32> to vector<64x1xf32>
    %94 = vector.shape_cast %93 : vector<64x1xf32> to vector<1x64x1xf32>
    %95 = vector.extract_strided_slice %0 {offsets = [0, 6, 0], sizes = [8, 1, 32], strides = [1, 1, 1]} : vector<8x8x32xf32> to vector<8x1x32xf32>
    %96 = vector.broadcast %94 : vector<1x64x1xf32> to vector<8x64x32xf32>
    %97 = vector.broadcast %95 : vector<8x1x32xf32> to vector<8x64x32xf32>
    %98 = arith.mulf %96, %97 : vector<8x64x32xf32>
    %99 = arith.addf %92, %98 : vector<8x64x32xf32>
    %100 = vector.extract_strided_slice %51 {offsets = [0, 7], sizes = [64, 1], strides = [1, 1]} : vector<64x8xf32> to vector<64x1xf32>
    %101 = vector.shape_cast %100 : vector<64x1xf32> to vector<1x64x1xf32>
    %102 = vector.extract_strided_slice %0 {offsets = [0, 7, 0], sizes = [8, 1, 32], strides = [1, 1, 1]} : vector<8x8x32xf32> to vector<8x1x32xf32>
    %103 = vector.broadcast %101 : vector<1x64x1xf32> to vector<8x64x32xf32>
    %104 = vector.broadcast %102 : vector<8x1x32xf32> to vector<8x64x32xf32>
    %105 = arith.mulf %103, %104 : vector<8x64x32xf32>
    %106 = arith.addf %99, %105 : vector<8x64x32xf32>
    %c0_21 = arith.constant 0 : index
    %c0_22 = arith.constant 0 : index
    %107 = vector.load %arg11[%c0_21, %c0_22] : memref<8x8xf32, #tpu.memory_space<vmem>>, vector<8x8xf32>
    %cst_23 = arith.constant 0.000000e+00 : f32
    %108 = vector.broadcast %cst_23 : f32 to vector<8x32xf32>
    %109 = vector.extract_strided_slice %106 {offsets = [0, 0, 0], sizes = [8, 8, 32], strides = [1, 1, 1]} : vector<8x64x32xf32> to vector<8x8x32xf32>
    %110 = vector.shape_cast %109 : vector<8x8x32xf32> to vector<64x32xf32>
    %c0_24 = arith.constant 0 : index
    %c0_25 = arith.constant 0 : index
    %c0_26 = arith.constant 0 : index
    %111 = vector.load %arg6[%c0_24, %c0_25, %c0_26] : memref<8x32x32xf32, #tpu.memory_space<vmem>>, vector<1x32x32xf32>
    %112 = vector.shape_cast %111 : vector<1x32x32xf32> to vector<32x32xf32>
    %cst_27 = arith.constant dense<0.000000e+00> : vector<64x32xf32>
    %113 = tpu.matmul %110, %112, %cst_27 {dimension_numbers = #tpu.dot_dimension_numbers<[1], [0], [0], [1], [0, 0, 1, 1], [], []>} : vector<64x32xf32>, vector<32x32xf32>, vector<64x32xf32> -> vector<64x32xf32>
    %c0_28 = arith.constant 0 : index
    %c0_29 = arith.constant 0 : index
    %114 = vector.load %arg7[%c0_28, %c0_29] : memref<8x32xf32, #tpu.memory_space<vmem>>, vector<1x32xf32>
    %115 = vector.broadcast %114 : vector<1x32xf32> to vector<64x32xf32>
    %116 = arith.addf %113, %115 : vector<64x32xf32>
    %117 = math.tanh %116 : vector<64x32xf32>
    %118 = vector.shape_cast %117 : vector<64x32xf32> to vector<8x8x32xf32>
    %119 = vector.shape_cast %23 : vector<8x32xf32> to vector<8x1x32xf32>
    %120 = vector.broadcast %119 : vector<8x1x32xf32> to vector<8x8x32xf32>
    %121 = arith.mulf %118, %120 : vector<8x8x32xf32>
    %cst_30 = arith.constant dense<0.000000e+00> : vector<8x8xf32>
    %122 = vector.multi_reduction <add>, %121, %cst_30 [2] : vector<8x8x32xf32> to vector<8x8xf32>
    %123 = vector.extract_strided_slice %107 {offsets = [0, 0], sizes = [1, 8], strides = [1, 1]} : vector<8x8xf32> to vector<1x8xf32>
    %124 = vector.broadcast %123 : vector<1x8xf32> to vector<8x8xf32>
    %125 = arith.addf %122, %124 : vector<8x8xf32>
    %cst_31 = arith.constant dense<0xFF800000> : vector<8xf32>
    %126 = vector.multi_reduction <maximumf>, %125, %cst_31 [1] : vector<8x8xf32> to vector<8xf32>
    %127 = vector.shape_cast %126 : vector<8xf32> to vector<8x1xf32>
    %128 = vector.broadcast %127 : vector<8x1xf32> to vector<8x8xf32>
    %129 = arith.subf %125, %128 : vector<8x8xf32>
    %130 = math.exp %129 : vector<8x8xf32>
    %cst_32 = arith.constant dense<0.000000e+00> : vector<8xf32>
    %131 = vector.multi_reduction <add>, %130, %cst_32 [1] : vector<8x8xf32> to vector<8xf32>
    %132 = vector.shape_cast %131 : vector<8xf32> to vector<8x1xf32>
    %133 = tpu.reciprocal %132 {approx = true} : vector<8x1xf32> -> vector<8x1xf32>
    %134 = vector.broadcast %133 : vector<8x1xf32> to vector<8x8xf32>
    %135 = arith.mulf %130, %134 : vector<8x8xf32>
    %136 = vector.shape_cast %135 : vector<8x8xf32> to vector<8x8x1xf32>
    %137 = vector.broadcast %136 : vector<8x8x1xf32> to vector<8x8x32xf32>
    %138 = arith.mulf %137, %118 : vector<8x8x32xf32>
    %cst_33 = arith.constant dense<0.000000e+00> : vector<8x32xf32>
    %139 = vector.multi_reduction <add>, %138, %cst_33 [1] : vector<8x8x32xf32> to vector<8x32xf32>
    %140 = vector.extract_strided_slice %50 {offsets = [0, 0], sizes = [8, 1], strides = [1, 1]} : vector<8x8xf32> to vector<8x1xf32>
    %141 = vector.broadcast %140 : vector<8x1xf32> to vector<8x32xf32>
    %142 = arith.mulf %141, %139 : vector<8x32xf32>
    %143 = arith.addf %108, %142 : vector<8x32xf32>
    %144 = vector.extract_strided_slice %106 {offsets = [0, 8, 0], sizes = [8, 8, 32], strides = [1, 1, 1]} : vector<8x64x32xf32> to vector<8x8x32xf32>
    %145 = vector.shape_cast %144 : vector<8x8x32xf32> to vector<64x32xf32>
    %c1 = arith.constant 1 : index
    %c0_34 = arith.constant 0 : index
    %c0_35 = arith.constant 0 : index
    %146 = vector.load %arg6[%c1, %c0_34, %c0_35] : memref<8x32x32xf32, #tpu.memory_space<vmem>>, vector<1x32x32xf32>
    %147 = vector.shape_cast %146 : vector<1x32x32xf32> to vector<32x32xf32>
    %cst_36 = arith.constant dense<0.000000e+00> : vector<64x32xf32>
    %148 = tpu.matmul %145, %147, %cst_36 {dimension_numbers = #tpu.dot_dimension_numbers<[1], [0], [0], [1], [0, 0, 1, 1], [], []>} : vector<64x32xf32>, vector<32x32xf32>, vector<64x32xf32> -> vector<64x32xf32>
    %c1_37 = arith.constant 1 : index
    %c0_38 = arith.constant 0 : index
    %149 = vector.load %arg7[%c1_37, %c0_38] : memref<8x32xf32, #tpu.memory_space<vmem>>, vector<1x32xf32>
    %150 = vector.broadcast %149 : vector<1x32xf32> to vector<64x32xf32>
    %151 = arith.addf %148, %150 : vector<64x32xf32>
    %152 = math.tanh %151 : vector<64x32xf32>
    %153 = vector.shape_cast %152 : vector<64x32xf32> to vector<8x8x32xf32>
    %154 = vector.shape_cast %23 : vector<8x32xf32> to vector<8x1x32xf32>
    %155 = vector.broadcast %154 : vector<8x1x32xf32> to vector<8x8x32xf32>
    %156 = arith.mulf %153, %155 : vector<8x8x32xf32>
    %cst_39 = arith.constant dense<0.000000e+00> : vector<8x8xf32>
    %157 = vector.multi_reduction <add>, %156, %cst_39 [2] : vector<8x8x32xf32> to vector<8x8xf32>
    %158 = vector.extract_strided_slice %107 {offsets = [1, 0], sizes = [1, 8], strides = [1, 1]} : vector<8x8xf32> to vector<1x8xf32>
    %159 = vector.broadcast %158 : vector<1x8xf32> to vector<8x8xf32>
    %160 = arith.addf %157, %159 : vector<8x8xf32>
    %cst_40 = arith.constant dense<0xFF800000> : vector<8xf32>
    %161 = vector.multi_reduction <maximumf>, %160, %cst_40 [1] : vector<8x8xf32> to vector<8xf32>
    %162 = vector.shape_cast %161 : vector<8xf32> to vector<8x1xf32>
    %163 = vector.broadcast %162 : vector<8x1xf32> to vector<8x8xf32>
    %164 = arith.subf %160, %163 : vector<8x8xf32>
    %165 = math.exp %164 : vector<8x8xf32>
    %cst_41 = arith.constant dense<0.000000e+00> : vector<8xf32>
    %166 = vector.multi_reduction <add>, %165, %cst_41 [1] : vector<8x8xf32> to vector<8xf32>
    %167 = vector.shape_cast %166 : vector<8xf32> to vector<8x1xf32>
    %168 = tpu.reciprocal %167 {approx = true} : vector<8x1xf32> -> vector<8x1xf32>
    %169 = vector.broadcast %168 : vector<8x1xf32> to vector<8x8xf32>
    %170 = arith.mulf %165, %169 : vector<8x8xf32>
    %171 = vector.shape_cast %170 : vector<8x8xf32> to vector<8x8x1xf32>
    %172 = vector.broadcast %171 : vector<8x8x1xf32> to vector<8x8x32xf32>
    %173 = arith.mulf %172, %153 : vector<8x8x32xf32>
    %cst_42 = arith.constant dense<0.000000e+00> : vector<8x32xf32>
    %174 = vector.multi_reduction <add>, %173, %cst_42 [1] : vector<8x8x32xf32> to vector<8x32xf32>
    %175 = vector.extract_strided_slice %50 {offsets = [0, 1], sizes = [8, 1], strides = [1, 1]} : vector<8x8xf32> to vector<8x1xf32>
    %176 = vector.broadcast %175 : vector<8x1xf32> to vector<8x32xf32>
    %177 = arith.mulf %176, %174 : vector<8x32xf32>
    %178 = arith.addf %143, %177 : vector<8x32xf32>
    %179 = vector.extract_strided_slice %106 {offsets = [0, 16, 0], sizes = [8, 8, 32], strides = [1, 1, 1]} : vector<8x64x32xf32> to vector<8x8x32xf32>
    %180 = vector.shape_cast %179 : vector<8x8x32xf32> to vector<64x32xf32>
    %c2 = arith.constant 2 : index
    %c0_43 = arith.constant 0 : index
    %c0_44 = arith.constant 0 : index
    %181 = vector.load %arg6[%c2, %c0_43, %c0_44] : memref<8x32x32xf32, #tpu.memory_space<vmem>>, vector<1x32x32xf32>
    %182 = vector.shape_cast %181 : vector<1x32x32xf32> to vector<32x32xf32>
    %cst_45 = arith.constant dense<0.000000e+00> : vector<64x32xf32>
    %183 = tpu.matmul %180, %182, %cst_45 {dimension_numbers = #tpu.dot_dimension_numbers<[1], [0], [0], [1], [0, 0, 1, 1], [], []>} : vector<64x32xf32>, vector<32x32xf32>, vector<64x32xf32> -> vector<64x32xf32>
    %c2_46 = arith.constant 2 : index
    %c0_47 = arith.constant 0 : index
    %184 = vector.load %arg7[%c2_46, %c0_47] : memref<8x32xf32, #tpu.memory_space<vmem>>, vector<1x32xf32>
    %185 = vector.broadcast %184 : vector<1x32xf32> to vector<64x32xf32>
    %186 = arith.addf %183, %185 : vector<64x32xf32>
    %187 = math.tanh %186 : vector<64x32xf32>
    %188 = vector.shape_cast %187 : vector<64x32xf32> to vector<8x8x32xf32>
    %189 = vector.shape_cast %23 : vector<8x32xf32> to vector<8x1x32xf32>
    %190 = vector.broadcast %189 : vector<8x1x32xf32> to vector<8x8x32xf32>
    %191 = arith.mulf %188, %190 : vector<8x8x32xf32>
    %cst_48 = arith.constant dense<0.000000e+00> : vector<8x8xf32>
    %192 = vector.multi_reduction <add>, %191, %cst_48 [2] : vector<8x8x32xf32> to vector<8x8xf32>
    %193 = vector.extract_strided_slice %107 {offsets = [2, 0], sizes = [1, 8], strides = [1, 1]} : vector<8x8xf32> to vector<1x8xf32>
    %194 = vector.broadcast %193 : vector<1x8xf32> to vector<8x8xf32>
    %195 = arith.addf %192, %194 : vector<8x8xf32>
    %cst_49 = arith.constant dense<0xFF800000> : vector<8xf32>
    %196 = vector.multi_reduction <maximumf>, %195, %cst_49 [1] : vector<8x8xf32> to vector<8xf32>
    %197 = vector.shape_cast %196 : vector<8xf32> to vector<8x1xf32>
    %198 = vector.broadcast %197 : vector<8x1xf32> to vector<8x8xf32>
    %199 = arith.subf %195, %198 : vector<8x8xf32>
    %200 = math.exp %199 : vector<8x8xf32>
    %cst_50 = arith.constant dense<0.000000e+00> : vector<8xf32>
    %201 = vector.multi_reduction <add>, %200, %cst_50 [1] : vector<8x8xf32> to vector<8xf32>
    %202 = vector.shape_cast %201 : vector<8xf32> to vector<8x1xf32>
    %203 = tpu.reciprocal %202 {approx = true} : vector<8x1xf32> -> vector<8x1xf32>
    %204 = vector.broadcast %203 : vector<8x1xf32> to vector<8x8xf32>
    %205 = arith.mulf %200, %204 : vector<8x8xf32>
    %206 = vector.shape_cast %205 : vector<8x8xf32> to vector<8x8x1xf32>
    %207 = vector.broadcast %206 : vector<8x8x1xf32> to vector<8x8x32xf32>
    %208 = arith.mulf %207, %188 : vector<8x8x32xf32>
    %cst_51 = arith.constant dense<0.000000e+00> : vector<8x32xf32>
    %209 = vector.multi_reduction <add>, %208, %cst_51 [1] : vector<8x8x32xf32> to vector<8x32xf32>
    %210 = vector.extract_strided_slice %50 {offsets = [0, 2], sizes = [8, 1], strides = [1, 1]} : vector<8x8xf32> to vector<8x1xf32>
    %211 = vector.broadcast %210 : vector<8x1xf32> to vector<8x32xf32>
    %212 = arith.mulf %211, %209 : vector<8x32xf32>
    %213 = arith.addf %178, %212 : vector<8x32xf32>
    %214 = vector.extract_strided_slice %106 {offsets = [0, 24, 0], sizes = [8, 8, 32], strides = [1, 1, 1]} : vector<8x64x32xf32> to vector<8x8x32xf32>
    %215 = vector.shape_cast %214 : vector<8x8x32xf32> to vector<64x32xf32>
    %c3 = arith.constant 3 : index
    %c0_52 = arith.constant 0 : index
    %c0_53 = arith.constant 0 : index
    %216 = vector.load %arg6[%c3, %c0_52, %c0_53] : memref<8x32x32xf32, #tpu.memory_space<vmem>>, vector<1x32x32xf32>
    %217 = vector.shape_cast %216 : vector<1x32x32xf32> to vector<32x32xf32>
    %cst_54 = arith.constant dense<0.000000e+00> : vector<64x32xf32>
    %218 = tpu.matmul %215, %217, %cst_54 {dimension_numbers = #tpu.dot_dimension_numbers<[1], [0], [0], [1], [0, 0, 1, 1], [], []>} : vector<64x32xf32>, vector<32x32xf32>, vector<64x32xf32> -> vector<64x32xf32>
    %c3_55 = arith.constant 3 : index
    %c0_56 = arith.constant 0 : index
    %219 = vector.load %arg7[%c3_55, %c0_56] : memref<8x32xf32, #tpu.memory_space<vmem>>, vector<1x32xf32>
    %220 = vector.broadcast %219 : vector<1x32xf32> to vector<64x32xf32>
    %221 = arith.addf %218, %220 : vector<64x32xf32>
    %222 = math.tanh %221 : vector<64x32xf32>
    %223 = vector.shape_cast %222 : vector<64x32xf32> to vector<8x8x32xf32>
    %224 = vector.shape_cast %23 : vector<8x32xf32> to vector<8x1x32xf32>
    %225 = vector.broadcast %224 : vector<8x1x32xf32> to vector<8x8x32xf32>
    %226 = arith.mulf %223, %225 : vector<8x8x32xf32>
    %cst_57 = arith.constant dense<0.000000e+00> : vector<8x8xf32>
    %227 = vector.multi_reduction <add>, %226, %cst_57 [2] : vector<8x8x32xf32> to vector<8x8xf32>
    %228 = vector.extract_strided_slice %107 {offsets = [3, 0], sizes = [1, 8], strides = [1, 1]} : vector<8x8xf32> to vector<1x8xf32>
    %229 = vector.broadcast %228 : vector<1x8xf32> to vector<8x8xf32>
    %230 = arith.addf %227, %229 : vector<8x8xf32>
    %cst_58 = arith.constant dense<0xFF800000> : vector<8xf32>
    %231 = vector.multi_reduction <maximumf>, %230, %cst_58 [1] : vector<8x8xf32> to vector<8xf32>
    %232 = vector.shape_cast %231 : vector<8xf32> to vector<8x1xf32>
    %233 = vector.broadcast %232 : vector<8x1xf32> to vector<8x8xf32>
    %234 = arith.subf %230, %233 : vector<8x8xf32>
    %235 = math.exp %234 : vector<8x8xf32>
    %cst_59 = arith.constant dense<0.000000e+00> : vector<8xf32>
    %236 = vector.multi_reduction <add>, %235, %cst_59 [1] : vector<8x8xf32> to vector<8xf32>
    %237 = vector.shape_cast %236 : vector<8xf32> to vector<8x1xf32>
    %238 = tpu.reciprocal %237 {approx = true} : vector<8x1xf32> -> vector<8x1xf32>
    %239 = vector.broadcast %238 : vector<8x1xf32> to vector<8x8xf32>
    %240 = arith.mulf %235, %239 : vector<8x8xf32>
    %241 = vector.shape_cast %240 : vector<8x8xf32> to vector<8x8x1xf32>
    %242 = vector.broadcast %241 : vector<8x8x1xf32> to vector<8x8x32xf32>
    %243 = arith.mulf %242, %223 : vector<8x8x32xf32>
    %cst_60 = arith.constant dense<0.000000e+00> : vector<8x32xf32>
    %244 = vector.multi_reduction <add>, %243, %cst_60 [1] : vector<8x8x32xf32> to vector<8x32xf32>
    %245 = vector.extract_strided_slice %50 {offsets = [0, 3], sizes = [8, 1], strides = [1, 1]} : vector<8x8xf32> to vector<8x1xf32>
    %246 = vector.broadcast %245 : vector<8x1xf32> to vector<8x32xf32>
    %247 = arith.mulf %246, %244 : vector<8x32xf32>
    %248 = arith.addf %213, %247 : vector<8x32xf32>
    %249 = vector.extract_strided_slice %106 {offsets = [0, 32, 0], sizes = [8, 8, 32], strides = [1, 1, 1]} : vector<8x64x32xf32> to vector<8x8x32xf32>
    %250 = vector.shape_cast %249 : vector<8x8x32xf32> to vector<64x32xf32>
    %c4 = arith.constant 4 : index
    %c0_61 = arith.constant 0 : index
    %c0_62 = arith.constant 0 : index
    %251 = vector.load %arg6[%c4, %c0_61, %c0_62] : memref<8x32x32xf32, #tpu.memory_space<vmem>>, vector<1x32x32xf32>
    %252 = vector.shape_cast %251 : vector<1x32x32xf32> to vector<32x32xf32>
    %cst_63 = arith.constant dense<0.000000e+00> : vector<64x32xf32>
    %253 = tpu.matmul %250, %252, %cst_63 {dimension_numbers = #tpu.dot_dimension_numbers<[1], [0], [0], [1], [0, 0, 1, 1], [], []>} : vector<64x32xf32>, vector<32x32xf32>, vector<64x32xf32> -> vector<64x32xf32>
    %c4_64 = arith.constant 4 : index
    %c0_65 = arith.constant 0 : index
    %254 = vector.load %arg7[%c4_64, %c0_65] : memref<8x32xf32, #tpu.memory_space<vmem>>, vector<1x32xf32>
    %255 = vector.broadcast %254 : vector<1x32xf32> to vector<64x32xf32>
    %256 = arith.addf %253, %255 : vector<64x32xf32>
    %257 = math.tanh %256 : vector<64x32xf32>
    %258 = vector.shape_cast %257 : vector<64x32xf32> to vector<8x8x32xf32>
    %259 = vector.shape_cast %23 : vector<8x32xf32> to vector<8x1x32xf32>
    %260 = vector.broadcast %259 : vector<8x1x32xf32> to vector<8x8x32xf32>
    %261 = arith.mulf %258, %260 : vector<8x8x32xf32>
    %cst_66 = arith.constant dense<0.000000e+00> : vector<8x8xf32>
    %262 = vector.multi_reduction <add>, %261, %cst_66 [2] : vector<8x8x32xf32> to vector<8x8xf32>
    %263 = vector.extract_strided_slice %107 {offsets = [4, 0], sizes = [1, 8], strides = [1, 1]} : vector<8x8xf32> to vector<1x8xf32>
    %264 = vector.broadcast %263 : vector<1x8xf32> to vector<8x8xf32>
    %265 = arith.addf %262, %264 : vector<8x8xf32>
    %cst_67 = arith.constant dense<0xFF800000> : vector<8xf32>
    %266 = vector.multi_reduction <maximumf>, %265, %cst_67 [1] : vector<8x8xf32> to vector<8xf32>
    %267 = vector.shape_cast %266 : vector<8xf32> to vector<8x1xf32>
    %268 = vector.broadcast %267 : vector<8x1xf32> to vector<8x8xf32>
    %269 = arith.subf %265, %268 : vector<8x8xf32>
    %270 = math.exp %269 : vector<8x8xf32>
    %cst_68 = arith.constant dense<0.000000e+00> : vector<8xf32>
    %271 = vector.multi_reduction <add>, %270, %cst_68 [1] : vector<8x8xf32> to vector<8xf32>
    %272 = vector.shape_cast %271 : vector<8xf32> to vector<8x1xf32>
    %273 = tpu.reciprocal %272 {approx = true} : vector<8x1xf32> -> vector<8x1xf32>
    %274 = vector.broadcast %273 : vector<8x1xf32> to vector<8x8xf32>
    %275 = arith.mulf %270, %274 : vector<8x8xf32>
    %276 = vector.shape_cast %275 : vector<8x8xf32> to vector<8x8x1xf32>
    %277 = vector.broadcast %276 : vector<8x8x1xf32> to vector<8x8x32xf32>
    %278 = arith.mulf %277, %258 : vector<8x8x32xf32>
    %cst_69 = arith.constant dense<0.000000e+00> : vector<8x32xf32>
    %279 = vector.multi_reduction <add>, %278, %cst_69 [1] : vector<8x8x32xf32> to vector<8x32xf32>
    %280 = vector.extract_strided_slice %50 {offsets = [0, 4], sizes = [8, 1], strides = [1, 1]} : vector<8x8xf32> to vector<8x1xf32>
    %281 = vector.broadcast %280 : vector<8x1xf32> to vector<8x32xf32>
    %282 = arith.mulf %281, %279 : vector<8x32xf32>
    %283 = arith.addf %248, %282 : vector<8x32xf32>
    %284 = vector.extract_strided_slice %106 {offsets = [0, 40, 0], sizes = [8, 8, 32], strides = [1, 1, 1]} : vector<8x64x32xf32> to vector<8x8x32xf32>
    %285 = vector.shape_cast %284 : vector<8x8x32xf32> to vector<64x32xf32>
    %c5 = arith.constant 5 : index
    %c0_70 = arith.constant 0 : index
    %c0_71 = arith.constant 0 : index
    %286 = vector.load %arg6[%c5, %c0_70, %c0_71] : memref<8x32x32xf32, #tpu.memory_space<vmem>>, vector<1x32x32xf32>
    %287 = vector.shape_cast %286 : vector<1x32x32xf32> to vector<32x32xf32>
    %cst_72 = arith.constant dense<0.000000e+00> : vector<64x32xf32>
    %288 = tpu.matmul %285, %287, %cst_72 {dimension_numbers = #tpu.dot_dimension_numbers<[1], [0], [0], [1], [0, 0, 1, 1], [], []>} : vector<64x32xf32>, vector<32x32xf32>, vector<64x32xf32> -> vector<64x32xf32>
    %c5_73 = arith.constant 5 : index
    %c0_74 = arith.constant 0 : index
    %289 = vector.load %arg7[%c5_73, %c0_74] : memref<8x32xf32, #tpu.memory_space<vmem>>, vector<1x32xf32>
    %290 = vector.broadcast %289 : vector<1x32xf32> to vector<64x32xf32>
    %291 = arith.addf %288, %290 : vector<64x32xf32>
    %292 = math.tanh %291 : vector<64x32xf32>
    %293 = vector.shape_cast %292 : vector<64x32xf32> to vector<8x8x32xf32>
    %294 = vector.shape_cast %23 : vector<8x32xf32> to vector<8x1x32xf32>
    %295 = vector.broadcast %294 : vector<8x1x32xf32> to vector<8x8x32xf32>
    %296 = arith.mulf %293, %295 : vector<8x8x32xf32>
    %cst_75 = arith.constant dense<0.000000e+00> : vector<8x8xf32>
    %297 = vector.multi_reduction <add>, %296, %cst_75 [2] : vector<8x8x32xf32> to vector<8x8xf32>
    %298 = vector.extract_strided_slice %107 {offsets = [5, 0], sizes = [1, 8], strides = [1, 1]} : vector<8x8xf32> to vector<1x8xf32>
    %299 = vector.broadcast %298 : vector<1x8xf32> to vector<8x8xf32>
    %300 = arith.addf %297, %299 : vector<8x8xf32>
    %cst_76 = arith.constant dense<0xFF800000> : vector<8xf32>
    %301 = vector.multi_reduction <maximumf>, %300, %cst_76 [1] : vector<8x8xf32> to vector<8xf32>
    %302 = vector.shape_cast %301 : vector<8xf32> to vector<8x1xf32>
    %303 = vector.broadcast %302 : vector<8x1xf32> to vector<8x8xf32>
    %304 = arith.subf %300, %303 : vector<8x8xf32>
    %305 = math.exp %304 : vector<8x8xf32>
    %cst_77 = arith.constant dense<0.000000e+00> : vector<8xf32>
    %306 = vector.multi_reduction <add>, %305, %cst_77 [1] : vector<8x8xf32> to vector<8xf32>
    %307 = vector.shape_cast %306 : vector<8xf32> to vector<8x1xf32>
    %308 = tpu.reciprocal %307 {approx = true} : vector<8x1xf32> -> vector<8x1xf32>
    %309 = vector.broadcast %308 : vector<8x1xf32> to vector<8x8xf32>
    %310 = arith.mulf %305, %309 : vector<8x8xf32>
    %311 = vector.shape_cast %310 : vector<8x8xf32> to vector<8x8x1xf32>
    %312 = vector.broadcast %311 : vector<8x8x1xf32> to vector<8x8x32xf32>
    %313 = arith.mulf %312, %293 : vector<8x8x32xf32>
    %cst_78 = arith.constant dense<0.000000e+00> : vector<8x32xf32>
    %314 = vector.multi_reduction <add>, %313, %cst_78 [1] : vector<8x8x32xf32> to vector<8x32xf32>
    %315 = vector.extract_strided_slice %50 {offsets = [0, 5], sizes = [8, 1], strides = [1, 1]} : vector<8x8xf32> to vector<8x1xf32>
    %316 = vector.broadcast %315 : vector<8x1xf32> to vector<8x32xf32>
    %317 = arith.mulf %316, %314 : vector<8x32xf32>
    %318 = arith.addf %283, %317 : vector<8x32xf32>
    %319 = vector.extract_strided_slice %106 {offsets = [0, 48, 0], sizes = [8, 8, 32], strides = [1, 1, 1]} : vector<8x64x32xf32> to vector<8x8x32xf32>
    %320 = vector.shape_cast %319 : vector<8x8x32xf32> to vector<64x32xf32>
    %c6 = arith.constant 6 : index
    %c0_79 = arith.constant 0 : index
    %c0_80 = arith.constant 0 : index
    %321 = vector.load %arg6[%c6, %c0_79, %c0_80] : memref<8x32x32xf32, #tpu.memory_space<vmem>>, vector<1x32x32xf32>
    %322 = vector.shape_cast %321 : vector<1x32x32xf32> to vector<32x32xf32>
    %cst_81 = arith.constant dense<0.000000e+00> : vector<64x32xf32>
    %323 = tpu.matmul %320, %322, %cst_81 {dimension_numbers = #tpu.dot_dimension_numbers<[1], [0], [0], [1], [0, 0, 1, 1], [], []>} : vector<64x32xf32>, vector<32x32xf32>, vector<64x32xf32> -> vector<64x32xf32>
    %c6_82 = arith.constant 6 : index
    %c0_83 = arith.constant 0 : index
    %324 = vector.load %arg7[%c6_82, %c0_83] : memref<8x32xf32, #tpu.memory_space<vmem>>, vector<1x32xf32>
    %325 = vector.broadcast %324 : vector<1x32xf32> to vector<64x32xf32>
    %326 = arith.addf %323, %325 : vector<64x32xf32>
    %327 = math.tanh %326 : vector<64x32xf32>
    %328 = vector.shape_cast %327 : vector<64x32xf32> to vector<8x8x32xf32>
    %329 = vector.shape_cast %23 : vector<8x32xf32> to vector<8x1x32xf32>
    %330 = vector.broadcast %329 : vector<8x1x32xf32> to vector<8x8x32xf32>
    %331 = arith.mulf %328, %330 : vector<8x8x32xf32>
    %cst_84 = arith.constant dense<0.000000e+00> : vector<8x8xf32>
    %332 = vector.multi_reduction <add>, %331, %cst_84 [2] : vector<8x8x32xf32> to vector<8x8xf32>
    %333 = vector.extract_strided_slice %107 {offsets = [6, 0], sizes = [1, 8], strides = [1, 1]} : vector<8x8xf32> to vector<1x8xf32>
    %334 = vector.broadcast %333 : vector<1x8xf32> to vector<8x8xf32>
    %335 = arith.addf %332, %334 : vector<8x8xf32>
    %cst_85 = arith.constant dense<0xFF800000> : vector<8xf32>
    %336 = vector.multi_reduction <maximumf>, %335, %cst_85 [1] : vector<8x8xf32> to vector<8xf32>
    %337 = vector.shape_cast %336 : vector<8xf32> to vector<8x1xf32>
    %338 = vector.broadcast %337 : vector<8x1xf32> to vector<8x8xf32>
    %339 = arith.subf %335, %338 : vector<8x8xf32>
    %340 = math.exp %339 : vector<8x8xf32>
    %cst_86 = arith.constant dense<0.000000e+00> : vector<8xf32>
    %341 = vector.multi_reduction <add>, %340, %cst_86 [1] : vector<8x8xf32> to vector<8xf32>
    %342 = vector.shape_cast %341 : vector<8xf32> to vector<8x1xf32>
    %343 = tpu.reciprocal %342 {approx = true} : vector<8x1xf32> -> vector<8x1xf32>
    %344 = vector.broadcast %343 : vector<8x1xf32> to vector<8x8xf32>
    %345 = arith.mulf %340, %344 : vector<8x8xf32>
    %346 = vector.shape_cast %345 : vector<8x8xf32> to vector<8x8x1xf32>
    %347 = vector.broadcast %346 : vector<8x8x1xf32> to vector<8x8x32xf32>
    %348 = arith.mulf %347, %328 : vector<8x8x32xf32>
    %cst_87 = arith.constant dense<0.000000e+00> : vector<8x32xf32>
    %349 = vector.multi_reduction <add>, %348, %cst_87 [1] : vector<8x8x32xf32> to vector<8x32xf32>
    %350 = vector.extract_strided_slice %50 {offsets = [0, 6], sizes = [8, 1], strides = [1, 1]} : vector<8x8xf32> to vector<8x1xf32>
    %351 = vector.broadcast %350 : vector<8x1xf32> to vector<8x32xf32>
    %352 = arith.mulf %351, %349 : vector<8x32xf32>
    %353 = arith.addf %318, %352 : vector<8x32xf32>
    %354 = vector.extract_strided_slice %106 {offsets = [0, 56, 0], sizes = [8, 8, 32], strides = [1, 1, 1]} : vector<8x64x32xf32> to vector<8x8x32xf32>
    %355 = vector.shape_cast %354 : vector<8x8x32xf32> to vector<64x32xf32>
    %c7 = arith.constant 7 : index
    %c0_88 = arith.constant 0 : index
    %c0_89 = arith.constant 0 : index
    %356 = vector.load %arg6[%c7, %c0_88, %c0_89] : memref<8x32x32xf32, #tpu.memory_space<vmem>>, vector<1x32x32xf32>
    %357 = vector.shape_cast %356 : vector<1x32x32xf32> to vector<32x32xf32>
    %cst_90 = arith.constant dense<0.000000e+00> : vector<64x32xf32>
    %358 = tpu.matmul %355, %357, %cst_90 {dimension_numbers = #tpu.dot_dimension_numbers<[1], [0], [0], [1], [0, 0, 1, 1], [], []>} : vector<64x32xf32>, vector<32x32xf32>, vector<64x32xf32> -> vector<64x32xf32>
    %c7_91 = arith.constant 7 : index
    %c0_92 = arith.constant 0 : index
    %359 = vector.load %arg7[%c7_91, %c0_92] : memref<8x32xf32, #tpu.memory_space<vmem>>, vector<1x32xf32>
    %360 = vector.broadcast %359 : vector<1x32xf32> to vector<64x32xf32>
    %361 = arith.addf %358, %360 : vector<64x32xf32>
    %362 = math.tanh %361 : vector<64x32xf32>
    %363 = vector.shape_cast %362 : vector<64x32xf32> to vector<8x8x32xf32>
    %364 = vector.shape_cast %23 : vector<8x32xf32> to vector<8x1x32xf32>
    %365 = vector.broadcast %364 : vector<8x1x32xf32> to vector<8x8x32xf32>
    %366 = arith.mulf %363, %365 : vector<8x8x32xf32>
    %cst_93 = arith.constant dense<0.000000e+00> : vector<8x8xf32>
    %367 = vector.multi_reduction <add>, %366, %cst_93 [2] : vector<8x8x32xf32> to vector<8x8xf32>
    %368 = vector.extract_strided_slice %107 {offsets = [7, 0], sizes = [1, 8], strides = [1, 1]} : vector<8x8xf32> to vector<1x8xf32>
    %369 = vector.broadcast %368 : vector<1x8xf32> to vector<8x8xf32>
    %370 = arith.addf %367, %369 : vector<8x8xf32>
    %cst_94 = arith.constant dense<0xFF800000> : vector<8xf32>
    %371 = vector.multi_reduction <maximumf>, %370, %cst_94 [1] : vector<8x8xf32> to vector<8xf32>
    %372 = vector.shape_cast %371 : vector<8xf32> to vector<8x1xf32>
    %373 = vector.broadcast %372 : vector<8x1xf32> to vector<8x8xf32>
    %374 = arith.subf %370, %373 : vector<8x8xf32>
    %375 = math.exp %374 : vector<8x8xf32>
    %cst_95 = arith.constant dense<0.000000e+00> : vector<8xf32>
    %376 = vector.multi_reduction <add>, %375, %cst_95 [1] : vector<8x8xf32> to vector<8xf32>
    %377 = vector.shape_cast %376 : vector<8xf32> to vector<8x1xf32>
    %378 = tpu.reciprocal %377 {approx = true} : vector<8x1xf32> -> vector<8x1xf32>
    %379 = vector.broadcast %378 : vector<8x1xf32> to vector<8x8xf32>
    %380 = arith.mulf %375, %379 : vector<8x8xf32>
    %381 = vector.shape_cast %380 : vector<8x8xf32> to vector<8x8x1xf32>
    %382 = vector.broadcast %381 : vector<8x8x1xf32> to vector<8x8x32xf32>
    %383 = arith.mulf %382, %363 : vector<8x8x32xf32>
    %cst_96 = arith.constant dense<0.000000e+00> : vector<8x32xf32>
    %384 = vector.multi_reduction <add>, %383, %cst_96 [1] : vector<8x8x32xf32> to vector<8x32xf32>
    %385 = vector.extract_strided_slice %50 {offsets = [0, 7], sizes = [8, 1], strides = [1, 1]} : vector<8x8xf32> to vector<8x1xf32>
    %386 = vector.broadcast %385 : vector<8x1xf32> to vector<8x32xf32>
    %387 = arith.mulf %386, %384 : vector<8x32xf32>
    %388 = arith.addf %353, %387 : vector<8x32xf32>
    %389 = arith.addf %41, %388 : vector<8x32xf32>
    %c0_97 = arith.constant 0 : index
    %c0_98 = arith.constant 0 : index
    %390 = vector.load %arg8[%c0_97, %c0_98] : memref<32x128xf32, #tpu.memory_space<vmem>>, vector<32x128xf32>
    %cst_99 = arith.constant dense<0.000000e+00> : vector<8x128xf32>
    %391 = tpu.matmul %389, %390, %cst_99 {dimension_numbers = #tpu.dot_dimension_numbers<[1], [0], [0], [1], [0, 0, 1, 1], [], []>} : vector<8x32xf32>, vector<32x128xf32>, vector<8x128xf32> -> vector<8x128xf32>
    %c0_100 = arith.constant 0 : index
    %c0_101 = arith.constant 0 : index
    %392 = vector.load %arg9[%c0_100, %c0_101] : memref<1x128xf32, #tpu.memory_space<vmem>>, vector<1x128xf32>
    %393 = vector.broadcast %392 : vector<1x128xf32> to vector<8x128xf32>
    %394 = arith.addf %391, %393 : vector<8x128xf32>
    %c0_102 = arith.constant 0 : index
    %c0_103 = arith.constant 0 : index
    %395 = vector.load %arg12[%c0_102, %c0_103] : memref<8x128xf32, #tpu.memory_space<vmem>>, vector<8x128xf32>
    tpu.vector_store %arg12[%c0_102, %c0_103], %394 {strides = array<i32>} : memref<8x128xf32, #tpu.memory_space<vmem>>, vector<8x128xf32>,
    return
  }
  func.func @transform_0(%arg0: i32) -> (i32, i32, i32) {
    %c0_i32 = arith.constant 0 : i32
    %c0_i32_0 = arith.constant 0 : i32
    %c0_i32_1 = arith.constant 0 : i32
    return %arg0, %c0_i32, %c0_i32_0 : i32, i32, i32
  }
  func.func @transform_1(%arg0: i32) -> (i32, i32) {
    %c0_i32 = arith.constant 0 : i32
    %c0_i32_0 = arith.constant 0 : i32
    %c0_i32_1 = arith.constant 0 : i32
    return %c0_i32, %c0_i32_0 : i32, i32
  }
  func.func @transform_2(%arg0: i32) -> (i32, i32) {
    %c0_i32 = arith.constant 0 : i32
    %c0_i32_0 = arith.constant 0 : i32
    %c0_i32_1 = arith.constant 0 : i32
    return %c0_i32, %c0_i32_0 : i32, i32
  }
  func.func @transform_3(%arg0: i32) -> (i32, i32) {
    %c0_i32 = arith.constant 0 : i32
    %c0_i32_0 = arith.constant 0 : i32
    %c0_i32_1 = arith.constant 0 : i32
    return %c0_i32, %c0_i32_0 : i32, i32
  }
  func.func @transform_4(%arg0: i32) -> (i32, i32) {
    %c0_i32 = arith.constant 0 : i32
    %c0_i32_0 = arith.constant 0 : i32
    %c0_i32_1 = arith.constant 0 : i32
    return %c0_i32, %c0_i32_0 : i32, i32
  }
  func.func @transform_5(%arg0: i32) -> (i32, i32, i32) {
    %c0_i32 = arith.constant 0 : i32
    %c0_i32_0 = arith.constant 0 : i32
    %c0_i32_1 = arith.constant 0 : i32
    %c0_i32_2 = arith.constant 0 : i32
    return %c0_i32, %c0_i32_0, %c0_i32_1 : i32, i32, i32
  }
  func.func @transform_6(%arg0: i32) -> (i32, i32) {
    %c0_i32 = arith.constant 0 : i32
    %c0_i32_0 = arith.constant 0 : i32
    %c0_i32_1 = arith.constant 0 : i32
    return %c0_i32, %c0_i32_0 : i32, i32
  }
  func.func @transform_7(%arg0: i32) -> (i32, i32) {
    %c0_i32 = arith.constant 0 : i32
    %c0_i32_0 = arith.constant 0 : i32
    %c0_i32_1 = arith.constant 0 : i32
    return %c0_i32, %c0_i32_0 : i32, i32
  }
  func.func @transform_8(%arg0: i32) -> (i32, i32) {
    %c0_i32 = arith.constant 0 : i32
    %c0_i32_0 = arith.constant 0 : i32
    %c0_i32_1 = arith.constant 0 : i32
    return %c0_i32, %c0_i32_0 : i32, i32
  }
  func.func @transform_9(%arg0: i32) -> (i32, i32) {
    %c0_i32 = arith.constant 0 : i32
    %c0_i32_0 = arith.constant 0 : i32
    %c0_i32_1 = arith.constant 0 : i32
    return %c0_i32, %c0_i32_0 : i32, i32
  }
  func.func @transform_10(%arg0: i32) -> (i32, i32) {
    %c0_i32 = arith.constant 0 : i32
    %c0_i32_0 = arith.constant 0 : i32
    %c0_i32_1 = arith.constant 0 : i32
    return %c0_i32, %c0_i32_0 : i32, i32
  }
  func.func @transform_11(%arg0: i32) -> (i32, i32) {
    %c0_i32 = arith.constant 0 : i32
    %c0_i32_0 = arith.constant 0 : i32
    return %arg0, %c0_i32 : i32, i32
  }
}

</mosaic_0001>

<bundles_post_ra>
// kernel: tpu_custom_call.1
= control target key start
LH: loop header
LB: loop body
LE: loop exit
PB: predicated region body
PF: predicated region fallthrough
CT: control target
= control target key end

     0   :  { %s13919_s0 = inlined_call_operand.hbm [shape: f32[16,8,32], index: 0, kind: input, shape index: {}]   ;;  %s13920_s1 = inlined_call_operand.vmem [shape: f32[32,64], index: 1, kind: input, shape index: {}]   ;;  %s13921_s2 = inlined_call_operand.vmem [shape: f32[1,64], index: 2, kind: input, shape index: {}]   ;;  %s13922_s3 = inlined_call_operand.vmem [shape: f32[32,40], index: 3, kind: input, shape index: {}]   ;;  %s13923_s4 = inlined_call_operand.vmem [shape: f32[1,40], index: 4, kind: input, shape index: {}]   ;;  %s13924_s5 = inlined_call_operand.hbm [shape: f32[8,32,32], index: 5, kind: input, shape index: {}]   ;;  %s13925_s6 = inlined_call_operand.hbm [shape: f32[8,32], index: 6, kind: input, shape index: {}]   ;;  %s13926_s7 = inlined_call_operand.vmem [shape: f32[32,128], index: 7, kind: input, shape index: {}]   ;;  %s13927_s8 = inlined_call_operand.hbm [shape: f32[1,128], index: 8, kind: input, shape index: {}]   ;;  %s13928_s9 = inlined_call_operand.vmem [shape: f32[64,8], index: 9, kind: input, shape index: {}]   ;;  %s13929_s10 = inlined_call_operand.vmem [shape: f32[8,8], index: 10, kind: input, shape index: {}]   ;;  %s13930_s11 = inlined_call_operand.hbm [shape: f32[16,128], index: 11, kind: output, shape index: {}]  }
   0x1   :  { %14283 = sst [smem:[#allocation360_spill]] %s13921_s2 }
   0x2   :  { %14284 = sst [smem:[#allocation361_spill]] %s13926_s7 }
   0x3   :  { %14285 = sst [smem:[#allocation362_spill]] %s13930_s11 }
   0x4   :  { %16 = vsyncpa [#allocation3], 0 }
   0x5   :  { %18 = vsyncpa [#allocation3 + $0x1], 0 }
   0x6   :  { %19 = vsyncpa [#allocation6], 0 }
   0x7   :  { %20 = vsyncpa [#allocation9], 0 }
   0x8   :  { %21 = vsyncpa [#allocation4], 0 }
   0x9   :  { %23 = vsyncpa [#allocation4 + $0x1], 0  ;;  %s8845_s17 = smov 0   ;;  %s8847_s18 = smov 0  }
   0xa   :  { %s8849_s19 = smov 0   ;;  %s8851_s20 = smov 0  }
   0xb LB: > { %14286 = sst [smem:[#allocation15_spill]] %s8742_s17  ;;  %s8866_s21 = sadd.s32 4294967295, %s8754_s20   ;;  %s8754_s20 = sphi %s8851_s20, %s15492_s20   ;;  %s8750_s19 = sphi %s8849_s19, %s15491_s19   ;;  %s8746_s18 = sphi %s8847_s18, %s15490_s18   ;;  %s8742_s17 = sphi %s8845_s17, %s15489_s17  }
   0xc   : > { %s7633_s22 = sadd.s32 4294967294, %s8754_s20   ;;  %p49_p0 = scmp.ne.s32.totalorder %s8746_s18, %s8742_s17 }
   0xd   : > { %p13932_p1 = scmp.eq.s32.totalorder %s8866_s21, 0  ;;  %p289_p3 = scmp.eq.s32.totalorder %s7633_s22, 1 }
   0xe   : > { %p7634_p5 = scmp.ge.s32.totalorder %s8754_s20, 1  ;;  %p296_p7 = scmp.lt.s32.totalorder %s8754_s20, 3 }
   0xf   : > { %p8875_p4 = por %p13932_p1, %p49_p0  ;;  %p8880_p6 = por %p289_p3, %p49_p0 }
  0x10   : > { %p8885_p8 = pnand %p7634_p5, %p296_p7  ;;  %s8756_s26 = smov [#allocation5]  }
  0x11   : > { %s14287_s23 = scalar_select %p8875_p4, 1, 0 }
  0x12   : > { %s14288_s24 = scalar_select %p8880_p6, 1, 0 }
  0x13   : > { %s14290_s25 = scalar_select %p8885_p8, 1, 0 }
  0x14   : > { %14289 = sst [smem:[#allocation16_spill]] %s14288_s24  ;;  %s320_s27 = sshll.u32 %s8756_s26, 4  ;;  %s8889_s27 = int_to_ptr.vmem [resolvable:$true] %s320_s27 }
  0x15   : > { %p8158_p9 = pneg %p8885_p8  ;;  %s8757_s29 = smov [#allocation7]  }
  0x16   : > { %s334_s30 = sshll.u32 %s8757_s29, 4  ;;  %s8758_s12 = smov [#allocation8]   ;;  %s8900_s30 = int_to_ptr.vmem [resolvable:$true] %s334_s30 }
  0x17   : > { %p8896_p11 = pnand %p8158_p9, %p13932_p1  ;;  %s8902_s13 = sshll.u32 %s8758_s12, 4  ;;  %s349_s13 = int_to_ptr.vmem [resolvable:$true] %s8902_s13 }
  0x18   : > { %s8566_s16 = scalar_lea.hbm %s13924_s5, 4096 }
  0x19   : > { %p8567_p12 = scmp.ne.s32.totalorder %s13924_s5, %s8566_s16  ;;  %p8912_p13 = pneg %p8896_p11 }
  0x1a   : > { %p8573_p5 = scmp.lt.u32.totalorder %s8566_s16, %s13924_s5 }
  0x1b   : > { %p8569_p0 = pnand %p8912_p13, %p8567_p12 }
  0x1d   : > { %p8570_p3 = pneg %p8569_p0 }
  0x1f   : > { %p8575_p7 = pnand %p8573_p5, %p8570_p3 }
  0x21   : > { %8578 = shalt.err (!%p8575_p7)
}
  0x22   : > { %s8579_s14 = scalar_lea.vmem %s8889_s27, 4096  ;;  %p8587_p2 = scmp.lt.s32.totalorder %s8889_s27, %s8889_s27 }
  0x23   : > { %p8580_p9 = scmp.ne.s32.totalorder %s8889_s27, %s8579_s14  ;;  %p8588_p6 = scmp.lt.s32.totalorder %s8579_s14, %s8579_s14 }
  0x25   : > { %p8582_p10 = pnand %p8580_p9, %p8912_p13  ;;  %p8589_p12 = por %p8588_p6, %p8587_p2 }
  0x27   : > { %p8583_p1 = pneg %p8582_p10 }
  0x29   : > { %p8590_p0 = pnand %p8589_p12, %p8583_p1 }
  0x2b   : > { %8593 = shalt.err (!%p8590_p0)
}
  0x2c   : > { %s8759_s15 = smov 128   ;;  %s8760_s16 = smov 8  }
  0x2d   : > { %8161 = dma.hbm_to_vmem [thread:$0]  (!%p8896_p11), %s13924_s5, 4096, %s8889_s27, [#allocation6], %s8759_s15, %s8759_s15, %s8760_s16  }
  0x2e   : > { %s8594_s14 = scalar_lea.hbm %s13925_s6, 128 }
  0x2f   : > { %p8595_p1 = scmp.ne.s32.totalorder %s13925_s6, %s8594_s14  ;;  %p8601_p10 = scmp.lt.u32.totalorder %s8594_s14, %s13925_s6 }
  0x31   : > { %p8597_p2 = pnand %p8595_p1, %p8912_p13 }
  0x33   : > { %p8598_p6 = pneg %p8597_p2 }
  0x35   : > { %p8603_p3 = pnand %p8601_p10, %p8598_p6 }
  0x37   : > { %8606 = shalt.err (!%p8603_p3)
}
  0x38   : > { %s8607_s27 = scalar_lea.vmem %s8900_s30, 128  ;;  %p8615_p12 = scmp.lt.s32.totalorder %s8900_s30, %s8900_s30 }
  0x39   : > { %p8608_p5 = scmp.ne.s32.totalorder %s8900_s30, %s8607_s27  ;;  %p8616_p0 = scmp.lt.s32.totalorder %s8607_s27, %s8607_s27 }
  0x3b   : > { %p8610_p7 = pnand %p8608_p5, %p8912_p13  ;;  %p8617_p1 = por %p8616_p0, %p8615_p12 }
  0x3d   : > { %p8611_p9 = pneg %p8610_p7 }
  0x3f   : > { %p8618_p2 = pnand %p8617_p1, %p8611_p9 }
  0x41   : > { %8621 = shalt.err (!%p8618_p2)
}
  0x42   : > { %8164 = dma.hbm_to_vmem [thread:$0]  (!%p8896_p11), %s13925_s6, 128, %s8900_s30, [#allocation6]  }
  0x43   : > { %s8622_s22 = scalar_lea.hbm %s13927_s8, 16 }
  0x44   : > { %p8623_p6 = scmp.ne.s32.totalorder %s13927_s8, %s8622_s22  ;;  %p8629_p5 = scmp.lt.u32.totalorder %s8622_s22, %s13927_s8 }
  0x46   : > { %p8625_p10 = pnand %p8623_p6, %p8912_p13 }
  0x48   : > { %p8626_p3 = pneg %p8625_p10 }
  0x4a   : > { %p8631_p7 = pnand %p8629_p5, %p8626_p3 }
  0x4c   : > { %8634 = shalt.err (!%p8631_p7)
}
  0x4d   : > { %s8635_s27 = scalar_lea.vmem %s349_s13, 16  ;;  %s8642_s30 = scalar_lea.vmem %s349_s13, 32 }
  0x4e   : > { %p8636_p9 = scmp.ne.s32.totalorder %s349_s13, %s8635_s27  ;;  %p8643_p1 = scmp.lt.s32.totalorder %s349_s13, %s349_s13 }
  0x4f   : > { %p8644_p2 = scmp.lt.s32.totalorder %s8642_s30, %s8635_s27 }
  0x50   : > { %p8638_p12 = pnand %p8636_p9, %p8912_p13 }
  0x51   : > { %p8645_p4 = por %p8644_p2, %p8643_p1 }
  0x52   : > { %p8639_p0 = pneg %p8638_p12 }
  0x54   : > { %p8646_p8 = pnand %p8645_p4, %p8639_p0 }
  0x56   : > { %8649 = shalt.err (!%p8646_p8)
}
  0x57   : > { %8167 = dma.hbm_to_vmem [thread:$0]  (!%p8896_p11), %s13927_s8, 16, %s349_s13, [#allocation9]  }
  0x58   : > { %s8979_s24 = sadd.s32 1, %s8754_s20   ;;  %s36_s28 = sadd.s32 1, %s8750_s19 }
  0x59   : > { %s33_s11 = ssub.s32 %s8754_s20, %s8979_s24  ;;  %p43_p8 = scmp.ne.s32.totalorder %s8750_s19, %s8746_s18 }
  0x5a   : > { %p34_p4 = scmp.eq.s32.totalorder %s33_s11, 0  ;;  %p44_p13 = scmp.eq.s32.totalorder %s8754_s20, 0 }
  0x5b   : > { %p8179_p6 = scmp.lt.s32.totalorder %s8754_s20, 2  ;;  %p14293_p3 = scmp.eq.s32.totalorder %s8866_s21, 1 }
  0x5c   : > { %s8989_s17 = scalar_select %p34_p4, %s8750_s19, %s36_s28  }
  0x5d   : > { %p45_p10 = por %p44_p13, %p43_p8  ;;  %p8993_p5 = por %p14293_p3, %p43_p8 }
  0x5e   : > { %s365_s26 = sand.u32 1, %s8750_s19   ;;  %s7737_s29 = sshll.u32 %s8754_s20, 10 }
  0x5f   : > { %s7639_s13 = sshll.u32 %s365_s26, 6  ;;  %s9002_s27 = scalar_lea.hbm %s13919_s0, %s7737_s29 }
  0x60   : > { %s369_s30 = scalar_lea.vmem [#allocation2], %s7639_s13  ;;  %p9004_p11 = pnand %p8179_p6, %p45_p10 }
  0x61   : > { %s376_s2 = sshll.u32 %s369_s30, 4  ;;  %s9010_s11 = scalar_lea.sflag [#allocation3], %s365_s26  ;;  %s9008_s2 = int_to_ptr.vmem [resolvable:$true] %s376_s2 }
  0x62   : > { %s8650_s28 = scalar_lea.hbm %s9002_s27, 1024  ;;  %p8652_p9 = pneg %p9004_p11 }
  0x63   : > { %p8651_p7 = scmp.ne.s32.totalorder %s9002_s27, %s8650_s28  ;;  %s8655_s12 = scalar_lea.hbm %s13919_s0, 2048 }
  0x64   : > { %p8656_p1 = scmp.lt.u32.totalorder %s9002_s27, %s13919_s0  ;;  %p8657_p2 = scmp.lt.u32.totalorder %s8655_s12, %s8650_s28 }
  0x65   : > { %p8653_p12 = pnand %p8652_p9, %p8651_p7  ;;  %p8659_p8 = scmp.lt.u32.totalorder %s8650_s28, %s9002_s27 }
  0x66   : > { %p8658_p4 = por %p8657_p2, %p8656_p1 }
  0x67   : > { %p8654_p0 = pneg %p8653_p12 }
  0x68   : > { %p8660_p13 = por %p8659_p8, %p8658_p4 }
  0x6a   : > { %p8661_p6 = pnand %p8660_p13, %p8654_p0 }
  0x6c   : > { %8664 = shalt.err (!%p8661_p6)
}
  0x6d   : > { %s8665_s26 = scalar_lea.vmem %s9008_s2, 1024  ;;  %s8761_s29 = smov [#allocation2]  }
  0x6e   : > { %p8666_p10 = scmp.ne.s32.totalorder %s9008_s2, %s8665_s26  ;;  %s8670_s13 = sshll.u32 %s8761_s29, 4  ;;  %s8671_s13 = int_to_ptr.vmem [resolvable:$false] %s8670_s13 }
  0x6f   : > { %s8672_s14 = scalar_lea.vmem %s8671_s13, 2048  ;;  %p8673_p12 = scmp.lt.s32.totalorder %s9008_s2, %s8671_s13 }
  0x70   : > { %p8668_p3 = pnand %p8666_p10, %p8652_p9  ;;  %p8674_p1 = scmp.lt.s32.totalorder %s8672_s14, %s8665_s26 }
  0x72   : > { %p8669_p7 = pneg %p8668_p3  ;;  %p8675_p2 = por %p8674_p1, %p8673_p12 }
  0x74   : > { %p8676_p4 = pnand %p8675_p2, %p8669_p7 }
  0x76   : > { %8679 = shalt.err (!%p8676_p4)
}
  0x77   : > { %8171 = dma.hbm_to_vmem [thread:$0]  (!%p9004_p11), %s9002_s27, 1024, %s9008_s2, %s9010_s11, %s8759_s15, %s8759_s15, %s8760_s16  }
  0x78   : > { %p14296_p9 = scmp.ne.s32.totalorder %s14290_s25, 0 }
  0x7a   : > { %388 = sbr.rel (%p14296_p9) target bundleno = 2919 (0xb67), region = 64 }
  0x81   : > { %s9044_s28 = sand.u32 1, %s8746_s18   ;;  %p14297_p0 = scmp.ne.s32.totalorder %s14287_s23, 0 }
  0x82   : > { %s7643_s12 = sshll.u32 %s9044_s28, 6  ;;  %s391_s30 = scalar_lea.sflag [#allocation3], %s9044_s28 }
  0x83   : > { %s9048_s26 = scalar_lea.vmem [#allocation2], %s7643_s12 }
  0x84   : > { %8725 = dma.done.wait (%p14297_p0), %s391_s30, 1024  }
  0x85   : > { %8727 = vsyncadd (%p14297_p0), %s391_s30, 4294966272  ;;  %p14298_p11 = scmp.eq.s32.totalorder %s8866_s21, 0 }
  0x87   : > { %8729 = dma.done.wait (%p14298_p11), [#allocation6], 4224   ;;  %p14299_p8 = pmov %p14298_p11 }
  0x89   : > { %8731 = vsyncadd (%p14299_p8), [#allocation6], 4294963072  ;;  %p14300_p13 = pmov %p14299_p8 }
  0x8a   : > { %p14301_p6 = pmov %p14299_p8 }
  0x8b   : > { %8733 = dma.done.wait (%p14300_p13), [#allocation9], 16  }
  0x8c   : > { %8735 = vsyncadd (%p14301_p6), [#allocation9], 4294967280  ;;  %v8762_v0 = vmov 1   ;;  %v13942_v1 = vmov 0   ;;  %v13940_v2 = vmov 0.0|0.0   ;;  %vm8765_vm0 = vmmov 0  }
  0x8d   : > { %8245 = vset.pattern.permute.xlu0 %v8762_v0  ;;  %8243 = vset.pattern.permute.xlu1 %v13942_v1  ;;  %v13939_v3 = vmov 0.0   ;;  %v9069_v4 = vld [vmem:[%s13928_s9 + $0x8] sm:$0xff]  ;;  %v595_v5 = vld [vmem:[%s13922_s3] sm:$0xff]  ;;  %v597_v9 = vld [vmem:[%s13922_s3 + $0x10] sm:$0xff]  ;;  %vm465_vm1 = vcmask 261120   ;;  %vm608_vm2 = vcmask 1041409   ;;  %v13938_v52 = vlaneseq }
  0x8e   : > { %8066 = vmatprep.subr.bf16.mxu1 %v13940_v2  ;;  %7884 = vmatprep.mubr.msk.f32.mxu1 %vm8765_vm0, %v13939_v3  ;;  %v596_v6 = vld [vmem:[%s13922_s3 + $0x8] sm:$0xff]  ;;  %v9082_v8 = vld [vmem:[%s13928_s9 + $0x20] sm:$0xff]  ;;  %v9090_v10 = vld [vmem:[%s13928_s9 + $0x30] sm:$0xff]  ;;  %vm611_vm3 = vcmask 1042434   ;;  %vm614_vm4 = vcmask 1043459   ;;  %vm617_vm5 = vcmask 1044484  }
  0x8f   : > { %1336 = vperm.xlu0 %8245, %v9069_v4   ;;  %1202 = vperm.xlu1 %8243, %v9069_v4   ;;  %v8067_v7 = vpack.c.bf16 %v596_v6, %v595_v5  ;;  %v598_v11 = vld [vmem:[%s13922_s3 + $0x18] sm:$0xff]  ;;  %v9096_v12 = vld [vmem:[%s9048_s26] sm:$0xff]  ;;  %v9099_v14 = vld [vmem:[%s9048_s26 + $0x8] sm:$0xff]  ;;  %vm620_vm6 = vcmask 1045509   ;;  %vm623_vm7 = vcmask 1046534   ;;  %vm625_vm8 = vcmask 1047559  }
  0x90   : > { %v8070_v13 = vpack.c.bf16 %v598_v11, %v597_v9  ;;  %v9102_v15 = vld [vmem:[%s9048_s26 + $0x10] sm:$0xff]  ;;  %v9105_v16 = vld [vmem:[%s9048_s26 + $0x18] sm:$0xff]  ;;  %v606_v17 = vrot.slane %v9096_v12, 7  ;;  %7864 = vmatprep.mubr.msk.f32.mxu0 %vm465_vm1, %v9096_v12  ;;  %v9112_v18 = vld [vmem:[%s9048_s26 + $0x20] sm:$0xff]  ;;  %v607_v21 = vrot.slane %v9099_v14, 6  ;;  %v8767_v42 = vmov 2  }
  0x91   : > { %8068 = vmatpush3.bf16.msra.mxu1 %v8067_v7  ;;  %v9115_v19 = vld [vmem:[%s9048_s26 + $0x28] sm:$0xff]  ;;  %v9118_v20 = vld [vmem:[%s9048_s26 + $0x30] sm:$0xff]  ;;  %v610_v22 = vrot.slane %v9102_v15, 5  ;;  %v613_v23 = vrot.slane %v9105_v16, 4  ;;  %v616_v24 = vrot.slane %v9112_v18, 3  ;;  %v9131_v27 = vld [vmem:[%s13928_s9] sm:$0xff] }
  0x92   : > { %8069 = vmatprep.subr.bf16.mxu1 %v13940_v2  ;;  %v609_v25 = vsel %vm608_vm2, %v607_v21, %v606_v17  ;;  %v619_v26 = vrot.slane %v9115_v19, 2  ;;  %v622_v29 = vrot.slane %v9118_v20, 1  ;;  %v454_v31 = vld [vmem:[%s13920_s1] sm:$0xff]  ;;  %v455_v32 = vld [vmem:[%s13920_s1 + $0x8] sm:$0xff]  ;;  %v9144_v33 = vld [vmem:[%s9048_s26 + $0x38] sm:$0xff]  ;;  %v8768_v47 = vmov 3  }
  0x93   : > { %1348 = vperm.xlu0 %8245, %v9082_v8   ;;  %1227 = vperm.xlu1 %8243, %v9090_v10   ;;  %v612_v28 = vsel %vm611_vm3, %v610_v22, %v609_v25  ;;  %v8058_v35 = vpack.c.bf16 %v455_v32, %v454_v31  ;;  %v9153_v38 = vld [vmem:[%s13928_s9 + $0x10] sm:$0xff]  ;;  %v457_v41 = vld [vmem:[%s13920_s1 + $0x18] sm:$0xff]  ;;  %v9176_v45 = vld [vmem:[%s13928_s9 + $0x28] sm:$0xff]  ;;  %v8769_v48 = vmov 4   ;;  %v8770_v49 = vmov 5   ;;  %s15050_s14 = sld [smem:[#allocation360_spill]] }
  0x94   : > { %v615_v30 = vsel %vm614_vm4, %v613_v23, %v612_v28  ;;  %v456_v40 = vld [vmem:[%s13920_s1 + $0x10] sm:$0xff]  ;;  %v9169_v44 = vld [vmem:[%s13928_s9 + $0x18] sm:$0xff]  ;;  %v8771_v50 = vmov 6   ;;  %v8772_v51 = vmov 7   ;;  %v3264_v53 = vld [vmem:[#allocation5 + $0x20] sm:$0xff]  ;;  %v9241_v56 = vshrl.u32 %v13938_v52, 7 }
  0x95   : > { %8071 = vmatpush3.bf16.msra.mxu1 %v8070_v13  ;;  %v618_v34 = vsel %vm617_vm5, %v616_v24, %v615_v30  ;;  %8059 = vmatprep.subr.bf16.mxu0 %v8058_v35  ;;  %v8062_v43 = vpack.c.bf16 %v457_v41, %v456_v40  ;;  %v9187_v46 = vld [vmem:[%s13928_s9 + $0x38] sm:$0xff]  ;;  %v3265_v54 = vld [vmem:[#allocation5 + $0x28] sm:$0xff]  ;;  %v3266_v57 = vld [vmem:[#allocation5 + $0x30] sm:$0xff]  ;;  %vm1171_vm9 = vcmask 326912   ;;  %s8774_s23 = smov 96   ;;  %vm872_vm10 = vcmask 64512  }
  0x96   : > { %v621_v36 = vsel %vm620_vm6, %v619_v26, %v618_v34  ;;  %8061 = vmatpush3.bf16.msra.mxu0 %v8058_v35  ;;  %v8080_v55 = vpack.c.bf16 %v3265_v54, %v3264_v53  ;;  %14302 = vst [vmem:[#allocation17_spill] sm:$0xff] %v9241_v56  ;;  %v3267_v58 = vld [vmem:[#allocation5 + $0x38] sm:$0xff]  ;;  %v9246_v60 = vsub.s32 1, %v9241_v56  ;;  %v9249_v61 = vsub.s32 0, %v9241_v56  ;;  %v2676_v34 = vld [vmem:[#allocation5] sm:$0xff]  ;;  %v2677_v35 = vld [vmem:[#allocation5 + $0x8] sm:$0xff] }
  0x97   : > { %1356 = vperm.xlu0 %8245, %v9090_v10   ;;  %8244 = vset.pattern.permute.xlu1 %v8762_v0  ;;  %v624_v37 = vsel %vm623_vm7, %v622_v29, %v621_v36  ;;  %v8084_v59 = vpack.c.bf16 %v3267_v58, %v3266_v57  ;;  %v9270_v5 = vsub.s32 2, %v9241_v56  ;;  %v9294_v13 = vsub.s32 3, %v9241_v56  ;;  %s8783_s16 = smov 32   ;;  %s15465_s7 = sld [smem:[#allocation361_spill]] }
  0x98   : > { %1332 = vperm.xlu1 %8244, %v9131_v27   ;;  %v626_v39 = vsel %vm625_vm8, %v9144_v33, %v624_v37  ;;  %8063 = vmatprep.subr.bf16.mxu0 %v8062_v43  ;;  %14303 = vst [vmem:[#allocation18_spill] sm:$0xff] %v9246_v60  ;;  %14304 = vst [vmem:[#allocation19_spill] sm:$0xff] %v9249_v61  ;;  %v9255_v62 = vrot.slane %v9096_v12, %v9249_v61  ;;  %v9330_v28 = vsub.s32 4, %v9241_v56  ;;  %vm1114_vm11 = vcmask 523520   ;;  %s7647_s30 = sshll.u32 %s9044_s28, 3  ;;  %s7734_s25 = sshll.u32 %s8866_s21, 7 }
  0x99   : > { %7885 = vmatmul.mubr.msk.f32.vlgmr.msra.gmra.mrb[0].mxu1 %vm465_vm1, %v626_v39  ;;  %v9259_v63 = vrot.slane %v9096_v12, %v9246_v60  ;;  %v9263_v0 = vrot.slane %v9099_v14, %v9246_v60  ;;  %14307 = vst [vmem:[#allocation22_spill] sm:$0xff] %v9270_v5  ;;  %v9274_v6 = vrot.slane %v9102_v15, %v9249_v61  ;;  %14313 = vst [vmem:[#allocation28_spill] sm:$0xff] %v9294_v13  ;;  %s444_s15 = scalar_lea.vmem [#allocation10], %s7647_s30  ;;  %s15483_s11 = sld [smem:[#allocation362_spill]] }
  0x9a   : > { %8065 = vmatpush3.bf16.msra.mxu0 %v8062_v43  ;;  %14305 = vst [vmem:[#allocation20_spill] sm:$0xff] %v9255_v62  ;;  %v9278_v7 = vrot.slane %v9102_v15, %v9246_v60  ;;  %v9286_v9 = vrot.slane %v9105_v16, %v9246_v60  ;;  %v9290_v11 = vrot.slane %v9112_v18, %v9249_v61  ;;  %14321 = vst [vmem:[#allocation36_spill] sm:$0xff] %v9330_v28  ;;  %s8784_s21 = smov [#allocation10]  }
  0x9b   : > { %8246 = vset.pattern.permute.xlu0 %v8767_v42  ;;  %8081 = vmatprep.subr.bf16.mxu0 %v8080_v55  ;;  %14308 = vst [vmem:[#allocation23_spill] sm:$0xff] %v9274_v6  ;;  %v9298_v17 = vrot.slane %v9112_v18, %v9246_v60  ;;  %v9302_v21 = vrot.slane %v9115_v19, %v9249_v61  ;;  %v9371_v43 = vsub.s32 5, %v9241_v56  ;;  %v9423_v52 = vsub.s32 6, %v9241_v56  ;;  %s8684_s13 = sshll.u32 %s8784_s21, 4  ;;  %s8685_s13 = int_to_ptr.vmem [resolvable:$false] %s8684_s13 }
  0x9c   : > { %1524 = vperm.xlu0 %8246, %v9131_v27   ;;  %1340 = vperm.xlu1 %8244, %v9153_v38   ;;  %14309 = vst [vmem:[#allocation24_spill] sm:$0xff] %v9278_v7  ;;  %14311 = vst [vmem:[#allocation26_spill] sm:$0xff] %v9286_v9  ;;  %v9306_v22 = vrot.slane %v9115_v19, %v9246_v60  ;;  %v9315_v23 = vrot.slane %v9118_v20, %v9246_v60 }
  0x9d   : > { %7865 = vmatmul.mubr.msk.f32.vlgmr.msra.gmra.mrb[0].mxu0 %vm465_vm1, %v9099_v14  ;;  %14312 = vst [vmem:[#allocation27_spill] sm:$0xff] %v9290_v11  ;;  %14314 = vst [vmem:[#allocation29_spill] sm:$0xff] %v9298_v17  ;;  %v9319_v24 = vrot.slane %v9144_v33, %v9249_v61  ;;  %v9323_v25 = vrot.slane %v9144_v33, %v9246_v60  ;;  %v9327_v26 = vrot.slane %v9099_v14, %v9270_v5 }
  0x9e   : > { %7867 = vmatprep.mubr.msk.f32.mxu0 %vm465_vm1, %v9102_v15  ;;  %8083 = vmatpush3.bf16.msra.mxu0 %v8080_v55  ;;  %14315 = vst [vmem:[#allocation30_spill] sm:$0xff] %v9302_v21  ;;  %14316 = vst [vmem:[#allocation31_spill] sm:$0xff] %v9306_v22  ;;  %v9334_v29 = vrot.slane %v9096_v12, %v9270_v5  ;;  %v9338_v30 = vrot.slane %v9102_v15, %v9270_v5 }
  0x9f   : > { %8085 = vmatprep.subr.bf16.mxu0 %v8084_v59  ;;  %14318 = vst [vmem:[#allocation33_spill] sm:$0xff] %v9315_v23  ;;  %14319 = vst [vmem:[#allocation34_spill] sm:$0xff] %v9319_v24  ;;  %v9342_v31 = vrot.slane %v9105_v16, %v9270_v5  ;;  %v9346_v32 = vrot.slane %v9112_v18, %v9270_v5  ;;  %v9350_v36 = vrot.slane %v9115_v19, %v9270_v5  ;;  %s13875_s29 = scalar_lea.hbm %s15483_s11, %s7734_s25 }
  0xa0   : > { %1536 = vperm.xlu0 %8246, %v9169_v44   ;;  %1344 = vperm.xlu1 %8244, %v9169_v44   ;;  %14320 = vst [vmem:[#allocation35_spill] sm:$0xff] %v9323_v25  ;;  %14322 = vst [vmem:[#allocation37_spill] sm:$0xff] %v9338_v30  ;;  %v9354_v37 = vrot.slane %v9118_v20, %v9270_v5  ;;  %v9358_v39 = vrot.slane %v9099_v14, %v9294_v13 }
  0xa1   : > { %7868 = vmatmul.mubr.msk.f32.gmra.mrb[2].mxu0 %vm465_vm1, %v9105_v16  ;;  %14323 = vst [vmem:[#allocation38_spill] sm:$0xff] %v9342_v31  ;;  %14324 = vst [vmem:[#allocation39_spill] sm:$0xff] %v9346_v32  ;;  %v9362_v40 = vrot.slane %v9096_v12, %v9294_v13  ;;  %v8072_v41 = vpack.c.bf16 %v2677_v35, %v2676_v34  ;;  %v9400_v53 = vrot.slane %v9118_v20, %v9294_v13  ;;  %v2678_v34 = vld [vmem:[#allocation5 + $0x10] sm:$0xff]  ;;  %v2679_v35 = vld [vmem:[#allocation5 + $0x18] sm:$0xff] }
  0xa2   : > { %7870 = vmatprep.mubr.msk.f32.mxu0 %vm465_vm1, %v9112_v18  ;;  %8087 = vmatpush3.bf16.msra.mxu0 %v8084_v59  ;;  %14325 = vst [vmem:[#allocation40_spill] sm:$0xff] %v9350_v36  ;;  %14326 = vst [vmem:[#allocation41_spill] sm:$0xff] %v9354_v37  ;;  %v9404_v54 = vrot.slane %v9144_v33, %v9294_v13  ;;  %v9408_v55 = vrot.slane %v9096_v12, %v9330_v28 }
  0xa3   : > { %14328 = vst [vmem:[#allocation43_spill] sm:$0xff] %v9371_v43  ;;  %8073 = vmatprep.subr.bf16.mxu1 %v8072_v41  ;;  %14333 = vst [vmem:[#allocation48_spill] sm:$0xff] %v9400_v53  ;;  %v9412_v57 = vrot.slane %v9102_v15, %v9330_v28  ;;  %v9416_v58 = vrot.slane %v9105_v16, %v9330_v28  ;;  %v9420_v59 = vrot.slane %v9112_v18, %v9330_v28 }
  0xa4   : > { %1544 = vperm.xlu0 %8246, %v9176_v45   ;;  %1352 = vperm.xlu1 %8244, %v9176_v45   ;;  %14334 = vst [vmem:[#allocation49_spill] sm:$0xff] %v9404_v54  ;;  %14338 = vst [vmem:[#allocation53_spill] sm:$0xff] %v9423_v52  ;;  %v9427_v3 = vrot.slane %v9115_v19, %v9330_v28  ;;  %v8076_v2 = vpack.c.bf16 %v2679_v35, %v2678_v34  ;;  %v9445_v34 = vsub.s32 7, %v9241_v56 }
  0xa5   : > { %7871 = vmatmul.mubr.msk.f32.gmra.mrb[4].mxu0 %vm465_vm1, %v9115_v19  ;;  %14335 = vst [vmem:[#allocation50_spill] sm:$0xff] %v9412_v57  ;;  %14336 = vst [vmem:[#allocation51_spill] sm:$0xff] %v9416_v58  ;;  %8075 = vmatpush3.bf16.msra.mxu1 %v8072_v41  ;;  %v9434_v41 = vrot.slane %v9096_v12, %v9371_v43  ;;  %v9438_v60 = vrot.slane %v9118_v20, %v9330_v28  ;;  %v4441_v57 = vld [vmem:[#allocation5 + $0x78] sm:$0xff] }
  0xa6   : > { %7873 = vmatprep.mubr.msk.f32.mxu0 %vm465_vm1, %v9118_v20  ;;  %14337 = vst [vmem:[#allocation52_spill] sm:$0xff] %v9420_v59  ;;  %14339 = vst [vmem:[#allocation54_spill] sm:$0xff] %v9427_v3  ;;  %v9442_v59 = vrot.slane %v9144_v33, %v9330_v28  ;;  %v9453_v35 = vrot.slane %v9102_v15, %v9371_v43  ;;  %8077 = vmatprep.subr.bf16.mxu1 %v8076_v2 }
  0xa7   : > { %14340 = vst [vmem:[#allocation55_spill] sm:$0xff] %v9434_v41  ;;  %14341 = vst [vmem:[#allocation56_spill] sm:$0xff] %v9438_v60  ;;  %v8773_v41 = vmov 1966171168   ;;  %v9527_v58 = vrot.slane %v9105_v16, %v9445_v34 }
  0xa8   : > { %1552 = vperm.xlu0 %8246, %v9187_v46   ;;  %1360 = vperm.xlu1 %8244, %v9187_v46   ;;  %14342 = vst [vmem:[#allocation57_spill] sm:$0xff] %v9442_v59  ;;  %14343 = vst [vmem:[#allocation58_spill] sm:$0xff] %v9445_v34  ;;  %v703_v60 = vunpack.c.l.s4 %v8773_v41  ;;  %v9465_v59 = vrot.slane %v9115_v19, %v9371_v43  ;;  %v9477_v41 = vrot.slane %v9099_v14, %v9423_v52 }
  0xa9   : > { %7874 = vmatmul.mubr.msk.f32.gmra.mrb[6].mxu0 %vm465_vm1, %v9144_v33  ;;  %14345 = vst [vmem:[#allocation60_spill] sm:$0xff] %v9453_v35  ;;  %8079 = vmatpush3.bf16.msra.mxu1 %v8076_v2  ;;  %v9473_v35 = vrot.slane %v9096_v12, %v9423_v52  ;;  %v9494_v2 = vrot.slane %v9105_v16, %v9423_v52  ;;  %14363 = vst [vmem:[#allocation78_spill] sm:$0xff] %v9527_v58 }
  0xaa   : > { %14348 = vst [vmem:[#allocation63_spill] sm:$0xff] %v9465_v59  ;;  %14351 = vst [vmem:[#allocation66_spill] sm:$0xff] %v9477_v41  ;;  %v9485_v59 = vrot.slane %v9144_v33, %v9371_v43  ;;  %v9498_v41 = vrot.slane %v9112_v18, %v9423_v52  ;;  %v704_v3 = vunpack.c.0.s8 %v703_v60 }
  0xab   : > { %14350 = vst [vmem:[#allocation65_spill] sm:$0xff] %v9473_v35  ;;  %14355 = vst [vmem:[#allocation70_spill] sm:$0xff] %v9494_v2  ;;  %v4438_v35 = vld [vmem:[#allocation5 + $0x60] sm:$0xff]  ;;  %v9514_v2 = vrot.slane %v9099_v14, %v9445_v34 }
  0xac   : > { %8249 = vset.pattern.permute.xlu0 %v8768_v47  ;;  %8247 = vset.pattern.permute.xlu1 %v8767_v42  ;;  %v9366_v42 = vrot.slane %v9144_v33, %v9270_v5  ;;  %v9457_v5 = vrot.slane %v9105_v16, %v9371_v43  ;;  %14353 = vst [vmem:[#allocation68_spill] sm:$0xff] %v9485_v59  ;;  %14356 = vst [vmem:[#allocation71_spill] sm:$0xff] %v9498_v41  ;;  %v4439_v59 = vld [vmem:[#allocation5 + $0x68] sm:$0xff] }
  0xad   : > { %1720 = vperm.xlu0 %8249, %v9069_v4   ;;  %1528 = vperm.xlu1 %8247, %v9069_v4   ;;  %14360 = vst [vmem:[#allocation75_spill] sm:$0xff] %v9514_v2  ;;  %v9518_v41 = vrot.slane %v9102_v15, %v9445_v34  ;;  %v9536_v2 = vpack.c.bf16 %v4439_v59, %v4438_v35 }
  0xae   : > { %14327 = vst [vmem:[#allocation42_spill] sm:$0xff] %v9366_v42  ;;  %14346 = vst [vmem:[#allocation61_spill] sm:$0xff] %v9457_v5  ;;  %v9549_v59 = vrot.slane %v9115_v19, %v9445_v34  ;;  %v9557_v35 = vsub.s32 %v704_v3, %v9241_v56 }
  0xaf   : > { %14361 = vst [vmem:[#allocation76_spill] sm:$0xff] %v9518_v41  ;;  %14365 = vst [vmem:[#allocation80_spill] sm:$0xff] %v9536_v2  ;;  %8097 = vmatprep.subr.bf16.mxu0 %v9536_v2  ;;  %v4440_v2 = vld [vmem:[#allocation5 + $0x70] sm:$0xff] }
  0xb0   : > { %14367 = vst [vmem:[#allocation82_spill] sm:$0xff] %v9549_v59  ;;  %14369 = vst [vmem:[#allocation84_spill] sm:$0xff] %v9557_v35 }
  0xb1   : > { %1732 = vperm.xlu0 %8249, %v9082_v8   ;;  %1532 = vperm.xlu1 %8247, %v9153_v38  }
  0xb5   : > { %1740 = vperm.xlu0 %8249, %v9090_v10   ;;  %1540 = vperm.xlu1 %8247, %v9082_v8  }
  0xb9   : > { %8250 = vset.pattern.permute.xlu0 %v8769_v48  ;;  %1548 = vperm.xlu1 %8247, %v9090_v10  }
  0xba   : > { %1908 = vperm.xlu0 %8250, %v9131_v27  }
  0xbd   : > { %8248 = vset.pattern.permute.xlu1 %v8768_v47  ;;  %v9375_v47 = vrot.slane %v9102_v15, %v9294_v13 }
  0xbe   : > { %1920 = vperm.xlu0 %8250, %v9169_v44   ;;  %1716 = vperm.xlu1 %8248, %v9131_v27  }
  0xbf   : > { %14329 = vst [vmem:[#allocation44_spill] sm:$0xff] %v9375_v47 }
  0xc2   : > { %1928 = vperm.xlu0 %8250, %v9176_v45   ;;  %1724 = vperm.xlu1 %8248, %v9153_v38  }
  0xc6   : > { %1936 = vperm.xlu0 %8250, %v9187_v46   ;;  %1728 = vperm.xlu1 %8248, %v9169_v44  }
  0xca   : > { %8253 = vset.pattern.permute.xlu0 %v8770_v49  ;;  %1736 = vperm.xlu1 %8248, %v9176_v45  }
  0xcb   : > { %2104 = vperm.xlu0 %8253, %v9069_v4  }
  0xce   : > { %1744 = vperm.xlu1 %8248, %v9187_v46  }
  0xcf   : > { %2116 = vperm.xlu0 %8253, %v9082_v8  }
  0xd2   : > { %8251 = vset.pattern.permute.xlu1 %v8769_v48  ;;  %v9379_v48 = vrot.slane %v9105_v16, %v9294_v13 }
  0xd3   : > { %2124 = vperm.xlu0 %8253, %v9090_v10   ;;  %1912 = vperm.xlu1 %8251, %v9069_v4  }
  0xd4   : > { %14330 = vst [vmem:[#allocation45_spill] sm:$0xff] %v9379_v48 }
  0xd7   : > { %8254 = vset.pattern.permute.xlu0 %v8771_v50  ;;  %1916 = vperm.xlu1 %8251, %v9153_v38  }
  0xd8   : > { %2292 = vperm.xlu0 %8254, %v9131_v27  }
  0xdb   : > { %1924 = vperm.xlu1 %8251, %v9082_v8  }
  0xdc   : > { %2304 = vperm.xlu0 %8254, %v9169_v44  }
  0xdf   : > { %1932 = vperm.xlu1 %8251, %v9090_v10  }
  0xe0   : > { %2312 = vperm.xlu0 %8254, %v9176_v45  }
  0xe3   : > { %8252 = vset.pattern.permute.xlu1 %v8770_v49  ;;  %v9383_v49 = vrot.slane %v9112_v18, %v9294_v13 }
  0xe4   : > { %2320 = vperm.xlu0 %8254, %v9187_v46   ;;  %2100 = vperm.xlu1 %8252, %v9131_v27  }
  0xe5   : > { %14331 = vst [vmem:[#allocation46_spill] sm:$0xff] %v9383_v49 }
  0xe8   : > { %8257 = vset.pattern.permute.xlu0 %v8772_v51  ;;  %2108 = vperm.xlu1 %8252, %v9153_v38  }
  0xe9   : > { %2488 = vperm.xlu0 %8257, %v9069_v4  }
  0xec   : > { %2112 = vperm.xlu1 %8252, %v9169_v44  }
  0xed   : > { %2500 = vperm.xlu0 %8257, %v9082_v8  }
  0xf0   : > { %2120 = vperm.xlu1 %8252, %v9176_v45  }
  0xf1   : > { %2508 = vperm.xlu0 %8257, %v9090_v10  }
  0xf4   : > { %2128 = vperm.xlu1 %8252, %v9187_v46  }
  0xf5   : > { %8258 = vset.pattern.permute.xlu0 %v13942_v1 }
  0xf6   : > { %1197 = vperm.xlu0 %8258, %v9131_v27  }
  0xf8   : > { %8255 = vset.pattern.permute.xlu1 %v8771_v50  ;;  %v9387_v50 = vrot.slane %v9099_v14, %v9330_v28  ;;  %v9461_v28 = vrot.slane %v9112_v18, %v9371_v43 }
  0xf9   : > { %2296 = vperm.xlu1 %8255, %v9069_v4   ;;  %v9267_v4 = vrot.slane %v9099_v14, %v9249_v61 }
  0xfa   : > { %1207 = vperm.xlu0 %8258, %v9153_v38   ;;  %14347 = vst [vmem:[#allocation62_spill] sm:$0xff] %v9461_v28  ;;  %v9481_v28 = vrot.slane %v9102_v15, %v9423_v52 }
  0xfb   : > { %14306 = vst [vmem:[#allocation21_spill] sm:$0xff] %v9267_v4 }
  0xfc   : > { %14352 = vst [vmem:[#allocation67_spill] sm:$0xff] %v9481_v28  ;;  %v9502_v28 = vrot.slane %v9115_v19, %v9423_v52 }
  0xfd   : > { %2300 = vperm.xlu1 %8255, %v9153_v38  }
  0xfe   : > { %1212 = vperm.xlu0 %8258, %v9169_v44   ;;  %14357 = vst [vmem:[#allocation72_spill] sm:$0xff] %v9502_v28  ;;  %v9522_v28 = vrot.slane %v9144_v33, %v9423_v52 }
 0x100   : > { %14362 = vst [vmem:[#allocation77_spill] sm:$0xff] %v9522_v28 }
 0x101   : > { %2308 = vperm.xlu1 %8255, %v9082_v8  }
 0x102   : > { %1217 = vperm.xlu0 %8258, %v9082_v8   ;;  %v9282_v8 = vrot.slane %v9105_v16, %v9249_v61 }
 0x104   : > { %14310 = vst [vmem:[#allocation25_spill] sm:$0xff] %v9282_v8 }
 0x105   : > { %2316 = vperm.xlu1 %8255, %v9090_v10   ;;  %v9311_v10 = vrot.slane %v9118_v20, %v9249_v61 }
 0x106   : > { %1222 = vperm.xlu0 %8258, %v9176_v45  }
 0x107   : > { %14317 = vst [vmem:[#allocation32_spill] sm:$0xff] %v9311_v10 }
 0x109   : > { %8256 = vset.pattern.permute.xlu1 %v8772_v51  ;;  %v9396_v51 = vrot.slane %v9115_v19, %v9294_v13 }
 0x10a   : > { %1232 = vperm.xlu0 %8258, %v9187_v46   ;;  %2484 = vperm.xlu1 %8256, %v9131_v27   ;;  %v9392_v27 = vld [vmem:[%s13929_s10] sm:$0xff] }
 0x10b   : > { %14332 = vst [vmem:[#allocation47_spill] sm:$0xff] %v9396_v51 }
 0x10e   : > { %v1337_v1 = vpop.permute.xlu0 %1336  ;;  %v1203_v13 = vpop.permute.xlu1 %1202  ;;  %2492 = vperm.xlu1 %8256, %v9153_v38   ;;  %v9449_v38 = vrot.slane %v9099_v14, %v9371_v43 }
 0x10f   : > { %v1276_v14 = vmul.f32 %v9267_v4, %v1203_v13  ;;  %v1268_v15 = vmul.f32 %v9255_v62, %v1203_v13  ;;  %v1396_v41 = vmul.f32 %v9259_v63, %v1337_v1  ;;  %v1284_v60 = vmul.f32 %v9274_v6, %v1203_v13 }
 0x110   : > { %14344 = vst [vmem:[#allocation59_spill] sm:$0xff] %v9449_v38  ;;  %v9469_v38 = vrot.slane %v9118_v20, %v9371_v43  ;;  %v9506_v43 = vrot.slane %v9118_v20, %v9423_v52  ;;  %v1412_v16 = vmul.f32 %v9278_v7, %v1337_v1  ;;  %v1292_v58 = vmul.f32 %v9282_v8, %v1203_v13 }
 0x111   : > { %v1428_v28 = vmul.f32 %v9298_v17, %v1337_v1  ;;  %v1308_v8 = vmul.f32 %v9302_v21, %v1203_v13  ;;  %v1436_v6 = vmul.f32 %v9306_v22, %v1337_v1  ;;  %v1316_v19 = vmul.f32 %v9311_v10, %v1203_v13  ;;  %v3852_v10 = vld [vmem:[#allocation5 + $0x48] sm:$0xff] }
 0x112   : > { %14349 = vst [vmem:[#allocation64_spill] sm:$0xff] %v9469_v38  ;;  %v9487_v5 = vpop.permute.xlu0 %1348  ;;  %v9489_v38 = vpop.permute.xlu1 %1227  ;;  %2496 = vperm.xlu1 %8256, %v9169_v44   ;;  %14358 = vst [vmem:[#allocation73_spill] sm:$0xff] %v9506_v43  ;;  %v9510_v44 = vrot.slane %v9096_v12, %v9445_v34  ;;  %v1404_v43 = vmul.f32 %v9263_v0, %v1337_v1  ;;  %v9531_v12 = vrot.slane %v9112_v18, %v9445_v34 }
 0x113   : > { %14354 = vst [vmem:[#allocation69_spill] sm:$0xff] %v9489_v38  ;;  %v1420_v18 = vmul.f32 %v9286_v9, %v1337_v1  ;;  %v1444_v59 = vmul.f32 %v9315_v23, %v1337_v1  ;;  %v9572_v56 = vadd.f32 %v1396_v41, %v1268_v15  ;;  %v9574_v21 = vadd.f32 %v1412_v16, %v1284_v60 }
 0x114   : > { %14359 = vst [vmem:[#allocation74_spill] sm:$0xff] %v9510_v44  ;;  %14364 = vst [vmem:[#allocation79_spill] sm:$0xff] %v9531_v12  ;;  %v1300_v44 = vmul.f32 %v9290_v11, %v1203_v13  ;;  %v9563_v11 = vrot.slane %v9144_v33, %v9445_v34  ;;  %v9569_v3 = vadd.f32 %v1404_v43, %v1276_v14 }
 0x115   : > { %v9576_v33 = vadd.f32 %v1420_v18, %v1292_v58  ;;  %v9580_v35 = vmul.f32 %v9263_v0, %v9487_v5  ;;  %v9590_v58 = vadd.f32 %v1436_v6, %v1308_v8  ;;  %v9592_v15 = vpack.c.bf16 %v4441_v57, %v4440_v2 }
 0x116   : > { %v9538_v52 = vpop.permute.xlu0 %1356  ;;  %2504 = vperm.xlu1 %8256, %v9176_v45   ;;  %v9553_v45 = vrot.slane %v9118_v20, %v9445_v34  ;;  %14370 = vst [vmem:[#allocation85_spill] sm:$0xff] %v9563_v11  ;;  %v1324_v20 = vmul.f32 %v9319_v24, %v1203_v13  ;;  %v3851_v34 = vld [vmem:[#allocation5 + $0x40] sm:$0xff]  ;;  %v9584_v14 = vadd.f32 %v1428_v28, %v1300_v44 }
 0x117   : > { %14366 = vst [vmem:[#allocation81_spill] sm:$0xff] %v9538_v52  ;;  %v1333_v12 = vpop.permute.xlu1 %1332  ;;  %14371 = vst [vmem:[#allocation86_spill] sm:$0xff] %v9580_v35  ;;  %v1409_v41 = vmul.f32 %v9263_v0, %v9538_v52  ;;  %v9596_v60 = vmul.f32 %v9259_v63, %v9487_v5  ;;  %v9598_v16 = vadd.f32 %v1444_v59, %v1316_v19 }
 0x118   : > { %14368 = vst [vmem:[#allocation83_spill] sm:$0xff] %v9553_v45  ;;  %v1452_v45 = vmul.f32 %v9323_v25, %v1337_v1  ;;  %v1281_v1 = vmul.f32 %v9267_v4, %v9489_v38  ;;  %14373 = vst [vmem:[#allocation88_spill] sm:$0xff] %v9592_v15  ;;  %v9609_v6 = vmul.f32 %v9286_v9, %v9487_v5 }
 0x119   : > { %14374 = vst [vmem:[#allocation89_spill] sm:$0xff] %v9596_v60  ;;  %v14377_v8 = vrot.slane %v9392_v27, %v9249_v61  ;;  %v9616_v28 = vmul.f32 %v9298_v17, %v9487_v5  ;;  %v9620_v57 = vmul.f32 %v9306_v22, %v9487_v5  ;;  %v9628_v2 = vmul.f32 %v9323_v25, %v9487_v5 }
 0x11a   : > { %2512 = vperm.xlu1 %8256, %v9187_v46   ;;  %v9586_v46 = vpack.c.bf16 %v3852_v10, %v3851_v34  ;;  %v9600_v18 = vadd.f32 %v1452_v45, %v1324_v20  ;;  %v9605_v10 = vmul.f32 %v9278_v7, %v9487_v5  ;;  %14376 = vst [vmem:[#allocation91_spill] sm:$0xff] %v9609_v6 }
 0x11b   : > { %v1525_v13 = vpop.permute.xlu0 %1524  ;;  %v1341_v43 = vpop.permute.xlu1 %1340  ;;  %14378 = vst [vmem:[#allocation92_spill] sm:$0xff] %v9616_v28  ;;  %14379 = vst [vmem:[#allocation93_spill] sm:$0xff] %v9620_v57  ;;  %v9624_v34 = vmul.f32 %v9315_v23, %v9487_v5  ;;  %v9631_v44 = vmul.f32 %v9263_v0, %v1333_v12  ;;  %v9634_v45 = vmul.f32 %v9259_v63, %v1333_v12 }
 0x11c   : > { %14372 = vst [vmem:[#allocation87_spill] sm:$0xff] %v9586_v46  ;;  %8089 = vmatprep.subr.bf16.mxu1 %v9586_v46  ;;  %14375 = vst [vmem:[#allocation90_spill] sm:$0xff] %v9605_v10  ;;  %v9637_v19 = vmul.f32 %v9278_v7, %v1333_v12  ;;  %v9640_v20 = vmul.f32 %v9286_v9, %v1333_v12  ;;  %v9643_v61 = vadd.f32 %v1409_v41, %v1281_v1 }
 0x11d   : > { %14380 = vst [vmem:[#allocation94_spill] sm:$0xff] %v9624_v34  ;;  %14381 = vst [vmem:[#allocation95_spill] sm:$0xff] %v9628_v2  ;;  %v9646_v5 = vmul.f32 %v9298_v17, %v1333_v12  ;;  %v9649_v2 = vmul.f32 %v9306_v22, %v1333_v12  ;;  %v9652_v34 = vmul.f32 %v9315_v23, %v1333_v12 }
 0x11e   : > { %2860 = vbcast.lane.b32.xlu1 %v14377_v8, 256  ;;  %14382 = vst [vmem:[#allocation96_spill] sm:$0xff] %v9631_v44  ;;  %14383 = vst [vmem:[#allocation97_spill] sm:$0xff] %v9634_v45  ;;  %v14386_v8 = vmov 0   ;;  %v9655_v57 = vmul.f32 %v9263_v0, %v1341_v43  ;;  %v9658_v28 = vmul.f32 %v9323_v25, %v1333_v12  ;;  %v9666_v1 = vmul.f32 %v9259_v63, %v9538_v52 }
 0x11f   : > { %v1537_v27 = vpop.permute.xlu0 %1536  ;;  %v1345_v59 = vpop.permute.xlu1 %1344  ;;  %14384 = vst [vmem:[#allocation98_spill] sm:$0xff] %v9637_v19  ;;  %14385 = vst [vmem:[#allocation99_spill] sm:$0xff] %v9640_v20  ;;  %8259 = vset.pattern.permute.xlu1 %v14386_v8  ;;  %v9662_v8 = vmul.f32 %v9255_v62, %v9489_v38  ;;  %v9669_v41 = vmul.f32 %v9334_v29, %v1525_v13  ;;  %v9672_v6 = vmul.f32 %v9327_v26, %v1525_v13  ;;  %v14552_v19 = vld [vmem:[#allocation68_spill] sm:$0xff] }
 0x120   : > { %14387 = vst [vmem:[#allocation100_spill] sm:$0xff] %v9646_v5  ;;  %14388 = vst [vmem:[#allocation101_spill] sm:$0xff] %v9649_v2  ;;  %v9675_v10 = vmul.f32 %v9338_v30, %v1525_v13  ;;  %v9678_v12 = vmul.f32 %v9342_v31, %v1525_v13  ;;  %v9681_v24 = vmul.f32 %v9346_v32, %v1525_v13 }
 0x121   : > { %14389 = vst [vmem:[#allocation102_spill] sm:$0xff] %v9652_v34  ;;  %14390 = vst [vmem:[#allocation103_spill] sm:$0xff] %v9655_v57  ;;  %v9684_v52 = vmul.f32 %v9350_v36, %v1525_v13  ;;  %v9687_v46 = vmul.f32 %v9354_v37, %v1525_v13  ;;  %v9690_v34 = vmul.f32 %v9366_v42, %v1525_v13 }
 0x122   : > { %14391 = vst [vmem:[#allocation104_spill] sm:$0xff] %v9658_v28  ;;  %14392 = vst [vmem:[#allocation105_spill] sm:$0xff] %v9669_v41  ;;  %v9693_v2 = vmul.f32 %v9259_v63, %v1341_v43  ;;  %v9696_v35 = vmul.f32 %v9278_v7, %v1341_v43  ;;  %v9699_v5 = vmul.f32 %v9286_v9, %v1341_v43 }
 0x123   : > { %14393 = vst [vmem:[#allocation106_spill] sm:$0xff] %v9672_v6  ;;  %14394 = vst [vmem:[#allocation107_spill] sm:$0xff] %v9675_v10  ;;  %v1545_v60 = vpop.permute.xlu0 %1544  ;;  %v1353_v28 = vpop.permute.xlu1 %1352  ;;  %v9711_v13 = vmul.f32 %v9315_v23, %v1341_v43  ;;  %v9748_v15 = vmul.f32 %v9306_v22, %v1345_v59  ;;  %v9751_v20 = vmul.f32 %v9350_v36, %v1537_v27 }
 0x124   : > { %14395 = vst [vmem:[#allocation108_spill] sm:$0xff] %v9678_v12  ;;  %14396 = vst [vmem:[#allocation109_spill] sm:$0xff] %v9681_v24  ;;  %v9702_v24 = vmul.f32 %v9298_v17, %v1341_v43  ;;  %v9736_v12 = vmul.f32 %v9286_v9, %v1345_v59 }
 0x125   : > { %14397 = vst [vmem:[#allocation110_spill] sm:$0xff] %v9684_v52  ;;  %14398 = vst [vmem:[#allocation111_spill] sm:$0xff] %v9687_v46  ;;  %v9705_v52 = vmul.f32 %v9327_v26, %v1537_v27  ;;  %v9708_v46 = vmul.f32 %v9306_v22, %v1341_v43 }
 0x126   : > { %14399 = vst [vmem:[#allocation112_spill] sm:$0xff] %v9690_v34  ;;  %14400 = vst [vmem:[#allocation113_spill] sm:$0xff] %v9693_v2  ;;  %v9714_v2 = vmul.f32 %v9323_v25, %v1341_v43  ;;  %v9726_v34 = vmul.f32 %v9278_v7, %v1345_v59  ;;  %v3853_v43 = vld [vmem:[#allocation5 + $0x50] sm:$0xff] }
 0x127   : > { %14401 = vst [vmem:[#allocation114_spill] sm:$0xff] %v9696_v35  ;;  %14402 = vst [vmem:[#allocation115_spill] sm:$0xff] %v9699_v5  ;;  %v9717_v35 = vmul.f32 %v9263_v0, %v1345_v59  ;;  %v9720_v5 = vmul.f32 %v9259_v63, %v1345_v59 }
 0x128   : > { %14403 = vst [vmem:[#allocation116_spill] sm:$0xff] %v9702_v24  ;;  %14404 = vst [vmem:[#allocation117_spill] sm:$0xff] %v9705_v52  ;;  %v9723_v24 = vmul.f32 %v9334_v29, %v1537_v27  ;;  %v9728_v52 = vpop.permute.xlu0 %1552 }
 0x129   : > { %14405 = vst [vmem:[#allocation118_spill] sm:$0xff] %v9708_v46  ;;  %14406 = vst [vmem:[#allocation119_spill] sm:$0xff] %v9711_v13  ;;  %v9730_v46 = vpop.permute.xlu1 %1360  ;;  %v9733_v13 = vmul.f32 %v9338_v30, %v1537_v27 }
 0x12a   : > { %14407 = vst [vmem:[#allocation120_spill] sm:$0xff] %v9714_v2  ;;  %14408 = vst [vmem:[#allocation121_spill] sm:$0xff] %v9717_v35  ;;  %v3854_v2 = vld [vmem:[#allocation5 + $0x58] sm:$0xff] }
 0x12b   : > { %14409 = vst [vmem:[#allocation122_spill] sm:$0xff] %v9720_v5  ;;  %14410 = vst [vmem:[#allocation123_spill] sm:$0xff] %v9723_v24  ;;  %v9739_v5 = vmul.f32 %v9342_v31, %v1537_v27  ;;  %v9742_v24 = vmul.f32 %v9298_v17, %v1345_v59  ;;  %v9771_v10 = vpack.c.bf16 %v3854_v2, %v3853_v43 }
 0x12c   : > { %14411 = vst [vmem:[#allocation124_spill] sm:$0xff] %v9726_v34  ;;  %14412 = vst [vmem:[#allocation125_spill] sm:$0xff] %v9728_v52  ;;  %v9745_v34 = vmul.f32 %v9346_v32, %v1537_v27  ;;  %v1721_v2 = vpop.permute.xlu0 %1720 }
 0x12d   : > { %14413 = vst [vmem:[#allocation126_spill] sm:$0xff] %v9730_v46  ;;  %14414 = vst [vmem:[#allocation127_spill] sm:$0xff] %v9733_v13  ;;  %v9754_v13 = vmul.f32 %v9315_v23, %v1345_v59  ;;  %v1529_v43 = vpop.permute.xlu1 %1528  ;;  %v1812_v6 = vmul.f32 %v9383_v49, %v1721_v2 }
 0x12e   : > { %14415 = vst [vmem:[#allocation128_spill] sm:$0xff] %v9736_v12  ;;  %14416 = vst [vmem:[#allocation129_spill] sm:$0xff] %v9739_v5  ;;  %v9757_v12 = vmul.f32 %v9327_v26, %v1545_v60  ;;  %v9760_v5 = vmul.f32 %v9354_v37, %v1537_v27  ;;  %v1636_v41 = vmul.f32 %v9354_v37, %v1529_v43 }
 0x12f   : > { %14417 = vst [vmem:[#allocation130_spill] sm:$0xff] %v9742_v24  ;;  %14418 = vst [vmem:[#allocation131_spill] sm:$0xff] %v9745_v34  ;;  %v9763_v24 = vmul.f32 %v9323_v25, %v1345_v59  ;;  %v9766_v34 = vmul.f32 %v9366_v42, %v1537_v27  ;;  %v9783_v59 = vmul.f32 %v9338_v30, %v1545_v60 }
 0x130   : > { %14419 = vst [vmem:[#allocation132_spill] sm:$0xff] %v9748_v15  ;;  %14420 = vst [vmem:[#allocation133_spill] sm:$0xff] %v9751_v20  ;;  %v9769_v15 = vmul.f32 %v9263_v0, %v1353_v28  ;;  %v9774_v20 = vmul.f32 %v9259_v63, %v1353_v28  ;;  %v9786_v27 = vmul.f32 %v9286_v9, %v1353_v28 }
 0x131   : > { %14421 = vst [vmem:[#allocation134_spill] sm:$0xff] %v9754_v13  ;;  %14422 = vst [vmem:[#allocation135_spill] sm:$0xff] %v9757_v12  ;;  %v9777_v13 = vmul.f32 %v9334_v29, %v1545_v60  ;;  %v9780_v12 = vmul.f32 %v9278_v7, %v1353_v28 }
 0x132   : > { %14423 = vst [vmem:[#allocation136_spill] sm:$0xff] %v9760_v5  ;;  %14424 = vst [vmem:[#allocation137_spill] sm:$0xff] %v9763_v24  ;;  %v9792_v24 = vmul.f32 %v9298_v17, %v1353_v28  ;;  %v1604_v5 = vmul.f32 %v9338_v30, %v1529_v43 }
 0x133   : > { %14425 = vst [vmem:[#allocation138_spill] sm:$0xff] %v9766_v34  ;;  %14426 = vst [vmem:[#allocation139_spill] sm:$0xff] %v9769_v15  ;;  %v9789_v34 = vmul.f32 %v9342_v31, %v1545_v60  ;;  %v1804_v15 = vmul.f32 %v9379_v48, %v1721_v2 }
 0x134   : > { %14427 = vst [vmem:[#allocation140_spill] sm:$0xff] %v9771_v10  ;;  %14428 = vst [vmem:[#allocation141_spill] sm:$0xff] %v9774_v20  ;;  %v9795_v20 = vmul.f32 %v9346_v32, %v1545_v60  ;;  %v1668_v10 = vadd.f32 %v1604_v5, %v9574_v21  ;;  %v1820_v5 = vmul.f32 %v9396_v51, %v1721_v2 }
 0x135   : > { %14429 = vst [vmem:[#allocation142_spill] sm:$0xff] %v9777_v13  ;;  %14430 = vst [vmem:[#allocation143_spill] sm:$0xff] %v9780_v12  ;;  %v9798_v13 = vmul.f32 %v9306_v22, %v1353_v28  ;;  %v9801_v12 = vmul.f32 %v9350_v36, %v1545_v60 }
 0x136   : > { %14431 = vst [vmem:[#allocation144_spill] sm:$0xff] %v9783_v59  ;;  %14432 = vst [vmem:[#allocation145_spill] sm:$0xff] %v9786_v27  ;;  %v9805_v27 = vmul.f32 %v9327_v26, %v9728_v52  ;;  %v9811_v59 = vmul.f32 %v9354_v37, %v1545_v60 }
 0x137   : > { %14433 = vst [vmem:[#allocation146_spill] sm:$0xff] %v9789_v34  ;;  %14434 = vst [vmem:[#allocation147_spill] sm:$0xff] %v9792_v24  ;;  %v9808_v34 = vmul.f32 %v9315_v23, %v1353_v28  ;;  %v9814_v24 = vmul.f32 %v9323_v25, %v1353_v28  ;;  %v9828_v23 = vmul.f32 %v9259_v63, %v9730_v46  ;;  %v9838_v25 = vpop.permute.xlu0 %1732 }
 0x138   : > { %14435 = vst [vmem:[#allocation148_spill] sm:$0xff] %v9795_v20  ;;  %14436 = vst [vmem:[#allocation149_spill] sm:$0xff] %v9798_v13  ;;  %v9818_v20 = vmul.f32 %v9263_v0, %v9730_v46  ;;  %v1596_v13 = vmul.f32 %v9327_v26, %v1529_v43  ;;  %v9832_v28 = vmul.f32 %v9334_v29, %v9728_v52 }
 0x139   : > { %14437 = vst [vmem:[#allocation150_spill] sm:$0xff] %v9801_v12  ;;  %14438 = vst [vmem:[#allocation151_spill] sm:$0xff] %v9805_v27  ;;  %v1588_v12 = vmul.f32 %v9334_v29, %v1529_v43  ;;  %v9824_v27 = vmul.f32 %v9366_v42, %v1545_v60  ;;  %v9836_v0 = vmul.f32 %v9278_v7, %v9730_v46 }
 0x13a   : > { %14439 = vst [vmem:[#allocation152_spill] sm:$0xff] %v9808_v34  ;;  %14440 = vst [vmem:[#allocation153_spill] sm:$0xff] %v9811_v59  ;;  %v1612_v59 = vmul.f32 %v9342_v31, %v1529_v43  ;;  %v1620_v60 = vmul.f32 %v9346_v32, %v1529_v43  ;;  %v9845_v63 = vmul.f32 %v9338_v30, %v9728_v52 }
 0x13b   : > { %14441 = vst [vmem:[#allocation154_spill] sm:$0xff] %v9814_v24  ;;  %14442 = vst [vmem:[#allocation155_spill] sm:$0xff] %v9818_v20  ;;  %v1533_v24 = vpop.permute.xlu1 %1532  ;;  %v9851_v7 = vmul.f32 %v9286_v9, %v9730_v46  ;;  %v1660_v34 = vadd.f32 %v1596_v13, %v9569_v3  ;;  %v1652_v20 = vadd.f32 %v1588_v12, %v9572_v56 }
 0x13c   : > { %14443 = vst [vmem:[#allocation156_spill] sm:$0xff] %v9824_v27  ;;  %14444 = vst [vmem:[#allocation157_spill] sm:$0xff] %v9828_v23  ;;  %v1628_v27 = vmul.f32 %v9350_v36, %v1529_v43  ;;  %v1788_v23 = vmul.f32 %v9358_v39, %v1721_v2  ;;  %v1644_v9 = vmul.f32 %v9366_v42, %v1529_v43 }
 0x13d   : > { %14445 = vst [vmem:[#allocation158_spill] sm:$0xff] %v9832_v28  ;;  %14446 = vst [vmem:[#allocation159_spill] sm:$0xff] %v9836_v0  ;;  %v1780_v28 = vmul.f32 %v9362_v40, %v1721_v2  ;;  %v9855_v0 = vmul.f32 %v9342_v31, %v9728_v52  ;;  %v1676_v3 = vadd.f32 %v1612_v59, %v9576_v33 }
 0x13e   : > { %14447 = vst [vmem:[#allocation160_spill] sm:$0xff] %v9845_v63  ;;  %14448 = vst [vmem:[#allocation161_spill] sm:$0xff] %v9851_v7  ;;  %v1796_v63 = vmul.f32 %v9375_v47, %v1721_v2  ;;  %v9865_v7 = vpop.permute.xlu0 %1740  ;;  %v1684_v56 = vadd.f32 %v1620_v60, %v9584_v14  ;;  %v1692_v21 = vadd.f32 %v1628_v27, %v9590_v58  ;;  %v5612_v60 = vld [vmem:[#allocation5 + $0xa0] sm:$0xff] }
 0x13f   : > { %14449 = vst [vmem:[#allocation162_spill] sm:$0xff] %v9855_v0  ;;  %14450 = vst [vmem:[#allocation163_spill] sm:$0xff] %v9865_v7  ;;  %v9867_v35 = vpop.permute.xlu1 %1540  ;;  %v9875_v12 = vmul.f32 %v9358_v39, %v9838_v25  ;;  %v9879_v13 = vadd.f32 %v9666_v1, %v9662_v8  ;;  %v9883_v43 = vmul.f32 %v9298_v17, %v9730_v46  ;;  %v5613_v8 = vld [vmem:[#allocation5 + $0xa8] sm:$0xff] }
 0x140   : > { %v9887_v33 = vmul.f32 %v9346_v32, %v9728_v52  ;;  %v9890_v14 = vmul.f32 %v9327_v26, %v1533_v24  ;;  %v9892_v58 = vadd.f32 %v1780_v28, %v1652_v20  ;;  %v9894_v59 = vadd.f32 %v1788_v23, %v1660_v34 }
 0x141   : > { %14451 = vst [vmem:[#allocation164_spill] sm:$0xff] %v9875_v12  ;;  %14452 = vst [vmem:[#allocation165_spill] sm:$0xff] %v9883_v43  ;;  %v9896_v27 = vadd.f32 %v1796_v63, %v1668_v10  ;;  %v1700_v1 = vadd.f32 %v1636_v41, %v9598_v16  ;;  %v1828_v17 = vmul.f32 %v9400_v53, %v1721_v2 }
 0x142   : > { %14453 = vst [vmem:[#allocation166_spill] sm:$0xff] %v9887_v33  ;;  %14454 = vst [vmem:[#allocation167_spill] sm:$0xff] %v9890_v14  ;;  %v1708_v43 = vadd.f32 %v1644_v9, %v9600_v18  ;;  %v1836_v0 = vmul.f32 %v9404_v54, %v1721_v2  ;;  %v9904_v12 = vadd.f32 %v1804_v15, %v1676_v3  ;;  %v1909_v15 = vpop.permute.xlu0 %1908 }
 0x143   : > { %v9902_v33 = vpop.permute.xlu1 %1548  ;;  %v9906_v20 = vadd.f32 %v1812_v6, %v1684_v56  ;;  %v9908_v23 = vadd.f32 %v1820_v5, %v1692_v21  ;;  %v9911_v10 = vmul.f32 %v9334_v29, %v1533_v24  ;;  %v9915_v16 = vmul.f32 %v9358_v39, %v9865_v7 }
 0x144   : > { %14455 = vst [vmem:[#allocation168_spill] sm:$0xff] %v9902_v33  ;;  %v9919_v9 = vmul.f32 %v9327_v26, %v9867_v35  ;;  %v1601_v18 = vmul.f32 %v9327_v26, %v9902_v33  ;;  %v9923_v34 = vpack.c.bf16 %v5613_v8, %v5612_v60  ;;  %v9926_v6 = vmul.f32 %v9338_v30, %v1533_v24  ;;  %v5615_v8 = vld [vmem:[#allocation5 + $0xb8] sm:$0xff] }
 0x145   : > { %14456 = vst [vmem:[#allocation169_spill] sm:$0xff] %v9911_v10  ;;  %v9929_v41 = vmul.f32 %v9342_v31, %v1533_v24  ;;  %v9932_v2 = vmul.f32 %v9346_v32, %v1533_v24  ;;  %v9935_v28 = vmul.f32 %v9350_v36, %v1533_v24  ;;  %v9940_v3 = vadd.f32 %v1828_v17, %v1700_v1 }
 0x146   : > { %14457 = vst [vmem:[#allocation170_spill] sm:$0xff] %v9919_v9  ;;  %14458 = vst [vmem:[#allocation171_spill] sm:$0xff] %v9923_v34  ;;  %v9938_v63 = vadd.f32 %v1601_v18, %v9643_v61  ;;  %v9942_v26 = vadd.f32 %v1836_v0, %v1708_v43  ;;  %v9945_v56 = vmul.f32 %v9354_v37, %v1533_v24  ;;  %v1921_v17 = vpop.permute.xlu0 %1920  ;;  %v5614_v43 = vld [vmem:[#allocation5 + $0xb0] sm:$0xff] }
 0x147   : > { %14459 = vst [vmem:[#allocation172_spill] sm:$0xff] %v9926_v6  ;;  %14460 = vst [vmem:[#allocation173_spill] sm:$0xff] %v9929_v41  ;;  %v9948_v21 = vmul.f32 %v9366_v42, %v1533_v24  ;;  %v9952_v5 = vmul.f32 %v9334_v29, %v9867_v35  ;;  %v9956_v60 = vmul.f32 %v9362_v40, %v9838_v25  ;;  %v1717_v0 = vpop.permute.xlu1 %1716  ;;  %v14476_v9 = vld [vmem:[#allocation51_spill] sm:$0xff] }
 0x148   : > { %14461 = vst [vmem:[#allocation174_spill] sm:$0xff] %v9932_v2  ;;  %14462 = vst [vmem:[#allocation175_spill] sm:$0xff] %v9935_v28  ;;  %v9960_v61 = vmul.f32 %v9338_v30, %v9867_v35  ;;  %v9964_v24 = vmul.f32 %v9375_v47, %v9838_v25  ;;  %v9968_v1 = vmul.f32 %v9342_v31, %v9867_v35  ;;  %v14484_v28 = vld [vmem:[#allocation57_spill] sm:$0xff] }
 0x149   : > { %14463 = vst [vmem:[#allocation176_spill] sm:$0xff] %v9945_v56  ;;  %14464 = vst [vmem:[#allocation177_spill] sm:$0xff] %v9948_v21  ;;  %v9972_v18 = vmul.f32 %v9379_v48, %v9838_v25  ;;  %v9976_v30 = vmul.f32 %v9346_v32, %v9867_v35  ;;  %v9988_v31 = vmul.f32 %v14476_v9, %v1909_v15  ;;  %v14482_v32 = vld [vmem:[#allocation56_spill] sm:$0xff] }
 0x14a   : > { %14465 = vst [vmem:[#allocation178_spill] sm:$0xff] %v9952_v5  ;;  %14466 = vst [vmem:[#allocation179_spill] sm:$0xff] %v9956_v60  ;;  %v9982_v60 = vmul.f32 %v9387_v50, %v1909_v15  ;;  %v14474_v5 = vld [vmem:[#allocation50_spill] sm:$0xff]  ;;  %v10000_v2 = vmul.f32 %v14484_v28, %v1909_v15  ;;  %v10002_v41 = vpack.c.bf16 %v5615_v8, %v5614_v43 }
 0x14b   : > { %14467 = vst [vmem:[#allocation180_spill] sm:$0xff] %v9960_v61  ;;  %14468 = vst [vmem:[#allocation181_spill] sm:$0xff] %v9964_v24  ;;  %v9979_v61 = vmul.f32 %v9408_v55, %v1909_v15  ;;  %v9985_v24 = vmul.f32 %v14474_v5, %v1909_v15  ;;  %v10006_v6 = vmul.f32 %v9383_v49, %v9838_v25 }
 0x14c   : > { %14469 = vst [vmem:[#allocation182_spill] sm:$0xff] %v9968_v1  ;;  %14470 = vst [vmem:[#allocation183_spill] sm:$0xff] %v9972_v18  ;;  %v14478_v1 = vld [vmem:[#allocation52_spill] sm:$0xff]  ;;  %v14480_v18 = vld [vmem:[#allocation54_spill] sm:$0xff]  ;;  %v10010_v10 = vmul.f32 %v9350_v36, %v9867_v35  ;;  %v10014_v14 = vmul.f32 %v9396_v51, %v9838_v25  ;;  %v10021_v43 = vmul.f32 %v9354_v37, %v9867_v35 }
 0x14d   : > { %14471 = vst [vmem:[#allocation184_spill] sm:$0xff] %v9976_v30  ;;  %14472 = vst [vmem:[#allocation185_spill] sm:$0xff] %v9979_v61  ;;  %v9991_v21 = vmul.f32 %v14478_v1, %v1909_v15  ;;  %v9994_v56 = vmul.f32 %v14480_v18, %v1909_v15  ;;  %v9997_v30 = vmul.f32 %v14482_v32, %v1909_v15  ;;  %v1725_v15 = vpop.permute.xlu1 %1724  ;;  %v14549_v61 = vld [vmem:[#allocation62_spill] sm:$0xff] }
 0x14e   : > { %14473 = vst [vmem:[#allocation186_spill] sm:$0xff] %v9982_v60  ;;  %14475 = vst [vmem:[#allocation187_spill] sm:$0xff] %v9985_v24  ;;  %v10025_v8 = vmul.f32 %v9400_v53, %v9838_v25  ;;  %v10041_v37 = vmul.f32 %v9379_v48, %v1717_v0  ;;  %v10073_v34 = vmul.f32 %v14480_v18, %v1921_v17  ;;  %v14547_v24 = vld [vmem:[#allocation60_spill] sm:$0xff] }
 0x14f   : > { %14477 = vst [vmem:[#allocation188_spill] sm:$0xff] %v9988_v31  ;;  %14479 = vst [vmem:[#allocation189_spill] sm:$0xff] %v9991_v21  ;;  %v10065_v21 = vmul.f32 %v14478_v1, %v1921_v17 }
 0x150   : > { %14481 = vst [vmem:[#allocation190_spill] sm:$0xff] %v9994_v56  ;;  %14483 = vst [vmem:[#allocation191_spill] sm:$0xff] %v9997_v30  ;;  %v10017_v56 = vmul.f32 %v9387_v50, %v1921_v17  ;;  %v1929_v30 = vpop.permute.xlu0 %1928 }
 0x151   : > { %14485 = vst [vmem:[#allocation192_spill] sm:$0xff] %v10000_v2  ;;  %14486 = vst [vmem:[#allocation193_spill] sm:$0xff] %v10002_v41  ;;  %v10038_v41 = vmul.f32 %v9375_v47, %v1717_v0  ;;  %v10059_v2 = vmul.f32 %v9404_v54, %v1717_v0  ;;  %v10068_v31 = vmul.f32 %v9387_v50, %v1929_v30 }
 0x152   : > { %14487 = vst [vmem:[#allocation194_spill] sm:$0xff] %v10006_v6  ;;  %14488 = vst [vmem:[#allocation195_spill] sm:$0xff] %v10010_v10  ;;  %v10029_v10 = vmul.f32 %v9366_v42, %v9867_v35  ;;  %v10032_v6 = vmul.f32 %v9362_v40, %v1717_v0  ;;  %v10050_v35 = vmul.f32 %v9396_v51, %v1717_v0 }
 0x153   : > { %14489 = vst [vmem:[#allocation196_spill] sm:$0xff] %v10014_v14  ;;  %14490 = vst [vmem:[#allocation197_spill] sm:$0xff] %v10017_v56  ;;  %v10035_v14 = vmul.f32 %v9358_v39, %v1717_v0  ;;  %v10053_v42 = vmul.f32 %v9400_v53, %v1717_v0  ;;  %v10062_v56 = vmul.f32 %v14476_v9, %v1921_v17 }
 0x154   : > { %14491 = vst [vmem:[#allocation198_spill] sm:$0xff] %v10021_v43  ;;  %14492 = vst [vmem:[#allocation199_spill] sm:$0xff] %v10025_v8  ;;  %v10044_v43 = vmul.f32 %v9383_v49, %v1717_v0  ;;  %v10047_v8 = vmul.f32 %v9408_v55, %v1921_v17  ;;  %v10076_v0 = vmul.f32 %v14482_v32, %v1921_v17 }
 0x155   : > { %14493 = vst [vmem:[#allocation200_spill] sm:$0xff] %v10029_v10  ;;  %14494 = vst [vmem:[#allocation201_spill] sm:$0xff] %v10032_v6  ;;  %v10056_v10 = vmul.f32 %v14474_v5, %v1921_v17  ;;  %v14551_v6 = vld [vmem:[#allocation64_spill] sm:$0xff] }
 0x156   : > { %14495 = vst [vmem:[#allocation202_spill] sm:$0xff] %v10035_v14  ;;  %14496 = vst [vmem:[#allocation203_spill] sm:$0xff] %v10038_v41  ;;  %v14550_v41 = vld [vmem:[#allocation63_spill] sm:$0xff] }
 0x157   : > { %14497 = vst [vmem:[#allocation204_spill] sm:$0xff] %v10041_v37  ;;  %14498 = vst [vmem:[#allocation205_spill] sm:$0xff] %v10044_v43  ;;  %v5025_v43 = vld [vmem:[#allocation5 + $0x80] sm:$0xff]  ;;  %v14546_v37 = vld [vmem:[#allocation59_spill] sm:$0xff] }
 0x158   : > { %14499 = vst [vmem:[#allocation206_spill] sm:$0xff] %v10047_v8  ;;  %14500 = vst [vmem:[#allocation207_spill] sm:$0xff] %v10050_v35  ;;  %v5026_v8 = vld [vmem:[#allocation5 + $0x88] sm:$0xff]  ;;  %v10070_v35 = vpop.permute.xlu0 %1936 }
 0x159   : > { %14501 = vst [vmem:[#allocation208_spill] sm:$0xff] %v10053_v42  ;;  %14502 = vst [vmem:[#allocation209_spill] sm:$0xff] %v10056_v10  ;;  %v1729_v42 = vpop.permute.xlu1 %1728  ;;  %v10091_v10 = vmul.f32 %v9379_v48, %v1725_v15 }
 0x15a   : > { %14503 = vst [vmem:[#allocation210_spill] sm:$0xff] %v10059_v2  ;;  %14504 = vst [vmem:[#allocation211_spill] sm:$0xff] %v10062_v56  ;;  %v10079_v2 = vmul.f32 %v14484_v28, %v1921_v17  ;;  %v10082_v56 = vmul.f32 %v9358_v39, %v1725_v15  ;;  %v10100_v17 = vmul.f32 %v9396_v51, %v1725_v15 }
 0x15b   : > { %14505 = vst [vmem:[#allocation212_spill] sm:$0xff] %v10065_v21  ;;  %14506 = vst [vmem:[#allocation213_spill] sm:$0xff] %v10068_v31  ;;  %v10085_v21 = vmul.f32 %v9362_v40, %v1725_v15  ;;  %v10088_v31 = vmul.f32 %v9375_v47, %v1725_v15 }
 0x15c   : > { %14507 = vst [vmem:[#allocation214_spill] sm:$0xff] %v10070_v35  ;;  %14508 = vst [vmem:[#allocation215_spill] sm:$0xff] %v10073_v34  ;;  %v10094_v34 = vmul.f32 %v9383_v49, %v1725_v15 }
 0x15d   : > { %14509 = vst [vmem:[#allocation216_spill] sm:$0xff] %v10076_v0  ;;  %14510 = vst [vmem:[#allocation217_spill] sm:$0xff] %v10079_v2  ;;  %v10097_v0 = vmul.f32 %v9408_v55, %v1929_v30  ;;  %v10102_v2 = vpack.c.bf16 %v5026_v8, %v5025_v43  ;;  %v10121_v43 = vmul.f32 %v14478_v1, %v1929_v30 }
 0x15e   : > { %14511 = vst [vmem:[#allocation218_spill] sm:$0xff] %v10082_v56  ;;  %14512 = vst [vmem:[#allocation219_spill] sm:$0xff] %v10085_v21  ;;  %v10105_v56 = vmul.f32 %v9400_v53, %v1725_v15  ;;  %v10108_v21 = vmul.f32 %v14474_v5, %v1929_v30  ;;  %v10124_v8 = vmul.f32 %v14480_v18, %v1929_v30 }
 0x15f   : > { %14513 = vst [vmem:[#allocation220_spill] sm:$0xff] %v10088_v31  ;;  %14514 = vst [vmem:[#allocation221_spill] sm:$0xff] %v10091_v10  ;;  %v10111_v31 = vmul.f32 %v9404_v54, %v1725_v15  ;;  %v10114_v10 = vmul.f32 %v14476_v9, %v1929_v30  ;;  %v10130_v15 = vmul.f32 %v9358_v39, %v1729_v42 }
 0x160   : > { %14515 = vst [vmem:[#allocation222_spill] sm:$0xff] %v10094_v34  ;;  %14516 = vst [vmem:[#allocation223_spill] sm:$0xff] %v10097_v0  ;;  %v10118_v0 = vmul.f32 %v9387_v50, %v10070_v35  ;;  %v1737_v34 = vpop.permute.xlu1 %1736 }
 0x161   : > { %14517 = vst [vmem:[#allocation224_spill] sm:$0xff] %v10100_v17  ;;  %14518 = vst [vmem:[#allocation225_spill] sm:$0xff] %v10102_v2  ;;  %v10151_v17 = vmul.f32 %v9404_v54, %v1729_v42  ;;  %v5027_v2 = vld [vmem:[#allocation5 + $0x90] sm:$0xff] }
 0x162   : > { %14519 = vst [vmem:[#allocation226_spill] sm:$0xff] %v10105_v56  ;;  %14520 = vst [vmem:[#allocation227_spill] sm:$0xff] %v10108_v21  ;;  %v10127_v56 = vmul.f32 %v14482_v32, %v1929_v30  ;;  %v10136_v21 = vmul.f32 %v9375_v47, %v1729_v42 }
 0x163   : > { %14521 = vst [vmem:[#allocation228_spill] sm:$0xff] %v10111_v31  ;;  %14522 = vst [vmem:[#allocation229_spill] sm:$0xff] %v10114_v10  ;;  %v2105_v31 = vpop.permute.xlu0 %2104  ;;  %v10133_v10 = vmul.f32 %v9362_v40, %v1729_v42 }
 0x164   : > { %14523 = vst [vmem:[#allocation230_spill] sm:$0xff] %v10118_v0  ;;  %14524 = vst [vmem:[#allocation231_spill] sm:$0xff] %v10121_v43  ;;  %v10139_v0 = vmul.f32 %v9379_v48, %v1729_v42  ;;  %v10142_v43 = vmul.f32 %v9383_v49, %v1729_v42  ;;  %v2180_v60 = vmul.f32 %v14547_v24, %v2105_v31 }
 0x165   : > { %14525 = vst [vmem:[#allocation232_spill] sm:$0xff] %v10124_v8  ;;  %14526 = vst [vmem:[#allocation233_spill] sm:$0xff] %v10127_v56  ;;  %v10145_v8 = vmul.f32 %v9396_v51, %v1729_v42  ;;  %v10148_v56 = vmul.f32 %v9400_v53, %v1729_v42  ;;  %v10169_v42 = vmul.f32 %v9358_v39, %v1737_v34 }
 0x166   : > { %14527 = vst [vmem:[#allocation234_spill] sm:$0xff] %v10130_v15  ;;  %14528 = vst [vmem:[#allocation235_spill] sm:$0xff] %v10133_v10  ;;  %v5028_v15 = vld [vmem:[#allocation5 + $0x98] sm:$0xff]  ;;  %v10154_v10 = vmul.f32 %v14484_v28, %v1929_v30  ;;  %v10175_v30 = vmul.f32 %v14476_v9, %v10070_v35  ;;  %v2204_v14 = vmul.f32 %v14550_v41, %v2105_v31 }
 0x167   : > { %14529 = vst [vmem:[#allocation236_spill] sm:$0xff] %v10136_v21  ;;  %14530 = vst [vmem:[#allocation237_spill] sm:$0xff] %v10139_v0  ;;  %v10158_v0 = vmul.f32 %v9408_v55, %v10070_v35  ;;  %v10190_v21 = vpack.c.bf16 %v5028_v15, %v5027_v2  ;;  %v2212_v57 = vmul.f32 %v14551_v6, %v2105_v31 }
 0x168   : > { %14531 = vst [vmem:[#allocation238_spill] sm:$0xff] %v10142_v43  ;;  %14532 = vst [vmem:[#allocation239_spill] sm:$0xff] %v10145_v8  ;;  %v10162_v43 = vmul.f32 %v14474_v5, %v10070_v35  ;;  %v10166_v8 = vmul.f32 %v9404_v54, %v9838_v25  ;;  %v2220_v44 = vmul.f32 %v14552_v19, %v2105_v31 }
 0x169   : > { %14533 = vst [vmem:[#allocation240_spill] sm:$0xff] %v10148_v56  ;;  %14534 = vst [vmem:[#allocation241_spill] sm:$0xff] %v10151_v17  ;;  %v10171_v17 = vpop.permute.xlu1 %1744  ;;  %v14542_v56 = vld [vmem:[#allocation55_spill] sm:$0xff]  ;;  %v10203_v2 = vmul.f32 %v9383_v49, %v1737_v34  ;;  %v10206_v15 = vmul.f32 %v9396_v51, %v1737_v34 }
 0x16a   : > { %14535 = vst [vmem:[#allocation242_spill] sm:$0xff] %v10154_v10  ;;  %14536 = vst [vmem:[#allocation243_spill] sm:$0xff] %v10158_v0  ;;  %v1593_v0 = vmul.f32 %v9334_v29, %v9902_v33  ;;  %v10181_v10 = vmul.f32 %v9362_v40, %v9865_v7  ;;  %v2164_v25 = vmul.f32 %v14542_v56, %v2105_v31  ;;  %v14548_v29 = vld [vmem:[#allocation61_spill] sm:$0xff] }
 0x16b   : > { %14537 = vst [vmem:[#allocation244_spill] sm:$0xff] %v10162_v43  ;;  %14538 = vst [vmem:[#allocation245_spill] sm:$0xff] %v10166_v8  ;;  %v2117_v43 = vpop.permute.xlu0 %2116  ;;  %v10185_v8 = vmul.f32 %v9362_v40, %v1737_v34  ;;  %v2188_v33 = vmul.f32 %v14548_v29, %v2105_v31  ;;  %v2196_v7 = vmul.f32 %v14549_v61, %v2105_v31 }
 0x16c   : > { %14539 = vst [vmem:[#allocation246_spill] sm:$0xff] %v10169_v42  ;;  %14540 = vst [vmem:[#allocation247_spill] sm:$0xff] %v10171_v17  ;;  %v10188_v42 = vmul.f32 %v9375_v47, %v1737_v34  ;;  %v10216_v45 = vmul.f32 %v9358_v39, %v10171_v17  ;;  %v10225_v51 = vmul.f32 %v9362_v40, %v10171_v17 }
 0x16d   : > { %14541 = vst [vmem:[#allocation248_spill] sm:$0xff] %v10175_v30  ;;  %14543 = vst [vmem:[#allocation55_spill] sm:$0xff] %v10185_v8  ;;  %v2172_v30 = vmul.f32 %v14546_v37, %v2105_v31  ;;  %v10200_v8 = vmul.f32 %v9379_v48, %v1737_v34  ;;  %v1913_v62 = vpop.permute.xlu1 %1912 }
 0x16e   : > { %14544 = vst [vmem:[#allocation249_spill] sm:$0xff] %v10188_v42  ;;  %14545 = vst [vmem:[#allocation250_spill] sm:$0xff] %v10190_v21  ;;  %v10209_v42 = vmul.f32 %v9400_v53, %v1737_v34  ;;  %v10212_v21 = vadd.f32 %v1593_v0, %v9879_v13  ;;  %v10229_v53 = vadd.f32 %v9915_v16, %v9938_v63 }
 0x16f   : > { %14553 = vst [vmem:[#allocation251_spill] sm:$0xff] %v10200_v8  ;;  %14554 = vst [vmem:[#allocation252_spill] sm:$0xff] %v10203_v2  ;;  %v10218_v31 = vpop.permute.xlu0 %2124  ;;  %v10221_v8 = vmul.f32 %v9404_v54, %v1737_v34  ;;  %v1980_v13 = vmul.f32 %v9387_v50, %v1913_v62  ;;  %v1972_v0 = vmul.f32 %v9408_v55, %v1913_v62 }
 0x170   : > { %14555 = vst [vmem:[#allocation253_spill] sm:$0xff] %v10206_v15  ;;  %14556 = vst [vmem:[#allocation254_spill] sm:$0xff] %v10209_v42  ;;  %v1988_v39 = vmul.f32 %v14474_v5, %v1913_v62  ;;  %v2004_v42 = vmul.f32 %v14478_v1, %v1913_v62  ;;  %v2012_v34 = vmul.f32 %v14480_v18, %v1913_v62 }
 0x171   : > { %14557 = vst [vmem:[#allocation255_spill] sm:$0xff] %v10216_v45  ;;  %14558 = vst [vmem:[#allocation256_spill] sm:$0xff] %v10218_v31  ;;  %v1996_v45 = vmul.f32 %v14476_v9, %v1913_v62  ;;  %v2020_v54 = vmul.f32 %v14482_v32, %v1913_v62  ;;  %v2028_v40 = vmul.f32 %v14484_v28, %v1913_v62 }
 0x172   : > { %14559 = vst [vmem:[#allocation257_spill] sm:$0xff] %v10221_v8  ;;  %14560 = vst [vmem:[#allocation258_spill] sm:$0xff] %v10225_v51  ;;  %v10240_v51 = vmul.f32 %v14542_v56, %v2117_v43  ;;  %v10243_v16 = vmul.f32 %v14546_v37, %v2117_v43  ;;  %v10246_v63 = vmul.f32 %v14547_v24, %v2117_v43  ;;  %v1917_v8 = vpop.permute.xlu1 %1916 }
 0x173   : > { %14561 = vst [vmem:[#allocation259_spill] sm:$0xff] %v10229_v53  ;;  %v10250_v53 = vmul.f32 %v9375_v47, %v10171_v17  ;;  %v10253_v15 = vmul.f32 %v14548_v29, %v2117_v43  ;;  %v10256_v2 = vmul.f32 %v14549_v61, %v2117_v43  ;;  %v10259_v62 = vmul.f32 %v14550_v41, %v2117_v43 }
 0x174   : > { %14562 = vst [vmem:[#allocation260_spill] sm:$0xff] %v10240_v51  ;;  %14563 = vst [vmem:[#allocation261_spill] sm:$0xff] %v10243_v16  ;;  %v10262_v51 = vmul.f32 %v14551_v6, %v2117_v43  ;;  %v2293_v16 = vpop.permute.xlu0 %2292  ;;  %v2044_v4 = vadd.f32 %v1980_v13, %v9894_v59  ;;  %v2052_v47 = vadd.f32 %v1988_v39, %v9896_v27 }
 0x175   : > { %14564 = vst [vmem:[#allocation262_spill] sm:$0xff] %v10246_v63  ;;  %14565 = vst [vmem:[#allocation263_spill] sm:$0xff] %v10250_v53  ;;  %v2036_v63 = vadd.f32 %v1972_v0, %v9892_v58  ;;  %v2060_v53 = vadd.f32 %v1996_v45, %v9904_v12  ;;  %v2076_v11 = vadd.f32 %v2012_v34, %v9908_v23  ;;  %v14577_v23 = vld [vmem:[#allocation23_spill] sm:$0xff] }
 0x176   : > { %14566 = vst [vmem:[#allocation264_spill] sm:$0xff] %v10253_v15  ;;  %14567 = vst [vmem:[#allocation265_spill] sm:$0xff] %v10256_v2  ;;  %v2068_v15 = vadd.f32 %v2004_v42, %v9906_v20  ;;  %v2084_v2 = vadd.f32 %v2020_v54, %v9940_v3  ;;  %v10273_v31 = vmul.f32 %v14552_v19, %v2117_v43  ;;  %v10290_v54 = vpop.permute.xlu1 %1924 }
 0x177   : > { %14568 = vst [vmem:[#allocation266_spill] sm:$0xff] %v10259_v62  ;;  %14569 = vst [vmem:[#allocation267_spill] sm:$0xff] %v10262_v51  ;;  %v2092_v62 = vadd.f32 %v2028_v40, %v9942_v26  ;;  %v10277_v58 = vmul.f32 %v9379_v48, %v10171_v17  ;;  %v10281_v59 = vmul.f32 %v9383_v49, %v10171_v17  ;;  %v14580_v48 = vld [vmem:[#allocation66_spill] sm:$0xff] }
 0x178   : > { %14570 = vst [vmem:[#allocation268_spill] sm:$0xff] %v10273_v31  ;;  %v10285_v45 = vmul.f32 %v14478_v1, %v10070_v35  ;;  %v10288_v12 = vmul.f32 %v9387_v50, %v1917_v8  ;;  %v10294_v27 = vmul.f32 %v9306_v22, %v9730_v46  ;;  %v10298_v20 = vmul.f32 %v9350_v36, %v9728_v52  ;;  %v2305_v26 = vpop.permute.xlu0 %2304  ;;  %v14579_v22 = vld [vmem:[#allocation65_spill] sm:$0xff] }
 0x179   : > { %14571 = vst [vmem:[#allocation269_spill] sm:$0xff] %v10277_v58  ;;  %14572 = vst [vmem:[#allocation270_spill] sm:$0xff] %v10281_v59  ;;  %v10302_v3 = vmul.f32 %v14577_v23, %v9489_v38  ;;  %v10304_v43 = vadd.f32 %v2164_v25, %v2036_v63  ;;  %v10306_v42 = vadd.f32 %v2172_v30, %v2044_v4  ;;  %v14581_v4 = vld [vmem:[#allocation67_spill] sm:$0xff] }
 0x17a   : > { %14573 = vst [vmem:[#allocation271_spill] sm:$0xff] %v10285_v45  ;;  %14574 = vst [vmem:[#allocation272_spill] sm:$0xff] %v10288_v12  ;;  %v10308_v13 = vadd.f32 %v2180_v60, %v2052_v47  ;;  %v10310_v0 = vadd.f32 %v2188_v33, %v2060_v53  ;;  %v10312_v39 = vadd.f32 %v2196_v7, %v2068_v15  ;;  %v14582_v47 = vld [vmem:[#allocation70_spill] sm:$0xff]  ;;  %v14588_v33 = vld [vmem:[#allocation72_spill] sm:$0xff] }
 0x17b   : > { %14575 = vst [vmem:[#allocation273_spill] sm:$0xff] %v10294_v27  ;;  %14576 = vst [vmem:[#allocation274_spill] sm:$0xff] %v10298_v20  ;;  %v10314_v34 = vadd.f32 %v2204_v14, %v2076_v11  ;;  %v10316_v40 = vadd.f32 %v2212_v57, %v2084_v2  ;;  %v10318_v36 = vadd.f32 %v2220_v44, %v2092_v62  ;;  %v10336_v11 = vpop.permute.xlu1 %1932  ;;  %v14586_v57 = vld [vmem:[#allocation71_spill] sm:$0xff]  ;;  %v14590_v60 = vld [vmem:[#allocation73_spill] sm:$0xff] }
 0x17c   : > { %14578 = vst [vmem:[#allocation23_spill] sm:$0xff] %v10302_v3  ;;  %v10321_v49 = vmul.f32 %v14579_v22, %v2293_v16  ;;  %v10324_v25 = vmul.f32 %v14580_v48, %v2293_v16  ;;  %v10327_v30 = vmul.f32 %v14581_v4, %v2293_v16  ;;  %v10330_v53 = vmul.f32 %v14582_v47, %v2293_v16  ;;  %v2313_v15 = vpop.permute.xlu0 %2312  ;;  %v14593_v62 = vld [vmem:[#allocation77_spill] sm:$0xff]  ;;  %v6787_v27 = vld [vmem:[#allocation5 + $0xe8] sm:$0xff] }
 0x17d   : > { %v10334_v7 = vmul.f32 %v9387_v50, %v10290_v54  ;;  %14585 = vst [vmem:[#allocation67_spill] sm:$0xff] %v10336_v11  ;;  %v10339_v44 = vmul.f32 %v14586_v57, %v2293_v16  ;;  %v10342_v14 = vmul.f32 %v14588_v33, %v2293_v16  ;;  %v10345_v2 = vmul.f32 %v14590_v60, %v2293_v16  ;;  %v14648_v12 = vld [vmem:[#allocation79_spill] sm:$0xff] }
 0x17e   : > { %14583 = vst [vmem:[#allocation65_spill] sm:$0xff] %v10330_v53  ;;  %v10348_v63 = vmul.f32 %v14579_v22, %v2305_v26  ;;  %v10351_v38 = vmul.f32 %v14593_v62, %v2293_v16  ;;  %v10354_v52 = vmul.f32 %v9408_v55, %v1917_v8  ;;  %v10357_v46 = vmul.f32 %v14474_v5, %v1917_v8  ;;  %v6786_v16 = vld [vmem:[#allocation5 + $0xe0] sm:$0xff] }
 0x17f   : > { %14584 = vst [vmem:[#allocation66_spill] sm:$0xff] %v10334_v7  ;;  %14587 = vst [vmem:[#allocation70_spill] sm:$0xff] %v10339_v44  ;;  %v10360_v3 = vmul.f32 %v14580_v48, %v2305_v26  ;;  %v10363_v35 = vmul.f32 %v14581_v4, %v2305_v26  ;;  %v10366_v20 = vmul.f32 %v14582_v47, %v2305_v26 }
 0x180   : > { %14589 = vst [vmem:[#allocation275_spill] sm:$0xff] %v10342_v14  ;;  %14591 = vst [vmem:[#allocation276_spill] sm:$0xff] %v10345_v2  ;;  %v10369_v17 = vmul.f32 %v14586_v57, %v2305_v26  ;;  %v10372_v45 = vmul.f32 %v14588_v33, %v2305_v26  ;;  %v10375_v59 = vmul.f32 %v14590_v60, %v2305_v26 }
 0x181   : > { %14592 = vst [vmem:[#allocation277_spill] sm:$0xff] %v10348_v63  ;;  %14594 = vst [vmem:[#allocation77_spill] sm:$0xff] %v10351_v38  ;;  %v10378_v31 = vmul.f32 %v14476_v9, %v1917_v8  ;;  %v10381_v58 = vmul.f32 %v14593_v62, %v2305_v26  ;;  %v10385_v51 = vmul.f32 %v9387_v50, %v10336_v11 }
 0x182   : > { %14595 = vst [vmem:[#allocation278_spill] sm:$0xff] %v10354_v52  ;;  %14596 = vst [vmem:[#allocation279_spill] sm:$0xff] %v10357_v46  ;;  %v10388_v7 = vmul.f32 %v14478_v1, %v1917_v8  ;;  %v10391_v46 = vmul.f32 %v14480_v18, %v1917_v8  ;;  %v10403_v26 = vmul.f32 %v9408_v55, %v10290_v54  ;;  %v14647_v52 = vld [vmem:[#allocation78_spill] sm:$0xff] }
 0x183   : > { %14597 = vst [vmem:[#allocation280_spill] sm:$0xff] %v10360_v3  ;;  %14598 = vst [vmem:[#allocation281_spill] sm:$0xff] %v10363_v35  ;;  %v10405_v50 = vpack.c.bf16 %v6787_v27, %v6786_v16  ;;  %v10424_v27 = vmul.f32 %v14586_v57, %v2313_v15  ;;  %v10427_v16 = vmul.f32 %v14588_v33, %v2313_v15 }
 0x184   : > { %14599 = vst [vmem:[#allocation282_spill] sm:$0xff] %v10366_v20  ;;  %14600 = vst [vmem:[#allocation283_spill] sm:$0xff] %v10369_v17  ;;  %v2101_v17 = vpop.permute.xlu1 %2100 }
 0x185   : > { %14601 = vst [vmem:[#allocation284_spill] sm:$0xff] %v10372_v45  ;;  %14602 = vst [vmem:[#allocation285_spill] sm:$0xff] %v10375_v59  ;;  %v10394_v45 = vmul.f32 %v14482_v32, %v1917_v8  ;;  %v10396_v59 = vpop.permute.xlu0 %2320 }
 0x186   : > { %14603 = vst [vmem:[#allocation286_spill] sm:$0xff] %v10378_v31  ;;  %14604 = vst [vmem:[#allocation287_spill] sm:$0xff] %v10381_v58  ;;  %v10399_v31 = vmul.f32 %v14484_v28, %v1917_v8  ;;  %v6789_v58 = vld [vmem:[#allocation5 + $0xf8] sm:$0xff]  ;;  %v10418_v8 = vmul.f32 %v14581_v4, %v2313_v15 }
 0x187   : > { %14605 = vst [vmem:[#allocation288_spill] sm:$0xff] %v10385_v51  ;;  %14606 = vst [vmem:[#allocation289_spill] sm:$0xff] %v10388_v7  ;;  %v6788_v51 = vld [vmem:[#allocation5 + $0xf0] sm:$0xff]  ;;  %v10415_v7 = vmul.f32 %v14580_v48, %v2313_v15 }
 0x188   : > { %14607 = vst [vmem:[#allocation290_spill] sm:$0xff] %v10391_v46  ;;  %14608 = vst [vmem:[#allocation291_spill] sm:$0xff] %v10394_v45  ;;  %v10409_v46 = vadd.f32 %v10181_v10, %v10212_v21  ;;  %v10412_v45 = vmul.f32 %v14579_v22, %v2313_v15  ;;  %v10431_v10 = vmul.f32 %v14474_v5, %v10290_v54 }
 0x189   : > { %14609 = vst [vmem:[#allocation292_spill] sm:$0xff] %v10396_v59  ;;  %14610 = vst [vmem:[#allocation293_spill] sm:$0xff] %v10399_v31  ;;  %v10421_v31 = vmul.f32 %v14582_v47, %v2313_v15  ;;  %v10434_v21 = vmul.f32 %v14590_v60, %v2313_v15  ;;  %v10450_v5 = vmul.f32 %v14542_v56, %v2101_v17 }
 0x18a   : > { %14611 = vst [vmem:[#allocation294_spill] sm:$0xff] %v10403_v26  ;;  %14612 = vst [vmem:[#allocation295_spill] sm:$0xff] %v10405_v50  ;;  %v10438_v26 = vmul.f32 %v14476_v9, %v10290_v54  ;;  %v6200_v9 = vld [vmem:[#allocation5 + $0xc8] sm:$0xff] }
 0x18b   : > { %14613 = vst [vmem:[#allocation296_spill] sm:$0xff] %v10412_v45  ;;  %14614 = vst [vmem:[#allocation297_spill] sm:$0xff] %v10415_v7 }
 0x18c   : > { %14615 = vst [vmem:[#allocation298_spill] sm:$0xff] %v10418_v8  ;;  %14616 = vst [vmem:[#allocation299_spill] sm:$0xff] %v10421_v31  ;;  %v10441_v31 = vmul.f32 %v14593_v62, %v2313_v15  ;;  %v10443_v8 = vpack.c.bf16 %v6789_v58, %v6788_v51  ;;  %v10458_v15 = vmul.f32 %v14482_v32, %v10290_v54  ;;  %v2489_v58 = vpop.permute.xlu0 %2488 }
 0x18d   : > { %14617 = vst [vmem:[#allocation300_spill] sm:$0xff] %v10424_v27  ;;  %14618 = vst [vmem:[#allocation301_spill] sm:$0xff] %v10427_v16  ;;  %v10447_v16 = vmul.f32 %v14478_v1, %v10290_v54  ;;  %v2109_v27 = vpop.permute.xlu1 %2108  ;;  %v10462_v51 = vmul.f32 %v14484_v28, %v10290_v54  ;;  %v10465_v1 = vmul.f32 %v14546_v37, %v2101_v17 }
 0x18e   : > { %14619 = vst [vmem:[#allocation302_spill] sm:$0xff] %v10431_v10  ;;  %14620 = vst [vmem:[#allocation303_spill] sm:$0xff] %v10434_v21  ;;  %v10454_v21 = vmul.f32 %v14480_v18, %v10290_v54  ;;  %v6199_v10 = vld [vmem:[#allocation5 + $0xc0] sm:$0xff]  ;;  %v10471_v18 = vmul.f32 %v14548_v29, %v2101_v17  ;;  %v10477_v32 = vmul.f32 %v14550_v41, %v2101_v17 }
 0x18f   : > { %14621 = vst [vmem:[#allocation304_spill] sm:$0xff] %v10438_v26  ;;  %14622 = vst [vmem:[#allocation305_spill] sm:$0xff] %v10441_v31  ;;  %v10468_v31 = vmul.f32 %v14547_v24, %v2101_v17  ;;  %v10483_v54 = vmul.f32 %v14552_v19, %v2101_v17  ;;  %v10487_v28 = vmul.f32 %v14579_v22, %v10396_v59 }
 0x190   : > { %14623 = vst [vmem:[#allocation306_spill] sm:$0xff] %v10443_v8  ;;  %14624 = vst [vmem:[#allocation307_spill] sm:$0xff] %v10447_v16  ;;  %v10493_v16 = vmul.f32 %v14580_v48, %v10396_v59  ;;  %v10497_v26 = vmul.f32 %v14581_v4, %v10396_v59  ;;  %v10501_v8 = vmul.f32 %v14582_v47, %v10396_v59  ;;  %v2501_v45 = vpop.permute.xlu0 %2500 }
 0x191   : > { %14625 = vst [vmem:[#allocation308_spill] sm:$0xff] %v10454_v21  ;;  %14626 = vst [vmem:[#allocation309_spill] sm:$0xff] %v10458_v15  ;;  %v10474_v21 = vmul.f32 %v14549_v61, %v2101_v17  ;;  %v10480_v15 = vmul.f32 %v14551_v6, %v2101_v17  ;;  %v2113_v17 = vpop.permute.xlu1 %2112  ;;  %v10504_v7 = vmul.f32 %v14542_v56, %v2109_v27 }
 0x192   : > { %14627 = vst [vmem:[#allocation310_spill] sm:$0xff] %v10462_v51  ;;  %14628 = vst [vmem:[#allocation311_spill] sm:$0xff] %v10471_v18  ;;  %v10489_v51 = vpack.c.bf16 %v6200_v9, %v6199_v10  ;;  %v1977_v9 = vmul.f32 %v9408_v55, %v10336_v11  ;;  %v14639_v10 = vld [vmem:[#allocation256_spill] sm:$0xff]  ;;  %v10524_v55 = vmul.f32 %v14547_v24, %v2109_v27 }
 0x193   : > { %14629 = vst [vmem:[#allocation312_spill] sm:$0xff] %v10474_v21  ;;  %14630 = vst [vmem:[#allocation313_spill] sm:$0xff] %v10477_v32  ;;  %v10527_v11 = vmul.f32 %v14548_v29, %v2109_v27  ;;  %v10536_v20 = vmul.f32 %v14647_v52, %v2489_v58  ;;  %v10539_v38 = vmul.f32 %v14648_v12, %v2489_v58 }
 0x194   : > { %14631 = vst [vmem:[#allocation314_spill] sm:$0xff] %v10480_v15  ;;  %14632 = vst [vmem:[#allocation315_spill] sm:$0xff] %v10483_v54  ;;  %v695_v54 = vpop.f32.mrb[0].mxu1  ;;  %v10551_v3 = vmul.f32 %v14549_v61, %v2109_v27  ;;  %v10556_v32 = vmul.f32 %v14550_v41, %v2109_v27  ;;  %v10559_v44 = vmul.f32 %v14551_v6, %v2109_v27  ;;  %v10564_v18 = vpop.permute.xlu0 %2508 }
 0x195   : > { %14633 = vst [vmem:[#allocation316_spill] sm:$0xff] %v10487_v28  ;;  %14634 = vst [vmem:[#allocation317_spill] sm:$0xff] %v10489_v51  ;;  %v2169_v28 = vmul.f32 %v14542_v56, %v14639_v10  ;;  %v14645_v10 = vld [vmem:[#allocation75_spill] sm:$0xff]  ;;  %v2121_v63 = vpop.permute.xlu1 %2120  ;;  %v10562_v21 = vmul.f32 %v14552_v19, %v2109_v27  ;;  %v7886_v53 = vpop.f32.mrb[1].mxu1 }
 0x196   : > { %14635 = vst [vmem:[#allocation318_spill] sm:$0xff] %v10493_v16  ;;  %14636 = vst [vmem:[#allocation319_spill] sm:$0xff] %v10497_v26  ;;  %v10512_v16 = vmul.f32 %v14586_v57, %v10396_v59  ;;  %v7657_v26 = vld [vmem:[%s13923_s4] ss:$0 sm:$0xff]  ;;  %v10530_v59 = vmul.f32 %v14645_v10, %v2489_v58  ;;  %v10582_v53 = vmul.f32 %v14549_v61, %v2113_v17 }
 0x197   : > { %14637 = vst [vmem:[#allocation320_spill] sm:$0xff] %v10501_v8  ;;  %14638 = vst [vmem:[#allocation321_spill] sm:$0xff] %v10504_v7  ;;  %v14641_v8 = vld [vmem:[#allocation74_spill] sm:$0xff]  ;;  %v10521_v7 = vmul.f32 %v14546_v37, %v2109_v27  ;;  %v10553_v14 = vadd.f32 %v7657_v26, %v695_v54  ;;  %v10573_v26 = vmul.f32 %v14547_v24, %v2113_v17 }
 0x198   : > { %14640 = vst [vmem:[#allocation322_spill] sm:$0xff] %v10512_v16  ;;  %v10518_v51 = vmul.f32 %v14641_v8, %v2489_v58  ;;  %14643 = vst [vmem:[#allocation323_spill] sm:$0xff] %v10524_v55  ;;  %v14646_v16 = vld [vmem:[#allocation76_spill] sm:$0xff]  ;;  %v14650_v55 = vld [vmem:[#allocation83_spill] sm:$0xff]  ;;  %v10576_v54 = vmul.f32 %v14548_v29, %v2113_v17 }
 0x199   : > { %14642 = vst [vmem:[#allocation74_spill] sm:$0xff] %v10521_v7  ;;  %14644 = vst [vmem:[#allocation324_spill] sm:$0xff] %v10527_v11  ;;  %v10533_v50 = vmul.f32 %v14646_v16, %v2489_v58  ;;  %v14649_v7 = vld [vmem:[#allocation82_spill] sm:$0xff]  ;;  %v10545_v2 = vmul.f32 %v14650_v55, %v2489_v58  ;;  %v14651_v11 = vld [vmem:[#allocation85_spill] sm:$0xff]  ;;  %v1172_v27 = vsel %vm1171_vm9, %v10553_v14, -inf }
 0x19a   : > { %v10542_v35 = vmul.f32 %v14649_v7, %v2489_v58  ;;  %v10548_v15 = vmul.f32 %v14651_v11, %v2489_v58  ;;  %14653 = vst [vmem:[#allocation76_spill] sm:$0xff] %v10551_v3  ;;  %14654 = vst [vmem:[#allocation78_spill] sm:$0xff] %v10553_v14  ;;  %v10567_v58 = vmul.f32 %v14542_v56, %v2113_v17  ;;  %1173 = vmax.xlane.f32.xlu1 %v1172_v27 }
 0x19b   : > { %14655 = vst [vmem:[#allocation85_spill] sm:$0xff] %v10556_v32  ;;  %14656 = vst [vmem:[#allocation325_spill] sm:$0xff] %v10559_v44  ;;  %v10570_v3 = vmul.f32 %v14546_v37, %v2113_v17  ;;  %v699_v44 = vmul.f32 0.17677669, %v10553_v14  ;;  %v10588_v32 = vmul.f32 %v14551_v6, %v2113_v17  ;;  %v10605_v27 = vmul.f32 %v14647_v52, %v2501_v45 }
 0x19c   : > { %14652 = vst [vmem:[#allocation75_spill] sm:$0xff] %v10548_v15  ;;  %14657 = vst [vmem:[#allocation326_spill] sm:$0xff] %v10562_v21  ;;  %v10585_v21 = vmul.f32 %v14550_v41, %v2113_v17 }
 0x19d   : > { %14658 = vst [vmem:[#allocation327_spill] sm:$0xff] %v10564_v18  ;;  %14659 = vst [vmem:[#allocation328_spill] sm:$0xff] %v10567_v58  ;;  %v701_v14 = vcombine.high %v699_v44, %v699_v44  ;;  %v10599_v58 = vpop.permute.xlu1 %2128 }
 0x19e   : > { %14660 = vst [vmem:[#allocation329_spill] sm:$0xff] %v10570_v3  ;;  %14661 = vst [vmem:[#allocation330_spill] sm:$0xff] %v10573_v26  ;;  %v10591_v26 = vmul.f32 %v14552_v19, %v2113_v17  ;;  %v10597_v3 = vmul.f32 %v14645_v10, %v2501_v45  ;;  %v10609_v17 = vmul.f32 %v14542_v56, %v2121_v63 }
 0x19f   : > { %14662 = vst [vmem:[#allocation331_spill] sm:$0xff] %v10576_v54  ;;  %14663 = vst [vmem:[#allocation332_spill] sm:$0xff] %v10582_v53  ;;  %v10594_v54 = vmul.f32 %v14641_v8, %v2501_v45  ;;  %v10602_v53 = vmul.f32 %v14646_v16, %v2501_v45 }
 0x1a0   : > { %14664 = vst [vmem:[#allocation333_spill] sm:$0xff] %v10585_v21  ;;  %14665 = vst [vmem:[#allocation334_spill] sm:$0xff] %v10588_v32  ;;  %v2041_v32 = vadd.f32 %v1977_v9, %v10409_v46  ;;  %v14676_v21 = vld [vmem:[#allocation84_spill] sm:$0xff]  ;;  %v10627_v46 = vmul.f32 %v14547_v24, %v2121_v63 }
 0x1a1   : > { %14666 = vst [vmem:[#allocation335_spill] sm:$0xff] %v10591_v26  ;;  %14667 = vst [vmem:[#allocation336_spill] sm:$0xff] %v10594_v54  ;;  %v10612_v26 = vmul.f32 %v14648_v12, %v2501_v45  ;;  %v10615_v54 = vmul.f32 %v14649_v7, %v2501_v45  ;;  %v708_v15 = vrot.slane %v699_v44, %v14676_v21  ;;  %v6201_v9 = vld [vmem:[#allocation5 + $0xd0] sm:$0xff] }
 0x1a2   : > { %14668 = vst [vmem:[#allocation337_spill] sm:$0xff] %v10597_v3  ;;  %14669 = vst [vmem:[#allocation338_spill] sm:$0xff] %v10599_v58  ;;  %v10618_v3 = vmul.f32 %v14650_v55, %v2501_v45  ;;  %v10629_v12 = vadd.f32 %v2169_v28, %v2041_v32  ;;  %v10638_v44 = vmul.f32 %v14550_v41, %v2121_v63  ;;  %v14685_v55 = vld [vmem:[#allocation21_spill] sm:$0xff]  ;;  %v14686_v28 = vld [vmem:[#allocation20_spill] sm:$0xff] }
 0x1a3   : > { %14670 = vst [vmem:[#allocation339_spill] sm:$0xff] %v10602_v53  ;;  %14671 = vst [vmem:[#allocation340_spill] sm:$0xff] %v10605_v27  ;;  %v10621_v53 = vpop.permute.xlu0 %1197  ;;  %v10624_v27 = vmul.f32 %v14546_v37, %v2121_v63  ;;  %v10653_v41 = vmul.f32 %v14552_v19, %v2121_v63  ;;  %v10672_v7 = vmul.f32 %v14547_v24, %v10599_v58 }
 0x1a4   : > { %14672 = vst [vmem:[#allocation341_spill] sm:$0xff] %v10609_v17  ;;  %14673 = vst [vmem:[#allocation342_spill] sm:$0xff] %v10612_v26  ;;  %v6202_v17 = vld [vmem:[#allocation5 + $0xd8] sm:$0xff]  ;;  %v10632_v26 = vmul.f32 %v14548_v29, %v2121_v63  ;;  %v1275_v32 = vmul.f32 %v14685_v55, %v10621_v53  ;;  %v10686_v19 = vmul.f32 %v14548_v29, %v10599_v58  ;;  %v14700_v29 = vld [vmem:[#allocation98_spill] sm:$0xff] }
 0x1a5   : > { %14674 = vst [vmem:[#allocation343_spill] sm:$0xff] %v10615_v54  ;;  %14675 = vst [vmem:[#allocation344_spill] sm:$0xff] %v10618_v3  ;;  %v10635_v54 = vmul.f32 %v14549_v61, %v2121_v63  ;;  %v10641_v3 = vmul.f32 %v14551_v6, %v2121_v63  ;;  %v1283_v61 = vmul.f32 %v14577_v23, %v10621_v53 }
 0x1a6   : > { %14677 = vst [vmem:[#allocation345_spill] sm:$0xff] %v10624_v27  ;;  %14678 = vst [vmem:[#allocation346_spill] sm:$0xff] %v10627_v46  ;;  %v10644_v27 = vrot.slane %v701_v14, %v14676_v21  ;;  %v716_v46 = vcombine.high %v708_v15, %v708_v15  ;;  %v10656_v6 = vmul.f32 %v14651_v11, %v2501_v45 }
 0x1a7   : > { %14679 = vst [vmem:[#allocation347_spill] sm:$0xff] %v10629_v12  ;;  %14680 = vst [vmem:[#allocation348_spill] sm:$0xff] %v10632_v26  ;;  %v1267_v12 = vmul.f32 %v14686_v28, %v10621_v53  ;;  %v2297_v26 = vpop.permute.xlu1 %2296  ;;  %v10660_v14 = vpop.permute.xlu0 %1207  ;;  %v10676_v45 = vmul.f32 %v14641_v8, %v10564_v18  ;;  %v10679_v63 = vrot.slane %v708_v15, %v14676_v21  ;;  %v14698_v18 = vld [vmem:[#allocation97_spill] sm:$0xff] }
 0x1a8   : > { %14681 = vst [vmem:[#allocation349_spill] sm:$0xff] %v10635_v54  ;;  %14682 = vst [vmem:[#allocation350_spill] sm:$0xff] %v10638_v44  ;;  %v10664_v44 = vmul.f32 %v14542_v56, %v10599_v58  ;;  %v10668_v54 = vmul.f32 %v14546_v37, %v10599_v58  ;;  %v14695_v56 = vld [vmem:[#allocation25_spill] sm:$0xff]  ;;  %v717_v24 = vcombine.high %v10644_v27, %v10644_v27  ;;  %v14699_v37 = vld [vmem:[#allocation96_spill] sm:$0xff] }
 0x1a9   : > { %14683 = vst [vmem:[#allocation351_spill] sm:$0xff] %v10641_v3  ;;  %14684 = vst [vmem:[#allocation352_spill] sm:$0xff] %v10644_v27  ;;  %v10658_v3 = vpack.c.bf16 %v6202_v17, %v6201_v9  ;;  %v2356_v17 = vmul.f32 %v14579_v22, %v2297_v26  ;;  %v1291_v9 = vmul.f32 %v14695_v56, %v10621_v53 }
 0x1aa   : > { %14687 = vst [vmem:[#allocation21_spill] sm:$0xff] %v10653_v41  ;;  %14688 = vst [vmem:[#allocation20_spill] sm:$0xff] %v10656_v6  ;;  %v10691_v6 = vrot.slane %v716_v46, %v14676_v21  ;;  %v1467_v15 = vadd.f32 %v14699_v37, %v1275_v32  ;;  %v2372_v41 = vmul.f32 %v14581_v4, %v2297_v26 }
 0x1ab   : > { %14689 = vst [vmem:[#allocation353_spill] sm:$0xff] %v10658_v3  ;;  %14690 = vst [vmem:[#allocation354_spill] sm:$0xff] %v10664_v44  ;;  %v2364_v44 = vmul.f32 %v14580_v48, %v2297_v26  ;;  %v1475_v58 = vadd.f32 %v14700_v29, %v1283_v61  ;;  %v1277_v27 = vmul.f32 %v14685_v55, %v10660_v14 }
 0x1ac   : > { %14691 = vst [vmem:[#allocation355_spill] sm:$0xff] %v10668_v54  ;;  %14692 = vst [vmem:[#allocation356_spill] sm:$0xff] %v10672_v7  ;;  %v10695_v7 = vpop.permute.xlu1 %2300  ;;  %v2420_v54 = vadd.f32 %v2356_v17, %v10304_v43  ;;  %v2380_v46 = vmul.f32 %v14582_v47, %v2297_v26  ;;  %v2396_v37 = vmul.f32 %v14588_v33, %v2297_v26  ;;  %v14757_v33 = vld [vmem:[#allocation329_spill] sm:$0xff] }
 0x1ad   : > { %14693 = vst [vmem:[#allocation357_spill] sm:$0xff] %v10676_v45  ;;  %14694 = vst [vmem:[#allocation358_spill] sm:$0xff] %v10679_v63  ;;  %v1459_v45 = vadd.f32 %v14698_v18, %v1267_v12  ;;  %v2388_v18 = vmul.f32 %v14586_v57, %v2297_v26  ;;  %v2428_v32 = vadd.f32 %v2364_v44, %v10306_v42 }
 0x1ae   : > { %14696 = vst [vmem:[#allocation25_spill] sm:$0xff] %v10686_v19  ;;  %14697 = vst [vmem:[#allocation359_spill] sm:$0xff] %v10691_v6  ;;  %v10703_v19 = vpop.permute.xlu0 %1212  ;;  %v2612_v43 = vadd.f32 %v10518_v51, %v2420_v54  ;;  %v2436_v61 = vadd.f32 %v2372_v41, %v10308_v13  ;;  %v2444_v29 = vadd.f32 %v2380_v46, %v10310_v0  ;;  %v14702_v13 = vld [vmem:[#allocation103_spill] sm:$0xff] }
 0x1af   : > { %v1278_v12 = vmul.f32 %v14685_v55, %v10703_v19  ;;  %v2452_v17 = vadd.f32 %v2388_v18, %v10312_v39  ;;  %v2460_v6 = vadd.f32 %v2396_v37, %v10314_v34  ;;  %v2404_v3 = vmul.f32 %v14590_v60, %v2297_v26  ;;  %v14703_v39 = vld [vmem:[#allocation121_spill] sm:$0xff]  ;;  %v14705_v37 = vld [vmem:[#allocation106_spill] sm:$0xff] }
 0x1b0   : > { %v10718_v57 = vrot.slane %v717_v24, %v14676_v21  ;;  %7915 = vmatprep.mubr.msk.f32.mxu0 %vm465_vm1, %v2612_v43  ;;  %v10723_v51 = vpop.permute.xlu1 %2308  ;;  %v2620_v41 = vadd.f32 %v10530_v59, %v2428_v32  ;;  %v2412_v42 = vmul.f32 %v14593_v62, %v2297_v26  ;;  %v10728_v0 = vadd.f32 %v14702_v13, %v1277_v27  ;;  %v14704_v18 = vld [vmem:[#allocation105_spill] sm:$0xff]  ;;  %v14706_v43 = vld [vmem:[#allocation107_spill] sm:$0xff]  ;;  %v14707_v13 = vld [vmem:[#allocation80_spill] sm:$0xff] }
 0x1b1   : > { %v10731_v34 = vadd.f32 %v14703_v39, %v1278_v12  ;;  %v2628_v24 = vadd.f32 %v10533_v50, %v2436_v61  ;;  %v2636_v44 = vadd.f32 %v10536_v20, %v2444_v29  ;;  %v2644_v46 = vadd.f32 %v10539_v38, %v2452_v17  ;;  %v14708_v50 = vld [vmem:[#allocation99_spill] sm:$0xff]  ;;  %v14712_v17 = vld [vmem:[#allocation88_spill] sm:$0xff] }
 0x1b2   : > { %14701 = vst [vmem:[#allocation97_spill] sm:$0xff] %v10718_v57  ;;  %v10733_v54 = vpop.permute.xlu0 %1217  ;;  %7916 = vmatmul.mubr.msk.f32.vlgmr.msra.gmra.mrb[8].mxu0 %vm465_vm1, %v2620_v41  ;;  %v2468_v59 = vadd.f32 %v2404_v3, %v10316_v40  ;;  %v1651_v26 = vadd.f32 %v14704_v18, %v1459_v45  ;;  %v1659_v27 = vadd.f32 %v14705_v37, %v1467_v15  ;;  %v14710_v40 = vld [vmem:[#allocation201_spill] sm:$0xff]  ;;  %v14711_v15 = vld [vmem:[#allocation202_spill] sm:$0xff]  ;;  %v14714_v41 = vld [vmem:[#allocation108_spill] sm:$0xff] }
 0x1b3   : > { %7918 = vmatprep.mubr.msk.f32.mxu0 %vm465_vm1, %v2628_v24  ;;  %v2652_v12 = vadd.f32 %v10542_v35, %v2460_v6  ;;  %v1667_v32 = vadd.f32 %v14706_v43, %v1475_v58  ;;  %8099 = vmatpush3.bf16.msra.mxu0 %v14707_v13  ;;  %v1483_v20 = vadd.f32 %v14708_v50, %v1291_v9  ;;  %v14713_v35 = vld [vmem:[#allocation203_spill] sm:$0xff]  ;;  %v14717_v37 = vld [vmem:[#allocation186_spill] sm:$0xff] }
 0x1b4   : > { %v1279_v61 = vmul.f32 %v14685_v55, %v10733_v54  ;;  %v10749_v38 = vpop.permute.xlu1 %2316  ;;  %v2476_v3 = vadd.f32 %v2412_v42, %v10318_v36  ;;  %v1843_v45 = vadd.f32 %v14710_v40, %v1651_v26  ;;  %v1851_v29 = vadd.f32 %v14711_v15, %v1659_v27  ;;  %8101 = vmatprep.subr.bf16.mxu0 %v14712_v17  ;;  %v14715_v9 = vld [vmem:[#allocation27_spill] sm:$0xff]  ;;  %v14716_v42 = vld [vmem:[#allocation185_spill] sm:$0xff]  ;;  %v14718_v43 = vld [vmem:[#allocation30_spill] sm:$0xff] }
 0x1b5   : > { %14709 = vst [vmem:[#allocation96_spill] sm:$0xff] %v10749_v38  ;;  %v1859_v58 = vadd.f32 %v14713_v35, %v1667_v32  ;;  %v1675_v39 = vadd.f32 %v14714_v41, %v1483_v20  ;;  %v1299_v24 = vmul.f32 %v14715_v9, %v10621_v53  ;;  %v1270_v18 = vmul.f32 %v14686_v28, %v10703_v19  ;;  %v14719_v32 = vld [vmem:[#allocation187_spill] sm:$0xff]  ;;  %v14720_v20 = vld [vmem:[#allocation204_spill] sm:$0xff] }
 0x1b6   : > { %v10755_v6 = vpop.permute.xlu0 %1222  ;;  %7919 = vmatmul.mubr.msk.f32.gmra.mrb[10].mxu0 %vm465_vm1, %v2636_v44  ;;  %v2660_v36 = vadd.f32 %v10545_v2, %v2468_v59  ;;  %v2035_v26 = vadd.f32 %v14716_v42, %v1843_v45  ;;  %v2043_v27 = vadd.f32 %v14717_v37, %v1851_v29  ;;  %v1307_v13 = vmul.f32 %v14718_v43, %v10621_v53  ;;  %v14721_v15 = vld [vmem:[#allocation100_spill] sm:$0xff]  ;;  %v14722_v44 = vld [vmem:[#allocation86_spill] sm:$0xff]  ;;  %v14723_v29 = vld [vmem:[#allocation171_spill] sm:$0xff] }
 0x1b7   : > { %7921 = vmatprep.mubr.msk.f32.mxu0 %vm465_vm1, %v2644_v46  ;;  %v2051_v50 = vadd.f32 %v14719_v32, %v1859_v58  ;;  %v1867_v40 = vadd.f32 %v14720_v20, %v1675_v39  ;;  %v1491_v35 = vadd.f32 %v14721_v15, %v1299_v24  ;;  %8103 = vmatpush3.bf16.msra.mxu0 %v14712_v17  ;;  %v14724_v39 = vld [vmem:[#allocation188_spill] sm:$0xff]  ;;  %v14725_v42 = vld [vmem:[#allocation109_spill] sm:$0xff]  ;;  %v14726_v37 = vld [vmem:[#allocation122_spill] sm:$0xff] }
 0x1b8   : > { %v10775_v41 = vadd.f32 %v14722_v44, %v1279_v61  ;;  %v1280_v2 = vmul.f32 %v14685_v55, %v10755_v6  ;;  %v2227_v59 = vadd.f32 %v10450_v5, %v2035_v26  ;;  %v2235_v45 = vadd.f32 %v10465_v1, %v2043_v27  ;;  %8113 = vmatprep.subr.bf16.mxu0 %v14723_v29  ;;  %v10782_v46 = vpop.permute.xlu1 %2484  ;;  %v14727_v26 = vld [vmem:[#allocation101_spill] sm:$0xff]  ;;  %v14732_v44 = vld [vmem:[#allocation139_spill] sm:$0xff] }
 0x1b9   : > { %v2243_v58 = vadd.f32 %v10468_v31, %v2051_v50  ;;  %v2059_v24 = vadd.f32 %v14724_v39, %v1867_v40  ;;  %v1683_v17 = vadd.f32 %v14725_v42, %v1491_v35  ;;  %v1462_v61 = vadd.f32 %v14726_v37, %v1270_v18  ;;  %v14730_v40 = vld [vmem:[#allocation75_spill] sm:$0xff]  ;;  %v14733_v39 = vld [vmem:[#allocation65_spill] sm:$0xff] }
 0x1ba   : > { %7922 = vmatmul.mubr.msk.f32.gmra.mrb[12].mxu0 %vm465_vm1, %v2652_v12  ;;  %v2419_v32 = vadd.f32 %v10321_v49, %v2227_v59  ;;  %v2547_v5 = vmul.f32 %v14641_v8, %v10782_v46  ;;  %v2427_v1 = vadd.f32 %v10324_v25, %v2235_v45  ;;  %v1499_v27 = vadd.f32 %v14727_v26, %v1307_v13  ;;  %v14728_v12 = vld [vmem:[#allocation311_spill] sm:$0xff]  ;;  %v10801_v49 = vpop.permute.xlu0 %1232  ;;  %v14731_v13 = vld [vmem:[#allocation205_spill] sm:$0xff] }
 0x1bb   : > { %7924 = vmatprep.mubr.msk.f32.mxu0 %vm465_vm1, %v2660_v36  ;;  %v2555_v31 = vmul.f32 %v14645_v10, %v10782_v46  ;;  %v2435_v50 = vadd.f32 %v10327_v30, %v2243_v58  ;;  %v2563_v18 = vmul.f32 %v14646_v16, %v10782_v46  ;;  %v2251_v20 = vadd.f32 %v14728_v12, %v2059_v24  ;;  %v14735_v37 = vld [vmem:[#allocation123_spill] sm:$0xff] }
 0x1bc   : > { %14729 = vst [vmem:[#allocation98_spill] sm:$0xff] %v10801_v49  ;;  %v2668_v15 = vadd.f32 %v14730_v40, %v2476_v3  ;;  %v2611_v35 = vadd.f32 %v2547_v5, %v2419_v32  ;;  %v2571_v25 = vmul.f32 %v14647_v52, %v10782_v46  ;;  %v1875_v36 = vadd.f32 %v14731_v13, %v1683_v17  ;;  %v10810_v45 = vpop.permute.xlu1 %2492  ;;  %v14734_v3 = vld [vmem:[#allocation189_spill] sm:$0xff]  ;;  %v14736_v5 = vld [vmem:[#allocation110_spill] sm:$0xff]  ;;  %v14737_v17 = vld [vmem:[#allocation79_spill] sm:$0xff] }
 0x1bd   : > { %v10808_v59 = vadd.f32 %v14732_v44, %v1280_v2  ;;  %v2619_v30 = vadd.f32 %v2555_v31, %v2427_v1  ;;  %v2627_v58 = vadd.f32 %v2563_v18, %v2435_v50  ;;  %v2443_v42 = vadd.f32 %v14733_v39, %v2251_v20  ;;  %v14738_v31 = vld [vmem:[#allocation117_spill] sm:$0xff]  ;;  %v14739_v18 = vld [vmem:[#allocation32_spill] sm:$0xff]  ;;  %v14759_v57 = vld [vmem:[#allocation127_spill] sm:$0xff] }
 0x1be   : > { %7925 = vmatmul.mubr.msk.f32.gmra.mrb[14].mxu0 %vm465_vm1, %v2668_v15  ;;  %7895 = vmatprep.mubr.msk.f32.mxu1 %vm465_vm1, %v2611_v35  ;;  %v2067_v24 = vadd.f32 %v14734_v3, %v1875_v36  ;;  %v1654_v32 = vadd.f32 %v14735_v37, %v1462_v61  ;;  %v1691_v26 = vadd.f32 %v14736_v5, %v1499_v27  ;;  %v14740_v61 = vld [vmem:[#allocation312_spill] sm:$0xff]  ;;  %v14741_v27 = vld [vmem:[#allocation235_spill] sm:$0xff]  ;;  %v14743_v36 = vld [vmem:[#allocation234_spill] sm:$0xff] }
 0x1bf   : > { %v1282_v2 = vmul.f32 %v14685_v55, %v10801_v49  ;;  %7896 = vmatmul.mubr.msk.f32.vlgmr.msra.gmra.mrb[2].mxu1 %vm465_vm1, %v2619_v30  ;;  %v2579_v1 = vmul.f32 %v14737_v17, %v10782_v46  ;;  %v1662_v50 = vadd.f32 %v14738_v31, %v10731_v34  ;;  %v1315_v12 = vmul.f32 %v14739_v18, %v10621_v53  ;;  %v14742_v35 = vld [vmem:[#allocation207_spill] sm:$0xff]  ;;  %v14744_v30 = vld [vmem:[#allocation102_spill] sm:$0xff]  ;;  %v14760_v49 = vld [vmem:[#allocation104_spill] sm:$0xff] }
 0x1c0   : > { %7898 = vmatprep.mubr.msk.f32.mxu1 %vm465_vm1, %v2627_v58  ;;  %v2635_v20 = vadd.f32 %v2571_v25, %v2443_v42  ;;  %v2259_v40 = vadd.f32 %v14740_v61, %v2067_v24  ;;  %v1846_v15 = vadd.f32 %v14741_v27, %v1654_v32  ;;  %v1883_v55 = vadd.f32 %v14742_v35, %v1691_v26  ;;  %v10831_v13 = vpop.permute.xlu1 %2496  ;;  %v14745_v3 = vld [vmem:[#allocation87_spill] sm:$0xff]  ;;  %v14746_v58 = vld [vmem:[#allocation34_spill] sm:$0xff]  ;;  %v14752_v27 = vld [vmem:[#allocation197_spill] sm:$0xff] }
 0x1c1   : > { %v1854_v44 = vadd.f32 %v14743_v36, %v1662_v50  ;;  %v1507_v39 = vadd.f32 %v14744_v30, %v1315_v12  ;;  %8091 = vmatpush3.bf16.msra.mxu1 %v14745_v3  ;;  %v1286_v34 = vmul.f32 %v14577_v23, %v10703_v19  ;;  %v1323_v25 = vmul.f32 %v14746_v58, %v10621_v53  ;;  %v14747_v42 = vld [vmem:[#allocation70_spill] sm:$0xff]  ;;  %v14751_v50 = vld [vmem:[#allocation140_spill] sm:$0xff]  ;;  %v14753_v36 = vld [vmem:[#allocation111_spill] sm:$0xff] }
 0x1c2   : > { %v2451_v24 = vadd.f32 %v14747_v42, %v2259_v40  ;;  %v14748_v37 = vld [vmem:[#allocation206_spill] sm:$0xff]  ;;  %8093 = vmatprep.subr.bf16.mxu1 %v14751_v50  ;;  %v2550_v12 = vmul.f32 %v14641_v8, %v10831_v13  ;;  %v14754_v30 = vld [vmem:[#allocation124_spill] sm:$0xff] }
 0x1c3   : > { %v2038_v32 = vadd.f32 %v14748_v37, %v1846_v15  ;;  %v14749_v5 = vld [vmem:[#allocation190_spill] sm:$0xff]  ;;  %7899 = vmatmul.mubr.msk.f32.gmra.mrb[4].mxu1 %vm465_vm1, %v2635_v20  ;;  %v2046_v35 = vadd.f32 %v14752_v27, %v1854_v44  ;;  %v1699_v53 = vadd.f32 %v14753_v36, %v1507_v39  ;;  %v1478_v40 = vadd.f32 %v14754_v30, %v1286_v34  ;;  %v14755_v15 = vld [vmem:[#allocation328_spill] sm:$0xff]  ;;  %v10861_v39 = vpop.f32.mrb[0].mxu0 }
 0x1c4   : > { %v2075_v26 = vadd.f32 %v14749_v5, %v1883_v55  ;;  %v14750_v31 = vld [vmem:[#allocation82_spill] sm:$0xff]  ;;  %v2643_v3 = vadd.f32 %v2579_v1, %v2451_v24  ;;  %v14756_v55 = vld [vmem:[#allocation313_spill] sm:$0xff]  ;;  %v2558_v5 = vmul.f32 %v14645_v10, %v10831_v13  ;;  %v14758_v20 = vld [vmem:[#allocation208_spill] sm:$0xff]  ;;  %v1515_v44 = vadd.f32 %v14760_v49, %v1323_v25  ;;  %14761 = vst [vmem:[#allocation103_spill] sm:$0xff] %v10861_v39 }
 0x1c5   : > { %v2587_v61 = vmul.f32 %v14750_v31, %v10782_v46  ;;  %v2230_v42 = vadd.f32 %v14755_v15, %v2038_v32  ;;  %v2238_v21 = vadd.f32 %v14757_v33, %v2046_v35  ;;  %v1891_v63 = vadd.f32 %v14758_v20, %v1699_v53  ;;  %8095 = vmatpush3.bf16.msra.mxu1 %v14751_v50  ;;  %v14762_v1 = vld [vmem:[#allocation155_spill] sm:$0xff]  ;;  %v14764_v24 = vld [vmem:[#allocation277_spill] sm:$0xff]  ;;  %v10871_v35 = vpop.f32.mrb[1].mxu0  ;;  %v14769_v36 = vld [vmem:[#allocation236_spill] sm:$0xff] }
 0x1c6   : > { %v2267_v37 = vadd.f32 %v14756_v55, %v2075_v26  ;;  %v1670_v38 = vadd.f32 %v14759_v57, %v1478_v40  ;;  %v10864_v34 = vadd.f32 %v14762_v1, %v1282_v2  ;;  %7901 = vmatprep.mubr.msk.f32.mxu1 %vm465_vm1, %v2643_v3  ;;  %v14765_v26 = vld [vmem:[#allocation275_spill] sm:$0xff]  ;;  %v1294_v33 = vmul.f32 %v14695_v56, %v10703_v19  ;;  %v14767_v57 = vld [vmem:[#allocation280_spill] sm:$0xff]  ;;  %v14771_v40 = vld [vmem:[#allocation225_spill] sm:$0xff]  ;;  %v10878_v3 = vpop.f32.mrb[2].mxu0 }
 0x1c7   : > { %v2422_v32 = vadd.f32 %v14764_v24, %v2230_v42  ;;  %14766 = vst [vmem:[#allocation105_spill] sm:$0xff] %v10871_v35  ;;  %v2430_v49 = vadd.f32 %v14767_v57, %v2238_v21  ;;  %v14768_v25 = vld [vmem:[#allocation191_spill] sm:$0xff]  ;;  %v14770_v30 = vld [vmem:[#allocation112_spill] sm:$0xff]  ;;  %8105 = vmatprep.subr.bf16.mxu1 %v14771_v40  ;;  %14772 = vst [vmem:[#allocation106_spill] sm:$0xff] %v10878_v3  ;;  %v10883_v24 = vpop.f32.mrb[3].mxu0 }
 0x1c8   : > { %14763 = vst [vmem:[#allocation121_spill] sm:$0xff] %v10864_v34  ;;  %v2459_v27 = vadd.f32 %v14765_v26, %v2267_v37  ;;  %v2083_v50 = vadd.f32 %v14768_v25, %v1891_v63  ;;  %v1862_v53 = vadd.f32 %v14769_v36, %v1670_v38  ;;  %v1707_v2 = vadd.f32 %v14770_v30, %v1515_v44  ;;  %v14773_v55 = vld [vmem:[#allocation83_spill] sm:$0xff]  ;;  %v14774_v20 = vld [vmem:[#allocation128_spill] sm:$0xff]  ;;  %v14776_v26 = vld [vmem:[#allocation314_spill] sm:$0xff] }
 0x1c9   : > { %v2614_v15 = vadd.f32 %v2550_v12, %v2422_v32  ;;  %v2595_v37 = vmul.f32 %v14773_v55, %v10782_v46  ;;  %v1486_v1 = vadd.f32 %v14774_v20, %v1294_v33  ;;  %14775 = vst [vmem:[#allocation107_spill] sm:$0xff] %v10883_v24  ;;  %v2622_v21 = vadd.f32 %v2558_v5, %v2430_v49  ;;  %v14777_v57 = vld [vmem:[#allocation209_spill] sm:$0xff]  ;;  %v14778_v25 = vld [vmem:[#allocation210_spill] sm:$0xff]  ;;  %v14780_v5 = vld [vmem:[#allocation276_spill] sm:$0xff] }
 0x1ca   : > { %v2651_v42 = vadd.f32 %v2587_v61, %v2459_v27  ;;  %v2275_v63 = vadd.f32 %v14776_v26, %v2083_v50  ;;  %v2054_v38 = vadd.f32 %v14777_v57, %v1862_v53  ;;  %v1899_v44 = vadd.f32 %v14778_v25, %v1707_v2  ;;  %v14779_v12 = vld [vmem:[#allocation129_spill] sm:$0xff]  ;;  %v14781_v49 = vld [vmem:[#allocation330_spill] sm:$0xff]  ;;  %v14782_v36 = vld [vmem:[#allocation192_spill] sm:$0xff] }
 0x1cb   : > { %7955 = vmatprep.mubr.msk.f32.mxu0 %vm465_vm1, %v2614_v15  ;;  %v2566_v61 = vmul.f32 %v14646_v16, %v10831_v13  ;;  %v1678_v32 = vadd.f32 %v14779_v12, %v1486_v1  ;;  %v1269_v27 = vmul.f32 %v14686_v28, %v10660_v14  ;;  %v2603_v30 = vmul.f32 %v14651_v11, %v10782_v46  ;;  %v14783_v2 = vld [vmem:[#allocation237_spill] sm:$0xff]  ;;  %v14813_v35 = vld [vmem:[#allocation283_spill] sm:$0xff]  ;;  %v14817_v3 = vld [vmem:[#allocation136_spill] sm:$0xff] }
 0x1cc   : > { %7902 = vmatmul.mubr.msk.f32.gmra.mrb[6].mxu1 %vm465_vm1, %v2651_v42  ;;  %7956 = vmatmul.mubr.msk.f32.vlgmr.msra.gmra.mrb[16].mxu0 %vm465_vm1, %v2622_v21  ;;  %v2467_v33 = vadd.f32 %v14780_v5, %v2275_v63  ;;  %v2246_v50 = vadd.f32 %v14781_v49, %v2054_v38  ;;  %v2091_v53 = vadd.f32 %v14782_v36, %v1899_v44  ;;  %v14784_v20 = vld [vmem:[#allocation113_spill] sm:$0xff]  ;;  %v14786_v38 = vld [vmem:[#allocation315_spill] sm:$0xff] }
 0x1cd   : > { %v1870_v15 = vadd.f32 %v14783_v2, %v1678_v32  ;;  %v2574_v42 = vmul.f32 %v14647_v52, %v10831_v13  ;;  %v1461_v1 = vadd.f32 %v14784_v20, %v1269_v27  ;;  %v1302_v26 = vmul.f32 %v14715_v9, %v10703_v19  ;;  %8115 = vmatpush3.bf16.msra.mxu0 %v14723_v29  ;;  %v14785_v63 = vld [vmem:[#allocation281_spill] sm:$0xff]  ;;  %v14787_v44 = vld [vmem:[#allocation167_spill] sm:$0xff]  ;;  %v14791_v2 = vld [vmem:[#allocation130_spill] sm:$0xff] }
 0x1ce   : > { %v2659_v21 = vadd.f32 %v2595_v37, %v2467_v33  ;;  %v2438_v57 = vadd.f32 %v14785_v63, %v2246_v50  ;;  %v2283_v25 = vadd.f32 %v14786_v38, %v2091_v53  ;;  %v1661_v46 = vadd.f32 %v14787_v44, %v10728_v0  ;;  %v14788_v12 = vld [vmem:[#allocation193_spill] sm:$0xff]  ;;  %v14789_v32 = vld [vmem:[#allocation211_spill] sm:$0xff]  ;;  %v14793_v0 = vld [vmem:[#allocation218_spill] sm:$0xff] }
 0x1cf   : > { %8117 = vmatprep.subr.bf16.mxu0 %v14788_v12  ;;  %v2062_v5 = vadd.f32 %v14789_v32, %v1870_v15  ;;  %v14790_v49 = vld [vmem:[#allocation169_spill] sm:$0xff]  ;;  %v2357_v27 = vmul.f32 %v14579_v22, %v10695_v7  ;;  %v1494_v20 = vadd.f32 %v14791_v2, %v1302_v26  ;;  %v2549_v50 = vmul.f32 %v14641_v8, %v10810_v45  ;;  %v14794_v63 = vld [vmem:[#allocation331_spill] sm:$0xff] }
 0x1d0   : > { %v1653_v36 = vadd.f32 %v14790_v49, %v1461_v1  ;;  %7904 = vmatprep.mubr.msk.f32.mxu1 %vm465_vm1, %v2659_v21  ;;  %v2630_v29 = vadd.f32 %v2566_v61, %v2438_v57  ;;  %v14792_v37 = vld [vmem:[#allocation77_spill] sm:$0xff]  ;;  %v1853_v53 = vadd.f32 %v14793_v0, %v1661_v46  ;;  %v14795_v15 = vld [vmem:[#allocation219_spill] sm:$0xff]  ;;  %v1310_v49 = vmul.f32 %v14718_v43, %v10703_v19  ;;  %v14797_v21 = vld [vmem:[#allocation272_spill] sm:$0xff] }
 0x1d1   : > { %v2475_v33 = vadd.f32 %v14792_v37, %v2283_v25  ;;  %v2254_v38 = vadd.f32 %v14794_v63, %v2062_v5  ;;  %v14796_v1 = vld [vmem:[#allocation131_spill] sm:$0xff]  ;;  %8119 = vmatpush3.bf16.msra.mxu0 %v14788_v12  ;;  %v2582_v26 = vmul.f32 %v14737_v17, %v10831_v13  ;;  %v1285_v25 = vmul.f32 %v14577_v23, %v10660_v14  ;;  %v14798_v46 = vld [vmem:[#allocation282_spill] sm:$0xff]  ;;  %v14801_v0 = vld [vmem:[#allocation132_spill] sm:$0xff] }
 0x1d2   : > { %v1845_v44 = vadd.f32 %v14795_v15, %v1653_v36  ;;  %v1686_v32 = vadd.f32 %v14796_v1, %v1494_v20  ;;  %7958 = vmatprep.mubr.msk.f32.mxu0 %vm465_vm1, %v2630_v29  ;;  %v2045_v57 = vadd.f32 %v14797_v21, %v1853_v53  ;;  %v14799_v36 = vld [vmem:[#allocation278_spill] sm:$0xff]  ;;  %v1502_v63 = vadd.f32 %v14801_v0, %v1310_v49  ;;  %v14802_v12 = vld [vmem:[#allocation295_spill] sm:$0xff]  ;;  %v14807_v49 = vld [vmem:[#allocation133_spill] sm:$0xff] }
 0x1d3   : > { %v2667_v61 = vadd.f32 %v2603_v30, %v2475_v33  ;;  %v2446_v5 = vadd.f32 %v14798_v46, %v2254_v38  ;;  %v14800_v20 = vld [vmem:[#allocation238_spill] sm:$0xff]  ;;  %8129 = vmatprep.subr.bf16.mxu0 %v14802_v12  ;;  %v2365_v33 = vmul.f32 %v14580_v48, %v10695_v7  ;;  %v2557_v53 = vmul.f32 %v14645_v10, %v10810_v45 }
 0x1d4   : > { %v2037_v2 = vadd.f32 %v14799_v36, %v1845_v44  ;;  %v1878_v37 = vadd.f32 %v14800_v20, %v1686_v32  ;;  %v14803_v30 = vld [vmem:[#allocation74_spill] sm:$0xff]  ;;  %v14805_v44 = vld [vmem:[#allocation321_spill] sm:$0xff]  ;;  %v14806_v32 = vld [vmem:[#allocation212_spill] sm:$0xff]  ;;  %v1694_v36 = vadd.f32 %v14807_v49, %v1502_v63  ;;  %v2373_v0 = vmul.f32 %v14581_v4, %v10695_v7 }
 0x1d5   : > { %7905 = vmatmul.mubr.msk.f32.gmra.mrb[8].mxu1 %vm465_vm1, %v2667_v61  ;;  %v2237_v29 = vadd.f32 %v14803_v30, %v2045_v57  ;;  %v14804_v15 = vld [vmem:[#allocation114_spill] sm:$0xff]  ;;  %v2638_v1 = vadd.f32 %v2574_v42, %v2446_v5  ;;  %v2590_v61 = vmul.f32 %v14750_v31, %v10831_v13  ;;  %v14808_v20 = vld [vmem:[#allocation172_spill] sm:$0xff]  ;;  %v1318_v30 = vmul.f32 %v14739_v18, %v10703_v19 }
 0x1d6   : > { %v1477_v38 = vadd.f32 %v14804_v15, %v1285_v25  ;;  %v2229_v21 = vadd.f32 %v14805_v44, %v2037_v2  ;;  %v2070_v46 = vadd.f32 %v14806_v32, %v1878_v37  ;;  %v14809_v25 = vld [vmem:[#allocation332_spill] sm:$0xff]  ;;  %v14810_v2 = vld [vmem:[#allocation239_spill] sm:$0xff]  ;;  %v1293_v63 = vmul.f32 %v14695_v56, %v10660_v14  ;;  %v14812_v49 = vld [vmem:[#allocation134_spill] sm:$0xff] }
 0x1d7   : > { %7959 = vmatmul.mubr.msk.f32.gmra.mrb[18].mxu0 %vm465_vm1, %v2638_v1  ;;  %v1886_v37 = vadd.f32 %v14810_v2, %v1694_v36  ;;  %v2429_v15 = vadd.f32 %v2365_v33, %v2237_v29  ;;  %v14811_v44 = vld [vmem:[#allocation220_spill] sm:$0xff]  ;;  %v14814_v1 = vld [vmem:[#allocation215_spill] sm:$0xff]  ;;  %v1326_v29 = vmul.f32 %v14746_v58, %v10703_v19  ;;  %v1301_v19 = vmul.f32 %v14715_v9, %v10660_v14 }
 0x1d8   : > { %v1669_v57 = vadd.f32 %v14808_v20, %v1477_v38  ;;  %v2421_v42 = vadd.f32 %v2357_v27, %v2229_v21  ;;  %v2262_v5 = vadd.f32 %v14809_v25, %v2070_v46  ;;  %v2565_v38 = vmul.f32 %v14646_v16, %v10810_v45  ;;  %v14815_v21 = vld [vmem:[#allocation115_spill] sm:$0xff] }
 0x1d9   : > { %v1510_v20 = vadd.f32 %v14812_v49, %v1318_v30  ;;  %v2078_v27 = vadd.f32 %v14814_v1, %v1886_v37  ;;  %v1485_v46 = vadd.f32 %v14815_v21, %v1293_v63  ;;  %v2621_v25 = vadd.f32 %v2557_v53, %v2429_v15  ;;  %v14816_v36 = vld [vmem:[#allocation279_spill] sm:$0xff]  ;;  %v14821_v37 = vld [vmem:[#allocation240_spill] sm:$0xff] }
 0x1da   : > { %v1861_v32 = vadd.f32 %v14811_v44, %v1669_v57  ;;  %v2613_v39 = vadd.f32 %v2549_v50, %v2421_v42  ;;  %v2454_v24 = vadd.f32 %v14813_v35, %v2262_v5  ;;  %v14818_v57 = vld [vmem:[#allocation333_spill] sm:$0xff]  ;;  %v2598_v35 = vmul.f32 %v14773_v55, %v10831_v13  ;;  %v14820_v53 = vld [vmem:[#allocation323_spill] sm:$0xff]  ;;  %v14825_v1 = vld [vmem:[#allocation216_spill] sm:$0xff] }
 0x1db   : > { %v1702_v34 = vadd.f32 %v14817_v3, %v1510_v20  ;;  %v2270_v30 = vadd.f32 %v14818_v57, %v2078_v27  ;;  %v14819_v50 = vld [vmem:[#allocation173_spill] sm:$0xff]  ;;  %v2573_v49 = vmul.f32 %v14647_v52, %v10810_v45  ;;  %v14826_v27 = vld [vmem:[#allocation138_spill] sm:$0xff]  ;;  %v1272_v57 = vmul.f32 %v14686_v28, %v10755_v6 }
 0x1dc   : > { %v2053_v2 = vadd.f32 %v14816_v36, %v1861_v32  ;;  %7935 = vmatprep.mubr.msk.f32.mxu1 %vm465_vm1, %v2613_v39  ;;  %v2646_v33 = vadd.f32 %v2582_v26, %v2454_v24  ;;  %v1677_v42 = vadd.f32 %v14819_v50, %v1485_v46  ;;  %v14822_v3 = vld [vmem:[#allocation137_spill] sm:$0xff]  ;;  %v14823_v39 = vld [vmem:[#allocation284_spill] sm:$0xff]  ;;  %v2381_v32 = vmul.f32 %v14582_v47, %v10695_v7  ;;  %v14830_v50 = vld [vmem:[#allocation334_spill] sm:$0xff] }
 0x1dd   : > { %7936 = vmatmul.mubr.msk.f32.vlgmr.msra.gmra.mrb[10].mxu1 %vm465_vm1, %v2621_v25  ;;  %v1894_v63 = vadd.f32 %v14821_v37, %v1702_v34  ;;  %v1518_v15 = vadd.f32 %v14822_v3, %v1326_v29  ;;  %v2462_v24 = vadd.f32 %v14823_v39, %v2270_v30  ;;  %v14824_v26 = vld [vmem:[#allocation221_spill] sm:$0xff]  ;;  %v14827_v46 = vld [vmem:[#allocation116_spill] sm:$0xff]  ;;  %v14829_v30 = vld [vmem:[#allocation250_spill] sm:$0xff]  ;;  %v11004_v3 = vpop.permute.xlu1 %2504 }
 0x1de   : > { %v2245_v5 = vadd.f32 %v14820_v53, %v2053_v2  ;;  %7961 = vmatprep.mubr.msk.f32.mxu0 %vm465_vm1, %v2646_v33  ;;  %v1869_v44 = vadd.f32 %v14824_v26, %v1677_v42  ;;  %v1493_v25 = vadd.f32 %v14827_v46, %v1301_v19  ;;  %8107 = vmatpush3.bf16.msra.mxu1 %v14771_v40  ;;  %v14828_v2 = vld [vmem:[#allocation286_spill] sm:$0xff]  ;;  %v14831_v53 = vld [vmem:[#allocation241_spill] sm:$0xff]  ;;  %v14833_v40 = vld [vmem:[#allocation324_spill] sm:$0xff] }
 0x1df   : > { %v2086_v34 = vadd.f32 %v14825_v1, %v1894_v63  ;;  %v1710_v21 = vadd.f32 %v14826_v27, %v1518_v15  ;;  %v2654_v36 = vadd.f32 %v2590_v61, %v2462_v24  ;;  %v2606_v33 = vmul.f32 %v14651_v11, %v10831_v13  ;;  %8109 = vmatprep.subr.bf16.mxu1 %v14829_v30  ;;  %v14832_v37 = vld [vmem:[#allocation174_spill] sm:$0xff]  ;;  %v14834_v13 = vld [vmem:[#allocation71_spill] sm:$0xff]  ;;  %v14835_v19 = vld [vmem:[#allocation141_spill] sm:$0xff] }
 0x1e0   : > { %v2437_v20 = vadd.f32 %v2373_v0, %v2245_v5  ;;  %v2061_v29 = vadd.f32 %v14828_v2, %v1869_v44  ;;  %v1685_v63 = vadd.f32 %v14832_v37, %v1493_v25  ;;  %v2389_v15 = vmul.f32 %v14834_v13, %v10695_v7  ;;  %v14836_v24 = vld [vmem:[#allocation285_spill] sm:$0xff]  ;;  %v14838_v1 = vld [vmem:[#allocation222_spill] sm:$0xff] }
 0x1e1   : > { %v2278_v42 = vadd.f32 %v14830_v50, %v2086_v34  ;;  %v1902_v5 = vadd.f32 %v14831_v53, %v1710_v21  ;;  %7962 = vmatmul.mubr.msk.f32.gmra.mrb[20].mxu0 %vm465_vm1, %v2654_v36  ;;  %v1464_v39 = vadd.f32 %v14835_v19, %v1272_v57  ;;  %v14837_v44 = vld [vmem:[#allocation217_spill] sm:$0xff]  ;;  %v2581_v27 = vmul.f32 %v14737_v17, %v10810_v45  ;;  %v14839_v46 = vld [vmem:[#allocation142_spill] sm:$0xff]  ;;  %v14847_v19 = vld [vmem:[#allocation55_spill] sm:$0xff] }
 0x1e2   : > { %v2629_v0 = vadd.f32 %v2565_v38, %v2437_v20  ;;  %v2253_v61 = vadd.f32 %v14833_v40, %v2061_v29  ;;  %v1309_v38 = vmul.f32 %v14718_v43, %v10660_v14  ;;  %v1877_v34 = vadd.f32 %v14838_v1, %v1685_v63  ;;  %v14840_v36 = vld [vmem:[#allocation118_spill] sm:$0xff]  ;;  %v14841_v29 = vld [vmem:[#allocation135_spill] sm:$0xff]  ;;  %8111 = vmatpush3.bf16.msra.mxu1 %v14829_v30  ;;  %v14852_v1 = vld [vmem:[#allocation72_spill] sm:$0xff] }
 0x1e3   : > { %v2470_v26 = vadd.f32 %v14836_v24, %v2278_v42  ;;  %v2094_v20 = vadd.f32 %v14837_v44, %v1902_v5  ;;  %v1656_v25 = vadd.f32 %v14839_v46, %v1464_v39  ;;  %v1664_v57 = vadd.f32 %v14841_v29, %v10808_v59  ;;  %v14843_v42 = vld [vmem:[#allocation335_spill] sm:$0xff]  ;;  %v14844_v5 = vld [vmem:[#allocation289_spill] sm:$0xff]  ;;  %v14849_v30 = vld [vmem:[#allocation246_spill] sm:$0xff] }
 0x1e4   : > { %7938 = vmatprep.mubr.msk.f32.mxu1 %vm465_vm1, %v2629_v0  ;;  %v2445_v21 = vadd.f32 %v2381_v32, %v2253_v61  ;;  %v1501_v2 = vadd.f32 %v14840_v36, %v1309_v38  ;;  %v11024_v0 = vpop.f32.mrb[4].mxu0  ;;  %v2069_v37 = vadd.f32 %v14844_v5, %v1877_v34  ;;  %v2552_v63 = vmul.f32 %v14641_v8, %v11004_v3  ;;  %v14845_v32 = vld [vmem:[#allocation317_spill] sm:$0xff]  ;;  %v14848_v59 = vld [vmem:[#allocation175_spill] sm:$0xff]  ;;  %v14851_v44 = vld [vmem:[#allocation76_spill] sm:$0xff] }
 0x1e5   : > { %14842 = vst [vmem:[#allocation80_spill] sm:$0xff] %v11024_v0  ;;  %v2662_v50 = vadd.f32 %v2598_v35, %v2470_v26  ;;  %v2286_v53 = vadd.f32 %v14843_v42, %v2094_v20  ;;  %8121 = vmatprep.subr.bf16.mxu1 %v14845_v32  ;;  %v11031_v40 = vpop.f32.mrb[5].mxu0  ;;  %v1848_v39 = vadd.f32 %v14847_v19, %v1656_v25  ;;  %v14850_v35 = vld [vmem:[#allocation287_spill] sm:$0xff]  ;;  %v14854_v25 = vld [vmem:[#allocation224_spill] sm:$0xff]  ;;  %v14855_v29 = vld [vmem:[#allocation213_spill] sm:$0xff] }
 0x1e6   : > { %14846 = vst [vmem:[#allocation99_spill] sm:$0xff] %v11031_v40  ;;  %v2637_v61 = vadd.f32 %v2573_v49, %v2445_v21  ;;  %v1693_v38 = vadd.f32 %v14848_v59, %v1501_v2  ;;  %v1856_v24 = vadd.f32 %v14849_v30, %v1664_v57  ;;  %v2261_v20 = vadd.f32 %v14851_v44, %v2069_v37  ;;  %v14853_v49 = vld [vmem:[#allocation223_spill] sm:$0xff]  ;;  %v14860_v30 = vld [vmem:[#allocation290_spill] sm:$0xff] }
 0x1e7   : > { %7964 = vmatprep.mubr.msk.f32.mxu0 %vm465_vm1, %v2662_v50  ;;  %v2478_v26 = vadd.f32 %v14850_v35, %v2286_v53  ;;  %v2397_v34 = vmul.f32 %v14852_v1, %v10695_v7  ;;  %v1317_v46 = vmul.f32 %v14739_v18, %v10660_v14  ;;  %v2040_v21 = vadd.f32 %v14853_v49, %v1848_v39  ;;  %v11049_v50 = vpop.f32.mrb[6].mxu0  ;;  %v14857_v5 = vld [vmem:[#allocation119_spill] sm:$0xff]  ;;  %v14861_v35 = vld [vmem:[#allocation345_spill] sm:$0xff] }
 0x1e8   : > { %7939 = vmatmul.mubr.msk.f32.gmra.mrb[12].mxu1 %vm465_vm1, %v2637_v61  ;;  %v1885_v36 = vadd.f32 %v14854_v25, %v1693_v38  ;;  %v2589_v2 = vmul.f32 %v14750_v31, %v10810_v45  ;;  %v2048_v57 = vadd.f32 %v14855_v29, %v1856_v24  ;;  %14856 = vst [vmem:[#allocation201_spill] sm:$0xff] %v11049_v50  ;;  %v11054_v59 = vpop.f32.mrb[7].mxu0  ;;  %v14859_v61 = vld [vmem:[#allocation341_spill] sm:$0xff]  ;;  %v14864_v25 = vld [vmem:[#allocation296_spill] sm:$0xff] }
 0x1e9   : > { %v2670_v42 = vadd.f32 %v2606_v33, %v2478_v26  ;;  %v2453_v53 = vadd.f32 %v2389_v15, %v2261_v20  ;;  %v1509_v37 = vadd.f32 %v14857_v5, %v1317_v46  ;;  %v1288_v19 = vmul.f32 %v14577_v23, %v10755_v6  ;;  %14858 = vst [vmem:[#allocation202_spill] sm:$0xff] %v11054_v59  ;;  %v14862_v15 = vld [vmem:[#allocation176_spill] sm:$0xff]  ;;  %v14863_v20 = vld [vmem:[#allocation143_spill] sm:$0xff] }
 0x1ea   : > { %v2232_v39 = vadd.f32 %v14859_v61, %v2040_v21  ;;  %v2077_v38 = vadd.f32 %v14860_v30, %v1885_v36  ;;  %v2240_v44 = vadd.f32 %v14861_v35, %v2048_v57  ;;  %v2560_v24 = vmul.f32 %v14645_v10, %v11004_v3  ;;  %v14865_v21 = vld [vmem:[#allocation85_spill] sm:$0xff]  ;;  %v14869_v30 = vld [vmem:[#allocation120_spill] sm:$0xff] }
 0x1eb   : > { %7965 = vmatmul.mubr.msk.f32.gmra.mrb[22].mxu0 %vm465_vm1, %v2670_v42  ;;  %v2645_v33 = vadd.f32 %v2581_v27, %v2453_v53  ;;  %v1701_v26 = vadd.f32 %v14862_v15, %v1509_v37  ;;  %v1480_v46 = vadd.f32 %v14863_v20, %v1288_v19  ;;  %v1325_v49 = vmul.f32 %v14746_v58, %v10660_v14  ;;  %v14866_v27 = vld [vmem:[#allocation297_spill] sm:$0xff]  ;;  %v14867_v53 = vld [vmem:[#allocation226_spill] sm:$0xff]  ;;  %v14868_v19 = vld [vmem:[#allocation144_spill] sm:$0xff] }
 0x1ec   : > { %v2424_v29 = vadd.f32 %v14864_v25, %v2232_v39  ;;  %v2269_v5 = vadd.f32 %v14865_v21, %v2077_v38  ;;  %v2405_v36 = vmul.f32 %v14590_v60, %v10695_v7  ;;  %v2597_v57 = vmul.f32 %v14773_v55, %v10810_v45  ;;  %v14870_v25 = vld [vmem:[#allocation291_spill] sm:$0xff] }
 0x1ed   : > { %7941 = vmatprep.mubr.msk.f32.mxu1 %vm465_vm1, %v2645_v33  ;;  %v2432_v42 = vadd.f32 %v14866_v27, %v2240_v44  ;;  %v1893_v37 = vadd.f32 %v14867_v53, %v1701_v26  ;;  %v1672_v61 = vadd.f32 %v14868_v19, %v1480_v46  ;;  %v1517_v14 = vadd.f32 %v14869_v30, %v1325_v49  ;;  %v14871_v33 = vld [vmem:[#allocation249_spill] sm:$0xff]  ;;  %v14876_v53 = vld [vmem:[#allocation228_spill] sm:$0xff] }
 0x1ee   : > { %v2616_v35 = vadd.f32 %v2552_v63, %v2424_v29  ;;  %v2461_v39 = vadd.f32 %v2397_v34, %v2269_v5  ;;  %v2568_v38 = vmul.f32 %v14646_v16, %v11004_v3  ;;  %v1296_v15 = vmul.f32 %v14695_v56, %v10755_v6  ;;  %v14872_v44 = vld [vmem:[#allocation177_spill] sm:$0xff]  ;;  %v14875_v5 = vld [vmem:[#allocation227_spill] sm:$0xff] }
 0x1ef   : > { %v2624_v20 = vadd.f32 %v2560_v24, %v2432_v42  ;;  %v2085_v21 = vadd.f32 %v14870_v25, %v1893_v37  ;;  %v1864_v59 = vadd.f32 %v14871_v33, %v1672_v61  ;;  %v1709_v27 = vadd.f32 %v14872_v44, %v1517_v14  ;;  %v14873_v34 = vld [vmem:[#allocation145_spill] sm:$0xff]  ;;  %v14882_v33 = vld [vmem:[#allocation147_spill] sm:$0xff] }
 0x1f0   : > { %7995 = vmatprep.mubr.msk.f32.mxu0 %vm465_vm1, %v2616_v35  ;;  %v2653_v26 = vadd.f32 %v2589_v2, %v2461_v39  ;;  %v2413_v63 = vmul.f32 %v14593_v62, %v10695_v7  ;;  %v1488_v46 = vadd.f32 %v14873_v34, %v1296_v15  ;;  %v1271_v49 = vmul.f32 %v14686_v28, %v10733_v54  ;;  %v14874_v24 = vld [vmem:[#allocation325_spill] sm:$0xff]  ;;  %v14877_v2 = vld [vmem:[#allocation146_spill] sm:$0xff] }
 0x1f1   : > { %7996 = vmatmul.mubr.msk.f32.vlgmr.msra.gmra.mrb[24].mxu0 %vm465_vm1, %v2624_v20  ;;  %v2277_v29 = vadd.f32 %v14874_v24, %v2085_v21  ;;  %v2056_v42 = vadd.f32 %v14875_v5, %v1864_v59  ;;  %v1901_v37 = vadd.f32 %v14876_v53, %v1709_v27  ;;  %v1304_v19 = vmul.f32 %v14715_v9, %v10755_v6  ;;  %v14878_v30 = vld [vmem:[#allocation89_spill] sm:$0xff]  ;;  %v14879_v35 = vld [vmem:[#allocation170_spill] sm:$0xff]  ;;  %v14883_v27 = vld [vmem:[#allocation251_spill] sm:$0xff] }
 0x1f2   : > { %7942 = vmatmul.mubr.msk.f32.gmra.mrb[14].mxu1 %vm465_vm1, %v2653_v26  ;;  %v2605_v7 = vmul.f32 %v14651_v11, %v10810_v45  ;;  %v1680_v61 = vadd.f32 %v14877_v2, %v1488_v46  ;;  %v1463_v14 = vadd.f32 %v14878_v30, %v1271_v49  ;;  %v1663_v39 = vadd.f32 %v14879_v35, %v10775_v41  ;;  %v14880_v20 = vld [vmem:[#allocation346_spill] sm:$0xff]  ;;  %v14881_v25 = vld [vmem:[#allocation293_spill] sm:$0xff]  ;;  %v14885_v49 = vld [vmem:[#allocation164_spill] sm:$0xff] }
 0x1f3   : > { %v2469_v15 = vadd.f32 %v2405_v36, %v2277_v29  ;;  %v2248_v59 = vadd.f32 %v14880_v20, %v2056_v42  ;;  %v2093_v21 = vadd.f32 %v14881_v25, %v1901_v37  ;;  %v1496_v44 = vadd.f32 %v14882_v33, %v1304_v19  ;;  %8131 = vmatpush3.bf16.msra.mxu0 %v14802_v12  ;;  %v14884_v34 = vld [vmem:[#allocation178_spill] sm:$0xff]  ;;  %v14889_v37 = vld [vmem:[#allocation148_spill] sm:$0xff]  ;;  %v14890_v2 = vld [vmem:[#allocation229_spill] sm:$0xff] }
 0x1f4   : > { %v1872_v26 = vadd.f32 %v14883_v27, %v1680_v61  ;;  %v2576_v45 = vmul.f32 %v14647_v52, %v11004_v3  ;;  %v1655_v46 = vadd.f32 %v14884_v34, %v1463_v14  ;;  %v1855_v24 = vadd.f32 %v14885_v49, %v1663_v39  ;;  %v14886_v5 = vld [vmem:[#allocation306_spill] sm:$0xff]  ;;  %v14891_v30 = vld [vmem:[#allocation179_spill] sm:$0xff] }
 0x1f5   : > { %8133 = vmatprep.subr.bf16.mxu0 %v14886_v5  ;;  %v2661_v41 = vadd.f32 %v2597_v57, %v2469_v15  ;;  %v14887_v36 = vld [vmem:[#allocation298_spill] sm:$0xff]  ;;  %v1688_v19 = vadd.f32 %v14889_v37, %v1496_v44  ;;  %v1312_v14 = vmul.f32 %v14718_v43, %v10755_v6  ;;  %v14893_v57 = vld [vmem:[#allocation252_spill] sm:$0xff] }
 0x1f6   : > { %v2440_v29 = vadd.f32 %v14887_v36, %v2248_v59  ;;  %v14888_v42 = vld [vmem:[#allocation326_spill] sm:$0xff]  ;;  %v2064_v12 = vadd.f32 %v14890_v2, %v1872_v26  ;;  %v1847_v61 = vadd.f32 %v14891_v30, %v1655_v46  ;;  %v2367_v59 = vmul.f32 %v14580_v48, %v10723_v51  ;;  %v14896_v26 = vld [vmem:[#allocation261_spill] sm:$0xff] }
 0x1f7   : > { %v2285_v53 = vadd.f32 %v14888_v42, %v2093_v21  ;;  %v14892_v35 = vld [vmem:[#allocation66_spill] sm:$0xff]  ;;  %7944 = vmatprep.mubr.msk.f32.mxu1 %vm465_vm1, %v2661_v41  ;;  %v1880_v15 = vadd.f32 %v14893_v57, %v1688_v19  ;;  %v14894_v21 = vld [vmem:[#allocation348_spill] sm:$0xff]  ;;  %v14897_v46 = vld [vmem:[#allocation149_spill] sm:$0xff]  ;;  %8135 = vmatpush3.bf16.msra.mxu0 %v14886_v5  ;;  %v1287_v36 = vmul.f32 %v14577_v23, %v10733_v54 }
 0x1f8   : > { %v2047_v20 = vadd.f32 %v14892_v35, %v1855_v24  ;;  %v2632_v39 = vadd.f32 %v2568_v38, %v2440_v29  ;;  %v2256_v33 = vadd.f32 %v14894_v21, %v2064_v12  ;;  %v14895_v44 = vld [vmem:[#allocation294_spill] sm:$0xff]  ;;  %v1504_v49 = vadd.f32 %v14897_v46, %v1312_v14  ;;  %v14899_v29 = vld [vmem:[#allocation299_spill] sm:$0xff]  ;;  %v14902_v5 = vld [vmem:[#allocation349_spill] sm:$0xff] }
 0x1f9   : > { %v2477_v25 = vadd.f32 %v2413_v63, %v2285_v53  ;;  %v2039_v27 = vadd.f32 %v14895_v44, %v1847_v61  ;;  %v2359_v38 = vmul.f32 %v14579_v22, %v10723_v51  ;;  %v14898_v63 = vld [vmem:[#allocation231_spill] sm:$0xff]  ;;  %v14900_v53 = vld [vmem:[#allocation260_spill] sm:$0xff]  ;;  %v14901_v2 = vld [vmem:[#allocation150_spill] sm:$0xff] }
 0x1fa   : > { %v2239_v34 = vadd.f32 %v14896_v26, %v2047_v20  ;;  %7998 = vmatprep.mubr.msk.f32.mxu0 %vm465_vm1, %v2632_v39  ;;  %v2072_v41 = vadd.f32 %v14898_v63, %v1880_v15  ;;  %v2448_v42 = vadd.f32 %v14899_v29, %v2256_v33  ;;  %v1696_v12 = vadd.f32 %v14901_v2, %v1504_v49  ;;  %v14903_v61 = vld [vmem:[#allocation90_spill] sm:$0xff]  ;;  %v14906_v33 = vld [vmem:[#allocation180_spill] sm:$0xff]  ;;  %v14911_v29 = vld [vmem:[#allocation181_spill] sm:$0xff] }
 0x1fb   : > { %v2669_v24 = vadd.f32 %v2605_v7, %v2477_v25  ;;  %v2231_v37 = vadd.f32 %v14900_v53, %v2039_v27  ;;  %v2584_v7 = vmul.f32 %v14737_v17, %v11004_v3  ;;  %v1479_v35 = vadd.f32 %v14903_v61, %v1287_v36  ;;  %v14904_v25 = vld [vmem:[#allocation253_spill] sm:$0xff]  ;;  %v14907_v27 = vld [vmem:[#allocation152_spill] sm:$0xff]  ;;  %v14913_v2 = vld [vmem:[#allocation91_spill] sm:$0xff] }
 0x1fc   : > { %v2431_v19 = vadd.f32 %v2367_v59, %v2239_v34  ;;  %v2264_v30 = vadd.f32 %v14902_v5, %v2072_v41  ;;  %v1320_v20 = vmul.f32 %v14739_v18, %v10755_v6  ;;  %v2640_v14 = vadd.f32 %v2576_v45, %v2448_v42  ;;  %v14905_v59 = vld [vmem:[#allocation300_spill] sm:$0xff]  ;;  %v14909_v45 = vld [vmem:[#allocation337_spill] sm:$0xff]  ;;  %v14914_v5 = vld [vmem:[#allocation350_spill] sm:$0xff] }
 0x1fd   : > { %7945 = vmatmul.mubr.msk.f32.gmra.mrb[16].mxu1 %vm465_vm1, %v2669_v24  ;;  %v2423_v39 = vadd.f32 %v2359_v38, %v2231_v37  ;;  %v1888_v57 = vadd.f32 %v14904_v25, %v1696_v12  ;;  %v2592_v15 = vmul.f32 %v14750_v31, %v11004_v3  ;;  %v1671_v44 = vadd.f32 %v14906_v33, %v1479_v35  ;;  %v14908_v46 = vld [vmem:[#allocation336_spill] sm:$0xff]  ;;  %v14912_v53 = vld [vmem:[#allocation153_spill] sm:$0xff]  ;;  %v14918_v25 = vld [vmem:[#allocation182_spill] sm:$0xff] }
 0x1fe   : > { %v2456_v21 = vadd.f32 %v14905_v59, %v2264_v30  ;;  %v1512_v26 = vadd.f32 %v14907_v27, %v1320_v20  ;;  %v1295_v34 = vmul.f32 %v14695_v56, %v10733_v54  ;;  %7999 = vmatmul.mubr.msk.f32.gmra.mrb[26].mxu0 %vm465_vm1, %v2640_v14  ;;  %v2623_v24 = vadd.f32 %v14909_v45, %v2431_v19  ;;  %v14910_v38 = vld [vmem:[#allocation232_spill] sm:$0xff]  ;;  %v14915_v19 = vld [vmem:[#allocation154_spill] sm:$0xff]  ;;  %v14919_v59 = vld [vmem:[#allocation301_spill] sm:$0xff] }
 0x1ff   : > { %v2615_v49 = vadd.f32 %v14908_v46, %v2423_v39  ;;  %v2080_v63 = vadd.f32 %v14910_v38, %v1888_v57  ;;  %v1328_v41 = vmul.f32 %v14746_v58, %v10755_v6  ;;  %v1863_v42 = vadd.f32 %v14911_v29, %v1671_v44  ;;  %v14916_v6 = vld [vmem:[#allocation302_spill] sm:$0xff]  ;;  %v14920_v44 = vld [vmem:[#allocation156_spill] sm:$0xff]  ;;  %v14923_v45 = vld [vmem:[#allocation233_spill] sm:$0xff] }
 0x200   : > { %v2648_v36 = vadd.f32 %v2584_v7, %v2456_v21  ;;  %v1704_v37 = vadd.f32 %v14912_v53, %v1512_v26  ;;  %v1487_v12 = vadd.f32 %v14913_v2, %v1295_v34  ;;  %v2375_v61 = vmul.f32 %v14581_v4, %v10723_v51  ;;  %v14917_v14 = vld [vmem:[#allocation254_spill] sm:$0xff]  ;;  %v14921_v26 = vld [vmem:[#allocation92_spill] sm:$0xff]  ;;  %v14924_v38 = vld [vmem:[#allocation183_spill] sm:$0xff] }
 0x201   : > { %7975 = vmatprep.mubr.msk.f32.mxu1 %vm465_vm1, %v2615_v49  ;;  %v2272_v30 = vadd.f32 %v14914_v5, %v2080_v63  ;;  %v1520_v35 = vadd.f32 %v14915_v19, %v1328_v41  ;;  %v1303_v20 = vmul.f32 %v14715_v9, %v10733_v54  ;;  %v2055_v7 = vadd.f32 %v14916_v6, %v1863_v42  ;;  %v14922_v46 = vld [vmem:[#allocation262_spill] sm:$0xff]  ;;  %v14926_v29 = vld [vmem:[#allocation353_spill] sm:$0xff] }
 0x202   : > { %8001 = vmatprep.mubr.msk.f32.mxu0 %vm465_vm1, %v2648_v36  ;;  %7976 = vmatmul.mubr.msk.f32.vlgmr.msra.gmra.mrb[18].mxu1 %vm465_vm1, %v2623_v24  ;;  %v1896_v39 = vadd.f32 %v14917_v14, %v1704_v37  ;;  %v1679_v57 = vadd.f32 %v14918_v25, %v1487_v12  ;;  %v2600_v33 = vmul.f32 %v14773_v55, %v11004_v3  ;;  %v14925_v41 = vld [vmem:[#allocation98_spill] sm:$0xff]  ;;  %v14927_v37 = vld [vmem:[#allocation257_spill] sm:$0xff]  ;;  %v14928_v12 = vld [vmem:[#allocation184_spill] sm:$0xff] }
 0x203   : > { %v2464_v21 = vadd.f32 %v14919_v59, %v2272_v30  ;;  %v1712_v27 = vadd.f32 %v14920_v44, %v1520_v35  ;;  %v1495_v34 = vadd.f32 %v14921_v26, %v1303_v20  ;;  %8123 = vmatpush3.bf16.msra.mxu1 %v14845_v32  ;;  %v2247_v49 = vadd.f32 %v14922_v46, %v2055_v7  ;;  %v14929_v30 = vld [vmem:[#allocation351_spill] sm:$0xff]  ;;  %v14930_v35 = vld [vmem:[#allocation304_spill] sm:$0xff]  ;;  %v14931_v6 = vld [vmem:[#allocation157_spill] sm:$0xff] }
 0x204   : > { %v2088_v24 = vadd.f32 %v14923_v45, %v1896_v39  ;;  %v1871_v63 = vadd.f32 %v14924_v38, %v1679_v57  ;;  %v1274_v36 = vmul.f32 %v14686_v28, %v14925_v41  ;;  %8125 = vmatprep.subr.bf16.mxu1 %v14926_v29  ;;  %v2383_v53 = vmul.f32 %v14582_v47, %v10723_v51  ;;  %v14932_v28 = vld [vmem:[#allocation242_spill] sm:$0xff]  ;;  %v14934_v59 = vld [vmem:[#allocation339_spill] sm:$0xff]  ;;  %v14938_v45 = vld [vmem:[#allocation21_spill] sm:$0xff] }
 0x205   : > { %v2656_v42 = vadd.f32 %v2592_v15, %v2464_v21  ;;  %v1904_v2 = vadd.f32 %v14927_v37, %v1712_v27  ;;  %v1687_v5 = vadd.f32 %v14928_v12, %v1495_v34  ;;  %v2439_v32 = vadd.f32 %v2375_v61, %v2247_v49  ;;  %v14933_v39 = vld [vmem:[#allocation194_spill] sm:$0xff]  ;;  %v14935_v21 = vld [vmem:[#allocation303_spill] sm:$0xff]  ;;  %v14936_v27 = vld [vmem:[#allocation264_spill] sm:$0xff]  ;;  %v11206_v49 = vpop.permute.xlu1 %2512 }
 0x206   : > { %v2280_v19 = vadd.f32 %v14929_v30, %v2088_v24  ;;  %v2063_v20 = vadd.f32 %v14930_v35, %v1871_v63  ;;  %v1466_v7 = vadd.f32 %v14931_v6, %v1274_v36  ;;  %v2608_v15 = vmul.f32 %v14651_v11, %v11004_v3  ;;  %v14937_v34 = vld [vmem:[#allocation158_spill] sm:$0xff]  ;;  %v14939_v3 = vld [vmem:[#allocation307_spill] sm:$0xff]  ;;  %v14940_v63 = vld [vmem:[#allocation93_spill] sm:$0xff] }
 0x207   : > { %8002 = vmatmul.mubr.msk.f32.gmra.mrb[28].mxu0 %vm465_vm1, %v2656_v42  ;;  %v2096_v14 = vadd.f32 %v14932_v28, %v1904_v2  ;;  %v1879_v25 = vadd.f32 %v14933_v39, %v1687_v5  ;;  %v1311_v57 = vmul.f32 %v14718_v43, %v10733_v54  ;;  %v2631_v61 = vadd.f32 %v14934_v59, %v2439_v32  ;;  %v14941_v42 = vld [vmem:[#allocation121_spill] sm:$0xff]  ;;  %v14942_v37 = vld [vmem:[#allocation151_spill] sm:$0xff]  ;;  %v14944_v30 = vld [vmem:[#allocation258_spill] sm:$0xff] }
 0x208   : > { %v2472_v44 = vadd.f32 %v14935_v21, %v2280_v19  ;;  %v2255_v26 = vadd.f32 %v14936_v27, %v2063_v20  ;;  %v1658_v46 = vadd.f32 %v14937_v34, %v1466_v7  ;;  %8127 = vmatpush3.bf16.msra.mxu1 %v14926_v29  ;;  %v1666_v2 = vadd.f32 %v14942_v37, %v14941_v42  ;;  %v14945_v35 = vld [vmem:[#allocation305_spill] sm:$0xff]  ;;  %v14947_v28 = vld [vmem:[#allocation195_spill] sm:$0xff]  ;;  %v14956_v37 = vld [vmem:[#allocation308_spill] sm:$0xff] }
 0x209   : > { %v2288_v24 = vadd.f32 %v14938_v45, %v2096_v14  ;;  %v2071_v38 = vadd.f32 %v14939_v3, %v1879_v25  ;;  %v1503_v36 = vadd.f32 %v14940_v63, %v1311_v57  ;;  %v14943_v12 = vmov 0.0|0.0   ;;  %7978 = vmatprep.mubr.msk.f32.mxu1 %vm465_vm1, %v2631_v61  ;;  %v14946_v6 = vld [vmem:[#allocation265_spill] sm:$0xff]  ;;  %v14948_v39 = vld [vmem:[#allocation255_spill] sm:$0xff]  ;;  %v14949_v57 = vld [vmem:[#allocation340_spill] sm:$0xff] }
 0x20a   : > { %8136 = vmatprep.subr.bf16.mxu1 %v14943_v12  ;;  %v2664_v5 = vadd.f32 %v2600_v33, %v2472_v44  ;;  %v2447_v32 = vadd.f32 %v2383_v53, %v2255_v26  ;;  %v2391_v29 = vmul.f32 %v14834_v13, %v10723_v51  ;;  %v1850_v19 = vadd.f32 %v14944_v30, %v1658_v46  ;;  %v14950_v61 = vld [vmem:[#allocation243_spill] sm:$0xff]  ;;  %v14951_v26 = vld [vmem:[#allocation196_spill] sm:$0xff]  ;;  %v14952_v46 = vld [vmem:[#allocation230_spill] sm:$0xff] }
 0x20b   : > { %v2480_v20 = vadd.f32 %v14945_v35, %v2288_v24  ;;  %v2263_v7 = vadd.f32 %v14946_v6, %v2071_v38  ;;  %v1695_v14 = vadd.f32 %v14947_v28, %v1503_v36  ;;  %v1858_v25 = vadd.f32 %v14948_v39, %v1666_v2  ;;  %v14953_v24 = vld [vmem:[#allocation354_spill] sm:$0xff]  ;;  %v14958_v30 = vld [vmem:[#allocation316_spill] sm:$0xff] }
 0x20c   : > { %8004 = vmatprep.mubr.msk.f32.mxu0 %vm465_vm1, %v2664_v5  ;;  %v2639_v59 = vadd.f32 %v14949_v57, %v2447_v32  ;;  %v2042_v33 = vadd.f32 %v14950_v61, %v1850_v19  ;;  %v2554_v53 = vmul.f32 %v14641_v8, %v11206_v49  ;;  %v1319_v21 = vmul.f32 %v14739_v18, %v10733_v54  ;;  %v14954_v63 = vld [vmem:[#allocation94_spill] sm:$0xff]  ;;  %v14957_v5 = vld [vmem:[#allocation355_spill] sm:$0xff] }
 0x20d   : > { %v2672_v44 = vadd.f32 %v2608_v15, %v2480_v20  ;;  %v2455_v27 = vadd.f32 %v2391_v29, %v2263_v7  ;;  %v1887_v34 = vadd.f32 %v14951_v26, %v1695_v14  ;;  %v2050_v45 = vadd.f32 %v14952_v46, %v1858_v25  ;;  %v14955_v15 = vld [vmem:[#allocation342_spill] sm:$0xff]  ;;  %v14960_v7 = vld [vmem:[#allocation159_spill] sm:$0xff]  ;;  %v14966_v26 = vld [vmem:[#allocation160_spill] sm:$0xff] }
 0x20e   : > { %7979 = vmatmul.mubr.msk.f32.gmra.mrb[20].mxu1 %vm465_vm1, %v2639_v59  ;;  %v2234_v3 = vadd.f32 %v14953_v24, %v2042_v33  ;;  %v2562_v38 = vmul.f32 %v14645_v10, %v11206_v49  ;;  %v1511_v36 = vadd.f32 %v14954_v63, %v1319_v21  ;;  %v1290_v8 = vmul.f32 %v14577_v23, %v14925_v41  ;;  %v14959_v20 = vld [vmem:[#allocation198_spill] sm:$0xff]  ;;  %v14963_v57 = vld [vmem:[#allocation95_spill] sm:$0xff]  ;;  %v14967_v24 = vld [vmem:[#allocation200_spill] sm:$0xff] }
 0x20f   : > { %8005 = vmatmul.mubr.msk.f32.gmra.mrb[30].mxu0 %vm465_vm1, %v2672_v44  ;;  %v2647_v42 = vadd.f32 %v14955_v15, %v2455_v27  ;;  %v2079_v2 = vadd.f32 %v14956_v37, %v1887_v34  ;;  %v2242_v32 = vadd.f32 %v14957_v5, %v2050_v45  ;;  %v1327_v29 = vmul.f32 %v14746_v58, %v10733_v54  ;;  %v14961_v28 = vld [vmem:[#allocation266_spill] sm:$0xff]  ;;  %v14965_v44 = vld [vmem:[#allocation199_spill] sm:$0xff]  ;;  %v14968_v63 = vld [vmem:[#allocation161_spill] sm:$0xff] }
 0x210   : > { %v2426_v19 = vadd.f32 %v14958_v30, %v2234_v3  ;;  %v2399_v35 = vmul.f32 %v14852_v1, %v10723_v51  ;;  %v1703_v6 = vadd.f32 %v14959_v20, %v1511_v36  ;;  %v1482_v23 = vadd.f32 %v14960_v7, %v1290_v8  ;;  %v14962_v39 = vld [vmem:[#allocation318_spill] sm:$0xff]  ;;  %v14969_v8 = vld [vmem:[#allocation309_spill] sm:$0xff]  ;;  %v14970_v37 = vld [vmem:[#allocation263_spill] sm:$0xff] }
 0x211   : > { %7981 = vmatprep.mubr.msk.f32.mxu1 %vm465_vm1, %v2647_v42  ;;  %v2271_v14 = vadd.f32 %v14961_v28, %v2079_v2  ;;  %v2434_v25 = vadd.f32 %v14962_v39, %v2242_v32  ;;  %v1519_v59 = vadd.f32 %v14963_v57, %v1327_v29  ;;  %v1298_v54 = vmul.f32 %v14695_v56, %v14925_v41  ;;  %v14971_v5 = vld [vmem:[#allocation343_spill] sm:$0xff]  ;;  %v14972_v29 = vld [vmem:[#allocation245_spill] sm:$0xff]  ;;  %v14975_v7 = vld [vmem:[#allocation244_spill] sm:$0xff] }
 0x212   : > { %v2618_v21 = vadd.f32 %v2554_v53, %v2426_v19  ;;  %v1895_v27 = vadd.f32 %v14965_v44, %v1703_v6  ;;  %v1674_v34 = vadd.f32 %v14966_v26, %v1482_v23  ;;  %v2407_v42 = vmul.f32 %v14590_v60, %v10723_v51  ;;  %v14973_v19 = vld [vmem:[#allocation162_spill] sm:$0xff]  ;;  %v14974_v20 = vld [vmem:[#allocation267_spill] sm:$0xff]  ;;  %v14976_v28 = vld [vmem:[#allocation96_spill] sm:$0xff] }
 0x213   : > { %v2463_v46 = vadd.f32 %v2399_v35, %v2271_v14  ;;  %v2626_v45 = vadd.f32 %v2562_v38, %v2434_v25  ;;  %v1711_v3 = vadd.f32 %v14967_v24, %v1519_v59  ;;  %v1490_v36 = vadd.f32 %v14968_v63, %v1298_v54  ;;  %v14977_v39 = vld [vmem:[#allocation165_spill] sm:$0xff]  ;;  %v14978_v57 = vld [vmem:[#allocation310_spill] sm:$0xff]  ;;  %v14981_v26 = vld [vmem:[#allocation288_spill] sm:$0xff] }
 0x214   : > { %8035 = vmatprep.mubr.msk.f32.mxu0 %vm465_vm1, %v2618_v21  ;;  %v2087_v15 = vadd.f32 %v14969_v8, %v1895_v27  ;;  %v1866_v2 = vadd.f32 %v14970_v37, %v1674_v34  ;;  %v1306_v53 = vmul.f32 %v14715_v9, %v14925_v41  ;;  %v2570_v38 = vmul.f32 %v14646_v16, %v11206_v49  ;;  %v14979_v21 = vld [vmem:[#allocation269_spill] sm:$0xff]  ;;  %v14980_v27 = vld [vmem:[#allocation259_spill] sm:$0xff] }
 0x215   : > { %v2655_v32 = vadd.f32 %v14971_v5, %v2463_v46  ;;  %8036 = vmatmul.mubr.msk.f32.vlgmr.msra.gmra.mrb[32].mxu0 %vm465_vm1, %v2626_v45  ;;  %v1903_v30 = vadd.f32 %v14972_v29, %v1711_v3  ;;  %v1682_v35 = vadd.f32 %v14973_v19, %v1490_v36  ;;  %v2361_v14 = vmul.f32 %v14579_v22, %v14976_v28  ;;  %v14982_v45 = vld [vmem:[#allocation356_spill] sm:$0xff]  ;;  %v14983_v3 = vld [vmem:[#allocation166_spill] sm:$0xff]  ;;  %v14990_v19 = vld [vmem:[#allocation347_spill] sm:$0xff] }
 0x216   : > { %v2279_v6 = vadd.f32 %v14974_v20, %v2087_v15  ;;  %v2058_v23 = vadd.f32 %v14975_v7, %v1866_v2  ;;  %v1498_v25 = vadd.f32 %v14977_v39, %v1306_v53  ;;  %v2415_v54 = vmul.f32 %v14593_v62, %v10723_v51  ;;  %v14984_v36 = vld [vmem:[#allocation268_spill] sm:$0xff]  ;;  %v14987_v53 = vld [vmem:[#allocation59_spill] sm:$0xff]  ;;  %v14991_v20 = vld [vmem:[#allocation270_spill] sm:$0xff] }
 0x217   : > { %7982 = vmatmul.mubr.msk.f32.gmra.mrb[22].mxu1 %vm465_vm1, %v2655_v32  ;;  %v2095_v59 = vadd.f32 %v14978_v57, %v1903_v30  ;;  %v1874_v44 = vadd.f32 %v14979_v21, %v1682_v35  ;;  %v2049_v34 = vadd.f32 %v14981_v26, %v14980_v27  ;;  %v2578_v22 = vmul.f32 %v14647_v52, %v11206_v49  ;;  %v14985_v15 = vld [vmem:[#allocation248_spill] sm:$0xff]  ;;  %v14993_v21 = vld [vmem:[#allocation271_spill] sm:$0xff]  ;;  %v14995_v27 = vld [vmem:[#allocation62_spill] sm:$0xff] }
 0x218   : > { %v2471_v46 = vadd.f32 %v2407_v42, %v2279_v6  ;;  %v2250_v24 = vadd.f32 %v14982_v45, %v2058_v23  ;;  %v1690_v63 = vadd.f32 %v14983_v3, %v1498_v25  ;;  %v14986_v2 = vld [vmem:[#allocation256_spill] sm:$0xff]  ;;  %v2369_v5 = vmul.f32 %v14580_v48, %v14976_v28  ;;  %v14989_v42 = vld [vmem:[#allocation319_spill] sm:$0xff]  ;;  %v14992_v23 = vld [vmem:[#allocation25_spill] sm:$0xff] }
 0x219   : > { %v2287_v8 = vadd.f32 %v14984_v36, %v2095_v59  ;;  %v2066_v37 = vadd.f32 %v14985_v15, %v1874_v44  ;;  %v2177_v51 = vmul.f32 %v14987_v53, %v14986_v2  ;;  %v14988_v32 = vld [vmem:[#allocation344_spill] sm:$0xff]  ;;  %v2425_v35 = vadd.f32 %v2361_v14, %v14990_v19  ;;  %v14994_v44 = vld [vmem:[#allocation338_spill] sm:$0xff]  ;;  %v14999_v36 = vld [vmem:[#allocation357_spill] sm:$0xff] }
 0x21a   : > { %v2663_v29 = vadd.f32 %v14988_v32, %v2471_v46  ;;  %v2442_v30 = vadd.f32 %v14989_v42, %v2250_v24  ;;  %v1882_v6 = vadd.f32 %v14991_v20, %v1690_v63  ;;  %v1314_v57 = vmul.f32 %v14718_v43, %v14925_v41  ;;  %v14996_v46 = vld [vmem:[#allocation20_spill] sm:$0xff]  ;;  %v15000_v15 = vld [vmem:[#allocation327_spill] sm:$0xff]  ;;  %v15003_v42 = vld [vmem:[#allocation274_spill] sm:$0xff] }
 0x21b   : > { %v2479_v7 = vadd.f32 %v2415_v54, %v2287_v8  ;;  %v2258_v39 = vadd.f32 %v14992_v23, %v2066_v37  ;;  %v2241_v25 = vadd.f32 %v2177_v51, %v2049_v34  ;;  %v2202_v26 = vmul.f32 %v14995_v27, %v14994_v44  ;;  %v14997_v54 = vld [vmem:[#allocation320_spill] sm:$0xff]  ;;  %v14998_v34 = vld [vmem:[#allocation273_spill] sm:$0xff]  ;;  %v15001_v53 = vld [vmem:[#allocation247_spill] sm:$0xff] }
 0x21c   : > { %7984 = vmatprep.mubr.msk.f32.mxu1 %vm465_vm1, %v2663_v29  ;;  %v2634_v59 = vadd.f32 %v2570_v38, %v2442_v30  ;;  %v2074_v48 = vadd.f32 %v14993_v21, %v1882_v6  ;;  %v2586_v14 = vmul.f32 %v14737_v17, %v11206_v49  ;;  %v1506_v63 = vadd.f32 %v14998_v34, %v1314_v57  ;;  %v15002_v51 = vld [vmem:[#allocation47_spill] sm:$0xff]  ;;  %v15004_v19 = vld [vmem:[#allocation214_spill] sm:$0xff]  ;;  %v15006_v6 = vld [vmem:[#allocation81_spill] sm:$0xff] }
 0x21d   : > { %v2671_v45 = vadd.f32 %v14996_v46, %v2479_v7  ;;  %v2450_v24 = vadd.f32 %v14997_v54, %v2258_v39  ;;  %v2433_v3 = vadd.f32 %v2369_v5, %v2241_v25  ;;  %v2617_v8 = vadd.f32 %v14999_v36, %v2425_v35  ;;  %v15005_v5 = vld [vmem:[#allocation54_spill] sm:$0xff]  ;;  %v15007_v7 = vld [vmem:[#allocation24_spill] sm:$0xff]  ;;  %v15013_v54 = vld [vmem:[#allocation23_spill] sm:$0xff] }
 0x21e   : > { %8038 = vmatprep.mubr.msk.f32.mxu0 %vm465_vm1, %v2634_v59  ;;  %v2266_v38 = vadd.f32 %v2202_v26, %v2074_v48  ;;  %v2561_v37 = vmul.f32 %v14645_v10, %v15000_v15  ;;  %v1826_v32 = vmul.f32 %v15002_v51, %v15001_v53  ;;  %v1698_v30 = vadd.f32 %v15003_v42, %v1506_v63  ;;  %v15008_v35 = vld [vmem:[#allocation322_spill] sm:$0xff]  ;;  %v15009_v10 = vld [vmem:[#allocation63_spill] sm:$0xff]  ;;  %v15010_v57 = vld [vmem:[#allocation292_spill] sm:$0xff] }
 0x21f   : > { %7985 = vmatmul.mubr.msk.f32.gmra.mrb[24].mxu1 %vm465_vm1, %v2671_v45  ;;  %v2642_v29 = vadd.f32 %v2578_v22, %v2450_v24  ;;  %v2018_v20 = vmul.f32 %v15005_v5, %v15004_v19  ;;  %v1417_v23 = vmul.f32 %v15007_v7, %v15006_v6  ;;  %v2210_v25 = vmul.f32 %v15009_v10, %v14994_v44  ;;  %v15011_v21 = vld [vmem:[#allocation168_spill] sm:$0xff]  ;;  %v15012_v22 = vld [vmem:[#allocation37_spill] sm:$0xff]  ;;  %v15014_v63 = vld [vmem:[#allocation163_spill] sm:$0xff] }
 0x220   : > { %8015 = vmatprep.mubr.msk.f32.mxu1 %vm465_vm1, %v2617_v8  ;;  %v2458_v39 = vadd.f32 %v15008_v35, %v2266_v38  ;;  %v2402_v59 = vmul.f32 %v14852_v1, %v15010_v57  ;;  %v1609_v48 = vmul.f32 %v15012_v22, %v15011_v21  ;;  %v2625_v26 = vadd.f32 %v2561_v37, %v2433_v3  ;;  %v15015_v36 = vld [vmem:[#allocation44_spill] sm:$0xff]  ;;  %v15016_v42 = vld [vmem:[#allocation126_spill] sm:$0xff]  ;;  %v15017_v7 = vld [vmem:[#allocation33_spill] sm:$0xff] }
 0x221   : > { %8039 = vmatmul.mubr.msk.f32.gmra.mrb[34].mxu0 %vm465_vm1, %v2642_v29  ;;  %v1890_v46 = vadd.f32 %v1826_v32, %v1698_v30  ;;  %v2594_v45 = vmul.f32 %v14750_v31, %v11206_v49  ;;  %v1481_v24 = vadd.f32 %v1417_v23, %v15013_v54  ;;  %v1801_v8 = vmul.f32 %v15015_v36, %v15014_v63  ;;  %v15018_v37 = vld [vmem:[#allocation67_spill] sm:$0xff]  ;;  %v15019_v32 = vld [vmem:[#allocation50_spill] sm:$0xff]  ;;  %v15020_v22 = vld [vmem:[#allocation60_spill] sm:$0xff] }
 0x222   : > { %v2650_v34 = vadd.f32 %v2586_v14, %v2458_v39  ;;  %v1322_v38 = vmul.f32 %v14739_v18, %v14925_v41  ;;  %v1450_v35 = vmul.f32 %v15017_v7, %v15016_v42  ;;  %v1993_v30 = vmul.f32 %v15019_v32, %v15018_v37  ;;  %v15021_v36 = vld [vmem:[#allocation125_spill] sm:$0xff]  ;;  %v15024_v32 = vld [vmem:[#allocation56_spill] sm:$0xff] }
 0x223   : > { %8016 = vmatmul.mubr.msk.f32.vlgmr.msra.gmra.mrb[26].mxu1 %vm465_vm1, %v2625_v26  ;;  %v2082_v29 = vadd.f32 %v2018_v20, %v1890_v46  ;;  %v1673_v3 = vadd.f32 %v1609_v48, %v1481_v24  ;;  %v2185_v23 = vmul.f32 %v15020_v22, %v14986_v2  ;;  %v2377_v14 = vmul.f32 %v14581_v4, %v14976_v28  ;;  %v15022_v33 = vld [vmem:[#allocation41_spill] sm:$0xff]  ;;  %v15023_v46 = vld [vmem:[#allocation48_spill] sm:$0xff]  ;;  %v15026_v4 = vld [vmem:[#allocation26_spill] sm:$0xff] }
 0x224   : > { %8041 = vmatprep.mubr.msk.f32.mxu0 %vm465_vm1, %v2650_v34  ;;  %v2569_v39 = vmul.f32 %v14646_v16, %v15000_v15  ;;  %v1514_v54 = vadd.f32 %v1450_v35, %v1322_v38  ;;  %v1642_v26 = vmul.f32 %v15022_v33, %v15021_v36  ;;  %v1834_v24 = vmul.f32 %v15023_v46, %v15001_v53  ;;  %v15025_v34 = vld [vmem:[#allocation69_spill] sm:$0xff]  ;;  %v15027_v16 = vld [vmem:[#allocation38_spill] sm:$0xff] }
 0x225   : > { %v2274_v20 = vadd.f32 %v2210_v25, %v2082_v29  ;;  %v1865_v48 = vadd.f32 %v1801_v8, %v1673_v3  ;;  %v2026_v22 = vmul.f32 %v15024_v32, %v15004_v19  ;;  %v1297_v40 = vmul.f32 %v14695_v56, %v15025_v34  ;;  %v15028_v25 = vld [vmem:[#allocation64_spill] sm:$0xff]  ;;  %v15029_v56 = vld [vmem:[#allocation45_spill] sm:$0xff] }
 0x226   : > { %v1706_v12 = vadd.f32 %v1642_v26, %v1514_v54  ;;  %v1425_v50 = vmul.f32 %v15026_v4, %v15006_v6  ;;  %v1617_v38 = vmul.f32 %v15027_v16, %v15011_v21  ;;  %v2218_v8 = vmul.f32 %v15028_v25, %v14994_v44 }
 0x227   : > { %v2466_v35 = vadd.f32 %v2402_v59, %v2274_v20  ;;  %v2057_v0 = vadd.f32 %v1993_v30, %v1865_v48  ;;  %v2410_v29 = vmul.f32 %v14590_v60, %v15010_v57  ;;  %v2602_v54 = vmul.f32 %v14773_v55, %v11206_v49  ;;  %v15030_v30 = vld [vmem:[#allocation35_spill] sm:$0xff] }
 0x228   : > { %v1898_v3 = vadd.f32 %v1834_v24, %v1706_v12  ;;  %v1489_v26 = vadd.f32 %v1425_v50, %v1297_v40  ;;  %v1809_v31 = vmul.f32 %v15029_v56, %v15014_v63  ;;  %v1330_v59 = vmul.f32 %v14746_v58, %v14925_v41  ;;  %v15031_v60 = vld [vmem:[#allocation51_spill] sm:$0xff]  ;;  %v15032_v24 = vld [vmem:[#allocation61_spill] sm:$0xff]  ;;  %v15033_v41 = vld [vmem:[#allocation42_spill] sm:$0xff] }
 0x229   : > { %v2658_v4 = vadd.f32 %v2594_v45, %v2466_v35  ;;  %v2249_v61 = vadd.f32 %v2185_v23, %v2057_v0  ;;  %v1458_v20 = vmul.f32 %v15030_v30, %v15016_v42  ;;  %v2001_v12 = vmul.f32 %v15031_v60, %v15018_v37  ;;  %v15034_v60 = vld [vmem:[#allocation49_spill] sm:$0xff] }
 0x22a   : > { %v2090_v48 = vadd.f32 %v2026_v22, %v1898_v3  ;;  %v1681_v16 = vadd.f32 %v1617_v38, %v1489_v26  ;;  %v2193_v55 = vmul.f32 %v15032_v24, %v14986_v2  ;;  %v2385_v0 = vmul.f32 %v14582_v47, %v14976_v28 }
 0x22b   : > { %8042 = vmatmul.mubr.msk.f32.gmra.mrb[36].mxu0 %vm465_vm1, %v2658_v4  ;;  %v2441_v40 = vadd.f32 %v2377_v14, %v2249_v61  ;;  %v1522_v50 = vadd.f32 %v1458_v20, %v1330_v59  ;;  %v1650_v45 = vmul.f32 %v15033_v41, %v15021_v36  ;;  %v2577_v22 = vmul.f32 %v14647_v52, %v15000_v15  ;;  %v15035_v14 = vld [vmem:[#allocation29_spill] sm:$0xff] }
 0x22c   : > { %v2282_v23 = vadd.f32 %v2218_v8, %v2090_v48  ;;  %v1873_v42 = vadd.f32 %v1809_v31, %v1681_v16  ;;  %v1842_v38 = vmul.f32 %v15034_v60, %v15001_v53  ;;  %v1305_v61 = vmul.f32 %v14715_v9, %v15025_v34  ;;  %v15036_v36 = vld [vmem:[#allocation57_spill] sm:$0xff]  ;;  %v15037_v31 = vld [vmem:[#allocation39_spill] sm:$0xff]  ;;  %v15038_v53 = vld [vmem:[#allocation68_spill] sm:$0xff] }
 0x22d   : > { %v2633_v35 = vadd.f32 %v2569_v39, %v2441_v40  ;;  %v1714_v3 = vadd.f32 %v1650_v45, %v1522_v50  ;;  %v1433_v47 = vmul.f32 %v15035_v14, %v15006_v6  ;;  %v2034_v8 = vmul.f32 %v15036_v36, %v15004_v19  ;;  %v15040_v19 = vld [vmem:[#allocation52_spill] sm:$0xff]  ;;  %v15041_v45 = vld [vmem:[#allocation31_spill] sm:$0xff] }
 0x22e   : > { %v2474_v26 = vadd.f32 %v2410_v29, %v2282_v23  ;;  %v2065_v56 = vadd.f32 %v2001_v12, %v1873_v42  ;;  %v1625_v4 = vmul.f32 %v15037_v31, %v15011_v21  ;;  %v2226_v39 = vmul.f32 %v15038_v53, %v14994_v44  ;;  %v15039_v29 = vld [vmem:[#allocation46_spill] sm:$0xff]  ;;  %v15042_v23 = vld [vmem:[#allocation40_spill] sm:$0xff] }
 0x22f   : > { %8018 = vmatprep.mubr.msk.f32.mxu1 %vm465_vm1, %v2633_v35  ;;  %v1906_v52 = vadd.f32 %v1842_v38, %v1714_v3  ;;  %v2418_v9 = vmul.f32 %v14593_v62, %v15010_v57  ;;  %v1497_v59 = vadd.f32 %v1433_v47, %v1305_v61  ;;  %v1817_v16 = vmul.f32 %v15039_v29, %v15014_v63 }
 0x230   : > { %v2666_v20 = vadd.f32 %v2602_v54, %v2474_v26  ;;  %v2257_v48 = vadd.f32 %v2193_v55, %v2065_v56  ;;  %v2009_v12 = vmul.f32 %v15040_v19, %v15018_v37  ;;  %v1313_v50 = vmul.f32 %v14718_v43, %v15025_v34 }
 0x231   : > { %v2098_v24 = vadd.f32 %v2034_v8, %v1906_v52  ;;  %v1689_v40 = vadd.f32 %v1625_v4, %v1497_v59  ;;  %v1441_v44 = vmul.f32 %v15041_v45, %v15006_v6  ;;  %v2610_v55 = vmul.f32 %v14651_v11, %v11206_v49  ;;  %v15043_v59 = vld [vmem:[#allocation97_spill] sm:$0xff] }
 0x232   : > { %8044 = vmatprep.mubr.msk.f32.mxu0 %vm465_vm1, %v2666_v20  ;;  %v2449_v57 = vadd.f32 %v2385_v0, %v2257_v48  ;;  %v2201_v54 = vmul.f32 %v14995_v27, %v14986_v2  ;;  %v1633_v42 = vmul.f32 %v15042_v23, %v15011_v21  ;;  %v2393_v43 = vmul.f32 %v14834_v13, %v14976_v28  ;;  %v15044_v20 = vld [vmem:[#allocation19_spill] sm:$0xff]  ;;  %v15045_v48 = vld [vmem:[#allocation358_spill] sm:$0xff] }
 0x233   : > { %v2290_v38 = vadd.f32 %v2226_v39, %v2098_v24  ;;  %v1881_v35 = vadd.f32 %v1817_v16, %v1689_v40  ;;  %v1505_v3 = vadd.f32 %v1441_v44, %v1313_v50  ;;  %v1825_v14 = vmul.f32 %v15002_v51, %v15014_v63  ;;  %v11466_v24 = vld [vmem:[%s15050_s14] ss:$0 sm:$0xff]  ;;  %s8686_s14 = scalar_lea.vmem %s8685_s13, 256 }
 0x234   : > { %v2641_v61 = vadd.f32 %v2577_v22, %v2449_v57  ;;  %v2017_v0 = vmul.f32 %v15005_v5, %v15018_v37  ;;  %v1321_v49 = vmul.f32 %v14739_v18, %v15025_v34  ;;  %v1449_v56 = vmul.f32 %v15017_v7, %v15006_v6  ;;  %v8564_v44 = vld [vmem:[%s13929_s10] sm:$0xff] }
 0x235   : > { %v2482_v27 = vadd.f32 %v2418_v9, %v2290_v38  ;;  %v2073_v47 = vadd.f32 %v2009_v12, %v1881_v35  ;;  %v1697_v26 = vadd.f32 %v1633_v42, %v1505_v3  ;;  %v2585_v13 = vmul.f32 %v14737_v17, %v15000_v15  ;;  %v15051_v57 = vld [vmem:[#allocation18_spill] sm:$0xff]  ;;  %v15052_v38 = vld [vmem:[#allocation73_spill] sm:$0xff]  ;;  %v15056_v3 = vld [vmem:[#allocation107_spill] sm:$0xff] }
 0x236   : > { %8019 = vmatmul.mubr.msk.f32.gmra.mrb[28].mxu1 %vm465_vm1, %v2641_v61  ;;  %v2209_v51 = vmul.f32 %v15009_v10, %v14986_v2  ;;  %v2401_v5 = vmul.f32 %v14852_v1, %v14976_v28  ;;  %v1641_v18 = vmul.f32 %v15022_v33, %v15011_v21  ;;  %v1513_v4 = vadd.f32 %v1449_v56, %v1321_v49 }
 0x237   : > { %v2674_v22 = vadd.f32 %v2610_v55, %v2482_v27  ;;  %v2265_v8 = vadd.f32 %v2201_v54, %v2073_v47  ;;  %v1889_v31 = vadd.f32 %v1825_v14, %v1697_v26  ;;  %v1833_v7 = vmul.f32 %v15023_v46, %v15014_v63  ;;  %v15059_v26 = vld [vmem:[#allocation80_spill] sm:$0xff] }
 0x238   : > { %v2025_v52 = vmul.f32 %v15024_v32, %v15018_v37  ;;  %v1329_v17 = vmul.f32 %v14746_v58, %v15025_v34  ;;  %v1457_v10 = vmul.f32 %v15030_v30, %v15006_v6  ;;  %v1705_v39 = vadd.f32 %v1641_v18, %v1513_v4  ;;  %v15047_v58 = vld [vmem:[#allocation359_spill] sm:$0xff] }
 0x239   : > { %8045 = vmatmul.mubr.msk.f32.gmra.mrb[38].mxu0 %vm465_vm1, %v2674_v22  ;;  %v2457_v1 = vadd.f32 %v2393_v43, %v2265_v8  ;;  %v2081_v33 = vadd.f32 %v2017_v0, %v1889_v31  ;;  %v1649_v9 = vmul.f32 %v15033_v41, %v15011_v21  ;;  %v749_v46 = vcombine.high %v15043_v59, %v15043_v59  ;;  %v15049_v21 = vld [vmem:[#allocation82_spill] sm:$0xff] }
 0x23a   : > { %v15046_v32 = vcombine.high %v15045_v48, %v15045_v48  ;;  %v15048_v6 = vcombine.high %v15047_v58, %v15047_v58  ;;  %v1521_v30 = vadd.f32 %v1457_v10, %v1329_v17  ;;  %v2593_v41 = vmul.f32 %v15049_v21, %v15000_v15  ;;  %v15070_v21 = vld [vmem:[#allocation103_spill] sm:$0xff] }
 0x23b   : > { %v2649_v16 = vadd.f32 %v2585_v13, %v2457_v1  ;;  %v2273_v19 = vadd.f32 %v2209_v51, %v2081_v33  ;;  %v1897_v12 = vadd.f32 %v1833_v7, %v1705_v39  ;;  %v1841_v50 = vmul.f32 %v15034_v60, %v15014_v63  ;;  %v15053_v60 = vld [vmem:[#allocation22_spill] sm:$0xff] }
 0x23c   : > { %v11453_v29 = vrot.slane %v15046_v32, %v15044_v20  ;;  %v11459_v34 = vrot.slane %v15048_v6, %v15044_v20  ;;  %v1713_v40 = vadd.f32 %v1649_v9, %v1521_v30  ;;  %v2033_v45 = vmul.f32 %v15036_v36, %v15018_v37  ;;  %v15054_v36 = vld [vmem:[#allocation106_spill] sm:$0xff]  ;;  %v15068_v6 = vld [vmem:[#allocation84_spill] sm:$0xff] }
 0x23d   : > { %v3445_v55 = vrot.slane %v8564_v44, %v15051_v57  ;;  %8021 = vmatprep.mubr.msk.f32.mxu1 %vm465_vm1, %v2649_v16  ;;  %v2465_v54 = vadd.f32 %v2401_v5, %v2273_v19  ;;  %v2089_v23 = vadd.f32 %v2025_v52, %v1897_v12  ;;  %v2217_v42 = vmul.f32 %v15028_v25, %v14986_v2  ;;  %v15061_v5 = vld [vmem:[#allocation83_spill] sm:$0xff]  ;;  %v15063_v52 = vld [vmem:[#allocation201_spill] sm:$0xff]  ;;  %v15069_v30 = vld [vmem:[#allocation352_spill] sm:$0xff] }
 0x23e   : > { %v2409_v35 = vmul.f32 %v15052_v38, %v14976_v28  ;;  %v1905_v63 = vadd.f32 %v1841_v50, %v1713_v40  ;;  %v4032_v37 = vrot.slane %v8564_v44, %v15053_v60  ;;  %v11484_v43 = vadd.f32 %v15054_v36, %v11466_v24  ;;  %v7668_v36 = vld [vmem:[#allocation7 + $0x1] ss:$0 sm:$0xff] }
 0x23f   : > { %3448 = vbcast.lane.b32.xlu0 %v3445_v55, 256  ;;  %v11488_v61 = vadd.f32 %v11466_v24, %v15056_v3  ;;  %v11492_v14 = vrot.slane %v15043_v59, %v15044_v20  ;;  %v2657_v25 = vadd.f32 %v2593_v41, %v2465_v54  ;;  %v2281_v0 = vadd.f32 %v2217_v42, %v2089_v23  ;;  %v15075_v23 = vld [vmem:[#allocation202_spill] sm:$0xff] }
 0x240   : > { %15055 = vst [vmem:[#allocation88_spill] sm:$0xff] %v11484_v43  ;;  %v2225_v49 = vmul.f32 %v15038_v53, %v14986_v2  ;;  %v2097_v27 = vadd.f32 %v2033_v45, %v1905_v63  ;;  %v2417_v47 = vmul.f32 %v14593_v62, %v14976_v28  ;;  %v11500_v56 = vadd.f32 %v15059_v26, %v11466_v24  ;;  %v15062_v2 = vld [vmem:[#allocation28_spill] sm:$0xff]  ;;  %v15072_v45 = vld [vmem:[#allocation99_spill] sm:$0xff] }
 0x241   : > { %15057 = vst [vmem:[#allocation203_spill] sm:$0xff] %v11488_v61  ;;  %15058 = vst [vmem:[#allocation108_spill] sm:$0xff] %v11492_v14  ;;  %v792_v13 = vmul.f32 %v11453_v29, %v11488_v61  ;;  %8022 = vmatmul.mubr.msk.f32.gmra.mrb[30].mxu1 %vm465_vm1, %v2657_v25  ;;  %v2473_v51 = vadd.f32 %v2409_v35, %v2281_v0  ;;  %v2601_v18 = vmul.f32 %v15061_v5, %v15000_v15  ;;  %v15065_v39 = vmov 0.0  }
 0x242   : > { %15060 = vst [vmem:[#allocation27_spill] sm:$0xff] %v11500_v56  ;;  %v2289_v22 = vadd.f32 %v2225_v49, %v2097_v27  ;;  %v4619_v53 = vrot.slane %v8564_v44, %v15062_v2  ;;  %v793_v62 = vmul.f32 %v11459_v34, %v11484_v43  ;;  %v11512_v28 = vrot.slane %v749_v46, %v15044_v20  ;;  %v15066_v46 = vld [vmem:[#allocation105_spill] sm:$0xff] }
 0x243   : > { %4035 = vbcast.lane.b32.xlu0 %v4032_v37, 256  ;;  %v804_v8 = vsel %vm465_vm1, %v792_v13, 0.0  ;;  %v2665_v31 = vadd.f32 %v2601_v18, %v2473_v51  ;;  %v2609_v4 = vmul.f32 %v14651_v11, %v15000_v15  ;;  %v11518_v17 = vadd.f32 %v15063_v52, %v11466_v24  ;;  %v7659_v13 = vld [vmem:[#allocation7] ss:$0 sm:$0xff] }
 0x244   : > { %805 = vadd.xlane.f32.xlu1 %v804_v8  ;;  %v2481_v7 = vadd.f32 %v2417_v47, %v2289_v22  ;;  %v807_v10 = vsel %vm465_vm1, %v793_v62, 0.0  ;;  %v795_v1 = vmul.f32 %v11492_v14, %v11500_v56  ;;  %v11533_v59 = vrot.slane %v15045_v48, %v15044_v20 }
 0x245   : > { %15064 = vst [vmem:[#allocation185_spill] sm:$0xff] %v11518_v17  ;;  %8024 = vmatprep.mubr.msk.f32.mxu1 %vm465_vm1, %v2665_v31  ;;  %v797_v15 = vmul.f32 %v11512_v28, %v11518_v17  ;;  %v11537_v32 = vadd.f32 %v11466_v24, %v15066_v46  ;;  %v731_v16 = vrot.slane %v15069_v30, %v15068_v6  ;;  %v11584_v46 = vld [vmem:[#allocation7 + $0x3] ss:$0 sm:$0xff] }
 0x246   : > { %v2673_v33 = vadd.f32 %v2609_v4, %v2481_v7  ;;  %v813_v11 = vsel %vm465_vm1, %v795_v1, 0.0  ;;  %v11543_v19 = vrot.slane %v15047_v58, %v15044_v20  ;;  %v11547_v41 = vadd.f32 %v15070_v21, %v11466_v24 }
 0x247   : > { %4622 = vbcast.lane.b32.xlu0 %v4619_v53, 256  ;;  %v819_v9 = vsel %vm465_vm1, %v797_v15, 0.0  ;;  %15067 = vst [vmem:[#allocation186_spill] sm:$0xff] %v11537_v32  ;;  %v790_v12 = vmul.f32 %v11533_v59, %v11537_v32  ;;  %v747_v48 = vcombine.high %v731_v16, %v731_v16  ;;  %v11552_v40 = vrot.slane %v731_v16, %v15044_v20 }
 0x248   : > { %808 = vadd.xlane.f32.xlu1 %v807_v10  ;;  %8025 = vmatmul.mubr.msk.f32.gmra.mrb[32].mxu1 %vm465_vm1, %v2673_v33  ;;  %15071 = vst [vmem:[#allocation30_spill] sm:$0xff] %v11547_v41  ;;  %v11557_v44 = vadd.f32 %v11466_v24, %v15072_v45  ;;  %v791_v58 = vmul.f32 %v11543_v19, %v11547_v41 }
 0x249   : > { %8055 = vmatprep.mubr.msk.f32.mxu1 %vm8765_vm0, %v15065_v39  ;;  %v798_v50 = vsel %vm465_vm1, %v790_v12, 0.0  ;;  %v11562_v55 = vrot.slane %v747_v48, %v15044_v20  ;;  %v11567_v42 = vadd.f32 %v11466_v24, %v15075_v23 }
 0x24a   : > { %15073 = vst [vmem:[#allocation187_spill] sm:$0xff] %v11557_v44  ;;  %v801_v54 = vsel %vm465_vm1, %v791_v58, 0.0  ;;  %v794_v38 = vmul.f32 %v11552_v40, %v11557_v44 }
 0x24b   : > { %15074 = vst [vmem:[#allocation204_spill] sm:$0xff] %v11562_v55  ;;  %15076 = vst [vmem:[#allocation100_spill] sm:$0xff] %v11567_v42  ;;  %v796_v63 = vmul.f32 %v11562_v55, %v11567_v42 }
 0x24c   : > { %814 = vadd.xlane.f32.xlu1 %v813_v11  ;;  %v810_v35 = vsel %vm465_vm1, %v794_v38, 0.0 }
 0x24d   : > { %v816_v37 = vsel %vm465_vm1, %v796_v63, 0.0 }
 0x250   : > { %820 = vadd.xlane.f32.xlu1 %v819_v9 }
 0x266   : > { %799 = vadd.xlane.f32.xlu0 %v798_v50 }
 0x26a   : > { %802 = vadd.xlane.f32.xlu0 %v801_v54 }
 0x26e   : > { %811 = vadd.xlane.f32.xlu0 %v810_v35 }
 0x272   : > { %817 = vadd.xlane.f32.xlu0 %v816_v37 }
 0x285   : > { %v7917_v3 = vpop.f32.mrb[8].mxu0 }
 0x286   : > { %v3369_v25 = vadd.f32 %v7917_v3, %v7668_v36  ;;  %v3363_v0 = vpop.f32.mrb[9].mxu0 }
 0x287   : > { %v3364_v51 = vadd.f32 %v7668_v36, %v3363_v0 }
 0x288   : > { %8270 = vtanh.f32 %v3369_v25 }
 0x289   : > { %v7920_v24 = vpop.f32.mrb[10].mxu0  ;;  %8272 = vtanh.f32 %v3364_v51 }
 0x28a   : > { %v3373_v49 = vpop.f32.mrb[11].mxu0  ;;  %v3379_v10 = vadd.f32 %v7920_v24, %v7668_v36 }
 0x28b   : > { %v3374_v9 = vadd.f32 %v7668_v36, %v3373_v49 }
 0x28d   : > { %v7923_v27 = vpop.f32.mrb[12].mxu0 }
 0x28e   : > { %v3383_v47 = vpop.f32.mrb[13].mxu0  ;;  %v3389_v39 = vadd.f32 %v7923_v27, %v7668_v36 }
 0x28f   : > { %v11575_v26 = vadd.f32 %v7668_v36, %v3383_v47 }
 0x291   : > { %v7926_v5 = vpop.f32.mrb[14].mxu0 }
 0x292   : > { %v11577_v18 = vpop.eup %8270  ;;  %v3393_v22 = vpop.f32.mrb[15].mxu0  ;;  %v3399_v38 = vadd.f32 %v7926_v5, %v7668_v36 }
 0x293   : > { %15077 = vst [vmem:[#allocation86_spill] sm:$0xff] %v11577_v18  ;;  %v7897_v53 = vpop.f32.mrb[2].mxu1  ;;  %v11579_v8 = vadd.f32 %v7668_v36, %v3393_v22  ;;  %v3411_v4 = vmul.f32 %v11577_v18, %v11543_v19  ;;  %v11588_v12 = vpop.eup %8272 }
 0x294   : > { %v2781_v62 = vadd.f32 %v7897_v53, %v7659_v13  ;;  %v2775_v31 = vpop.f32.mrb[3].mxu1  ;;  %15078 = vst [vmem:[#allocation171_spill] sm:$0xff] %v11588_v12  ;;  %v3410_v3 = vmul.f32 %v11588_v12, %v11533_v59 }
 0x295   : > { %v2776_v7 = vadd.f32 %v7659_v13, %v2775_v31  ;;  %v3421_v52 = vsel %vm465_vm1, %v3411_v4, 0.0 }
 0x296   : > { %8274 = vtanh.f32 %v2781_v62  ;;  %3422 = vadd.xlane.f32.xlu0 %v3421_v52  ;;  %v7900_v1 = vpop.f32.mrb[4].mxu1  ;;  %v3418_v5 = vsel %vm465_vm1, %v3410_v3, 0.0 }
 0x297   : > { %8276 = vtanh.f32 %v2776_v7  ;;  %v2791_v33 = vadd.f32 %v7900_v1, %v7659_v13  ;;  %v2785_v11 = vpop.f32.mrb[5].mxu1  ;;  %v11625_v7 = vpop.permute.xlu1 %2860 }
 0x298   : > { %v2786_v15 = vadd.f32 %v7659_v13, %v2785_v11 }
 0x299   : > { %8278 = vtanh.f32 %v2791_v33 }
 0x29a   : > { %8280 = vtanh.f32 %v3379_v10 }
 0x29b   : > { %8282 = vtanh.f32 %v2786_v15  ;;  %v11635_v15 = vld [vmem:[#allocation7 + $0x2] ss:$0 sm:$0xff] }
 0x29c   : > { %8284 = vtanh.f32 %v3389_v39 }
 0x29d   : > { %8286 = vtanh.f32 %v3374_v9 }
 0x29f   : > { %v7903_v6 = vpop.f32.mrb[6].mxu1  ;;  %v7957_v16 = vpop.f32.mrb[16].mxu0 }
 0x2a0   : > { %v11586_v30 = vadd.f32 %v7903_v6, %v7659_v13  ;;  %v2795_v21 = vpop.f32.mrb[7].mxu1  ;;  %v11591_v48 = vadd.f32 %v7957_v16, %v11584_v46  ;;  %v4537_v45 = vpop.f32.mrb[17].mxu0 }
 0x2a1   : > { %v2796_v50 = vadd.f32 %v7659_v13, %v2795_v21  ;;  %v11593_v58 = vpop.eup %8274  ;;  %v4538_v6 = vadd.f32 %v11584_v46, %v4537_v45  ;;  %v1174_v21 = vpop.xlane.xlu1 %1173  ;;  %v15088_v45 = vld [vmem:[#allocation78_spill] sm:$0xff] }
 0x2a2   : > { %15079 = vst [vmem:[#allocation188_spill] sm:$0xff] %v11593_v58  ;;  %v11595_v54 = vpop.eup %8276  ;;  %v2823_v23 = vmul.f32 %v11593_v58, %v11543_v19 }
 0x2a3   : > { %15080 = vst [vmem:[#allocation109_spill] sm:$0xff] %v11595_v54  ;;  %8288 = vtanh.f32 %v2796_v50  ;;  %v2822_v35 = vmul.f32 %v11595_v54, %v11533_v59  ;;  %v11601_v63 = vpop.eup %8278 }
 0x2a4   : > { %15081 = vst [vmem:[#allocation122_spill] sm:$0xff] %v11601_v63  ;;  %v2833_v37 = vsel %vm465_vm1, %v2823_v23, 0.0  ;;  %v11606_v25 = vpop.eup %8280  ;;  %v2825_v24 = vmul.f32 %v11601_v63, %v11459_v34  ;;  %8290 = vtanh.f32 %v3399_v38 }
 0x2a5   : > { %15082 = vst [vmem:[#allocation101_spill] sm:$0xff] %v11606_v25  ;;  %2834 = vadd.xlane.f32.xlu1 %v2833_v37  ;;  %v2830_v0 = vsel %vm465_vm1, %v2822_v35, 0.0  ;;  %v11611_v36 = vpop.eup %8282  ;;  %v3413_v22 = vmul.f32 %v11606_v25, %v11459_v34 }
 0x2a6   : > { %15083 = vst [vmem:[#allocation311_spill] sm:$0xff] %v11611_v36  ;;  %2831 = vadd.xlane.f32.xlu0 %v2830_v0  ;;  %v2839_v27 = vsel %vm465_vm1, %v2825_v24, 0.0  ;;  %v11619_v53 = vpop.eup %8284  ;;  %v2824_v31 = vmul.f32 %v11611_v36, %v11453_v29  ;;  %v1175_v24 = vsub.f32 %v15088_v45, %v1174_v21 }
 0x2a7   : > { %15084 = vst [vmem:[#allocation75_spill] sm:$0xff] %v11619_v53  ;;  %v11623_v4 = vpop.eup %8286  ;;  %v3427_v33 = vsel %vm465_vm1, %v3413_v22, 0.0 }
 0x2a8   : > { %v7906_v49 = vpop.f32.mrb[8].mxu1  ;;  %15085 = vst [vmem:[#allocation205_spill] sm:$0xff] %v11623_v4  ;;  %v2836_v39 = vsel %vm465_vm1, %v2824_v31, 0.0  ;;  %v3412_v9 = vmul.f32 %v11623_v4, %v11453_v29  ;;  %v1176_v31 = vmul.f32 1.442695, %v1175_v24 }
 0x2a9   : > { %v11614_v47 = vadd.f32 %v7906_v49, %v7659_v13  ;;  %v2805_v51 = vpop.f32.mrb[9].mxu1  ;;  %3419 = vadd.xlane.f32.xlu1 %v3418_v5 }
 0x2aa   : > { %v2806_v62 = vadd.f32 %v7659_v13, %v2805_v51  ;;  %v7960_v52 = vpop.f32.mrb[18].mxu0  ;;  %2840 = vadd.xlane.f32.xlu0 %v2839_v27  ;;  %v3415_v13 = vmul.f32 %v11619_v53, %v11492_v14  ;;  %v3424_v0 = vsel %vm465_vm1, %v3412_v9, 0.0 }
 0x2ab   : > { %v4547_v10 = vpop.f32.mrb[19].mxu0 }
 0x2ac   : > { %8292 = vtanh.f32 %v2806_v62  ;;  %v11628_v1 = vadd.f32 %v11584_v46, %v4547_v10  ;;  %v3433_v38 = vsel %vm465_vm1, %v3415_v13, 0.0  ;;  %v4553_v10 = vadd.f32 %v7960_v52, %v11584_v46 }
 0x2ad   : > { %v11633_v11 = vpop.eup %8288  ;;  %3428 = vadd.xlane.f32.xlu1 %v3427_v33  ;;  %8294 = vtanh.f32 %v4538_v6 }
 0x2ae   : > { %15086 = vst [vmem:[#allocation139_spill] sm:$0xff] %v11633_v11  ;;  %2837 = vadd.xlane.f32.xlu0 %v2836_v39  ;;  %v2826_v35 = vmul.f32 %v11633_v11, %v11552_v40  ;;  %v11647_v37 = vpop.eup %8290 }
 0x2af   : > { %15087 = vst [vmem:[#allocation65_spill] sm:$0xff] %v11647_v37  ;;  %v3417_v51 = vmul.f32 %v11647_v37, %v11512_v28 }
 0x2b0   : > { %v7937_v16 = vpop.f32.mrb[10].mxu1  ;;  %v2842_v27 = vsel %vm465_vm1, %v2826_v35, 0.0 }
 0x2b1   : > { %v11642_v50 = vadd.f32 %v7937_v16, %v11635_v15  ;;  %v3950_v23 = vpop.f32.mrb[11].mxu1  ;;  %3434 = vadd.xlane.f32.xlu1 %v3433_v38  ;;  %v3439_v33 = vsel %vm465_vm1, %v3417_v51, 0.0  ;;  %v11682_v51 = vld [vmem:[#allocation7 + $0x5] ss:$0 sm:$0xff] }
 0x2b2   : > { %v3951_v3 = vadd.f32 %v11635_v15, %v3950_v23  ;;  %3425 = vadd.xlane.f32.xlu0 %v3424_v0 }
 0x2b4   : > { %8296 = vtanh.f32 %v3951_v3  ;;  %v7963_v49 = vpop.f32.mrb[20].mxu0 }
 0x2b5   : > { %v4557_v22 = vpop.f32.mrb[21].mxu0  ;;  %2843 = vadd.xlane.f32.xlu1 %v2842_v27  ;;  %8298 = vpow2.f32 %v1176_v31  ;;  %v4563_v27 = vadd.f32 %v7963_v49, %v11584_v46 }
 0x2b6   : > { %v11655_v5 = vpop.eup %8292  ;;  %v11658_v62 = vadd.f32 %v11584_v46, %v4557_v22  ;;  %8300 = vtanh.f32 %v4553_v10 }
 0x2b7   : > { %15089 = vst [vmem:[#allocation189_spill] sm:$0xff] %v11655_v5  ;;  %v2828_v13 = vmul.f32 %v11655_v5, %v11562_v55  ;;  %v11665_v16 = vpop.eup %8294 }
 0x2b8   : > { %15090 = vst [vmem:[#allocation123_spill] sm:$0xff] %v11665_v16  ;;  %v4584_v24 = vmul.f32 %v11665_v16, %v11533_v59  ;;  %v15105_v16 = vlaneseq }
 0x2b9   : > { %3440 = vadd.xlane.f32.xlu1 %v3439_v33  ;;  %v2848_v23 = vsel %vm465_vm1, %v2828_v13, 0.0 }
 0x2ba   : > { %v4592_v33 = vsel %vm465_vm1, %v4584_v24, 0.0 }
 0x2bb   : > { %v7940_v39 = vpop.f32.mrb[12].mxu1 }
 0x2bc   : > { %v3966_v9 = vadd.f32 %v7940_v39, %v11635_v15  ;;  %v3960_v6 = vpop.f32.mrb[13].mxu1 }
 0x2bd   : > { %v11668_v21 = vadd.f32 %v11635_v15, %v3960_v6  ;;  %2849 = vadd.xlane.f32.xlu1 %v2848_v23 }
 0x2be   : > { %v11671_v52 = vpop.eup %8296  ;;  %8302 = vtanh.f32 %v3966_v9  ;;  %v7966_v38 = vpop.f32.mrb[22].mxu0 }
 0x2bf   : > { %15091 = vst [vmem:[#allocation110_spill] sm:$0xff] %v11671_v52  ;;  %v4567_v35 = vpop.f32.mrb[23].mxu0  ;;  %v3997_v3 = vmul.f32 %v11671_v52, %v11533_v59  ;;  %v11687_v13 = vpop.eup %8298  ;;  %8304 = vtanh.f32 %v4563_v27  ;;  %v4573_v27 = vadd.f32 %v7966_v38, %v11584_v46  ;;  %v11721_v38 = vld [vmem:[#allocation7 + $0x4] ss:$0 sm:$0xff] }
 0x2c0   : > { %v11676_v0 = vadd.f32 %v11584_v46, %v4567_v35  ;;  %v11693_v23 = vpop.eup %8300 }
 0x2c1   : > { %v4005_v45 = vsel %vm465_vm1, %v3997_v3, 0.0  ;;  %15092 = vst [vmem:[#allocation79_spill] sm:$0xff] %v11693_v23  ;;  %v4587_v24 = vmul.f32 %v11693_v23, %v11459_v34 }
 0x2c2   : > { %4006 = vadd.xlane.f32.xlu1 %v4005_v45 }
 0x2c4   : > { %v11684_v22 = vpop.f32.mrb[24].mxu0 }
 0x2c5   : > { %v7943_v31 = vpop.f32.mrb[14].mxu1  ;;  %v5711_v10 = vpop.f32.mrb[25].mxu0 }
 0x2c6   : > { %v3976_v39 = vadd.f32 %v7943_v31, %v11635_v15  ;;  %v3970_v9 = vpop.f32.mrb[15].mxu1  ;;  %v11691_v6 = vadd.f32 %v11682_v51, %v5711_v10  ;;  %4593 = vadd.xlane.f32.xlu1 %v4592_v33 }
 0x2c7   : > { %v11696_v49 = vadd.f32 %v11635_v15, %v3970_v9 }
 0x2c8   : > { %v11698_v35 = vpop.eup %8302  ;;  %8306 = vtanh.f32 %v3976_v39  ;;  %1179 = vrot.lane.b32.xlu0 %v11687_v13, %s8774_s23  ;;  %v4601_v39 = vsel %vm465_vm1, %v4587_v24, 0.0 }
 0x2c9   : > { %15093 = vst [vmem:[#allocation117_spill] sm:$0xff] %v11698_v35  ;;  %v4000_v3 = vmul.f32 %v11698_v35, %v11459_v34  ;;  %8308 = vtanh.f32 %v4573_v27  ;;  %v11713_v17 = vpop.eup %8304  ;;  %v15106_v35 = vld [vmem:[#allocation17_spill] sm:$0xff] }
 0x2ca   : > { %15094 = vst [vmem:[#allocation32_spill] sm:$0xff] %v11713_v17 }
 0x2cb   : > { %v4014_v45 = vsel %vm465_vm1, %v4000_v3, 0.0 }
 0x2cc   : > { %4015 = vadd.xlane.f32.xlu1 %v4014_v45 }
 0x2d0   : > { %v7946_v31 = vpop.f32.mrb[16].mxu1  ;;  %4602 = vadd.xlane.f32.xlu1 %v4601_v39 }
 0x2d1   : > { %v3986_v10 = vadd.f32 %v7946_v31, %v11635_v15  ;;  %v3980_v33 = vpop.f32.mrb[17].mxu1  ;;  %v11715_v3 = vpop.f32.mrb[26].mxu0 }
 0x2d2   : > { %v11711_v9 = vadd.f32 %v11635_v15, %v3980_v33  ;;  %v11717_v42 = vpop.eup %8306  ;;  %v11719_v46 = vpop.f32.mrb[27].mxu0 }
 0x2d3   : > { %8310 = vtanh.f32 %v3986_v10  ;;  %15095 = vst [vmem:[#allocation312_spill] sm:$0xff] %v11717_v42  ;;  %v4002_v45 = vmul.f32 %v11717_v42, %v11492_v14  ;;  %v4589_v10 = vmul.f32 %v11713_v17, %v11492_v14  ;;  %v11735_v56 = vpop.eup %8308  ;;  %v11771_v17 = vld [vmem:[#allocation7 + $0x7] ss:$0 sm:$0xff] }
 0x2d4   : > { %8312 = vtanh.f32 %v11586_v30  ;;  %15096 = vst [vmem:[#allocation235_spill] sm:$0xff] %v11735_v56 }
 0x2d5   : > { %v7977_v24 = vpop.f32.mrb[18].mxu1  ;;  %v4020_v31 = vsel %vm465_vm1, %v4002_v45, 0.0  ;;  %v4607_v39 = vsel %vm465_vm1, %v4589_v10, 0.0  ;;  %8314 = vtanh.f32 %v11575_v26  ;;  %v11753_v10 = vpop.permute.xlu0 %3448 }
 0x2d6   : > { %v11726_v27 = vadd.f32 %v7977_v24, %v11721_v38  ;;  %v11728_v15 = vpop.f32.mrb[19].mxu1  ;;  %4021 = vadd.xlane.f32.xlu1 %v4020_v31  ;;  %8316 = vtanh.f32 %v11614_v47  ;;  %v4591_v31 = vmul.f32 %v11735_v56, %v11512_v28 }
 0x2d7   : > { %8318 = vtanh.f32 %v11579_v8 }
 0x2d8   : > { %8320 = vtanh.f32 %v11642_v50 }
 0x2d9   : > { %8322 = vtanh.f32 %v11591_v48 }
 0x2da   : > { %v8003_v33 = vpop.f32.mrb[28].mxu0  ;;  %4608 = vadd.xlane.f32.xlu1 %v4607_v39  ;;  %8324 = vtanh.f32 %v11668_v21 }
 0x2db   : > { %v11739_v24 = vadd.f32 %v8003_v33, %v11682_v51  ;;  %v11741_v44 = vpop.f32.mrb[29].mxu0  ;;  %8326 = vtanh.f32 %v11628_v1 }
 0x2dc   : > { %8328 = vtanh.f32 %v11696_v49 }
 0x2dd   : > { %15097 = vst [vmem:[#allocation207_spill] sm:$0xff] %v11739_v24  ;;  %v11743_v45 = vpop.eup %8310  ;;  %8330 = vtanh.f32 %v11658_v62 }
 0x2de   : > { %15098 = vst [vmem:[#allocation234_spill] sm:$0xff] %v11743_v45  ;;  %v4004_v43 = vmul.f32 %v11743_v45, %v11512_v28  ;;  %v11751_v26 = vpop.eup %8312  ;;  %v11773_v45 = vpop.permute.xlu0 %4035  ;;  %8332 = vtanh.f32 %v11711_v9 }
 0x2df   : > { %15099 = vst [vmem:[#allocation102_spill] sm:$0xff] %v11751_v26  ;;  %v11769_v56 = vpop.eup %8314  ;;  %8334 = vtanh.f32 %v11676_v0 }
 0x2e0   : > { %v4026_v30 = vsel %vm465_vm1, %v4004_v43, 0.0  ;;  %v4613_v43 = vsel %vm465_vm1, %v4591_v31, 0.0  ;;  %15101 = vst [vmem:[#allocation34_spill] sm:$0xff] %v11769_v56  ;;  %v3414_v31 = vmul.f32 %v11769_v56, %v11552_v40  ;;  %v11780_v37 = vpop.eup %8316 }
 0x2e1   : > { %4027 = vadd.xlane.f32.xlu1 %v4026_v30  ;;  %v11755_v33 = vpop.f32.mrb[20].mxu1  ;;  %v2827_v30 = vmul.f32 %v11751_v26, %v11492_v14  ;;  %15102 = vst [vmem:[#allocation70_spill] sm:$0xff] %v11780_v37  ;;  %v2829_v56 = vmul.f32 %v11780_v37, %v11512_v28  ;;  %v11796_v23 = vpop.eup %8318 }
 0x2e2   : > { %v11757_v39 = vpop.f32.mrb[30].mxu0  ;;  %v5134_v32 = vpop.f32.mrb[21].mxu1  ;;  %15104 = vst [vmem:[#allocation190_spill] sm:$0xff] %v11796_v23 }
 0x2e3   : > { %v11761_v41 = vadd.f32 %v11721_v38, %v5134_v32  ;;  %v5741_v47 = vpop.f32.mrb[31].mxu0  ;;  %v2845_v32 = vsel %vm465_vm1, %v2827_v30, 0.0  ;;  %v3430_v30 = vsel %vm465_vm1, %v3414_v31, 0.0  ;;  %v11799_v42 = vpop.permute.xlu0 %4622 }
 0x2e4   : > { %v11765_v61 = vadd.f32 %v11682_v51, %v5741_v47  ;;  %v11782_v47 = vpop.xlane.xlu1 %805  ;;  %v11868_v14 = vpop.eup %8320 }
 0x2e5   : > { %4614 = vadd.xlane.f32.xlu1 %v4613_v43  ;;  %15109 = vst [vmem:[#allocation111_spill] sm:$0xff] %v11868_v14 }
 0x2e6   : > { %15100 = vst [vmem:[#allocation87_spill] sm:$0xff] %v11765_v61 }
 0x2e7   : > { %2846 = vadd.xlane.f32.xlu0 %v2845_v32  ;;  %v831_v32 = vand.u32 127, %v15105_v16 }
 0x2e8   : > { %v11775_v8 = vpop.f32.mrb[32].mxu0 }
 0x2e9   : > { %v6885_v43 = vpop.f32.mrb[33].mxu0  ;;  %v11807_v52 = vsub.s32 %v831_v32, %v15106_v35  ;;  %v11823_v35 = vld [vmem:[#allocation7 + $0x6] ss:$0 sm:$0xff] }
 0x2ea   : > { %v7983_v53 = vpop.f32.mrb[22].mxu1  ;;  %v11785_v25 = vadd.f32 %v11771_v17, %v6885_v43  ;;  %v11801_v43 = vpop.xlane.xlu1 %808 }
 0x2eb   : > { %v11788_v4 = vadd.f32 %v7983_v53, %v11721_v38  ;;  %v5144_v12 = vpop.f32.mrb[23].mxu1  ;;  %3431 = vadd.xlane.f32.xlu0 %v3430_v30  ;;  %v2851_v53 = vsel %vm465_vm1, %v2829_v56, 0.0  ;;  %v843_v32 = vrot.slane %v11782_v47, %v11807_v52  ;;  %v847_v36 = vrot.slane %v11801_v43, %v11807_v52 }
 0x2ec   : > { %15103 = vst [vmem:[#allocation206_spill] sm:$0xff] %v11785_v25  ;;  %v11791_v18 = vadd.f32 %v11721_v38, %v5144_v12  ;;  %v3416_v12 = vmul.f32 %v11796_v23, %v11562_v55 }
 0x2ee   : > { %v3436_v26 = vsel %vm465_vm1, %v3416_v12, 0.0  ;;  %v11821_v11 = vpop.xlane.xlu1 %814 }
 0x2ef   : > { %2852 = vadd.xlane.f32.xlu0 %v2851_v53 }
 0x2f2   : > { %v11811_v37 = vpop.f32.mrb[24].mxu1  ;;  %v11852_v24 = vpop.xlane.xlu1 %820 }
 0x2f3   : > { %v11809_v31 = vpop.xlane.xlu0 %799  ;;  %v5154_v5 = vpop.f32.mrb[25].mxu1  ;;  %3437 = vadd.xlane.f32.xlu0 %v3436_v26 }
 0x2f4   : > { %v11813_v16 = vpop.f32.mrb[34].mxu0  ;;  %v11816_v30 = vadd.f32 %v11721_v38, %v5154_v5  ;;  %v835_v56 = vrot.slane %v11809_v31, %v11807_v52 }
 0x2f5   : > { %v6895_v23 = vpop.f32.mrb[35].mxu0 }
 0x2f6   : > { %v11831_v5 = vadd.f32 %v11771_v17, %v6895_v23  ;;  %v11833_v12 = vpop.f32.mrb[26].mxu1 }
 0x2f7   : > { %v11828_v53 = vpop.xlane.xlu0 %802  ;;  %v6298_v54 = vpop.f32.mrb[27].mxu1 }
 0x2f8   : > { %15107 = vst [vmem:[#allocation140_spill] sm:$0xff] %v11831_v5  ;;  %v839_v63 = vrot.slane %v11828_v53, %v11807_v52  ;;  %v11840_v26 = vadd.f32 %v11823_v35, %v6298_v54  ;;  %v855_v5 = vrot.slane %v11821_v11, %v11807_v52 }
 0x2fa   : > { %v864_v50 = vsel %vm608_vm2, %v839_v63, %v835_v56  ;;  %v863_v56 = vrot.slane %v11852_v24, %v11807_v52 }
 0x2fb   : > { %v865_v58 = vsel %vm611_vm3, %v843_v32, %v864_v50  ;;  %v11845_v23 = vpop.xlane.xlu0 %811 }
 0x2fc   : > { %v866_v61 = vsel %vm614_vm4, %v847_v36, %v865_v58  ;;  %v851_v25 = vrot.slane %v11845_v23, %v11807_v52 }
 0x2fe   : > { %v867_v54 = vsel %vm617_vm5, %v851_v25, %v866_v61  ;;  %v8043_v63 = vpop.f32.mrb[36].mxu0 }
 0x2ff   : > { %v11856_v48 = vpop.xlane.xlu0 %817  ;;  %v868_v32 = vsel %vm620_vm6, %v855_v5, %v867_v54  ;;  %v11862_v50 = vadd.f32 %v8043_v63, %v11771_v17  ;;  %v11864_v58 = vpop.f32.mrb[37].mxu0  ;;  %v3998_v5 = vmul.f32 %v11868_v14, %v11543_v19 }
 0x300   : > { %v859_v36 = vrot.slane %v11856_v48, %v11807_v52  ;;  %v11876_v54 = vpop.eup %8322 }
 0x301   : > { %15108 = vst [vmem:[#allocation197_spill] sm:$0xff] %v11862_v50  ;;  %15110 = vst [vmem:[#allocation124_spill] sm:$0xff] %v11876_v54  ;;  %v4008_v63 = vsel %vm465_vm1, %v3998_v5, 0.0  ;;  %v4585_v50 = vmul.f32 %v11876_v54, %v11543_v19 }
 0x302   : > { %v869_v61 = vsel %vm623_vm7, %v859_v36, %v868_v32  ;;  %v11882_v32 = vpop.eup %8324 }
 0x303   : > { %v870_v25 = vsel %vm625_vm8, %v863_v56, %v869_v61  ;;  %15111 = vst [vmem:[#allocation328_spill] sm:$0xff] %v11882_v32  ;;  %v4595_v61 = vsel %vm465_vm1, %v4585_v50, 0.0  ;;  %v3999_v49 = vmul.f32 %v11882_v32, %v11453_v29 }
 0x304   : > { %v873_v21 = vsel %vm872_vm10, %v870_v25, -inf  ;;  %v11893_v25 = vpop.eup %8326 }
 0x305   : > { %874 = vmax.xlane.f32.xlu0 %v873_v21  ;;  %15112 = vst [vmem:[#allocation313_spill] sm:$0xff] %v11893_v25  ;;  %v4586_v50 = vmul.f32 %v11893_v25, %v11453_v29  ;;  %v11905_v54 = vpop.eup %8328 }
 0x306   : > { %15115 = vst [vmem:[#allocation127_spill] sm:$0xff] %v11905_v54  ;;  %v11911_v32 = vpop.eup %8330 }
 0x307   : > { %15116 = vst [vmem:[#allocation104_spill] sm:$0xff] %v11911_v32  ;;  %v11921_v0 = vpop.eup %8332 }
 0x308   : > { %15118 = vst [vmem:[#allocation277_spill] sm:$0xff] %v11921_v0  ;;  %v4003_v14 = vmul.f32 %v11921_v0, %v11562_v55 }
 0x309   : > { %4009 = vadd.xlane.f32.xlu0 %v4008_v63  ;;  %v11884_v1 = vpop.f32.mrb[28].mxu1 }
 0x30a   : > { %v6308_v56 = vpop.f32.mrb[29].mxu1 }
 0x30b   : > { %v11888_v36 = vadd.f32 %v11823_v35, %v6308_v56  ;;  %v4011_v56 = vsel %vm465_vm1, %v3999_v49, 0.0 }
 0x30c   : > { %v8046_v21 = vpop.f32.mrb[38].mxu0 }
 0x30d   : > { %4596 = vadd.xlane.f32.xlu0 %v4595_v61  ;;  %v11896_v5 = vadd.f32 %v8046_v21, %v11771_v17  ;;  %v6915_v63 = vpop.f32.mrb[39].mxu0  ;;  %v4598_v61 = vsel %vm465_vm1, %v4586_v50, 0.0  ;;  %v4001_v21 = vmul.f32 %v11905_v54, %v11552_v40 }
 0x30e   : > { %v11900_v62 = vadd.f32 %v11771_v17, %v6915_v63 }
 0x30f   : > { %15113 = vst [vmem:[#allocation329_spill] sm:$0xff] %v11896_v5  ;;  %v4017_v25 = vsel %vm465_vm1, %v4001_v21, 0.0 }
 0x310   : > { %15114 = vst [vmem:[#allocation208_spill] sm:$0xff] %v11900_v62 }
 0x311   : > { %4012 = vadd.xlane.f32.xlu0 %v4011_v56  ;;  %v4588_v56 = vmul.f32 %v11911_v32, %v11552_v40  ;;  %v4023_v32 = vsel %vm465_vm1, %v4003_v14, 0.0 }
 0x313   : > { %v4604_v54 = vsel %vm465_vm1, %v4588_v56, 0.0 }
 0x314   : > { %v8023_v9 = vpop.f32.mrb[30].mxu1 }
 0x315   : > { %4599 = vadd.xlane.f32.xlu0 %v4598_v61  ;;  %v11914_v63 = vadd.f32 %v8023_v9, %v11823_v35  ;;  %v11916_v49 = vpop.f32.mrb[31].mxu1  ;;  %v11926_v61 = vpop.eup %8334 }
 0x316   : > { %15119 = vst [vmem:[#allocation275_spill] sm:$0xff] %v11926_v61 }
 0x317   : > { %15117 = vst [vmem:[#allocation155_spill] sm:$0xff] %v11914_v63 }
 0x319   : > { %4018 = vadd.xlane.f32.xlu0 %v4017_v25  ;;  %v4590_v25 = vmul.f32 %v11926_v61, %v11562_v55 }
 0x31b   : > { %v8026_v50 = vpop.f32.mrb[32].mxu1  ;;  %v4610_v56 = vsel %vm465_vm1, %v4590_v25, 0.0 }
 0x31c   : > { %v11929_v9 = vadd.f32 %v8026_v50, %v11823_v35  ;;  %v6328_v62 = vpop.f32.mrb[33].mxu1 }
 0x31d   : > { %4605 = vadd.xlane.f32.xlu0 %v4604_v54  ;;  %v11932_v21 = vadd.f32 %v11823_v35, %v6328_v62 }
 0x31e   : > { %15120 = vst [vmem:[#allocation280_spill] sm:$0xff] %v11929_v9 }
 0x31f   : > { %15121 = vst [vmem:[#allocation191_spill] sm:$0xff] %v11932_v21 }
 0x321   : > { %4024 = vadd.xlane.f32.xlu0 %v4023_v32 }
 0x323   : > { %v3423_v0 = vpop.xlane.xlu0 %3422 }
 0x325   : > { %4611 = vadd.xlane.f32.xlu0 %v4610_v56 }
 0x332   : > { %v2835_v5 = vpop.xlane.xlu1 %2834 }
 0x333   : > { %v2832_v63 = vpop.xlane.xlu0 %2831  ;;  %v11948_v61 = vadd.f32 %v11625_v7, %v2835_v5 }
 0x334   : > { %v11939_v50 = vadd.f32 %v11625_v7, %v2832_v63  ;;  %v11952_v63 = vadd.f32 %v11753_v10, %v3423_v0 }
 0x335   : > { %15124 = vst [vmem:[#allocation225_spill] sm:$0xff] %v11948_v61 }
 0x336   : > { %15122 = vst [vmem:[#allocation236_spill] sm:$0xff] %v11939_v50  ;;  %v3420_v9 = vpop.xlane.xlu1 %3419  ;;  %15125 = vst [vmem:[#allocation128_spill] sm:$0xff] %v11952_v63 }
 0x337   : > { %v2841_v54 = vpop.xlane.xlu0 %2840 }
 0x33a   : > { %v3429_v62 = vpop.xlane.xlu1 %3428 }
 0x33b   : > { %2880 = vperm.xlu0 %8258, %v11939_v50   ;;  %v11943_v14 = vadd.f32 %v11753_v10, %v3429_v62  ;;  %v2838_v21 = vpop.xlane.xlu0 %2837  ;;  %v11956_v62 = vadd.f32 %v11753_v10, %v3420_v9 }
 0x33c   : > { %v11964_v5 = vadd.f32 %v11625_v7, %v2838_v21 }
 0x33d   : > { %15123 = vst [vmem:[#allocation112_spill] sm:$0xff] %v11943_v14  ;;  %15126 = vst [vmem:[#allocation314_spill] sm:$0xff] %v11956_v62 }
 0x33e   : > { %v3435_v50 = vpop.xlane.xlu1 %3434  ;;  %15128 = vst [vmem:[#allocation210_spill] sm:$0xff] %v11964_v5 }
 0x33f   : > { %3477 = vperm.xlu0 %8258, %v11943_v14   ;;  %v3426_v32 = vpop.xlane.xlu0 %3425  ;;  %v11960_v14 = vadd.f32 %v11625_v7, %v2841_v54  ;;  %v11976_v21 = vadd.f32 %v11753_v10, %v3435_v50 }
 0x340   : > { %v11968_v0 = vadd.f32 %v11753_v10, %v3426_v32 }
 0x341   : > { %15127 = vst [vmem:[#allocation209_spill] sm:$0xff] %v11960_v14  ;;  %15131 = vst [vmem:[#allocation330_spill] sm:$0xff] %v11976_v21 }
 0x342   : > { %15129 = vst [vmem:[#allocation129_spill] sm:$0xff] %v11968_v0 }
 0x343   : > { %v1180_v25 = vpop.permute.xlu0 %1179 }
 0x344   : > { %v1182_v56 = vsel %vm872_vm10, %v1180_v25, 0.0  ;;  %v2844_v25 = vpop.xlane.xlu1 %2843 }
 0x345   : > { %1183 = vadd.xlane.f32.xlu1 %v1182_v56 }
 0x348   : > { %v3441_v56 = vpop.xlane.xlu1 %3440 }
 0x34c   : > { %v2850_v9 = vpop.xlane.xlu1 %2849 }
 0x356   : > { %2883 = vperm.xlu1 %8259, %v11948_v61  }
 0x35a   : > { %3471 = vperm.xlu1 %8259, %v11952_v63   ;;  %v4007_v63 = vpop.xlane.xlu1 %4006 }
 0x35e   : > { %3468 = vperm.xlu1 %8259, %v11956_v62   ;;  %v4594_v61 = vpop.xlane.xlu1 %4593 }
 0x362   : > { %2889 = vperm.xlu1 %8259, %v11960_v14  }
 0x366   : > { %2886 = vperm.xlu1 %8259, %v11964_v5   ;;  %v11980_v5 = vadd.f32 %v11625_v7, %v2844_v25 }
 0x36a   : > { %3474 = vperm.xlu1 %8259, %v11968_v0   ;;  %v4016_v0 = vpop.xlane.xlu1 %4015 }
 0x36b   : > { %v11992_v50 = vadd.f32 %v11773_v45, %v4016_v0  ;;  %v12008_v0 = vadd.f32 %v11625_v7, %v2850_v9 }
 0x36d   : > { %15134 = vst [vmem:[#allocation113_spill] sm:$0xff] %v11992_v50  ;;  %15137 = vst [vmem:[#allocation167_spill] sm:$0xff] %v12008_v0 }
 0x374   : > { %v2847_v62 = vpop.xlane.xlu0 %2846 }
 0x375   : > { %v11972_v54 = vadd.f32 %v11625_v7, %v2847_v62 }
 0x377   : > { %15130 = vst [vmem:[#allocation276_spill] sm:$0xff] %v11972_v54  ;;  %2895 = vperm.xlu1 %8259, %v11972_v54  }
 0x378   : > { %v3432_v14 = vpop.xlane.xlu0 %3431 }
 0x379   : > { %v11984_v62 = vadd.f32 %v11753_v10, %v3432_v14  ;;  %v12000_v14 = vadd.f32 %v11753_v10, %v3441_v56 }
 0x37b   : > { %3483 = vperm.xlu1 %8259, %v11976_v21   ;;  %15132 = vst [vmem:[#allocation192_spill] sm:$0xff] %v11984_v62  ;;  %v4603_v21 = vpop.xlane.xlu1 %4602 }
 0x37c   : > { %v2853_v32 = vpop.xlane.xlu0 %2852 }
 0x37d   : > { %v11995_v25 = vadd.f32 %v11625_v7, %v2853_v32  ;;  %v12022_v7 = vadd.f32 %v11773_v45, %v4007_v63 }
 0x37f   : > { %2892 = vperm.xlu1 %8259, %v11980_v5   ;;  %15135 = vst [vmem:[#allocation281_spill] sm:$0xff] %v11995_v25  ;;  %15140 = vst [vmem:[#allocation169_spill] sm:$0xff] %v12022_v7  ;;  %v4022_v63 = vpop.xlane.xlu1 %4021 }
 0x380   : > { %v3438_v55 = vpop.xlane.xlu0 %3437 }
 0x381   : > { %v11987_v54 = vadd.f32 %v11753_v10, %v3438_v55  ;;  %v12003_v55 = vadd.f32 %v11799_v42, %v4603_v21 }
 0x383   : > { %15133 = vst [vmem:[#allocation237_spill] sm:$0xff] %v11987_v54  ;;  %3480 = vperm.xlu1 %8259, %v11984_v62   ;;  %3486 = vperm.xlu0 %8258, %v11987_v54   ;;  %15136 = vst [vmem:[#allocation315_spill] sm:$0xff] %v12003_v55 }
 0x387   : > { %2901 = vperm.xlu1 %8259, %v11995_v25   ;;  %4064 = vperm.xlu0 %8258, %v11992_v50  }
 0x38b   : > { %3489 = vperm.xlu1 %8259, %v12000_v14   ;;  %4651 = vperm.xlu0 %8258, %v12003_v55  }
 0x38f   : > { %2898 = vperm.xlu1 %8259, %v12008_v0  }
 0x392   : > { %v12010_v32 = vpop.xlane.xlu0 %874 }
 0x393   : > { %v884_v9 = vrot.slane %v12010_v32, %v15051_v57 }
 0x396   : > { %v4010_v54 = vpop.xlane.xlu0 %4009 }
 0x397   : > { %v12014_v50 = vadd.f32 %v11773_v45, %v4010_v54  ;;  %v12028_v54 = vadd.f32 %v11799_v42, %v4594_v61 }
 0x399   : > { %15138 = vst [vmem:[#allocation193_spill] sm:$0xff] %v12014_v50  ;;  %4058 = vperm.xlu1 %8259, %v12014_v50   ;;  %15141 = vst [vmem:[#allocation130_spill] sm:$0xff] %v12028_v54 }
 0x39a   : > { %v4597_v10 = vpop.xlane.xlu0 %4596 }
 0x39b   : > { %v12018_v56 = vadd.f32 %v11799_v42, %v4597_v10  ;;  %v918_v10 = vsub.f32 %v11828_v53, %v884_v9  ;;  %v880_v9 = vrot.slane %v12010_v32, %v15044_v20 }
 0x39d   : > { %15139 = vst [vmem:[#allocation211_spill] sm:$0xff] %v12018_v56  ;;  %4645 = vperm.xlu1 %8259, %v12018_v56   ;;  %v927_v62 = vmul.f32 1.442695, %v918_v10 }
 0x39e   : > { %v4013_v21 = vpop.xlane.xlu0 %4012 }
 0x39f   : > { %v12033_v56 = vadd.f32 %v11773_v45, %v4013_v21  ;;  %8336 = vpow2.f32 %v927_v62  ;;  %v4609_v21 = vpop.xlane.xlu1 %4608 }
 0x3a0   : > { %v12051_v10 = vadd.f32 %v11799_v42, %v4609_v21 }
 0x3a1   : > { %4055 = vperm.xlu1 %8259, %v12022_v7   ;;  %15142 = vst [vmem:[#allocation77_spill] sm:$0xff] %v12033_v56 }
 0x3a2   : > { %v4600_v55 = vpop.xlane.xlu0 %4599  ;;  %15146 = vst [vmem:[#allocation131_spill] sm:$0xff] %v12051_v10 }
 0x3a3   : > { %v12037_v25 = vadd.f32 %v11799_v42, %v4600_v55  ;;  %v4028_v21 = vpop.xlane.xlu1 %4027 }
 0x3a5   : > { %4642 = vperm.xlu1 %8259, %v12028_v54   ;;  %15143 = vst [vmem:[#allocation218_spill] sm:$0xff] %v12037_v25  ;;  %v12041_v54 = vadd.f32 %v11773_v45, %v4022_v63  ;;  %v888_v63 = vrot.slane %v12010_v32, %v15053_v60 }
 0x3a6   : > { %v4019_v50 = vpop.xlane.xlu0 %4018 }
 0x3a7   : > { %15144 = vst [vmem:[#allocation331_spill] sm:$0xff] %v12041_v54  ;;  %v4615_v0 = vpop.xlane.xlu1 %4614 }
 0x3a9   : > { %4061 = vperm.xlu1 %8259, %v12033_v56   ;;  %v12079_v56 = vadd.f32 %v11773_v45, %v4028_v21 }
 0x3aa   : > { %v4606_v7 = vpop.xlane.xlu0 %4605 }
 0x3ad   : > { %4648 = vperm.xlu1 %8259, %v12037_v25   ;;  %v12062_v25 = vadd.f32 %v11773_v45, %v4019_v50  ;;  %v15151_v50 = vld [vmem:[#allocation36_spill] sm:$0xff] }
 0x3ae   : > { %v4025_v61 = vpop.xlane.xlu0 %4024 }
 0x3af   : > { %v12044_v53 = vadd.f32 %v11773_v45, %v4025_v61  ;;  %v917_v61 = vsub.f32 %v11809_v31, %v880_v9  ;;  %15148 = vst [vmem:[#allocation282_spill] sm:$0xff] %v12062_v25  ;;  %v8775_v31 = vmov 32   ;;  %v896_v9 = vrot.slane %v12010_v32, %v15151_v50 }
 0x3b1   : > { %15145 = vst [vmem:[#allocation219_spill] sm:$0xff] %v12044_v53  ;;  %4073 = vperm.xlu0 %8258, %v12044_v53   ;;  %4070 = vperm.xlu1 %8259, %v12041_v54   ;;  %v12064_v53 = vpop.eup %8336  ;;  %v12072_v54 = vadd.f32 %v11799_v42, %v4606_v7 }
 0x3b2   : > { %v4612_v55 = vpop.xlane.xlu0 %4611  ;;  %15149 = vst [vmem:[#allocation278_spill] sm:$0xff] %v12064_v53 }
 0x3b3   : > { %v12054_v62 = vadd.f32 %v11799_v42, %v4612_v55  ;;  %v892_v55 = vrot.slane %v12010_v32, %v15062_v2  ;;  %15150 = vst [vmem:[#allocation238_spill] sm:$0xff] %v12072_v54 }
 0x3b5   : > { %15147 = vst [vmem:[#allocation272_spill] sm:$0xff] %v12054_v62  ;;  %4660 = vperm.xlu0 %8258, %v12054_v62   ;;  %4657 = vperm.xlu1 %8259, %v12051_v10   ;;  %v919_v62 = vsub.f32 %v11782_v47, %v888_v63  ;;  %v925_v10 = vmul.f32 1.442695, %v917_v61  ;;  %v15152_v47 = vld [vmem:[#allocation43_spill] sm:$0xff]  ;;  %v921_v63 = vsub.f32 %v11845_v23, %v896_v9 }
 0x3b6   : > { %v900_v7 = vrot.slane %v12010_v32, %v15152_v47 }
 0x3b7   : > { %8338 = vpow2.f32 %v925_v10 }
 0x3b8   : > { %v922_v45 = vsub.f32 %v11821_v11, %v900_v7 }
 0x3b9   : > { %953 = vperm.xlu0 %8258, %v12064_v53   ;;  %4067 = vperm.xlu1 %8259, %v12062_v25   ;;  %v920_v53 = vsub.f32 %v11801_v43, %v892_v55  ;;  %v929_v25 = vmul.f32 1.442695, %v919_v62  ;;  %v15154_v43 = vld [vmem:[#allocation53_spill] sm:$0xff]  ;;  %v933_v62 = vmul.f32 1.442695, %v921_v63  ;;  %v15155_v55 = vld [vmem:[#allocation58_spill] sm:$0xff] }
 0x3ba   : > { %v904_v10 = vrot.slane %v12010_v32, %v15154_v43 }
 0x3bb   : > { %8340 = vpow2.f32 %v929_v25  ;;  %v931_v61 = vmul.f32 1.442695, %v920_v53 }
 0x3bc   : > { %v923_v23 = vsub.f32 %v11856_v48, %v904_v10 }
 0x3bd   : > { %4654 = vperm.xlu1 %8259, %v12072_v54   ;;  %8260 = vset.pattern.permute.xlu0 %v8775_v31  ;;  %v12086_v31 = vadd.f32 %v11799_v42, %v4615_v0  ;;  %8342 = vpow2.f32 %v931_v61  ;;  %v908_v54 = vrot.slane %v12010_v32, %v15155_v55  ;;  %v935_v42 = vmul.f32 1.442695, %v922_v45 }
 0x3be   : > { %8344 = vpow2.f32 %v933_v62  ;;  %v937_v11 = vmul.f32 1.442695, %v923_v23  ;;  %v8776_v23 = vmov 33  }
 0x3bf   : > { %15153 = vst [vmem:[#allocation132_spill] sm:$0xff] %v12086_v31  ;;  %v924_v0 = vsub.f32 %v11852_v24, %v908_v54  ;;  %8346 = vpow2.f32 %v935_v42 }
 0x3c0   : > { %8348 = vpow2.f32 %v937_v11  ;;  %v5125_v11 = vadd.f32 %v11721_v38, %v11728_v15 }
 0x3c1   : > { %4076 = vperm.xlu1 %8259, %v12079_v56   ;;  %v12092_v21 = vpop.eup %8338  ;;  %v939_v9 = vmul.f32 1.442695, %v924_v0  ;;  %v8777_v0 = vmov 34  }
 0x3c3   : > { %8350 = vpow2.f32 %v939_v9  ;;  %v8778_v9 = vmov 35  }
 0x3c5   : > { %4663 = vperm.xlu1 %8259, %v12086_v31   ;;  %v12098_v25 = vpop.eup %8340 }
 0x3c6   : > { %15156 = vst [vmem:[#allocation295_spill] sm:$0xff] %v12098_v25 }
 0x3c7   : > { %v12102_v53 = vpop.eup %8342 }
 0x3c8   : > { %15157 = vst [vmem:[#allocation74_spill] sm:$0xff] %v12102_v53  ;;  %v12105_v32 = vpop.eup %8344 }
 0x3c9   : > { %950 = vperm.xlu1 %8259, %v12092_v21   ;;  %15158 = vst [vmem:[#allocation114_spill] sm:$0xff] %v12105_v32  ;;  %v12108_v7 = vpop.eup %8346 }
 0x3ca   : > { %15159 = vst [vmem:[#allocation321_spill] sm:$0xff] %v12108_v7  ;;  %v12111_v54 = vpop.eup %8348 }
 0x3cb   : > { %15160 = vst [vmem:[#allocation212_spill] sm:$0xff] %v12111_v54 }
 0x3cd   : > { %956 = vperm.xlu1 %8259, %v12098_v25   ;;  %v12114_v61 = vpop.eup %8350 }
 0x3ce   : > { %15161 = vst [vmem:[#allocation133_spill] sm:$0xff] %v12114_v61 }
 0x3d1   : > { %959 = vperm.xlu1 %8259, %v12102_v53  }
 0x3d2   : > { %v1184_v48 = vpop.xlane.xlu1 %1183 }
 0x3d3   : > { %8352 = vrcp.f32 %v1184_v48  ;;  %v5140_v48 = vadd.f32 %v11755_v33, %v11721_v38 }
 0x3d4   : > { %8354 = vtanh.f32 %v5125_v11  ;;  %v5727_v11 = vadd.f32 %v11715_v3, %v11682_v51  ;;  %v5732_v3 = vadd.f32 %v11682_v51, %v11741_v44 }
 0x3d5   : > { %962 = vperm.xlu1 %8259, %v12105_v32   ;;  %8356 = vtanh.f32 %v5140_v48  ;;  %v6304_v48 = vadd.f32 %v11833_v12, %v11823_v35 }
 0x3d6   : > { %v2884_v24 = vpop.permute.xlu1 %2883 }
 0x3d9   : > { %965 = vperm.xlu1 %8259, %v12108_v7   ;;  %v2910_v7 = vrot.slane %v2884_v24, %v11807_v52  ;;  %v5160_v24 = vadd.f32 %v11811_v37, %v11721_v38 }
 0x3da   : > { %v3472_v63 = vpop.permute.xlu1 %3471 }
 0x3db   : > { %v3498_v44 = vrot.slane %v3472_v63, %v11807_v52 }
 0x3dd   : > { %968 = vperm.xlu1 %8259, %v12111_v54   ;;  %v8353_v10 = vpop.eup %8352 }
 0x3de   : > { %v12117_v45 = vmul.f32 %v8353_v10, %v11687_v13  ;;  %v3469_v62 = vpop.permute.xlu1 %3468 }
 0x3e0   : > { %15162 = vst [vmem:[#allocation172_spill] sm:$0xff] %v12117_v45  ;;  %3242 = vperm.xlu0 %8260, %v12117_v45  }
 0x3e1   : > { %971 = vperm.xlu1 %8259, %v12114_v61   ;;  %v12135_v61 = vpop.eup %8354 }
 0x3e2   : > { %v12122_v42 = vpop.permute.xlu1 %2889  ;;  %15163 = vst [vmem:[#allocation332_spill] sm:$0xff] %v12135_v61  ;;  %v5171_v33 = vmul.f32 %v12135_v61, %v11533_v59  ;;  %v2881_v61 = vpop.permute.xlu0 %2880 }
 0x3e3   : > { %v2906_v53 = vrot.slane %v2881_v61, %v11807_v52  ;;  %v2918_v38 = vrot.slane %v12122_v42, %v11807_v52 }
 0x3e4   : > { %8261 = vset.pattern.permute.xlu0 %v8776_v23  ;;  %v5717_v23 = vadd.f32 %v11684_v22, %v11682_v51 }
 0x3e5   : > { %3829 = vperm.xlu0 %8261, %v12117_v45  }
 0x3e6   : > { %v2887_v13 = vpop.permute.xlu1 %2886  ;;  %8358 = vtanh.f32 %v5717_v23 }
 0x3e9   : > { %8262 = vset.pattern.permute.xlu0 %v8777_v0  ;;  %v5722_v0 = vadd.f32 %v11682_v51, %v11719_v46  ;;  %v5179_v46 = vsel %vm465_vm1, %v5171_v33, 0.0  ;;  %v2914_v33 = vrot.slane %v2887_v13, %v11807_v52 }
 0x3ea   : > { %4416 = vperm.xlu0 %8262, %v12117_v45   ;;  %v3475_v10 = vpop.permute.xlu1 %3474 }
 0x3eb   : > { %8360 = vtanh.f32 %v5722_v0 }
 0x3ec   : > { %8362 = vtanh.f32 %v5727_v11  ;;  %v3494_v11 = vrot.slane %v3469_v62, %v11807_v52  ;;  %v3478_v62 = vpop.permute.xlu0 %3477 }
 0x3ed   : > { %8364 = vtanh.f32 %v6304_v48  ;;  %v3506_v37 = vrot.slane %v3478_v62, %v11807_v52 }
 0x3ee   : > { %8263 = vset.pattern.permute.xlu0 %v8778_v9  ;;  %v12143_v9 = vpop.eup %8356  ;;  %8366 = vtanh.f32 %v5732_v3  ;;  %v3523_v25 = vsel %vm608_vm2, %v3498_v44, %v3494_v11 }
 0x3ef   : > { %15164 = vst [vmem:[#allocation239_spill] sm:$0xff] %v12143_v9  ;;  %v5174_v0 = vmul.f32 %v12143_v9, %v11459_v34  ;;  %v3502_v9 = vrot.slane %v3475_v10, %v11807_v52  ;;  %8368 = vtanh.f32 %v5160_v24  ;;  %v6891_v24 = vadd.f32 %v11775_v8, %v11771_v17 }
 0x3f0   : > { %v12147_v23 = vpop.eup %8358 }
 0x3f1   : > { %15165 = vst [vmem:[#allocation220_spill] sm:$0xff] %v12147_v23  ;;  %v5759_v12 = vmul.f32 %v12147_v23, %v11543_v19  ;;  %v2935_v23 = vsel %vm608_vm2, %v2910_v7, %v2906_v53  ;;  %v3524_v63 = vsel %vm611_vm3, %v3502_v9, %v3523_v25  ;;  %v6314_v7 = vadd.f32 %v11884_v1, %v11823_v35 }
 0x3f2   : > { %v2936_v61 = vsel %vm611_vm3, %v2914_v33, %v2935_v23  ;;  %v3525_v25 = vsel %vm614_vm4, %v3506_v37, %v3524_v63 }
 0x3f3   : > { %v5769_v13 = vsel %vm465_vm1, %v5759_v12, 0.0  ;;  %v2937_v23 = vsel %vm614_vm4, %v2918_v38, %v2936_v61  ;;  %8370 = vtanh.f32 %v6314_v7 }
 0x3f4   : > { %8372 = vtanh.f32 %v6891_v24 }
 0x3f5   : > { %v12158_v32 = vpop.eup %8360 }
 0x3f6   : > { %v12131_v31 = vpop.permute.xlu1 %2895  ;;  %15166 = vst [vmem:[#allocation134_spill] sm:$0xff] %v12158_v32  ;;  %v5760_v10 = vmul.f32 %v12158_v32, %v11453_v29  ;;  %v15241_v32 = vld [vmem:[#allocation331_spill] sm:$0xff] }
 0x3f7   : > { %v2926_v12 = vrot.slane %v12131_v31, %v11807_v52 }
 0x3fa   : > { %v12137_v15 = vpop.permute.xlu1 %3483 }
 0x3fb   : > { %v3514_v1 = vrot.slane %v12137_v15, %v11807_v52 }
 0x3fe   : > { %v2893_v22 = vpop.permute.xlu1 %2892 }
 0x402   : > { %v3481_v54 = vpop.permute.xlu1 %3480  ;;  %v3487_v33 = vpop.permute.xlu0 %3486 }
 0x403   : > { %v3510_v3 = vrot.slane %v3481_v54, %v11807_v52  ;;  %v3518_v15 = vrot.slane %v3487_v33, %v11807_v52  ;;  %v6901_v33 = vadd.f32 %v11813_v16, %v11771_v17 }
 0x405   : > { %5180 = vadd.xlane.f32.xlu1 %v5179_v46  ;;  %v5188_v46 = vsel %vm465_vm1, %v5174_v0, 0.0  ;;  %v2922_v0 = vrot.slane %v2893_v22, %v11807_v52  ;;  %v3526_v54 = vsel %vm617_vm5, %v3510_v3, %v3525_v25  ;;  %v5772_v22 = vsel %vm465_vm1, %v5760_v10, 0.0 }
 0x406   : > { %v2902_v48 = vpop.permute.xlu1 %2901  ;;  %v3527_v31 = vsel %vm620_vm6, %v3514_v1, %v3526_v54 }
 0x407   : > { %v2938_v9 = vsel %vm617_vm5, %v2922_v0, %v2937_v23  ;;  %v3528_v38 = vsel %vm623_vm7, %v3518_v15, %v3527_v31 }
 0x408   : > { %v2939_v61 = vsel %vm620_vm6, %v2926_v12, %v2938_v9 }
 0x409   : > { %5189 = vadd.xlane.f32.xlu1 %v5188_v46  ;;  %v12176_v46 = vpop.eup %8362 }
 0x40a   : > { %15167 = vst [vmem:[#allocation283_spill] sm:$0xff] %v12176_v46  ;;  %v3490_v53 = vpop.permute.xlu1 %3489  ;;  %v5761_v11 = vmul.f32 %v12176_v46, %v11459_v34  ;;  %v12190_v42 = vpop.eup %8364  ;;  %v15236_v46 = vld [vmem:[#allocation113_spill] sm:$0xff] }
 0x40b   : > { %15168 = vst [vmem:[#allocation215_spill] sm:$0xff] %v12190_v42  ;;  %v3522_v10 = vrot.slane %v3490_v53, %v11807_v52  ;;  %v12203_v63 = vpop.eup %8366  ;;  %v6346_v8 = vmul.f32 %v12190_v42, %v11543_v19  ;;  %v6319_v53 = vadd.f32 %v11823_v35, %v11916_v49 }
 0x40c   : > { %15169 = vst [vmem:[#allocation115_spill] sm:$0xff] %v12203_v63  ;;  %v5775_v0 = vsel %vm465_vm1, %v5761_v11, 0.0  ;;  %v5762_v9 = vmul.f32 %v12203_v63, %v11552_v40  ;;  %v12219_v54 = vpop.eup %8368  ;;  %v5747_v11 = vadd.f32 %v11757_v39, %v11682_v51 }
 0x40d   : > { %5770 = vadd.xlane.f32.xlu1 %v5769_v13  ;;  %v2934_v13 = vrot.slane %v2902_v48, %v11807_v52  ;;  %v3529_v7 = vsel %vm625_vm8, %v3522_v10, %v3528_v38  ;;  %v6356_v25 = vsel %vm465_vm1, %v6346_v8, 0.0  ;;  %15170 = vst [vmem:[#allocation279_spill] sm:$0xff] %v12219_v54  ;;  %8374 = vtanh.f32 %v6319_v53  ;;  %v12224_v35 = vpop.eup %8370 }
 0x40e   : > { %v2899_v44 = vpop.permute.xlu1 %2898  ;;  %15171 = vst [vmem:[#allocation136_spill] sm:$0xff] %v12224_v35  ;;  %v5778_v12 = vsel %vm465_vm1, %v5762_v9, 0.0  ;;  %v5178_v1 = vmul.f32 %v12219_v54, %v11512_v28  ;;  %8376 = vtanh.f32 %v5747_v11  ;;  %v6348_v51 = vmul.f32 %v12224_v35, %v11459_v34  ;;  %v12234_v39 = vpop.eup %8372  ;;  %v15225_v35 = vld [vmem:[#allocation330_spill] sm:$0xff] }
 0x40f   : > { %v2930_v62 = vrot.slane %v2899_v44, %v11807_v52  ;;  %15172 = vst [vmem:[#allocation333_spill] sm:$0xff] %v12234_v39  ;;  %8378 = vtanh.f32 %v6901_v33 }
 0x410   : > { %v5200_v24 = vsel %vm465_vm1, %v5178_v1, 0.0  ;;  %v6362_v10 = vsel %vm465_vm1, %v6348_v51, 0.0 }
 0x411   : > { %5773 = vadd.xlane.f32.xlu1 %v5772_v22  ;;  %v2940_v3 = vsel %vm623_vm7, %v2930_v62, %v2939_v61  ;;  %v3531_v22 = vsel %vm872_vm10, %v3529_v7, -inf  ;;  %v6906_v62 = vadd.f32 %v11771_v17, %v11864_v58  ;;  %v6933_v61 = vmul.f32 %v12234_v39, %v11543_v19 }
 0x412   : > { %v2941_v48 = vsel %vm625_vm8, %v2934_v13, %v2940_v3 }
 0x413   : > { %v2943_v37 = vsel %vm872_vm10, %v2941_v48, -inf  ;;  %8380 = vtanh.f32 %v6906_v62  ;;  %v6943_v15 = vsel %vm465_vm1, %v6933_v61, 0.0 }
 0x414   : > { %2944 = vmax.xlane.f32.xlu0 %v2943_v37  ;;  %8382 = vtanh.f32 %v11726_v27 }
 0x415   : > { %5776 = vadd.xlane.f32.xlu1 %v5775_v0  ;;  %8384 = vtanh.f32 %v11761_v41 }
 0x416   : > { %8386 = vtanh.f32 %v11691_v6 }
 0x417   : > { %v12241_v16 = vpop.eup %8374  ;;  %8388 = vtanh.f32 %v11791_v18 }
 0x418   : > { %v4059_v23 = vpop.permute.xlu1 %4058  ;;  %3532 = vmax.xlane.f32.xlu0 %v3531_v22  ;;  %15173 = vst [vmem:[#allocation173_spill] sm:$0xff] %v12241_v16  ;;  %v6349_v0 = vmul.f32 %v12241_v16, %v11552_v40  ;;  %v12246_v8 = vpop.eup %8376  ;;  %8390 = vtanh.f32 %v11788_v4 }
 0x419   : > { %6357 = vadd.xlane.f32.xlu1 %v6356_v25  ;;  %15174 = vst [vmem:[#allocation323_spill] sm:$0xff] %v12246_v8  ;;  %v5765_v3 = vmul.f32 %v12246_v8, %v11512_v28  ;;  %v12251_v48 = vpop.eup %8378  ;;  %v4065_v25 = vpop.permute.xlu0 %4064  ;;  %v4085_v33 = vrot.slane %v4059_v23, %v11807_v52  ;;  %8392 = vtanh.f32 %v11840_v26 }
 0x41a   : > { %v6365_v58 = vsel %vm465_vm1, %v6349_v0, 0.0  ;;  %15175 = vst [vmem:[#allocation240_spill] sm:$0xff] %v12251_v48  ;;  %v6935_v53 = vmul.f32 %v12251_v48, %v11459_v34  ;;  %8394 = vtanh.f32 %v11816_v30 }
 0x41b   : > { %v5787_v38 = vsel %vm465_vm1, %v5765_v3, 0.0  ;;  %8396 = vtanh.f32 %v11888_v36 }
 0x41c   : > { %v4646_v49 = vpop.permute.xlu1 %4645 }
 0x41d   : > { %5779 = vadd.xlane.f32.xlu1 %v5778_v12  ;;  %v12256_v7 = vpop.eup %8380  ;;  %v6949_v12 = vsel %vm465_vm1, %v6935_v53, 0.0 }
 0x41e   : > { %15176 = vst [vmem:[#allocation137_spill] sm:$0xff] %v12256_v7  ;;  %v6936_v1 = vmul.f32 %v12256_v7, %v11552_v40 }
 0x420   : > { %v4056_v44 = vpop.permute.xlu1 %4055  ;;  %v6952_v61 = vsel %vm465_vm1, %v6936_v1, 0.0 }
 0x421   : > { %5201 = vadd.xlane.f32.xlu1 %v5200_v24  ;;  %v4081_v9 = vrot.slane %v4056_v44, %v11807_v52  ;;  %v4652_v24 = vpop.permute.xlu0 %4651 }
 0x422   : > { %v4680_v53 = vrot.slane %v4652_v24, %v11807_v52 }
 0x423   : > { %v4110_v34 = vsel %vm608_vm2, %v4085_v33, %v4081_v9 }
 0x424   : > { %v4643_v13 = vpop.permute.xlu1 %4642 }
 0x425   : > { %6363 = vadd.xlane.f32.xlu1 %v6362_v10  ;;  %v4668_v51 = vrot.slane %v4643_v13, %v11807_v52 }
 0x428   : > { %v4062_v31 = vpop.permute.xlu1 %4061 }
 0x429   : > { %6944 = vadd.xlane.f32.xlu1 %v6943_v15  ;;  %v4089_v22 = vrot.slane %v4062_v31, %v11807_v52  ;;  %v4093_v31 = vrot.slane %v4065_v25, %v11807_v52  ;;  %v4672_v15 = vrot.slane %v4646_v49, %v11807_v52 }
 0x42b   : > { %v4111_v62 = vsel %vm611_vm3, %v4089_v22, %v4110_v34  ;;  %v4697_v23 = vsel %vm608_vm2, %v4672_v15, %v4668_v51 }
 0x42c   : > { %v4649_v17 = vpop.permute.xlu1 %4648  ;;  %v4112_v3 = vsel %vm614_vm4, %v4093_v31, %v4111_v62 }
 0x42d   : > { %6366 = vadd.xlane.f32.xlu1 %v6365_v58  ;;  %v4676_v44 = vrot.slane %v4649_v17, %v11807_v52 }
 0x42f   : > { %v4698_v13 = vsel %vm611_vm3, %v4676_v44, %v4697_v23 }
 0x430   : > { %v4071_v37 = vpop.permute.xlu1 %4070  ;;  %v4074_v58 = vpop.permute.xlu0 %4073  ;;  %v4699_v49 = vsel %vm614_vm4, %v4680_v53, %v4698_v13 }
 0x431   : > { %5788 = vadd.xlane.f32.xlu1 %v5787_v38  ;;  %v4101_v9 = vrot.slane %v4071_v37, %v11807_v52 }
 0x434   : > { %v4658_v11 = vpop.permute.xlu1 %4657  ;;  %v4661_v34 = vpop.permute.xlu0 %4660 }
 0x435   : > { %6950 = vadd.xlane.f32.xlu1 %v6949_v12  ;;  %v4105_v12 = vrot.slane %v4074_v58, %v11807_v52  ;;  %v4688_v51 = vrot.slane %v4658_v11, %v11807_v52 }
 0x438   : > { %v4068_v10 = vpop.permute.xlu1 %4067 }
 0x439   : > { %v4097_v0 = vrot.slane %v4068_v10, %v11807_v52  ;;  %6953 = vadd.xlane.f32.xlu1 %v6952_v61  ;;  %v4692_v10 = vrot.slane %v4661_v34, %v11807_v52 }
 0x43b   : > { %v4113_v38 = vsel %vm617_vm5, %v4097_v0, %v4112_v3 }
 0x43c   : > { %v4655_v17 = vpop.permute.xlu1 %4654  ;;  %v4114_v22 = vsel %vm620_vm6, %v4101_v9, %v4113_v38 }
 0x43d   : > { %v4684_v25 = vrot.slane %v4655_v17, %v11807_v52  ;;  %v4115_v24 = vsel %vm623_vm7, %v4105_v12, %v4114_v22  ;;  %v954_v17 = vpop.permute.xlu0 %953 }
 0x43f   : > { %v4700_v1 = vsel %vm617_vm5, %v4684_v25, %v4699_v49  ;;  %v980_v49 = vrot.slane %v954_v17, %v11807_v52 }
 0x440   : > { %v4077_v33 = vpop.permute.xlu1 %4076  ;;  %v4701_v44 = vsel %vm620_vm6, %v4688_v51, %v4700_v1 }
 0x441   : > { %v4109_v62 = vrot.slane %v4077_v33, %v11807_v52  ;;  %v4702_v0 = vsel %vm623_vm7, %v4692_v10, %v4701_v44 }
 0x443   : > { %v4116_v37 = vsel %vm625_vm8, %v4109_v62, %v4115_v24 }
 0x444   : > { %v4664_v61 = vpop.permute.xlu1 %4663  ;;  %v4118_v31 = vsel %vm872_vm10, %v4116_v37, -inf }
 0x445   : > { %v4696_v15 = vrot.slane %v4664_v61, %v11807_v52  ;;  %4119 = vmax.xlane.f32.xlu0 %v4118_v31 }
 0x447   : > { %v4703_v11 = vsel %vm625_vm8, %v4696_v15, %v4702_v0  ;;  %v15177_v0 = vmov 0  }
 0x448   : > { %v951_v23 = vpop.permute.xlu1 %950  ;;  %v4705_v58 = vsel %vm872_vm10, %v4703_v11, -inf }
 0x449   : > { %4706 = vmax.xlane.f32.xlu0 %v4705_v58  ;;  %v976_v9 = vrot.slane %v951_v23, %v11807_v52  ;;  %v12315_v23 = vpop.eup %8382 }
 0x44a   : > { %15178 = vst [vmem:[#allocation284_spill] sm:$0xff] %v12315_v23  ;;  %v5172_v58 = vmul.f32 %v12315_v23, %v11543_v19 }
 0x44b   : > { %v1005_v33 = vsel %vm608_vm2, %v980_v49, %v976_v9  ;;  %v15185_v49 = vld [vmem:[#allocation207_spill] sm:$0xff] }
 0x44c   : > { %v957_v3 = vpop.permute.xlu1 %956  ;;  %8398 = vtanh.f32 %v15185_v49 }
 0x44d   : > { %v984_v25 = vrot.slane %v957_v3, %v11807_v52  ;;  %v12320_v3 = vpop.eup %8384 }
 0x44e   : > { %15179 = vst [vmem:[#allocation221_spill] sm:$0xff] %v12320_v3  ;;  %v5173_v27 = vmul.f32 %v12320_v3, %v11453_v29  ;;  %v15243_v3 = vld [vmem:[#allocation219_spill] sm:$0xff] }
 0x44f   : > { %v1006_v51 = vsel %vm611_vm3, %v984_v25, %v1005_v33 }
 0x450   : > { %v960_v13 = vpop.permute.xlu1 %959  ;;  %v5185_v41 = vsel %vm465_vm1, %v5173_v27, 0.0 }
 0x451   : > { %v988_v22 = vrot.slane %v960_v13, %v11807_v52  ;;  %v5182_v13 = vsel %vm465_vm1, %v5172_v58, 0.0 }
 0x453   : > { %v1007_v24 = vsel %vm614_vm4, %v988_v22, %v1006_v51  ;;  %v15190_v51 = vld [vmem:[#allocation87_spill] sm:$0xff] }
 0x454   : > { %v963_v38 = vpop.permute.xlu1 %962 }
 0x455   : > { %v992_v12 = vrot.slane %v963_v38, %v11807_v52  ;;  %v12326_v38 = vpop.eup %8386 }
 0x456   : > { %15180 = vst [vmem:[#allocation216_spill] sm:$0xff] %v12326_v38  ;;  %v5758_v18 = vmul.f32 %v12326_v38, %v11533_v59  ;;  %v12332_v19 = vpop.eup %8388 }
 0x457   : > { %v1008_v37 = vsel %vm617_vm5, %v992_v12, %v1007_v24  ;;  %15181 = vst [vmem:[#allocation138_spill] sm:$0xff] %v12332_v19  ;;  %v5175_v6 = vmul.f32 %v12332_v19, %v11552_v40  ;;  %v12338_v17 = vpop.eup %8390  ;;  %v15187_v12 = vld [vmem:[#allocation206_spill] sm:$0xff] }
 0x458   : > { %v966_v53 = vpop.permute.xlu1 %965  ;;  %v5766_v4 = vsel %vm465_vm1, %v5758_v18, 0.0  ;;  %15182 = vst [vmem:[#allocation116_spill] sm:$0xff] %v12338_v17  ;;  %v12344_v25 = vpop.eup %8392  ;;  %8400 = vtanh.f32 %v15187_v12 }
 0x459   : > { %v996_v34 = vrot.slane %v966_v53, %v11807_v52  ;;  %v5191_v26 = vsel %vm465_vm1, %v5175_v6, 0.0  ;;  %v15183_v53 = vld [vmem:[#allocation108_spill] sm:$0xff]  ;;  %15184 = vst [vmem:[#allocation286_spill] sm:$0xff] %v12344_v25  ;;  %v6345_v40 = vmul.f32 %v12344_v25, %v11533_v59  ;;  %v12350_v22 = vpop.eup %8394  ;;  %8402 = vtanh.f32 %v15190_v51 }
 0x45a   : > { %v5176_v9 = vmul.f32 %v12338_v17, %v15183_v53  ;;  %15186 = vst [vmem:[#allocation250_spill] sm:$0xff] %v12350_v22 }
 0x45b   : > { %v1009_v10 = vsel %vm620_vm6, %v996_v34, %v1008_v37  ;;  %v6353_v36 = vsel %vm465_vm1, %v6345_v40, 0.0  ;;  %v12356_v34 = vpop.eup %8396 }
 0x45c   : > { %v969_v1 = vpop.permute.xlu1 %968  ;;  %v5194_v30 = vsel %vm465_vm1, %v5176_v9, 0.0  ;;  %15189 = vst [vmem:[#allocation334_spill] sm:$0xff] %v12356_v34  ;;  %v6347_v37 = vmul.f32 %v12356_v34, %v11453_v29 }
 0x45d   : > { %v1000_v62 = vrot.slane %v969_v1, %v11807_v52  ;;  %v15188_v1 = vld [vmem:[#allocation204_spill] sm:$0xff] }
 0x45e   : > { %v5177_v33 = vmul.f32 %v12350_v22, %v15188_v1 }
 0x45f   : > { %5003 = vperm.xlu0 %8263, %v12117_v45   ;;  %v1010_v31 = vsel %vm623_vm7, %v1000_v62, %v1009_v10  ;;  %v12359_v62 = vpop.permute.xlu0 %3242  ;;  %v15193_v10 = vld [vmem:[#allocation140_spill] sm:$0xff] }
 0x460   : > { %v972_v44 = vpop.permute.xlu1 %971  ;;  %15191 = vst [vmem:[#allocation241_spill] sm:$0xff] %v12359_v62  ;;  %v5197_v24 = vsel %vm465_vm1, %v5177_v33, 0.0  ;;  %8404 = vtanh.f32 %v15193_v10  ;;  %v15203_v10 = vld [vmem:[#allocation225_spill] sm:$0xff] }
 0x461   : > { %v1004_v61 = vrot.slane %v972_v44, %v11807_v52  ;;  %v12364_v44 = vpop.eup %8398 }
 0x462   : > { %15192 = vst [vmem:[#allocation174_spill] sm:$0xff] %v12364_v44 }
 0x463   : > { %v1011_v15 = vsel %vm625_vm8, %v1004_v61, %v1010_v31  ;;  %8264 = vset.pattern.permute.xlu0 %v15177_v0  ;;  %v6359_v61 = vsel %vm465_vm1, %v6347_v37, 0.0  ;;  %v5763_v31 = vmul.f32 %v12364_v44, %v15183_v53 }
 0x464   : > { %v1013_v11 = vsel %vm872_vm10, %v1011_v15, 0.0  ;;  %v12370_v15 = vpop.eup %8400  ;;  %v12372_v0 = vpop.permute.xlu0 %3829 }
 0x465   : > { %1014 = vadd.xlane.f32.xlu1 %v1013_v11  ;;  %15194 = vst [vmem:[#allocation324_spill] sm:$0xff] %v12370_v15  ;;  %15195 = vst [vmem:[#allocation71_spill] sm:$0xff] %v12372_v0  ;;  %v15196_v11 = vld [vmem:[#allocation155_spill] sm:$0xff]  ;;  %v5781_v58 = vsel %vm465_vm1, %v5763_v31, 0.0  ;;  %v12378_v27 = vpop.eup %8402 }
 0x466   : > { %8406 = vtanh.f32 %v15196_v11  ;;  %15197 = vst [vmem:[#allocation141_spill] sm:$0xff] %v12378_v27 }
 0x469   : > { %v12381_v18 = vpop.permute.xlu0 %4416 }
 0x46a   : > { %15199 = vst [vmem:[#allocation285_spill] sm:$0xff] %v12381_v18  ;;  %v12388_v9 = vpop.eup %8404  ;;  %v15253_v18 = vld [vmem:[#allocation321_spill] sm:$0xff] }
 0x46b   : > { %15200 = vst [vmem:[#allocation217_spill] sm:$0xff] %v12388_v9  ;;  %v6934_v12 = vmul.f32 %v12388_v9, %v11453_v29 }
 0x46d   : > { %v6946_v11 = vsel %vm465_vm1, %v6934_v12, 0.0 }
 0x47e   : > { %5183 = vadd.xlane.f32.xlu0 %v5182_v13  ;;  %v6932_v13 = vmul.f32 %v12370_v15, %v11533_v59 }
 0x480   : > { %v6940_v6 = vsel %vm465_vm1, %v6932_v13, 0.0 }
 0x482   : > { %5186 = vadd.xlane.f32.xlu0 %v5185_v41  ;;  %v15198_v41 = vld [vmem:[#allocation191_spill] sm:$0xff] }
 0x483   : > { %8408 = vtanh.f32 %v15198_v41  ;;  %v15205_v41 = vld [vmem:[#allocation210_spill] sm:$0xff] }
 0x486   : > { %5767 = vadd.xlane.f32.xlu0 %v5766_v4 }
 0x48a   : > { %5192 = vadd.xlane.f32.xlu0 %v5191_v26  ;;  %v5764_v26 = vmul.f32 %v12378_v27, %v15188_v1 }
 0x48c   : > { %v5784_v59 = vsel %vm465_vm1, %v5764_v26, 0.0 }
 0x48e   : > { %5195 = vadd.xlane.f32.xlu0 %v5194_v30 }
 0x492   : > { %6354 = vadd.xlane.f32.xlu0 %v6353_v36  ;;  %v12383_v4 = vpop.xlane.xlu1 %5180  ;;  %v12395_v36 = vpop.eup %8406 }
 0x493   : > { %15201 = vst [vmem:[#allocation222_spill] sm:$0xff] %v12395_v36  ;;  %v12405_v13 = vpop.eup %8408 }
 0x494   : > { %15204 = vst [vmem:[#allocation142_spill] sm:$0xff] %v12405_v13 }
 0x496   : > { %5198 = vadd.xlane.f32.xlu0 %v5197_v24  ;;  %v12397_v33 = vpop.xlane.xlu1 %5189  ;;  %v15202_v24 = vld [vmem:[#allocation236_spill] sm:$0xff] }
 0x49a   : > { %6360 = vadd.xlane.f32.xlu0 %v6359_v61 }
 0x49e   : > { %5782 = vadd.xlane.f32.xlu0 %v5781_v58  ;;  %v6350_v58 = vmul.f32 %v12395_v36, %v15183_v53  ;;  %v15219_v36 = vld [vmem:[#allocation129_spill] sm:$0xff] }
 0x4a1   : > { %v2945_v49 = vpop.xlane.xlu0 %2944 }
 0x4a2   : > { %6941 = vadd.xlane.f32.xlu0 %v6940_v6  ;;  %v2950_v30 = vrot.slane %v2945_v49, %v15044_v20  ;;  %v2954_v40 = vrot.slane %v2945_v49, %v15051_v57  ;;  %v2958_v51 = vrot.slane %v2945_v49, %v15053_v60  ;;  %v2962_v29 = vrot.slane %v2945_v49, %v15062_v2 }
 0x4a4   : > { %v2987_v37 = vsub.f32 %v15202_v24, %v2950_v30  ;;  %v2988_v61 = vsub.f32 %v15203_v10, %v2954_v40  ;;  %v2989_v6 = vsub.f32 %v15205_v41, %v2958_v51  ;;  %v6368_v30 = vsel %vm465_vm1, %v6350_v58, 0.0 }
 0x4a5   : > { %v6351_v40 = vmul.f32 %v12405_v13, %v15188_v1  ;;  %v12414_v12 = vpop.xlane.xlu0 %3532  ;;  %v2966_v24 = vrot.slane %v2945_v49, %v15151_v50  ;;  %v2970_v58 = vrot.slane %v2945_v49, %v15152_v47 }
 0x4a6   : > { %5785 = vadd.xlane.f32.xlu0 %v5784_v59  ;;  %v2995_v31 = vmul.f32 1.442695, %v2987_v37  ;;  %v2997_v26 = vmul.f32 1.442695, %v2988_v61  ;;  %v12409_v59 = vpop.xlane.xlu1 %5770  ;;  %v15206_v37 = vld [vmem:[#allocation209_spill] sm:$0xff]  ;;  %v3566_v51 = vrot.slane %v12414_v12, %v15155_v55 }
 0x4a7   : > { %v2990_v10 = vsub.f32 %v15206_v37, %v2962_v29  ;;  %v6371_v61 = vsel %vm465_vm1, %v6351_v40, 0.0  ;;  %v2991_v41 = vsub.f32 %v11980_v5, %v2966_v24  ;;  %v2978_v5 = vrot.slane %v2945_v49, %v15155_v55  ;;  %v15210_v24 = vld [vmem:[#allocation167_spill] sm:$0xff] }
 0x4a8   : > { %8410 = vpow2.f32 %v2995_v31  ;;  %v3582_v29 = vsub.f32 %v12000_v14, %v3566_v51 }
 0x4a9   : > { %8412 = vpow2.f32 %v2997_v26  ;;  %v15208_v26 = vld [vmem:[#allocation276_spill] sm:$0xff]  ;;  %v3003_v40 = vmul.f32 1.442695, %v2991_v41 }
 0x4aa   : > { %6947 = vadd.xlane.f32.xlu0 %v6946_v11  ;;  %v2999_v11 = vmul.f32 1.442695, %v2989_v6  ;;  %v12421_v31 = vpop.xlane.xlu1 %5773  ;;  %v2974_v6 = vrot.slane %v2945_v49, %v15154_v43  ;;  %v2992_v37 = vsub.f32 %v15208_v26, %v2970_v58  ;;  %v3597_v48 = vmul.f32 1.442695, %v3582_v29  ;;  %v15212_v58 = vld [vmem:[#allocation281_spill] sm:$0xff] }
 0x4ab   : > { %v2994_v41 = vsub.f32 %v15212_v58, %v2978_v5  ;;  %v3538_v29 = vrot.slane %v12414_v12, %v15044_v20 }
 0x4ac   : > { %8414 = vpow2.f32 %v2999_v11  ;;  %v3005_v14 = vmul.f32 1.442695, %v2992_v37 }
 0x4ad   : > { %v3009_v49 = vmul.f32 1.442695, %v2994_v41 }
 0x4ae   : > { %6369 = vadd.xlane.f32.xlu0 %v6368_v30  ;;  %v3001_v30 = vmul.f32 1.442695, %v2990_v10  ;;  %v12431_v13 = vpop.xlane.xlu1 %5776  ;;  %v2993_v10 = vsub.f32 %v15210_v24, %v2974_v6  ;;  %v15214_v6 = vld [vmem:[#allocation314_spill] sm:$0xff] }
 0x4af   : > { %v3575_v37 = vsub.f32 %v15214_v6, %v3538_v29  ;;  %v3550_v6 = vrot.slane %v12414_v12, %v15062_v2 }
 0x4b0   : > { %8416 = vpow2.f32 %v3001_v30  ;;  %v3007_v30 = vmul.f32 1.442695, %v2993_v10  ;;  %v3546_v10 = vrot.slane %v12414_v12, %v15053_v60 }
 0x4b1   : > { %8418 = vpow2.f32 %v3003_v40  ;;  %v3583_v41 = vmul.f32 1.442695, %v3575_v37  ;;  %v15221_v37 = vld [vmem:[#allocation112_spill] sm:$0xff] }
 0x4b2   : > { %6372 = vadd.xlane.f32.xlu0 %v6371_v61  ;;  %v12425_v7 = vpop.eup %8410  ;;  %8420 = vpow2.f32 %v3597_v48  ;;  %v12440_v51 = vpop.xlane.xlu1 %6357  ;;  %v3542_v48 = vrot.slane %v12414_v12, %v15051_v57  ;;  %v3577_v8 = vsub.f32 %v15219_v36, %v3546_v10  ;;  %v3558_v36 = vrot.slane %v12414_v12, %v15152_v47  ;;  %v15223_v10 = vld [vmem:[#allocation192_spill] sm:$0xff] }
 0x4b3   : > { %15207 = vst [vmem:[#allocation118_spill] sm:$0xff] %v12425_v7  ;;  %3020 = vperm.xlu1 %8259, %v12425_v7   ;;  %v12433_v61 = vpop.eup %8412  ;;  %8422 = vpow2.f32 %v3005_v14  ;;  %v15217_v14 = vld [vmem:[#allocation128_spill] sm:$0xff] }
 0x4b4   : > { %15209 = vst [vmem:[#allocation135_spill] sm:$0xff] %v12433_v61  ;;  %8424 = vpow2.f32 %v3007_v30  ;;  %v3576_v58 = vsub.f32 %v15217_v14, %v3542_v48  ;;  %v3554_v48 = vrot.slane %v12414_v12, %v15151_v50  ;;  %v3578_v14 = vsub.f32 %v15221_v37, %v3550_v6 }
 0x4b5   : > { %8426 = vpow2.f32 %v3009_v49  ;;  %v3587_v16 = vmul.f32 1.442695, %v3577_v8  ;;  %v3562_v37 = vrot.slane %v12414_v12, %v15154_v43  ;;  %v3580_v44 = vsub.f32 %v15225_v35, %v3558_v36  ;;  %v15229_v36 = vld [vmem:[#allocation169_spill] sm:$0xff] }
 0x4b6   : > { %v12438_v11 = vpop.eup %8414  ;;  %v12452_v40 = vpop.xlane.xlu1 %5779  ;;  %8428 = vpow2.f32 %v3583_v41  ;;  %v3585_v49 = vmul.f32 1.442695, %v3576_v58  ;;  %v3579_v58 = vsub.f32 %v15223_v10, %v3554_v48  ;;  %v3589_v41 = vmul.f32 1.442695, %v3578_v14  ;;  %v15227_v14 = vld [vmem:[#allocation237_spill] sm:$0xff] }
 0x4b7   : > { %3023 = vperm.xlu1 %8259, %v12433_v61   ;;  %15211 = vst [vmem:[#allocation335_spill] sm:$0xff] %v12438_v11  ;;  %v3581_v10 = vsub.f32 %v15227_v14, %v3562_v37  ;;  %v3593_v34 = vmul.f32 1.442695, %v3580_v44 }
 0x4b8   : > { %8430 = vpow2.f32 %v3585_v49  ;;  %v3591_v54 = vmul.f32 1.442695, %v3579_v58 }
 0x4b9   : > { %8432 = vpow2.f32 %v3587_v16 }
 0x4ba   : > { %v12446_v26 = vpop.eup %8416  ;;  %v12465_v29 = vpop.xlane.xlu1 %5201  ;;  %8434 = vpow2.f32 %v3589_v41 }
 0x4bb   : > { %3026 = vperm.xlu1 %8259, %v12438_v11   ;;  %15213 = vst [vmem:[#allocation289_spill] sm:$0xff] %v12446_v26  ;;  %v12454_v24 = vpop.eup %8418  ;;  %8436 = vpow2.f32 %v3591_v54 }
 0x4bc   : > { %15215 = vst [vmem:[#allocation317_spill] sm:$0xff] %v12454_v24  ;;  %v12457_v5 = vpop.eup %8420  ;;  %8438 = vpow2.f32 %v3593_v34 }
 0x4bd   : > { %15216 = vst [vmem:[#allocation55_spill] sm:$0xff] %v12457_v5  ;;  %v12463_v30 = vpop.eup %8422 }
 0x4be   : > { %15218 = vst [vmem:[#allocation175_spill] sm:$0xff] %v12463_v30  ;;  %v12471_v9 = vpop.eup %8424  ;;  %v12477_v27 = vpop.xlane.xlu1 %6363 }
 0x4bf   : > { %3029 = vperm.xlu1 %8259, %v12446_v26   ;;  %15220 = vst [vmem:[#allocation246_spill] sm:$0xff] %v12471_v9  ;;  %v12479_v39 = vpop.eup %8426 }
 0x4c0   : > { %15222 = vst [vmem:[#allocation287_spill] sm:$0xff] %v12479_v39  ;;  %v12489_v49 = vpop.eup %8428 }
 0x4c1   : > { %15224 = vst [vmem:[#allocation76_spill] sm:$0xff] %v12489_v49 }
 0x4c2   : > { %v12491_v8 = vpop.xlane.xlu1 %6944  ;;  %v12498_v16 = vpop.eup %8430 }
 0x4c3   : > { %3032 = vperm.xlu1 %8259, %v12454_v24   ;;  %15226 = vst [vmem:[#allocation72_spill] sm:$0xff] %v12498_v16  ;;  %v12506_v42 = vpop.eup %8432 }
 0x4c4   : > { %15228 = vst [vmem:[#allocation223_spill] sm:$0xff] %v12506_v42  ;;  %v12512_v54 = vpop.eup %8434 }
 0x4c5   : > { %15230 = vst [vmem:[#allocation224_spill] sm:$0xff] %v12512_v54 }
 0x4c6   : > { %v12504_v22 = vpop.xlane.xlu1 %6366 }
 0x4c7   : > { %3035 = vperm.xlu1 %8259, %v12463_v30  }
 0x4c8   : > { %3629 = vperm.xlu0 %8264, %v12457_v5  }
 0x4ca   : > { %v12514_v44 = vpop.xlane.xlu1 %5788 }
 0x4cb   : > { %3038 = vperm.xlu1 %8259, %v12471_v9  }
 0x4cf   : > { %3041 = vperm.xlu1 %8259, %v12479_v39  }
 0x4d2   : > { %v12481_v15 = vpop.xlane.xlu0 %4119 }
 0x4d3   : > { %v4153_v6 = vrot.slane %v12481_v15, %v15155_v55  ;;  %3608 = vperm.xlu1 %8259, %v12489_v49   ;;  %v4125_v63 = vrot.slane %v12481_v15, %v15044_v20  ;;  %v4129_v35 = vrot.slane %v12481_v15, %v15051_v57  ;;  %v4133_v41 = vrot.slane %v12481_v15, %v15053_v60 }
 0x4d4   : > { %v4137_v14 = vrot.slane %v12481_v15, %v15062_v2 }
 0x4d5   : > { %v4169_v48 = vsub.f32 %v12079_v56, %v4153_v6  ;;  %v3595_v56 = vmul.f32 1.442695, %v3581_v10  ;;  %v4162_v58 = vsub.f32 %v15229_v36, %v4125_v63  ;;  %v15231_v6 = vld [vmem:[#allocation193_spill] sm:$0xff]  ;;  %v12526_v36 = vpop.xlane.xlu1 %6950 }
 0x4d6   : > { %v4163_v37 = vsub.f32 %v15231_v6, %v4129_v35  ;;  %v15233_v63 = vld [vmem:[#allocation77_spill] sm:$0xff]  ;;  %v4165_v35 = vsub.f32 %v15236_v46, %v4137_v14  ;;  %v15239_v46 = vld [vmem:[#allocation282_spill] sm:$0xff] }
 0x4d7   : > { %3611 = vperm.xlu1 %8259, %v12498_v16   ;;  %v4184_v12 = vmul.f32 1.442695, %v4169_v48  ;;  %v4170_v34 = vmul.f32 1.442695, %v4162_v58  ;;  %v12520_v48 = vpop.eup %8436  ;;  %v4164_v10 = vsub.f32 %v15233_v63, %v4133_v41  ;;  %v4141_v58 = vrot.slane %v12481_v15, %v15151_v50 }
 0x4d8   : > { %15232 = vst [vmem:[#allocation213_spill] sm:$0xff] %v12520_v48  ;;  %v4145_v63 = vrot.slane %v12481_v15, %v15152_v47 }
 0x4d9   : > { %8440 = vpow2.f32 %v4184_v12  ;;  %v4172_v12 = vmul.f32 1.442695, %v4163_v37  ;;  %v4174_v6 = vmul.f32 1.442695, %v4164_v10  ;;  %v12539_v37 = vpop.xlane.xlu1 %6953  ;;  %v4166_v14 = vsub.f32 %v15239_v46, %v4141_v58 }
 0x4da   : > { %8442 = vpow2.f32 %v3595_v56  ;;  %v12528_v56 = vpop.eup %8438  ;;  %15238 = vst [vmem:[#allocation345_spill] sm:$0xff] %v12539_v37  ;;  %v4149_v10 = vrot.slane %v12481_v15, %v15154_v43  ;;  %v4167_v19 = vsub.f32 %v15241_v32, %v4145_v63 }
 0x4db   : > { %3614 = vperm.xlu1 %8259, %v12506_v42   ;;  %8444 = vpow2.f32 %v4170_v34  ;;  %15234 = vst [vmem:[#allocation119_spill] sm:$0xff] %v12528_v56  ;;  %v4176_v34 = vmul.f32 1.442695, %v4165_v35  ;;  %v4178_v35 = vmul.f32 1.442695, %v4166_v14 }
 0x4dc   : > { %8446 = vpow2.f32 %v4172_v12  ;;  %v4168_v58 = vsub.f32 %v15243_v3, %v4149_v10 }
 0x4dd   : > { %8448 = vpow2.f32 %v4174_v6  ;;  %v4180_v6 = vmul.f32 1.442695, %v4167_v19  ;;  %v15247_v19 = vld [vmem:[#allocation278_spill] sm:$0xff] }
 0x4de   : > { %8450 = vpow2.f32 %v4176_v34  ;;  %v4182_v34 = vmul.f32 1.442695, %v4168_v58  ;;  %v15249_v58 = vld [vmem:[#allocation295_spill] sm:$0xff] }
 0x4df   : > { %3617 = vperm.xlu1 %8259, %v12512_v54  }
 0x4e3   : > { %3620 = vperm.xlu1 %8259, %v12520_v48   ;;  %v12530_v25 = vpop.eup %8440 }
 0x4e4   : > { %15235 = vst [vmem:[#allocation341_spill] sm:$0xff] %v12530_v25  ;;  %4216 = vperm.xlu0 %8264, %v12530_v25   ;;  %v12537_v41 = vpop.eup %8442  ;;  %v15255_v25 = vld [vmem:[#allocation197_spill] sm:$0xff] }
 0x4e5   : > { %15237 = vst [vmem:[#allocation290_spill] sm:$0xff] %v12537_v41  ;;  %v12545_v17 = vpop.eup %8444 }
 0x4e6   : > { %15240 = vst [vmem:[#allocation176_spill] sm:$0xff] %v12545_v17  ;;  %v12551_v38 = vpop.eup %8446 }
 0x4e7   : > { %3623 = vperm.xlu1 %8259, %v12528_v56   ;;  %15242 = vst [vmem:[#allocation143_spill] sm:$0xff] %v12551_v38  ;;  %v12555_v46 = vpop.eup %8448 }
 0x4e8   : > { %15244 = vst [vmem:[#allocation296_spill] sm:$0xff] %v12555_v46  ;;  %v12558_v23 = vpop.eup %8450 }
 0x4e9   : > { %15245 = vst [vmem:[#allocation85_spill] sm:$0xff] %v12558_v23 }
 0x4eb   : > { %3626 = vperm.xlu1 %8259, %v12537_v41  }
 0x4ef   : > { %4195 = vperm.xlu1 %8259, %v12545_v17  }
 0x4f2   : > { %v1015_v12 = vpop.xlane.xlu1 %1014 }
 0x4f3   : > { %8452 = vrcp.f32 %v1015_v12  ;;  %4198 = vperm.xlu1 %8259, %v12551_v38  }
 0x4f4   : > { %8454 = vpow2.f32 %v4178_v35 }
 0x4f5   : > { %8456 = vpow2.f32 %v4180_v6 }
 0x4f6   : > { %8458 = vpow2.f32 %v4182_v34 }
 0x4f7   : > { %4201 = vperm.xlu1 %8259, %v12555_v46   ;;  %8460 = vtanh.f32 %v15255_v25 }
 0x4fb   : > { %4204 = vperm.xlu1 %8259, %v12558_v23  }
 0x4fd   : > { %v8453_v15 = vpop.eup %8452 }
 0x4fe   : > { %v1021_v32 = vrot.slane %v8453_v15, %v15044_v20  ;;  %v1025_v3 = vrot.slane %v8453_v15, %v15051_v57  ;;  %v12564_v14 = vpop.eup %8454  ;;  %v1029_v10 = vrot.slane %v8453_v15, %v15053_v60 }
 0x4ff   : > { %15246 = vst [vmem:[#allocation297_spill] sm:$0xff] %v12564_v14  ;;  %4207 = vperm.xlu1 %8259, %v12564_v14   ;;  %v12569_v35 = vpop.eup %8456 }
 0x500   : > { %v1058_v63 = vmul.f32 %v12092_v21, %v1021_v32  ;;  %v1059_v12 = vmul.f32 %v15247_v19, %v1025_v3  ;;  %15248 = vst [vmem:[#allocation226_spill] sm:$0xff] %v12569_v35  ;;  %v1060_v6 = vmul.f32 %v15249_v58, %v1029_v10  ;;  %v1033_v21 = vrot.slane %v8453_v15, %v15062_v2  ;;  %v12574_v34 = vpop.eup %8458  ;;  %v15251_v32 = vld [vmem:[#allocation74_spill] sm:$0xff]  ;;  %v15254_v58 = vld [vmem:[#allocation212_spill] sm:$0xff] }
 0x501   : > { %15250 = vst [vmem:[#allocation144_spill] sm:$0xff] %v12574_v34  ;;  %v1037_v3 = vrot.slane %v8453_v15, %v15151_v50  ;;  %v15252_v19 = vld [vmem:[#allocation114_spill] sm:$0xff]  ;;  %v1045_v10 = vrot.slane %v8453_v15, %v15154_v43 }
 0x502   : > { %1068 = vperm.xlu0 %8264, %v1058_v63   ;;  %v1061_v63 = vmul.f32 %v15251_v32, %v1033_v21  ;;  %v15256_v21 = vld [vmem:[#allocation133_spill] sm:$0xff] }
 0x503   : > { %4210 = vperm.xlu1 %8259, %v12569_v35   ;;  %v1062_v45 = vmul.f32 %v15252_v19, %v1037_v3  ;;  %v1064_v62 = vmul.f32 %v15254_v58, %v1045_v10  ;;  %v12588_v3 = vpop.eup %8460  ;;  %v15262_v58 = vld [vmem:[#allocation130_spill] sm:$0xff] }
 0x504   : > { %15258 = vst [vmem:[#allocation120_spill] sm:$0xff] %v12588_v3 }
 0x506   : > { %1073 = vperm.xlu0 %8264, %v1059_v12   ;;  %v1041_v12 = vrot.slane %v8453_v15, %v15152_v47 }
 0x507   : > { %4213 = vperm.xlu1 %8259, %v12574_v34  }
 0x508   : > { %v1063_v0 = vmul.f32 %v15253_v18, %v1041_v12  ;;  %v6937_v18 = vmul.f32 %v12588_v3, %v15183_v53  ;;  %v15261_v12 = vld [vmem:[#allocation208_spill] sm:$0xff] }
 0x50a   : > { %1078 = vperm.xlu0 %8264, %v1060_v6   ;;  %v1049_v6 = vrot.slane %v8453_v15, %v15155_v55 }
 0x50c   : > { %v1065_v32 = vmul.f32 %v15256_v21, %v1049_v6 }
 0x50e   : > { %1083 = vperm.xlu0 %8264, %v1061_v63   ;;  %v15257_v63 = vld [vmem:[#allocation329_spill] sm:$0xff] }
 0x50f   : > { %8462 = vtanh.f32 %v15257_v63  ;;  %v15264_v63 = vld [vmem:[#allocation211_spill] sm:$0xff] }
 0x512   : > { %1088 = vperm.xlu0 %8264, %v1062_v45   ;;  %v4707_v45 = vpop.xlane.xlu0 %4706 }
 0x513   : > { %v4712_v15 = vrot.slane %v4707_v45, %v15044_v20  ;;  %v4716_v10 = vrot.slane %v4707_v45, %v15051_v57 }
 0x515   : > { %v4749_v6 = vsub.f32 %v15262_v58, %v4712_v15 }
 0x516   : > { %1093 = vperm.xlu0 %8264, %v1063_v0   ;;  %v15260_v0 = vld [vmem:[#allocation280_spill] sm:$0xff] }
 0x517   : > { %8464 = vtanh.f32 %v15260_v0  ;;  %v4750_v0 = vsub.f32 %v15264_v63, %v4716_v10  ;;  %v4728_v10 = vrot.slane %v4707_v45, %v15151_v50 }
 0x518   : > { %8466 = vtanh.f32 %v15261_v12  ;;  %v15266_v12 = vld [vmem:[#allocation218_spill] sm:$0xff] }
 0x519   : > { %v12592_v19 = vpop.eup %8462  ;;  %v4759_v15 = vmul.f32 1.442695, %v4750_v0  ;;  %v4740_v0 = vrot.slane %v4707_v45, %v15155_v55 }
 0x51a   : > { %1098 = vperm.xlu0 %8264, %v1064_v62   ;;  %15259 = vst [vmem:[#allocation291_spill] sm:$0xff] %v12592_v19  ;;  %v6955_v62 = vsel %vm465_vm1, %v6937_v18, 0.0  ;;  %v6939_v25 = vmul.f32 %v12592_v19, %v11512_v28  ;;  %v4757_v18 = vmul.f32 1.442695, %v4749_v6  ;;  %v15267_v6 = vld [vmem:[#allocation315_spill] sm:$0xff] }
 0x51c   : > { %v6961_v53 = vsel %vm465_vm1, %v6939_v25, 0.0  ;;  %8468 = vpow2.f32 %v4757_v18  ;;  %v15268_v18 = vld [vmem:[#allocation238_spill] sm:$0xff] }
 0x51d   : > { %8470 = vpow2.f32 %v4759_v15  ;;  %v4736_v15 = vrot.slane %v4707_v45, %v15154_v43 }
 0x51e   : > { %1103 = vperm.xlu0 %8264, %v1065_v32   ;;  %v4720_v32 = vrot.slane %v4707_v45, %v15053_v60 }
 0x520   : > { %v4751_v34 = vsub.f32 %v15266_v12, %v4720_v32 }
 0x521   : > { %v12603_v21 = vpop.eup %8464 }
 0x522   : > { %15263 = vst [vmem:[#allocation249_spill] sm:$0xff] %v12603_v21  ;;  %v6352_v19 = vmul.f32 %v12603_v21, %v11512_v28  ;;  %v12609_v3 = vpop.eup %8466  ;;  %v4761_v28 = vmul.f32 1.442695, %v4751_v34  ;;  %v4732_v21 = vrot.slane %v4707_v45, %v15152_v47 }
 0x523   : > { %15265 = vst [vmem:[#allocation177_spill] sm:$0xff] %v12609_v3 }
 0x524   : > { %v6374_v58 = vsel %vm465_vm1, %v6352_v19, 0.0  ;;  %v4753_v19 = vsub.f32 %v15268_v18, %v4728_v10  ;;  %8472 = vpow2.f32 %v4761_v28 }
 0x52b   : > { %6956 = vadd.xlane.f32.xlu1 %v6955_v62  ;;  %v4724_v62 = vrot.slane %v4707_v45, %v15062_v2 }
 0x52d   : > { %v4752_v63 = vsub.f32 %v15267_v6, %v4724_v62  ;;  %v15271_v62 = vld [vmem:[#allocation131_spill] sm:$0xff] }
 0x52e   : > { %v4754_v34 = vsub.f32 %v15271_v62, %v4732_v21 }
 0x52f   : > { %6962 = vadd.xlane.f32.xlu1 %v6961_v53  ;;  %v6938_v53 = vmul.f32 %v12609_v3, %v15188_v1  ;;  %v4763_v12 = vmul.f32 1.442695, %v4752_v63  ;;  %v12626_v1 = vpop.permute.xlu0 %5003  ;;  %v12628_v3 = vpop.eup %8468 }
 0x530   : > { %15269 = vst [vmem:[#allocation145_spill] sm:$0xff] %v12626_v1  ;;  %15270 = vst [vmem:[#allocation325_spill] sm:$0xff] %v12628_v3  ;;  %v12638_v63 = vpop.eup %8470  ;;  %v4767_v28 = vmul.f32 1.442695, %v4754_v34 }
 0x531   : > { %v6958_v32 = vsel %vm465_vm1, %v6938_v53, 0.0  ;;  %8474 = vpow2.f32 %v4763_v12  ;;  %v4765_v53 = vmul.f32 1.442695, %v4753_v19  ;;  %15273 = vst [vmem:[#allocation227_spill] sm:$0xff] %v12638_v63  ;;  %v12642_v62 = vpop.eup %8472 }
 0x532   : > { %v12613_v25 = vpop.permute.xlu1 %3020  ;;  %15275 = vst [vmem:[#allocation228_spill] sm:$0xff] %v12642_v62 }
 0x533   : > { %v12634_v23 = vpop.xlane.xlu0 %5183  ;;  %8476 = vpow2.f32 %v4765_v53 }
 0x534   : > { %8478 = vpow2.f32 %v4767_v28 }
 0x536   : > { %v12621_v35 = vpop.permute.xlu1 %3023 }
 0x537   : > { %v12644_v45 = vpop.xlane.xlu0 %5186 }
 0x53a   : > { %v12636_v10 = vpop.permute.xlu1 %3026 }
 0x53b   : > { %v12649_v12 = vpop.eup %8474  ;;  %v12652_v34 = vpop.xlane.xlu0 %5767 }
 0x53c   : > { %15276 = vst [vmem:[#allocation146_spill] sm:$0xff] %v12649_v12 }
 0x53d   : > { %6375 = vadd.xlane.f32.xlu0 %v6374_v58  ;;  %v15272_v58 = vld [vmem:[#allocation132_spill] sm:$0xff] }
 0x53e   : > { %v4756_v6 = vsub.f32 %v15272_v58, %v4740_v0  ;;  %v12646_v0 = vpop.permute.xlu1 %3029  ;;  %v12656_v58 = vpop.eup %8476 }
 0x53f   : > { %15277 = vst [vmem:[#allocation89_spill] sm:$0xff] %v12656_v58  ;;  %v12663_v28 = vpop.xlane.xlu0 %5192 }
 0x540   : > { %4782 = vperm.xlu1 %8259, %v12628_v3   ;;  %v4771_v21 = vmul.f32 1.442695, %v4756_v6  ;;  %v12659_v6 = vpop.eup %8478 }
 0x541   : > { %6959 = vadd.xlane.f32.xlu0 %v6958_v32  ;;  %v15274_v32 = vld [vmem:[#allocation272_spill] sm:$0xff]  ;;  %15278 = vst [vmem:[#allocation170_spill] sm:$0xff] %v12659_v6 }
 0x542   : > { %v4755_v18 = vsub.f32 %v15274_v32, %v4736_v15  ;;  %8480 = vpow2.f32 %v4771_v21  ;;  %v12654_v15 = vpop.permute.xlu1 %3032 }
 0x544   : > { %4785 = vperm.xlu1 %8259, %v12638_v63   ;;  %v4769_v19 = vmul.f32 1.442695, %v4755_v18  ;;  %v8565_v18 = vld [vmem:[%s13929_s10] sm:$0xff] }
 0x545   : > { %v5206_v21 = vrot.slane %v8565_v18, %v15151_v50  ;;  %v5793_v1 = vrot.slane %v8565_v18, %v15152_v47  ;;  %v6967_v3 = vrot.slane %v8565_v18, %v15155_v55 }
 0x546   : > { %8482 = vpow2.f32 %v4769_v19  ;;  %v12665_v32 = vpop.permute.xlu1 %3035 }
 0x548   : > { %4788 = vperm.xlu1 %8259, %v12642_v62  }
 0x54a   : > { %v12679_v62 = vpop.permute.xlu1 %3038 }
 0x54c   : > { %4791 = vperm.xlu1 %8259, %v12649_v12   ;;  %v12661_v53 = vpop.eup %8480  ;;  %v12677_v12 = vpop.xlane.xlu0 %5195 }
 0x54d   : > { %15279 = vst [vmem:[#allocation346_spill] sm:$0xff] %v12661_v53 }
 0x54e   : > { %v12684_v63 = vpop.permute.xlu1 %3041 }
 0x550   : > { %4794 = vperm.xlu1 %8259, %v12656_v58   ;;  %v12673_v19 = vpop.eup %8482 }
 0x551   : > { %15280 = vst [vmem:[#allocation293_spill] sm:$0xff] %v12673_v19 }
 0x554   : > { %4797 = vperm.xlu1 %8259, %v12659_v6   ;;  %v12682_v6 = vpop.xlane.xlu0 %6354 }
 0x557   : > { %4803 = vperm.xlu0 %8264, %v12661_v53   ;;  %v6380_v53 = vrot.slane %v8565_v18, %v15154_v43 }
 0x558   : > { %4800 = vperm.xlu1 %8259, %v12673_v19   ;;  %v12687_v58 = vpop.xlane.xlu0 %5198 }
 0x55b   : > { %5209 = vbcast.lane.b32.xlu0 %v5206_v21, 256  ;;  %v12689_v21 = vpop.permute.xlu1 %3608 }
 0x55c   : > { %5796 = vbcast.lane.b32.xlu1 %v5793_v1, 256  ;;  %v12691_v19 = vpop.xlane.xlu0 %6360 }
 0x55f   : > { %v12693_v46 = vpop.permute.xlu1 %3611 }
 0x560   : > { %6383 = vbcast.lane.b32.xlu1 %v6380_v53, 256  ;;  %v12695_v14 = vpop.xlane.xlu0 %5782 }
 0x563   : > { %v12697_v1 = vpop.permute.xlu1 %3614 }
 0x564   : > { %6970 = vbcast.lane.b32.xlu1 %v6967_v3, 256  ;;  %v12699_v38 = vpop.xlane.xlu0 %6941 }
 0x567   : > { %v12701_v48 = vpop.permute.xlu1 %3617 }
 0x568   : > { %v12703_v53 = vpop.xlane.xlu0 %5785 }
 0x56b   : > { %v12705_v18 = vpop.permute.xlu1 %3620 }
 0x56c   : > { %v12707_v3 = vpop.xlane.xlu0 %6947 }
 0x56f   : > { %v12709_v17 = vpop.permute.xlu1 %3623 }
 0x570   : > { %v12711_v39 = vpop.xlane.xlu0 %6369 }
 0x571   : > { %15281 = vst [vmem:[#allocation147_spill] sm:$0xff] %v12711_v39 }
 0x573   : > { %v12713_v5 = vpop.permute.xlu1 %3626 }
 0x574   : > { %v12715_v9 = vpop.xlane.xlu0 %6372 }
 0x575   : > { %15282 = vst [vmem:[#allocation251_spill] sm:$0xff] %v12715_v9 }
 0x577   : > { %v12717_v55 = vpop.permute.xlu1 %4195 }
 0x578   : > { %v12719_v41 = vpop.permute.xlu0 %3629 }
 0x57b   : > { %v12721_v30 = vpop.permute.xlu1 %4198 }
 0x57c   : > { %v12723_v43 = vpop.permute.xlu0 %4216 }
 0x57f   : > { %v12727_v24 = vpop.permute.xlu1 %4201 }
 0x581   : > { %v12725_v56 = vpop.permute.xlu0 %1068 }
 0x582   : > { %15283 = vst [vmem:[#allocation178_spill] sm:$0xff] %v12725_v56 }
 0x583   : > { %v12731_v54 = vpop.permute.xlu1 %4204 }
 0x585   : > { %v12729_v47 = vpop.permute.xlu0 %1073 }
 0x586   : > { %15284 = vst [vmem:[#allocation164_spill] sm:$0xff] %v12729_v47 }
 0x587   : > { %v12735_v26 = vpop.permute.xlu1 %4207 }
 0x589   : > { %v12733_v50 = vpop.permute.xlu0 %1078 }
 0x58a   : > { %15285 = vst [vmem:[#allocation306_spill] sm:$0xff] %v12733_v50 }
 0x58b   : > { %v12739_v11 = vpop.permute.xlu1 %4210 }
 0x58d   : > { %v12737_v42 = vpop.permute.xlu0 %1083 }
 0x58e   : > { %15286 = vst [vmem:[#allocation298_spill] sm:$0xff] %v12737_v42 }
 0x58f   : > { %v12743_v7 = vpop.permute.xlu1 %4213 }
 0x591   : > { %v12741_v16 = vpop.permute.xlu0 %1088 }
 0x592   : > { %15287 = vst [vmem:[#allocation326_spill] sm:$0xff] %v12741_v16 }
 0x595   : > { %v12747_v56 = vpop.permute.xlu0 %1093 }
 0x596   : > { %15289 = vst [vmem:[#allocation229_spill] sm:$0xff] %v12747_v56 }
 0x599   : > { %v12751_v47 = vpop.permute.xlu0 %1098 }
 0x59a   : > { %15291 = vst [vmem:[#allocation66_spill] sm:$0xff] %v12751_v47 }
 0x59d   : > { %v12757_v60 = vpop.permute.xlu0 %1103 }
 0x59e   : > { %15292 = vst [vmem:[#allocation252_spill] sm:$0xff] %v12757_v60 }
 0x5b8   : > { %v12745_v49 = vpop.xlane.xlu1 %6956 }
 0x5b9   : > { %15288 = vst [vmem:[#allocation148_spill] sm:$0xff] %v12745_v49 }
 0x5bc   : > { %v12749_v61 = vpop.xlane.xlu1 %6962 }
 0x5bd   : > { %15290 = vst [vmem:[#allocation179_spill] sm:$0xff] %v12749_v61 }
 0x5c0   : > { %v12753_v2 = vpop.permute.xlu1 %4782 }
 0x5c4   : > { %v12755_v50 = vpop.permute.xlu1 %4785 }
 0x5c8   : > { %v12759_v42 = vpop.permute.xlu1 %4788 }
 0x5ca   : > { %v12761_v57 = vpop.xlane.xlu0 %6375 }
 0x5cb   : > { %15293 = vst [vmem:[#allocation348_spill] sm:$0xff] %v12761_v57 }
 0x5cc   : > { %v12763_v16 = vpop.permute.xlu1 %4791 }
 0x5ce   : > { %v12765_v20 = vpop.xlane.xlu0 %6959 }
 0x5cf   : > { %15294 = vst [vmem:[#allocation294_spill] sm:$0xff] %v12765_v20 }
 0x5d0   : > { %v12767_v9 = vpop.permute.xlu1 %4794 }
 0x5d4   : > { %v12771_v61 = vpop.permute.xlu1 %4797 }
 0x5d6   : > { %v12769_v56 = vpop.permute.xlu0 %4803 }
 0x5d8   : > { %v12779_v39 = vpop.permute.xlu1 %4800 }
 0x5da   : > { %v5210_v47 = vpop.permute.xlu0 %5209 }
 0x5db   : > { %v12774_v49 = vadd.f32 %v5210_v47, %v12634_v23  ;;  %v12777_v60 = vadd.f32 %v5210_v47, %v12383_v4  ;;  %v12784_v20 = vadd.f32 %v5210_v47, %v12644_v45  ;;  %v12787_v57 = vadd.f32 %v5210_v47, %v12397_v33 }
 0x5dc   : > { %v5797_v37 = vpop.permute.xlu1 %5796  ;;  %v12800_v45 = vadd.f32 %v5210_v47, %v12663_v28 }
 0x5dd   : > { %5232 = vperm.xlu1 %8259, %v12774_v49   ;;  %5229 = vperm.xlu0 %8264, %v12777_v60   ;;  %15295 = vst [vmem:[#allocation261_spill] sm:$0xff] %v12787_v57  ;;  %v12792_v23 = vadd.f32 %v5797_v37, %v12652_v34  ;;  %v12795_v4 = vadd.f32 %v5797_v37, %v12409_v59 }
 0x5de   : > { %v12803_v33 = vadd.f32 %v5797_v37, %v12421_v31  ;;  %v12808_v34 = vadd.f32 %v5210_v47, %v12677_v12  ;;  %v12811_v59 = vadd.f32 %v5797_v37, %v12431_v13  ;;  %v12828_v13 = vadd.f32 %v5210_v47, %v12687_v58 }
 0x5df   : > { %v12831_v12 = vadd.f32 %v5797_v37, %v12452_v40  ;;  %v12845_v58 = vadd.f32 %v5797_v37, %v12695_v14 }
 0x5e1   : > { %5235 = vperm.xlu1 %8259, %v12784_v20   ;;  %5238 = vperm.xlu0 %8264, %v12787_v57   ;;  %v12813_v57 = vpop.permute.xlu1 %6383 }
 0x5e2   : > { %v12819_v31 = vadd.f32 %v12813_v57, %v12682_v6  ;;  %v12823_v28 = vadd.f32 %v12813_v57, %v12440_v51  ;;  %v12837_v6 = vadd.f32 %v12813_v57, %v12691_v19  ;;  %v12840_v51 = vadd.f32 %v5210_v47, %v12465_v29 }
 0x5e3   : > { %v12849_v40 = vadd.f32 %v12813_v57, %v12477_v27  ;;  %v12866_v27 = vadd.f32 %v5797_v37, %v12703_v53  ;;  %v12870_v14 = vadd.f32 %v12813_v57, %v12504_v22  ;;  %v3050_v19 = vrot.slane %v12621_v35, %v11807_v52 }
 0x5e4   : > { %15296 = vst [vmem:[#allocation149_spill] sm:$0xff] %v12823_v28  ;;  %v3054_v22 = vrot.slane %v12636_v10, %v11807_v52  ;;  %v3046_v53 = vrot.slane %v12613_v25, %v11807_v52  ;;  %v3066_v35 = vrot.slane %v12665_v32, %v11807_v52  ;;  %v3642_v10 = vrot.slane %v12697_v1, %v11807_v52 }
 0x5e5   : > { %5816 = vperm.xlu1 %8259, %v12792_v23   ;;  %5819 = vperm.xlu0 %8264, %v12795_v4   ;;  %15297 = vst [vmem:[#allocation231_spill] sm:$0xff] %v12870_v14  ;;  %v3070_v25 = vrot.slane %v12679_v62, %v11807_v52  ;;  %v3650_v32 = vrot.slane %v12705_v18, %v11807_v52 }
 0x5e6   : > { %v3654_v62 = vrot.slane %v12709_v17, %v11807_v52  ;;  %v4229_v18 = vrot.slane %v12727_v24, %v11807_v52  ;;  %v4233_v17 = vrot.slane %v12731_v54, %v11807_v52  ;;  %v4812_v54 = vrot.slane %v12755_v50, %v11807_v52 }
 0x5e9   : > { %5241 = vperm.xlu1 %8259, %v12800_v45   ;;  %5822 = vperm.xlu0 %8264, %v12803_v33  }
 0x5ed   : > { %5244 = vperm.xlu1 %8259, %v12808_v34   ;;  %5825 = vperm.xlu0 %8264, %v12811_v59  }
 0x5f1   : > { %6403 = vperm.xlu1 %8259, %v12819_v31   ;;  %6406 = vperm.xlu0 %8264, %v12823_v28   ;;  %v12851_v28 = vpop.permute.xlu1 %6970 }
 0x5f2   : > { %v12857_v47 = vadd.f32 %v12851_v28, %v12699_v38  ;;  %v12861_v29 = vadd.f32 %v12851_v28, %v12491_v8  ;;  %v12876_v38 = vadd.f32 %v12851_v28, %v12707_v3  ;;  %v12879_v8 = vadd.f32 %v5797_v37, %v12514_v44 }
 0x5f3   : > { %v3058_v3 = vrot.slane %v12646_v0, %v11807_v52  ;;  %v3062_v44 = vrot.slane %v12654_v15, %v11807_v52  ;;  %v3638_v37 = vrot.slane %v12693_v46, %v11807_v52  ;;  %v3634_v0 = vrot.slane %v12689_v21, %v11807_v52 }
 0x5f4   : > { %15298 = vst [vmem:[#allocation299_spill] sm:$0xff] %v12879_v8  ;;  %v3646_v15 = vrot.slane %v12701_v48, %v11807_v52  ;;  %v4225_v21 = vrot.slane %v12721_v30, %v11807_v52 }
 0x5f5   : > { %5247 = vperm.xlu1 %8259, %v12828_v13   ;;  %5828 = vperm.xlu0 %8264, %v12831_v12  }
 0x5f9   : > { %6409 = vperm.xlu1 %8259, %v12837_v6   ;;  %5250 = vperm.xlu0 %8264, %v12840_v51  }
 0x5fd   : > { %5831 = vperm.xlu1 %8259, %v12845_v58   ;;  %6412 = vperm.xlu0 %8264, %v12849_v40  }
 0x601   : > { %6990 = vperm.xlu1 %8259, %v12857_v47   ;;  %6993 = vperm.xlu0 %8264, %v12861_v29  }
 0x605   : > { %5834 = vperm.xlu1 %8259, %v12866_v27   ;;  %6415 = vperm.xlu0 %8264, %v12870_v14  }
 0x609   : > { %6996 = vperm.xlu1 %8259, %v12876_v38   ;;  %5837 = vperm.xlu0 %8264, %v12879_v8   ;;  %v3075_v8 = vsel %vm608_vm2, %v3050_v19, %v3046_v53  ;;  %v3074_v19 = vrot.slane %v12684_v63, %v11807_v52  ;;  %v3658_v63 = vrot.slane %v12713_v5, %v11807_v52 }
 0x60a   : > { %v3076_v14 = vsel %vm611_vm3, %v3054_v22, %v3075_v8  ;;  %v3663_v8 = vsel %vm608_vm2, %v3638_v37, %v3634_v0  ;;  %v4221_v53 = vrot.slane %v12717_v55, %v11807_v52  ;;  %v4237_v5 = vrot.slane %v12735_v26, %v11807_v52 }
 0x60b   : > { %v3077_v46 = vsel %vm614_vm4, %v3058_v3, %v3076_v14  ;;  %v3664_v14 = vsel %vm611_vm3, %v3642_v10, %v3663_v8  ;;  %v3662_v3 = vrot.slane %v12719_v41, %v11807_v52  ;;  %v4241_v55 = vrot.slane %v12739_v11, %v11807_v52 }
 0x60c   : > { %v3078_v1 = vsel %vm617_vm5, %v3062_v44, %v3077_v46  ;;  %v3665_v22 = vsel %vm614_vm4, %v3646_v15, %v3664_v14  ;;  %v4245_v41 = vrot.slane %v12743_v7, %v11807_v52  ;;  %v4816_v26 = vrot.slane %v12759_v42, %v11807_v52 }
 0x60d   : > { %v3079_v48 = vsel %vm620_vm6, %v3066_v35, %v3078_v1  ;;  %v3666_v44 = vsel %vm617_vm5, %v3650_v32, %v3665_v22  ;;  %v4250_v35 = vsel %vm608_vm2, %v4225_v21, %v4221_v53  ;;  %v4808_v15 = vrot.slane %v12753_v2, %v11807_v52 }
 0x60e   : > { %v3080_v30 = vsel %vm623_vm7, %v3070_v25, %v3079_v48  ;;  %v3667_v37 = vsel %vm620_vm6, %v3654_v62, %v3666_v44  ;;  %v4251_v10 = vsel %vm611_vm3, %v4229_v18, %v4250_v35  ;;  %v4820_v11 = vrot.slane %v12763_v16, %v11807_v52  ;;  %v15301_v44 = vld [vmem:[#allocation148_spill] sm:$0xff] }
 0x60f   : > { %v3081_v24 = vsel %vm625_vm8, %v3074_v19, %v3080_v30  ;;  %v3668_v25 = vsel %vm623_vm7, %v3658_v63, %v3667_v37  ;;  %v4252_v0 = vsel %vm614_vm4, %v4233_v17, %v4251_v10  ;;  %v4824_v7 = vrot.slane %v12767_v9, %v11807_v52  ;;  %v15299_v17 = vld [vmem:[#allocation345_spill] sm:$0xff]  ;;  %v15303_v37 = vld [vmem:[#allocation179_spill] sm:$0xff]  ;;  %v15305_v10 = vld [vmem:[#allocation294_spill] sm:$0xff] }
 0x610   : > { %v3083_v50 = vsel %vm872_vm10, %v3081_v24, 0.0  ;;  %v4253_v46 = vsel %vm617_vm5, %v4237_v5, %v4252_v0  ;;  %v4837_v19 = vsel %vm608_vm2, %v4812_v54, %v4808_v15  ;;  %v4828_v32 = vrot.slane %v12771_v61, %v11807_v52 }
 0x611   : > { %v4254_v42 = vsel %vm620_vm6, %v4241_v55, %v4253_v46  ;;  %v3669_v2 = vsel %vm625_vm8, %v3662_v3, %v3668_v25  ;;  %v4838_v1 = vsel %vm611_vm3, %v4816_v26, %v4837_v19  ;;  %v4832_v16 = vrot.slane %v12779_v39, %v11807_v52  ;;  %v15304_v55 = vld [vmem:[#allocation348_spill] sm:$0xff] }
 0x612   : > { %v4255_v8 = vsel %vm623_vm7, %v4245_v41, %v4254_v42  ;;  %v4249_v9 = vrot.slane %v12723_v43, %v11807_v52  ;;  %v4839_v62 = vsel %vm614_vm4, %v4820_v11, %v4838_v1  ;;  %v3671_v48 = vsel %vm872_vm10, %v3669_v2, 0.0 }
 0x613   : > { %v4840_v21 = vsel %vm617_vm5, %v4824_v7, %v4839_v62  ;;  %v4836_v39 = vrot.slane %v12769_v56, %v11807_v52  ;;  %v12981_v53 = vadd.f32 %v12851_v28, %v12526_v36  ;;  %v12986_v30 = vadd.f32 %v12851_v28, %v15299_v17  ;;  %v15300_v56 = vld [vmem:[#allocation147_spill] sm:$0xff] }
 0x614   : > { %v4841_v61 = vsel %vm620_vm6, %v4828_v32, %v4840_v21  ;;  %v4256_v14 = vsel %vm625_vm8, %v4249_v9, %v4255_v8  ;;  %v12991_v3 = vadd.f32 %v12813_v57, %v15300_v56  ;;  %v12995_v5 = vadd.f32 %v12851_v28, %v15301_v44  ;;  %v15302_v36 = vld [vmem:[#allocation251_spill] sm:$0xff] }
 0x615   : > { %v4842_v63 = vsel %vm623_vm7, %v4832_v16, %v4841_v61  ;;  %v4258_v18 = vsel %vm872_vm10, %v4256_v14, 0.0  ;;  %v13001_v24 = vadd.f32 %v12813_v57, %v15302_v36  ;;  %v13005_v35 = vadd.f32 %v12851_v28, %v15303_v37 }
 0x616   : > { %v4843_v43 = vsel %vm625_vm8, %v4836_v39, %v4842_v63  ;;  %v13011_v54 = vadd.f32 %v12813_v57, %v15304_v55  ;;  %v13016_v41 = vadd.f32 %v12851_v28, %v15305_v10 }
 0x617   : > { %v4845_v22 = vsel %vm872_vm10, %v4843_v43, 0.0 }
 0x628   : > { %3084 = vadd.xlane.f32.xlu0 %v3083_v50 }
 0x62d   : > { %3672 = vadd.xlane.f32.xlu1 %v3671_v48 }
 0x631   : > { %4259 = vadd.xlane.f32.xlu1 %v4258_v18 }
 0x635   : > { %4846 = vadd.xlane.f32.xlu1 %v4845_v22 }
 0x63e   : > { %6999 = vperm.xlu0 %8264, %v12981_v53  }
 0x642   : > { %7002 = vperm.xlu0 %8264, %v12986_v30  }
 0x646   : > { %6418 = vperm.xlu1 %8259, %v12991_v3   ;;  %7005 = vperm.xlu0 %8264, %v12995_v5  }
 0x64a   : > { %6421 = vperm.xlu1 %8259, %v13001_v24   ;;  %7011 = vperm.xlu0 %8264, %v13005_v35  }
 0x64e   : > { %6424 = vperm.xlu1 %8259, %v13011_v54  }
 0x652   : > { %7008 = vperm.xlu1 %8259, %v13016_v41  }
 0x65c   : > { %v5233_v26 = vpop.permute.xlu1 %5232  ;;  %v5230_v25 = vpop.permute.xlu0 %5229 }
 0x65d   : > { %v5259_v57 = vrot.slane %v5233_v26, %v11807_v52  ;;  %v5255_v32 = vrot.slane %v5230_v25, %v11807_v52 }
 0x65f   : > { %v5284_v16 = vsel %vm608_vm2, %v5259_v57, %v5255_v32 }
 0x660   : > { %v5236_v0 = vpop.permute.xlu1 %5235  ;;  %v5239_v15 = vpop.permute.xlu0 %5238 }
 0x661   : > { %v5263_v2 = vrot.slane %v5236_v0, %v11807_v52  ;;  %v5267_v8 = vrot.slane %v5239_v15, %v11807_v52 }
 0x663   : > { %v5285_v9 = vsel %vm611_vm3, %v5263_v2, %v5284_v16 }
 0x664   : > { %v5817_v11 = vpop.permute.xlu1 %5816  ;;  %v5820_v50 = vpop.permute.xlu0 %5819  ;;  %v5286_v63 = vsel %vm614_vm4, %v5267_v8, %v5285_v9 }
 0x665   : > { %v5842_v25 = vrot.slane %v5817_v11, %v11807_v52  ;;  %v5846_v0 = vrot.slane %v5820_v50, %v11807_v52 }
 0x667   : > { %v5871_v2 = vsel %vm608_vm2, %v5846_v0, %v5842_v25 }
 0x668   : > { %v5242_v46 = vpop.permute.xlu1 %5241  ;;  %v5823_v7 = vpop.permute.xlu0 %5822 }
 0x669   : > { %v5271_v62 = vrot.slane %v5242_v46, %v11807_v52  ;;  %v5850_v15 = vrot.slane %v5823_v7, %v11807_v52 }
 0x66b   : > { %v5287_v39 = vsel %vm617_vm5, %v5271_v62, %v5286_v63  ;;  %v5872_v8 = vsel %vm611_vm3, %v5850_v15, %v5871_v2 }
 0x66c   : > { %v5245_v42 = vpop.permute.xlu1 %5244  ;;  %v5826_v19 = vpop.permute.xlu0 %5825 }
 0x66d   : > { %v5275_v61 = vrot.slane %v5245_v42, %v11807_v52  ;;  %v5854_v46 = vrot.slane %v5826_v19, %v11807_v52 }
 0x66f   : > { %v5288_v22 = vsel %vm620_vm6, %v5275_v61, %v5287_v39  ;;  %v5873_v11 = vsel %vm614_vm4, %v5854_v46, %v5872_v8 }
 0x670   : > { %v6404_v28 = vpop.permute.xlu1 %6403  ;;  %v6407_v1 = vpop.permute.xlu0 %6406 }
 0x674   : > { %v5248_v21 = vpop.permute.xlu1 %5247  ;;  %v5829_v48 = vpop.permute.xlu0 %5828 }
 0x675   : > { %v5279_v14 = vrot.slane %v5248_v21, %v11807_v52  ;;  %v5858_v42 = vrot.slane %v5829_v48, %v11807_v52 }
 0x677   : > { %v5289_v56 = vsel %vm623_vm7, %v5279_v14, %v5288_v22  ;;  %v5874_v50 = vsel %vm617_vm5, %v5858_v42, %v5873_v11 }
 0x678   : > { %v6410_v18 = vpop.permute.xlu1 %6409  ;;  %v5251_v43 = vpop.permute.xlu0 %5250 }
 0x679   : > { %v5283_v17 = vrot.slane %v5251_v43, %v11807_v52  ;;  %v6437_v25 = vrot.slane %v6410_v18, %v11807_v52 }
 0x67b   : > { %v5290_v44 = vsel %vm625_vm8, %v5283_v17, %v5289_v56 }
 0x67c   : > { %v5832_v36 = vpop.permute.xlu1 %5831  ;;  %v6413_v37 = vpop.permute.xlu0 %6412  ;;  %v5292_v55 = vsel %vm872_vm10, %v5290_v44, -inf }
 0x67d   : > { %5293 = vmax.xlane.f32.xlu1 %v5292_v55  ;;  %v5862_v16 = vrot.slane %v5832_v36, %v11807_v52  ;;  %v6429_v36 = vrot.slane %v6404_v28, %v11807_v52  ;;  %v6433_v55 = vrot.slane %v6407_v1, %v11807_v52  ;;  %v6441_v0 = vrot.slane %v6413_v37, %v11807_v52 }
 0x67f   : > { %v5875_v7 = vsel %vm620_vm6, %v5862_v16, %v5874_v50  ;;  %v6458_v42 = vsel %vm608_vm2, %v6433_v55, %v6429_v36 }
 0x680   : > { %v6991_v10 = vpop.permute.xlu1 %6990  ;;  %v6994_v26 = vpop.permute.xlu0 %6993  ;;  %v6459_v16 = vsel %vm611_vm3, %v6437_v25, %v6458_v42 }
 0x681   : > { %v7016_v8 = vrot.slane %v6991_v10, %v11807_v52  ;;  %v7020_v28 = vrot.slane %v6994_v26, %v11807_v52  ;;  %v6460_v18 = vsel %vm614_vm4, %v6441_v0, %v6459_v16  ;;  %v15307_v16 = vld [vmem:[#allocation18_spill] sm:$0xff] }
 0x683   : > { %v7045_v10 = vsel %vm608_vm2, %v7020_v28, %v7016_v8  ;;  %v15308_v28 = vld [vmem:[#allocation22_spill] sm:$0xff] }
 0x684   : > { %v5835_v57 = vpop.permute.xlu1 %5834  ;;  %v6416_v32 = vpop.permute.xlu0 %6415 }
 0x685   : > { %v5866_v9 = vrot.slane %v5835_v57, %v11807_v52  ;;  %v6445_v15 = vrot.slane %v6416_v32, %v11807_v52 }
 0x687   : > { %v5876_v21 = vsel %vm623_vm7, %v5866_v9, %v5875_v7  ;;  %v6461_v32 = vsel %vm617_vm5, %v6445_v15, %v6460_v18  ;;  %v15309_v18 = vld [vmem:[#allocation28_spill] sm:$0xff] }
 0x688   : > { %v5838_v62 = vpop.permute.xlu0 %5837  ;;  %v6997_v14 = vpop.permute.xlu1 %6996 }
 0x689   : > { %v5870_v19 = vrot.slane %v5838_v62, %v11807_v52  ;;  %v7024_v37 = vrot.slane %v6997_v14, %v11807_v52 }
 0x68b   : > { %v5877_v48 = vsel %vm625_vm8, %v5870_v19, %v5876_v21  ;;  %v7046_v21 = vsel %vm611_vm3, %v7024_v37, %v7045_v10 }
 0x68c   : > { %v5879_v61 = vsel %vm872_vm10, %v5877_v48, -inf }
 0x68d   : > { %5880 = vmax.xlane.f32.xlu0 %v5879_v61 }
 0x6b5   : > { %v3085_v39 = vpop.xlane.xlu0 %3084 }
 0x6b6   : > { %8484 = vrcp.f32 %v3085_v39  ;;  %v15311_v39 = vld [vmem:[#allocation135_spill] sm:$0xff] }
 0x6ba   : > { %v3673_v63 = vpop.xlane.xlu1 %3672 }
 0x6bb   : > { %8486 = vrcp.f32 %v3673_v63 }
 0x6bd   : > { %v7000_v22 = vpop.permute.xlu0 %6999 }
 0x6be   : > { %v13051_v43 = vpop.xlane.xlu1 %4259  ;;  %v7028_v9 = vrot.slane %v7000_v22, %v11807_v52 }
 0x6c0   : > { %v7047_v14 = vsel %vm614_vm4, %v7028_v9, %v7046_v21  ;;  %v13101_v21 = vpop.eup %8484 }
 0x6c1   : > { %v7003_v56 = vpop.permute.xlu0 %7002 }
 0x6c2   : > { %v13053_v17 = vpop.xlane.xlu1 %4846  ;;  %v7032_v50 = vrot.slane %v7003_v56, %v11807_v52 }
 0x6c5   : > { %v7006_v57 = vpop.permute.xlu0 %7005 }
 0x6c6   : > { %v6419_v44 = vpop.permute.xlu1 %6418  ;;  %v7036_v26 = vrot.slane %v7006_v57, %v11807_v52  ;;  %v15306_v57 = vld [vmem:[#allocation19_spill] sm:$0xff] }
 0x6c7   : > { %v6449_v2 = vrot.slane %v6419_v44, %v11807_v52  ;;  %v7048_v44 = vsel %vm617_vm5, %v7032_v50, %v7047_v14 }
 0x6c8   : > { %v7049_v55 = vsel %vm620_vm6, %v7036_v26, %v7048_v44  ;;  %v15312_v44 = vld [vmem:[#allocation76_spill] sm:$0xff] }
 0x6c9   : > { %v6462_v62 = vsel %vm620_vm6, %v6449_v2, %v6461_v32  ;;  %v7012_v48 = vpop.permute.xlu0 %7011 }
 0x6ca   : > { %v6422_v46 = vpop.permute.xlu1 %6421  ;;  %v7044_v25 = vrot.slane %v7012_v48, %v11807_v52  ;;  %v13103_v48 = vpop.eup %8486 }
 0x6cb   : > { %v6453_v1 = vrot.slane %v6422_v46, %v11807_v52  ;;  %v3679_v14 = vrot.slane %v13103_v48, %v15306_v57 }
 0x6cd   : > { %v6463_v19 = vsel %vm623_vm7, %v6453_v1, %v6462_v62 }
 0x6ce   : > { %v6425_v11 = vpop.permute.xlu1 %6424 }
 0x6cf   : > { %v6457_v7 = vrot.slane %v6425_v11, %v11807_v52 }
 0x6d1   : > { %v6464_v61 = vsel %vm625_vm8, %v6457_v7, %v6463_v19  ;;  %v15310_v7 = vld [vmem:[#allocation261_spill] sm:$0xff] }
 0x6d2   : > { %v7009_v22 = vpop.permute.xlu1 %7008  ;;  %v6466_v56 = vsel %vm872_vm10, %v6464_v61, -inf }
 0x6d3   : > { %v7040_v36 = vrot.slane %v7009_v22, %v11807_v52  ;;  %6467 = vmax.xlane.f32.xlu0 %v6466_v56  ;;  %v3091_v22 = vrot.slane %v13101_v21, %v15306_v57 }
 0x6d5   : > { %v7050_v0 = vsel %vm623_vm7, %v7040_v36, %v7049_v55  ;;  %v3716_v36 = vmul.f32 %v15312_v44, %v3679_v14  ;;  %v3683_v55 = vrot.slane %v13103_v48, %v15307_v16  ;;  %v15321_v14 = vld [vmem:[#allocation317_spill] sm:$0xff] }
 0x6d6   : > { %v7051_v15 = vsel %vm625_vm8, %v7044_v25, %v7050_v0  ;;  %v15313_v25 = vld [vmem:[#allocation118_spill] sm:$0xff] }
 0x6d7   : > { %v7053_v46 = vsel %vm872_vm10, %v7051_v15, -inf  ;;  %v3128_v0 = vmul.f32 %v15313_v25, %v3091_v22  ;;  %v3099_v15 = vrot.slane %v13101_v21, %v15308_v28 }
 0x6d8   : > { %7054 = vmax.xlane.f32.xlu0 %v7053_v46  ;;  %v15314_v46 = vld [vmem:[#allocation72_spill] sm:$0xff] }
 0x70a   : > { %v13087_v42 = vpop.xlane.xlu1 %5293 }
 0x70b   : > { %v5299_v2 = vrot.slane %v13087_v42, %v15306_v57  ;;  %v5303_v8 = vrot.slane %v13087_v42, %v15307_v16  ;;  %v5307_v1 = vrot.slane %v13087_v42, %v15308_v28  ;;  %v5311_v37 = vrot.slane %v13087_v42, %v15309_v18 }
 0x70d   : > { %v5336_v32 = vsub.f32 %v12777_v60, %v5299_v2  ;;  %v5337_v9 = vsub.f32 %v12774_v49, %v5303_v8  ;;  %v5338_v11 = vsub.f32 %v12784_v20, %v5307_v1  ;;  %v5339_v10 = vsub.f32 %v15310_v7, %v5311_v37  ;;  %v15315_v1 = vld [vmem:[#allocation335_spill] sm:$0xff] }
 0x70e   : > { %v3095_v20 = vrot.slane %v13101_v21, %v15307_v16  ;;  %v3717_v2 = vmul.f32 %v15314_v46, %v3683_v55  ;;  %v3687_v8 = vrot.slane %v13103_v48, %v15308_v28  ;;  %v3130_v37 = vmul.f32 %v15315_v1, %v3099_v15  ;;  %v15324_v15 = vld [vmem:[#allocation175_spill] sm:$0xff] }
 0x70f   : > { %v5344_v50 = vmul.f32 1.442695, %v5336_v32  ;;  %v5346_v62 = vmul.f32 1.442695, %v5337_v9  ;;  %v5348_v26 = vmul.f32 1.442695, %v5338_v11  ;;  %v3103_v32 = vrot.slane %v13101_v21, %v15309_v18 }
 0x710   : > { %v5350_v19 = vmul.f32 1.442695, %v5339_v10  ;;  %v3129_v61 = vmul.f32 %v15311_v39, %v3095_v20  ;;  %v15316_v9 = vld [vmem:[#allocation223_spill] sm:$0xff]  ;;  %v15318_v10 = vld [vmem:[#allocation36_spill] sm:$0xff] }
 0x711   : > { %8488 = vpow2.f32 %v5344_v50  ;;  %v3718_v11 = vmul.f32 %v15316_v9, %v3687_v8  ;;  %v3691_v50 = vrot.slane %v13103_v48, %v15309_v18  ;;  %v15320_v39 = vld [vmem:[#allocation43_spill] sm:$0xff]  ;;  %v15325_v8 = vld [vmem:[#allocation290_spill] sm:$0xff] }
 0x712   : > { %8490 = vpow2.f32 %v5346_v62  ;;  %v15317_v62 = vld [vmem:[#allocation289_spill] sm:$0xff]  ;;  %v3111_v44 = vrot.slane %v13101_v21, %v15320_v39 }
 0x713   : > { %8492 = vpow2.f32 %v5348_v26  ;;  %v3131_v7 = vmul.f32 %v15317_v62, %v3103_v32  ;;  %v3107_v26 = vrot.slane %v13101_v21, %v15318_v10 }
 0x714   : > { %8494 = vpow2.f32 %v5350_v19  ;;  %v15319_v19 = vld [vmem:[#allocation224_spill] sm:$0xff]  ;;  %v3133_v46 = vmul.f32 %v15324_v15, %v3111_v44  ;;  %v3695_v44 = vrot.slane %v13103_v48, %v15318_v10 }
 0x715   : > { %8496 = vrcp.f32 %v13051_v43  ;;  %v3719_v20 = vmul.f32 %v15319_v19, %v3691_v50  ;;  %v3132_v22 = vmul.f32 %v15321_v14, %v3107_v26  ;;  %v15323_v43 = vld [vmem:[#allocation53_spill] sm:$0xff]  ;;  %v15327_v50 = vld [vmem:[#allocation246_spill] sm:$0xff]  ;;  %v15328_v26 = vld [vmem:[#allocation55_spill] sm:$0xff] }
 0x716   : > { %v3703_v25 = vrot.slane %v13103_v48, %v15323_v43  ;;  %8498 = vrcp.f32 %v13053_v17  ;;  %v15329_v17 = vld [vmem:[#allocation287_spill] sm:$0xff] }
 0x718   : > { %v3722_v1 = vmul.f32 %v15325_v8, %v3703_v25  ;;  %v5319_v25 = vrot.slane %v13087_v42, %v15320_v39 }
 0x71b   : > { %v13105_v60 = vpop.eup %8488 }
 0x71c   : > { %v13109_v49 = vpop.eup %8490  ;;  %5369 = vperm.xlu1 %8259, %v13105_v60  }
 0x71d   : > { %5372 = vperm.xlu0 %8264, %v13109_v49   ;;  %v13113_v63 = vpop.eup %8492 }
 0x71e   : > { %v13121_v56 = vpop.eup %8494 }
 0x71f   : > { %v8497_v9 = vpop.eup %8496 }
 0x720   : > { %5375 = vperm.xlu1 %8259, %v13113_v63   ;;  %v4282_v8 = vrot.slane %v8497_v9, %v15318_v10 }
 0x721   : > { %3143 = vperm.xlu0 %8264, %v3129_v61   ;;  %v3699_v61 = vrot.slane %v13103_v48, %v15320_v39 }
 0x724   : > { %5378 = vperm.xlu1 %8259, %v13121_v56  }
 0x725   : > { %3726 = vperm.xlu0 %8264, %v3716_v36   ;;  %v15322_v36 = vld [vmem:[#allocation119_spill] sm:$0xff] }
 0x726   : > { %v3721_v55 = vmul.f32 %v15322_v36, %v3699_v61  ;;  %v5315_v61 = vrot.slane %v13087_v42, %v15318_v10  ;;  %v15330_v36 = vld [vmem:[#allocation176_spill] sm:$0xff] }
 0x728   : > { %3138 = vperm.xlu1 %8259, %v3128_v0   ;;  %v13152_v0 = vpop.xlane.xlu0 %5880  ;;  %v5340_v15 = vsub.f32 %v12800_v45, %v5315_v61  ;;  %v4278_v61 = vrot.slane %v8497_v9, %v15309_v18 }
 0x729   : > { %3731 = vperm.xlu0 %8264, %v3717_v2   ;;  %v3115_v2 = vrot.slane %v13101_v21, %v15323_v43 }
 0x72b   : > { %v3134_v62 = vmul.f32 %v15327_v50, %v3115_v2  ;;  %v15331_v2 = vld [vmem:[#allocation213_spill] sm:$0xff]  ;;  %v5341_v50 = vsub.f32 %v12808_v34, %v5319_v25 }
 0x72c   : > { %3148 = vperm.xlu1 %8259, %v3130_v37   ;;  %v15326_v37 = vld [vmem:[#allocation58_spill] sm:$0xff] }
 0x72d   : > { %3736 = vperm.xlu0 %8264, %v3718_v11   ;;  %v3707_v32 = vrot.slane %v13103_v48, %v15326_v37  ;;  %v5886_v11 = vrot.slane %v13152_v0, %v15306_v57 }
 0x72f   : > { %v3723_v19 = vmul.f32 %v15328_v26, %v3707_v32  ;;  %v5923_v14 = vsub.f32 %v12792_v23, %v5886_v11  ;;  %v3720_v23 = vmul.f32 %v15331_v2, %v3695_v44  ;;  %v15332_v32 = vld [vmem:[#allocation143_spill] sm:$0xff]  ;;  %v4274_v11 = vrot.slane %v8497_v9, %v15308_v28  ;;  %v15336_v44 = vld [vmem:[#allocation85_spill] sm:$0xff]  ;;  %v15338_v2 = vld [vmem:[#allocation144_spill] sm:$0xff] }
 0x730   : > { %3153 = vperm.xlu1 %8259, %v3131_v7   ;;  %v3119_v7 = vrot.slane %v13101_v21, %v15326_v37  ;;  %v4270_v21 = vrot.slane %v8497_v9, %v15307_v16  ;;  %v4306_v34 = vmul.f32 %v15336_v44, %v4278_v61 }
 0x731   : > { %3741 = vperm.xlu0 %8264, %v3719_v20   ;;  %v4266_v20 = vrot.slane %v8497_v9, %v15306_v57 }
 0x732   : > { %v4304_v48 = vmul.f32 %v15332_v32, %v4270_v21  ;;  %v15337_v21 = vld [vmem:[#allocation226_spill] sm:$0xff] }
 0x734   : > { %3158 = vperm.xlu1 %8259, %v3132_v22   ;;  %v3135_v22 = vmul.f32 %v15329_v17, %v3119_v7  ;;  %v15333_v7 = vld [vmem:[#allocation297_spill] sm:$0xff] }
 0x735   : > { %3751 = vperm.xlu0 %8264, %v3721_v55   ;;  %v4303_v55 = vmul.f32 %v15330_v36, %v4266_v20  ;;  %v4307_v45 = vmul.f32 %v15333_v7, %v4282_v8  ;;  %v15335_v17 = vld [vmem:[#allocation89_spill] sm:$0xff]  ;;  %v4286_v36 = vrot.slane %v8497_v9, %v15320_v39  ;;  %v4294_v8 = vrot.slane %v8497_v9, %v15326_v37 }
 0x737   : > { %v4308_v25 = vmul.f32 %v15337_v21, %v4286_v36  ;;  %v15342_v21 = vld [vmem:[#allocation228_spill] sm:$0xff] }
 0x738   : > { %3163 = vperm.xlu1 %8259, %v3133_v46   ;;  %v5931_v46 = vmul.f32 1.442695, %v5923_v14  ;;  %v5354_v14 = vmul.f32 1.442695, %v5341_v50 }
 0x739   : > { %3756 = vperm.xlu0 %8264, %v3722_v1   ;;  %v13181_v1 = vpop.eup %8498 }
 0x73a   : > { %8500 = vpow2.f32 %v5931_v46  ;;  %v4869_v26 = vrot.slane %v13181_v1, %v15318_v10  ;;  %v4853_v50 = vrot.slane %v13181_v1, %v15306_v57 }
 0x73c   : > { %3168 = vperm.xlu1 %8259, %v3134_v62   ;;  %v5352_v62 = vmul.f32 1.442695, %v5340_v15  ;;  %v4290_v15 = vrot.slane %v8497_v9, %v15323_v43  ;;  %v5323_v9 = vrot.slane %v13087_v42, %v15323_v43 }
 0x73d   : > { %3761 = vperm.xlu0 %8264, %v3723_v19   ;;  %v15334_v19 = vld [vmem:[#allocation296_spill] sm:$0xff] }
 0x73e   : > { %v4305_v20 = vmul.f32 %v15334_v19, %v4274_v11  ;;  %8502 = vpow2.f32 %v5352_v62  ;;  %v15340_v62 = vld [vmem:[#allocation325_spill] sm:$0xff]  ;;  %v5342_v44 = vsub.f32 %v12828_v13, %v5323_v9 }
 0x73f   : > { %8504 = vpow2.f32 %v5354_v14  ;;  %v4890_v7 = vmul.f32 %v15340_v62, %v4853_v50  ;;  %v5906_v50 = vrot.slane %v13152_v0, %v15320_v39 }
 0x740   : > { %3173 = vperm.xlu1 %8259, %v3135_v22   ;;  %v4894_v22 = vmul.f32 %v15335_v17, %v4869_v26  ;;  %v15341_v26 = vld [vmem:[#allocation227_spill] sm:$0xff]  ;;  %v5890_v17 = vrot.slane %v13152_v0, %v15307_v16  ;;  %v5356_v13 = vmul.f32 1.442695, %v5342_v44  ;;  %v4881_v44 = vrot.slane %v13181_v1, %v15326_v37 }
 0x741   : > { %4313 = vperm.xlu0 %8264, %v4303_v55  }
 0x744   : > { %3746 = vperm.xlu1 %8259, %v3720_v23   ;;  %v13194_v55 = vpop.eup %8500  ;;  %v4309_v23 = vmul.f32 %v15338_v2, %v4290_v15  ;;  %v5894_v2 = vrot.slane %v13152_v0, %v15308_v28 }
 0x745   : > { %4318 = vperm.xlu0 %8264, %v4304_v48   ;;  %v15339_v48 = vld [vmem:[#allocation341_spill] sm:$0xff] }
 0x746   : > { %v4310_v11 = vmul.f32 %v15339_v48, %v4294_v8  ;;  %v15343_v8 = vld [vmem:[#allocation146_spill] sm:$0xff] }
 0x748   : > { %4333 = vperm.xlu1 %8259, %v4307_v45   ;;  %v13199_v46 = vpop.eup %8502  ;;  %v4857_v45 = vrot.slane %v13181_v1, %v15307_v16 }
 0x749   : > { %4323 = vperm.xlu0 %8264, %v4305_v20   ;;  %v13204_v32 = vpop.eup %8504  ;;  %v4861_v20 = vrot.slane %v13181_v1, %v15308_v28 }
 0x74a   : > { %v4891_v19 = vmul.f32 %v15341_v26, %v4857_v45  ;;  %v5925_v45 = vsub.f32 %v12803_v33, %v5894_v2  ;;  %v15344_v26 = vld [vmem:[#allocation170_spill] sm:$0xff] }
 0x74b   : > { %v15347_v2 = vld [vmem:[#allocation346_spill] sm:$0xff] }
 0x74c   : > { %4920 = vperm.xlu1 %8259, %v4894_v22   ;;  %v4865_v22 = vrot.slane %v13181_v1, %v15309_v18  ;;  %v5935_v33 = vmul.f32 1.442695, %v5925_v45 }
 0x74d   : > { %4328 = vperm.xlu0 %8264, %v4306_v34  }
 0x74e   : > { %v4893_v48 = vmul.f32 %v15343_v8, %v4865_v22  ;;  %v15348_v8 = vld [vmem:[#allocation149_spill] sm:$0xff] }
 0x750   : > { %5956 = vperm.xlu1 %8259, %v13194_v55  }
 0x751   : > { %4338 = vperm.xlu0 %8264, %v4308_v25   ;;  %v4892_v25 = vmul.f32 %v15342_v21, %v4861_v20  ;;  %v5928_v20 = vsub.f32 %v12845_v58, %v5906_v50  ;;  %v5910_v58 = vrot.slane %v13152_v0, %v15323_v43 }
 0x753   : > { %v5941_v21 = vmul.f32 1.442695, %v5928_v20 }
 0x754   : > { %5381 = vperm.xlu1 %8259, %v13199_v46  }
 0x755   : > { %4343 = vperm.xlu0 %8264, %v4309_v23   ;;  %v5924_v23 = vsub.f32 %v12795_v4, %v5890_v17  ;;  %v5898_v4 = vrot.slane %v13152_v0, %v15309_v18  ;;  %v15345_v17 = vld [vmem:[#allocation293_spill] sm:$0xff] }
 0x757   : > { %v5933_v9 = vmul.f32 1.442695, %v5924_v23  ;;  %v4897_v23 = vmul.f32 %v15347_v2, %v4881_v44 }
 0x758   : > { %5384 = vperm.xlu1 %8259, %v13204_v32  }
 0x759   : > { %4348 = vperm.xlu0 %8264, %v4310_v11   ;;  %v4873_v11 = vrot.slane %v13181_v1, %v15320_v39 }
 0x75d   : > { %4900 = vperm.xlu0 %8264, %v4890_v7   ;;  %v4877_v7 = vrot.slane %v13181_v1, %v15323_v43 }
 0x75f   : > { %v4896_v22 = vmul.f32 %v15345_v17, %v4877_v7 }
 0x760   : > { %v13218_v61 = vpop.xlane.xlu0 %6467 }
 0x761   : > { %4905 = vperm.xlu0 %8264, %v4891_v19   ;;  %v6473_v14 = vrot.slane %v13218_v61, %v15306_v57  ;;  %v6481_v34 = vrot.slane %v13218_v61, %v15308_v28  ;;  %v4895_v19 = vmul.f32 %v15344_v26, %v4873_v11  ;;  %v5929_v11 = vsub.f32 %v12866_v27, %v5910_v58 }
 0x762   : > { %v6493_v27 = vrot.slane %v13218_v61, %v15320_v39  ;;  %v6485_v20 = vrot.slane %v13218_v61, %v15309_v18 }
 0x763   : > { %v6510_v36 = vsub.f32 %v12819_v31, %v6473_v14  ;;  %v6512_v31 = vsub.f32 %v12837_v6, %v6481_v34  ;;  %v5926_v34 = vsub.f32 %v12811_v59, %v5898_v4  ;;  %v5902_v59 = vrot.slane %v13152_v0, %v15318_v10 }
 0x764   : > { %v5943_v45 = vmul.f32 1.442695, %v5929_v11  ;;  %v6513_v44 = vsub.f32 %v12849_v40, %v6485_v20  ;;  %v6489_v40 = vrot.slane %v13218_v61, %v15318_v10 }
 0x765   : > { %v6518_v15 = vmul.f32 1.442695, %v6510_v36  ;;  %4910 = vperm.xlu0 %8264, %v4892_v25   ;;  %v13240_v62 = vpop.xlane.xlu0 %7054  ;;  %v6522_v14 = vmul.f32 1.442695, %v6512_v31  ;;  %v6477_v36 = vrot.slane %v13218_v61, %v15307_v16  ;;  %v5937_v1 = vmul.f32 1.442695, %v5926_v34 }
 0x766   : > { %v7060_v6 = vrot.slane %v13240_v62, %v15306_v57  ;;  %v5327_v31 = vrot.slane %v13087_v42, %v15326_v37  ;;  %v5927_v7 = vsub.f32 %v12831_v12, %v5902_v59  ;;  %v7064_v34 = vrot.slane %v13240_v62, %v15307_v16 }
 0x767   : > { %8506 = vpow2.f32 %v6518_v15  ;;  %v7084_v59 = vrot.slane %v13240_v62, %v15323_v43 }
 0x768   : > { %8508 = vpow2.f32 %v5356_v13  ;;  %v7097_v25 = vsub.f32 %v12857_v47, %v7060_v6  ;;  %v7068_v47 = vrot.slane %v13240_v62, %v15308_v28  ;;  %v5343_v42 = vsub.f32 %v12840_v51, %v5327_v31 }
 0x769   : > { %4915 = vperm.xlu0 %8264, %v4893_v48   ;;  %8510 = vpow2.f32 %v5933_v9  ;;  %v6511_v48 = vsub.f32 %v15348_v8, %v6477_v36  ;;  %v5939_v12 = vmul.f32 1.442695, %v5927_v7  ;;  %v7098_v2 = vsub.f32 %v12861_v29, %v7064_v34  ;;  %v15358_v7 = vld [vmem:[#allocation299_spill] sm:$0xff] }
 0x76a   : > { %8512 = vpow2.f32 %v6522_v14  ;;  %v7105_v13 = vmul.f32 1.442695, %v7097_v25  ;;  %v7099_v9 = vsub.f32 %v12876_v38, %v7068_v47  ;;  %v6497_v38 = vrot.slane %v13218_v61, %v15323_v43 }
 0x76b   : > { %8514 = vpow2.f32 %v5935_v33  ;;  %v6520_v4 = vmul.f32 1.442695, %v6511_v48  ;;  %v6515_v14 = vsub.f32 %v12991_v3, %v6493_v27  ;;  %v5358_v51 = vmul.f32 1.442695, %v5343_v42  ;;  %v15355_v48 = vld [vmem:[#allocation231_spill] sm:$0xff] }
 0x76c   : > { %8516 = vpow2.f32 %v5941_v21  ;;  %v7109_v6 = vmul.f32 1.442695, %v7099_v9  ;;  %v6501_v33 = vrot.slane %v13218_v61, %v15326_v37  ;;  %v6516_v3 = vsub.f32 %v13001_v24, %v6497_v38 }
 0x76d   : > { %4925 = vperm.xlu0 %8264, %v4895_v19   ;;  %8518 = vpow2.f32 %v5937_v1  ;;  %v6528_v36 = vmul.f32 1.442695, %v6515_v14  ;;  %v6524_v25 = vmul.f32 1.442695, %v6513_v44  ;;  %v5914_v61 = vrot.slane %v13152_v0, %v15326_v37 }
 0x76e   : > { %8520 = vpow2.f32 %v7105_v13  ;;  %v6530_v24 = vmul.f32 1.442695, %v6516_v3  ;;  %v6514_v29 = vsub.f32 %v15355_v48, %v6489_v40  ;;  %v7107_v11 = vmul.f32 1.442695, %v7098_v2 }
 0x76f   : > { %8522 = vpow2.f32 %v6520_v4  ;;  %v7103_v47 = vsub.f32 %v13016_v41, %v7084_v59  ;;  %v5930_v4 = vsub.f32 %v15358_v7, %v5914_v61  ;;  %v7072_v0 = vrot.slane %v13240_v62, %v15309_v18 }
 0x770   : > { %8524 = vpow2.f32 %v5943_v45  ;;  %v6526_v45 = vmul.f32 1.442695, %v6514_v29 }
 0x771   : > { %v13260_v15 = vpop.eup %8506  ;;  %4930 = vperm.xlu0 %8264, %v4896_v22   ;;  %8526 = vpow2.f32 %v5939_v12  ;;  %v7117_v27 = vmul.f32 1.442695, %v7103_v47  ;;  %v5945_v42 = vmul.f32 1.442695, %v5930_v4  ;;  %v7076_v12 = vrot.slane %v13240_v62, %v15318_v10 }
 0x772   : > { %15346 = vst [vmem:[#allocation260_spill] sm:$0xff] %v13260_v15  ;;  %6543 = vperm.xlu1 %8259, %v13260_v15   ;;  %v13270_v50 = vpop.eup %8508  ;;  %8528 = vpow2.f32 %v7109_v6  ;;  %v7100_v20 = vsub.f32 %v12981_v53, %v7072_v0  ;;  %v7080_v6 = vrot.slane %v13240_v62, %v15320_v39 }
 0x773   : > { %15349 = vst [vmem:[#allocation150_spill] sm:$0xff] %v13270_v50  ;;  %v13279_v26 = vpop.eup %8510  ;;  %8530 = vpow2.f32 %v5358_v51  ;;  %v7101_v51 = vsub.f32 %v12986_v30, %v7076_v12 }
 0x774   : > { %v13281_v19 = vpop.eup %8512  ;;  %8532 = vpow2.f32 %v6528_v36  ;;  %v7111_v44 = vmul.f32 1.442695, %v7100_v20  ;;  %v7102_v3 = vsub.f32 %v12995_v5, %v7080_v6 }
 0x775   : > { %4935 = vperm.xlu0 %8264, %v4897_v23   ;;  %15350 = vst [vmem:[#allocation349_spill] sm:$0xff] %v13281_v19  ;;  %v13291_v17 = vpop.eup %8514  ;;  %v6517_v23 = vsub.f32 %v13011_v54, %v6501_v33  ;;  %8534 = vpow2.f32 %v6524_v25  ;;  %v7088_v33 = vrot.slane %v13240_v62, %v15326_v37  ;;  %v7113_v36 = vmul.f32 1.442695, %v7101_v51 }
 0x776   : > { %5387 = vperm.xlu1 %8259, %v13270_v50   ;;  %v13293_v22 = vpop.eup %8516  ;;  %8536 = vpow2.f32 %v6530_v24  ;;  %v7115_v2 = vmul.f32 1.442695, %v7102_v3 }
 0x777   : > { %15351 = vst [vmem:[#allocation90_spill] sm:$0xff] %v13293_v22  ;;  %v13303_v58 = vpop.eup %8518  ;;  %v6532_v54 = vmul.f32 1.442695, %v6517_v23  ;;  %8538 = vpow2.f32 %v7107_v11  ;;  %v7104_v25 = vsub.f32 %v13005_v35, %v7088_v33  ;;  %v15369_v35 = vld [vmem:[#allocation188_spill] sm:$0xff] }
 0x778   : > { %v13305_v21 = vpop.eup %8520 }
 0x779   : > { %5959 = vperm.xlu0 %8264, %v13279_v26   ;;  %15352 = vst [vmem:[#allocation253_spill] sm:$0xff] %v13305_v21  ;;  %v13315_v1 = vpop.eup %8522  ;;  %8540 = vpow2.f32 %v6532_v54  ;;  %v7119_v24 = vmul.f32 1.442695, %v7104_v25 }
 0x77a   : > { %6549 = vperm.xlu1 %8259, %v13281_v19   ;;  %15353 = vst [vmem:[#allocation300_spill] sm:$0xff] %v13315_v1  ;;  %v13317_v8 = vpop.eup %8524  ;;  %8542 = vpow2.f32 %v6526_v45 }
 0x77b   : > { %15354 = vst [vmem:[#allocation180_spill] sm:$0xff] %v13317_v8  ;;  %v13325_v13 = vpop.eup %8526  ;;  %8544 = vpow2.f32 %v7117_v27 }
 0x77c   : > { %15356 = vst [vmem:[#allocation152_spill] sm:$0xff] %v13325_v13  ;;  %v13327_v31 = vpop.eup %8528  ;;  %8546 = vpow2.f32 %v5945_v42  ;;  %v15372_v42 = vld [vmem:[#allocation109_spill] sm:$0xff] }
 0x77d   : > { %5962 = vperm.xlu0 %8264, %v13291_v17   ;;  %15357 = vst [vmem:[#allocation336_spill] sm:$0xff] %v13327_v31  ;;  %v13334_v9 = vpop.eup %8530  ;;  %8548 = vpow2.f32 %v7111_v44 }
 0x77e   : > { %5971 = vperm.xlu1 %8259, %v13293_v22   ;;  %15359 = vst [vmem:[#allocation337_spill] sm:$0xff] %v13334_v9  ;;  %v13336_v41 = vpop.eup %8532  ;;  %8550 = vpow2.f32 %v7113_v36  ;;  %v15374_v36 = vld [vmem:[#allocation311_spill] sm:$0xff] }
 0x77f   : > { %15360 = vst [vmem:[#allocation232_spill] sm:$0xff] %v13336_v41  ;;  %v13343_v38 = vpop.eup %8534  ;;  %8552 = vpow2.f32 %v7115_v2 }
 0x780   : > { %15361 = vst [vmem:[#allocation181_spill] sm:$0xff] %v13343_v38  ;;  %v13345_v14 = vpop.eup %8536  ;;  %8554 = vpow2.f32 %v7119_v24 }
 0x781   : > { %5965 = vperm.xlu0 %8264, %v13303_v58   ;;  %15362 = vst [vmem:[#allocation153_spill] sm:$0xff] %v13345_v14  ;;  %v13352_v34 = vpop.eup %8538 }
 0x782   : > { %7130 = vperm.xlu1 %8259, %v13305_v21   ;;  %15363 = vst [vmem:[#allocation91_spill] sm:$0xff] %v13352_v34 }
 0x783   : > { %v13354_v53 = vpop.eup %8540 }
 0x784   : > { %15364 = vst [vmem:[#allocation350_spill] sm:$0xff] %v13354_v53  ;;  %v13361_v40 = vpop.eup %8542 }
 0x785   : > { %6546 = vperm.xlu0 %8264, %v13315_v1   ;;  %15365 = vst [vmem:[#allocation154_spill] sm:$0xff] %v13361_v40  ;;  %v13363_v30 = vpop.eup %8544 }
 0x786   : > { %5974 = vperm.xlu1 %8259, %v13317_v8   ;;  %15366 = vst [vmem:[#allocation302_spill] sm:$0xff] %v13363_v30  ;;  %v13370_v62 = vpop.eup %8546 }
 0x787   : > { %15367 = vst [vmem:[#allocation254_spill] sm:$0xff] %v13370_v62  ;;  %v13377_v61 = vpop.eup %8548 }
 0x788   : > { %15368 = vst [vmem:[#allocation182_spill] sm:$0xff] %v13377_v61  ;;  %v13384_v47 = vpop.eup %8550 }
 0x789   : > { %5968 = vperm.xlu0 %8264, %v13325_v13   ;;  %15370 = vst [vmem:[#allocation301_spill] sm:$0xff] %v13384_v47  ;;  %v13389_v0 = vpop.eup %8552 }
 0x78a   : > { %7136 = vperm.xlu1 %8259, %v13327_v31   ;;  %15371 = vst [vmem:[#allocation156_spill] sm:$0xff] %v13389_v0  ;;  %v13396_v33 = vpop.eup %8554 }
 0x78b   : > { %15373 = vst [vmem:[#allocation92_spill] sm:$0xff] %v13396_v33 }
 0x78d   : > { %5390 = vperm.xlu0 %8264, %v13334_v9  }
 0x78e   : > { %6558 = vperm.xlu1 %8259, %v13336_v41  }
 0x791   : > { %6552 = vperm.xlu0 %8264, %v13343_v38   ;;  %v15383_v38 = vld [vmem:[#allocation117_spill] sm:$0xff] }
 0x792   : > { %6561 = vperm.xlu1 %8259, %v13345_v14  }
 0x795   : > { %7133 = vperm.xlu0 %8264, %v13352_v34  }
 0x796   : > { %6564 = vperm.xlu1 %8259, %v13354_v53  }
 0x799   : > { %6555 = vperm.xlu0 %8264, %v13361_v40   ;;  %v15378_v40 = vld [vmem:[#allocation189_spill] sm:$0xff] }
 0x79a   : > { %7148 = vperm.xlu1 %8259, %v13363_v30  }
 0x79b   : > { %v13368_v23 = vpop.permute.xlu1 %5369 }
 0x79c   : > { %v13372_v5 = vpop.permute.xlu0 %5372 }
 0x79d   : > { %5977 = vperm.xlu0 %8264, %v13370_v62  }
 0x79f   : > { %v13375_v59 = vpop.permute.xlu1 %5375 }
 0x7a0   : > { %v3144_v48 = vpop.permute.xlu0 %3143 }
 0x7a1   : > { %v3177_v29 = vmul.f32 %v15369_v35, %v3144_v48  ;;  %7139 = vperm.xlu0 %8264, %v13377_v61  }
 0x7a3   : > { %v3191_v11 = vsel %vm465_vm1, %v3177_v29, 0.0  ;;  %v13382_v54 = vpop.permute.xlu1 %5378 }
 0x7a4   : > { %v3192_v7 = vrot.slane %v3191_v11, 4  ;;  %v13386_v4 = vpop.permute.xlu0 %3726 }
 0x7a5   : > { %7142 = vperm.xlu0 %8264, %v13384_v47  }
 0x7a6   : > { %v3193_v27 = vadd.f32 %v3192_v7, %v3191_v11 }
 0x7a7   : > { %v3139_v45 = vpop.permute.xlu1 %3138 }
 0x7a8   : > { %v3176_v12 = vmul.f32 %v15372_v42, %v3139_v45  ;;  %v13392_v20 = vpop.permute.xlu0 %3731  ;;  %v3194_v3 = vrot.slane %v3193_v27, 2  ;;  %v15375_v45 = vld [vmem:[#allocation122_spill] sm:$0xff] }
 0x7a9   : > { %7145 = vperm.xlu0 %8264, %v13389_v0  }
 0x7aa   : > { %v3184_v6 = vsel %vm465_vm1, %v3176_v12, 0.0  ;;  %v3195_v7 = vadd.f32 %v3194_v3, %v3193_v27 }
 0x7ab   : > { %v3185_v51 = vrot.slane %v3184_v6, 4  ;;  %v3149_v44 = vpop.permute.xlu1 %3148 }
 0x7ac   : > { %v3178_v25 = vmul.f32 %v15374_v36, %v3149_v44  ;;  %v13399_v2 = vpop.permute.xlu0 %3736 }
 0x7ad   : > { %v3186_v24 = vadd.f32 %v3185_v51, %v3184_v6  ;;  %7151 = vperm.xlu0 %8264, %v13396_v33   ;;  %v3196_v51 = vrot.slane %v3195_v7, 1  ;;  %v15376_v33 = vld [vmem:[#allocation139_spill] sm:$0xff] }
 0x7ae   : > { %v3198_v48 = vsel %vm465_vm1, %v3178_v25, 0.0 }
 0x7af   : > { %v3187_v35 = vrot.slane %v3186_v24, 2  ;;  %v3199_v29 = vrot.slane %v3198_v48, 4  ;;  %v3154_v11 = vpop.permute.xlu1 %3153 }
 0x7b0   : > { %v3179_v42 = vmul.f32 %v15375_v45, %v3154_v11  ;;  %v13404_v12 = vpop.permute.xlu0 %3741 }
 0x7b1   : > { %v3188_v30 = vadd.f32 %v3187_v35, %v3186_v24  ;;  %v3200_v53 = vadd.f32 %v3199_v29, %v3198_v48  ;;  %v3197_v35 = vadd.f32 %v3196_v51, %v3195_v7 }
 0x7b2   : > { %v3205_v0 = vsel %vm465_vm1, %v3179_v42, 0.0 }
 0x7b3   : > { %v3189_v44 = vrot.slane %v3188_v30, 1  ;;  %v3201_v36 = vrot.slane %v3200_v53, 2  ;;  %v3206_v14 = vrot.slane %v3205_v0, 4  ;;  %v3159_v6 = vpop.permute.xlu1 %3158 }
 0x7b4   : > { %v3180_v47 = vmul.f32 %v15376_v33, %v3159_v6  ;;  %v13408_v25 = vpop.permute.xlu0 %3751  ;;  %v15377_v33 = vld [vmem:[#allocation102_spill] sm:$0xff] }
 0x7b5   : > { %v3202_v41 = vadd.f32 %v3201_v36, %v3200_v53  ;;  %v3207_v61 = vadd.f32 %v3206_v14, %v3205_v0  ;;  %v3190_v27 = vadd.f32 %v3189_v44, %v3188_v30 }
 0x7b6   : > { %v3212_v3 = vsel %vm465_vm1, %v3180_v47, 0.0 }
 0x7b7   : > { %v3203_v11 = vrot.slane %v3202_v41, 1  ;;  %v3208_v45 = vrot.slane %v3207_v61, 2  ;;  %v3213_v24 = vrot.slane %v3212_v3, 4  ;;  %v3164_v48 = vpop.permute.xlu1 %3163  ;;  %v3253_v8 = vsel %vm608_vm2, %v3197_v35, %v3190_v27 }
 0x7b8   : > { %v13411_v29 = vpop.permute.xlu0 %3756  ;;  %v3181_v6 = vmul.f32 %v15377_v33, %v3164_v48 }
 0x7b9   : > { %v3204_v42 = vadd.f32 %v3203_v11, %v3202_v41  ;;  %v3209_v31 = vadd.f32 %v3208_v45, %v3207_v61  ;;  %v3214_v62 = vadd.f32 %v3213_v24, %v3212_v3 }
 0x7ba   : > { %v3219_v47 = vsel %vm465_vm1, %v3181_v6, 0.0 }
 0x7bb   : > { %v3254_v53 = vsel %vm611_vm3, %v3204_v42, %v3253_v8  ;;  %v3210_v14 = vrot.slane %v3209_v31, 1  ;;  %v3215_v30 = vrot.slane %v3214_v62, 2  ;;  %v3169_v0 = vpop.permute.xlu1 %3168  ;;  %v3220_v51 = vrot.slane %v3219_v47, 4  ;;  %v15379_v42 = vld [vmem:[#allocation110_spill] sm:$0xff] }
 0x7bc   : > { %v13417_v44 = vpop.permute.xlu0 %3761  ;;  %v3182_v41 = vmul.f32 %v15378_v40, %v3169_v0 }
 0x7bd   : > { %v3211_v36 = vadd.f32 %v3210_v14, %v3209_v31  ;;  %v3216_v7 = vadd.f32 %v3215_v30, %v3214_v62  ;;  %v3221_v27 = vadd.f32 %v3220_v51, %v3219_v47  ;;  %v15380_v47 = vld [vmem:[#allocation111_spill] sm:$0xff] }
 0x7be   : > { %v3226_v8 = vsel %vm465_vm1, %v3182_v41, 0.0 }
 0x7bf   : > { %v3255_v61 = vsel %vm614_vm4, %v3211_v36, %v3254_v53  ;;  %v3217_v3 = vrot.slane %v3216_v7, 1  ;;  %v13421_v11 = vpop.permute.xlu1 %3173  ;;  %v3222_v48 = vrot.slane %v3221_v27, 2  ;;  %v3227_v35 = vrot.slane %v3226_v8, 4 }
 0x7c0   : > { %v4314_v45 = vpop.permute.xlu0 %4313 }
 0x7c1   : > { %v3218_v24 = vadd.f32 %v3217_v3, %v3216_v7  ;;  %v4351_v33 = vmul.f32 %v15379_v42, %v4314_v45  ;;  %v3223_v62 = vadd.f32 %v3222_v48, %v3221_v27  ;;  %v3228_v6 = vadd.f32 %v3227_v35, %v3226_v8  ;;  %v15382_v42 = vld [vmem:[#allocation328_spill] sm:$0xff] }
 0x7c3   : > { %v3256_v31 = vsel %vm617_vm5, %v3218_v24, %v3255_v61  ;;  %v13426_v14 = vpop.permute.xlu1 %3746  ;;  %v3224_v53 = vrot.slane %v3223_v62, 1  ;;  %v3229_v30 = vrot.slane %v3228_v6, 2  ;;  %v4359_v0 = vsel %vm465_vm1, %v4351_v33, 0.0  ;;  %v15381_v24 = vld [vmem:[#allocation127_spill] sm:$0xff] }
 0x7c4   : > { %v4319_v40 = vpop.permute.xlu0 %4318  ;;  %v4360_v3 = vrot.slane %v4359_v0, 4 }
 0x7c5   : > { %v4352_v36 = vmul.f32 %v15380_v47, %v4319_v40  ;;  %v3225_v51 = vadd.f32 %v3224_v53, %v3223_v62  ;;  %v3230_v41 = vadd.f32 %v3229_v30, %v3228_v6 }
 0x7c6   : > { %v4361_v22 = vadd.f32 %v4360_v3, %v4359_v0  ;;  %v15384_v0 = vld [vmem:[#allocation312_spill] sm:$0xff] }
 0x7c7   : > { %v4334_v7 = vpop.permute.xlu1 %4333  ;;  %v4366_v21 = vsel %vm465_vm1, %v4352_v36, 0.0  ;;  %v3257_v61 = vsel %vm620_vm6, %v3225_v51, %v3256_v31  ;;  %v3231_v27 = vrot.slane %v3230_v41, 1 }
 0x7c8   : > { %v4324_v45 = vpop.permute.xlu0 %4323  ;;  %v4367_v8 = vrot.slane %v4366_v21, 4  ;;  %v4355_v48 = vmul.f32 %v15381_v24, %v4334_v7  ;;  %v4362_v51 = vrot.slane %v4361_v22, 2 }
 0x7c9   : > { %v3232_v35 = vadd.f32 %v3231_v27, %v3230_v41  ;;  %v4353_v34 = vmul.f32 %v15382_v42, %v4324_v45 }
 0x7ca   : > { %v4368_v33 = vadd.f32 %v4367_v8, %v4366_v21  ;;  %v4387_v40 = vsel %vm465_vm1, %v4355_v48, 0.0  ;;  %v4363_v48 = vadd.f32 %v4362_v51, %v4361_v22 }
 0x7cb   : > { %v13436_v6 = vsel %vm623_vm7, %v3232_v35, %v3257_v61  ;;  %v4388_v53 = vrot.slane %v4387_v40, 4  ;;  %v4373_v47 = vsel %vm465_vm1, %v4353_v34, 0.0  ;;  %v13447_v51 = vpop.permute.xlu1 %4920 }
 0x7cc   : > { %v4329_v62 = vpop.permute.xlu0 %4328  ;;  %v4369_v30 = vrot.slane %v4368_v33, 2  ;;  %v4374_v36 = vrot.slane %v4373_v47, 4 }
 0x7cd   : > { %v4389_v31 = vadd.f32 %v4388_v53, %v4387_v40  ;;  %v4354_v7 = vmul.f32 %v15383_v38, %v4329_v62 }
 0x7ce   : > { %v4375_v27 = vadd.f32 %v4374_v36, %v4373_v47  ;;  %v4370_v45 = vadd.f32 %v4369_v30, %v4368_v33  ;;  %v4364_v47 = vrot.slane %v4363_v48, 1 }
 0x7cf   : > { %v4380_v21 = vsel %vm465_vm1, %v4354_v7, 0.0  ;;  %v4390_v8 = vrot.slane %v4389_v31, 2 }
 0x7d0   : > { %v4339_v41 = vpop.permute.xlu0 %4338  ;;  %v4376_v24 = vrot.slane %v4375_v27, 2  ;;  %v4381_v61 = vrot.slane %v4380_v21, 4  ;;  %v4371_v53 = vrot.slane %v4370_v45, 1 }
 0x7d1   : > { %v4356_v3 = vmul.f32 %v15384_v0, %v4339_v41  ;;  %v4391_v38 = vadd.f32 %v4390_v8, %v4389_v31 }
 0x7d2   : > { %v4377_v34 = vadd.f32 %v4376_v24, %v4375_v27  ;;  %v4382_v40 = vadd.f32 %v4381_v61, %v4380_v21  ;;  %v4372_v7 = vadd.f32 %v4371_v53, %v4370_v45  ;;  %v15385_v24 = vld [vmem:[#allocation123_spill] sm:$0xff] }
 0x7d3   : > { %v4394_v35 = vsel %vm465_vm1, %v4356_v3, 0.0  ;;  %v4392_v9 = vrot.slane %v4391_v38, 1  ;;  %v4365_v3 = vadd.f32 %v4364_v47, %v4363_v48  ;;  %v13454_v48 = vpop.permute.xlu1 %5956 }
 0x7d4   : > { %v13443_v42 = vpop.permute.xlu0 %4343  ;;  %v4395_v19 = vrot.slane %v4394_v35, 4  ;;  %v4378_v62 = vrot.slane %v4377_v34, 1  ;;  %v4383_v33 = vrot.slane %v4382_v40, 2 }
 0x7d5   : > { %v4427_v31 = vsel %vm608_vm2, %v4372_v7, %v4365_v3 }
 0x7d6   : > { %v4396_v30 = vadd.f32 %v4395_v19, %v4394_v35  ;;  %v4384_v41 = vadd.f32 %v4383_v33, %v4382_v40  ;;  %v4379_v22 = vadd.f32 %v4378_v62, %v4377_v34  ;;  %v4393_v19 = vadd.f32 %v4392_v9, %v4391_v38  ;;  %v15386_v33 = vld [vmem:[#allocation124_spill] sm:$0xff] }
 0x7d8   : > { %v13445_v36 = vpop.permute.xlu0 %4348  ;;  %v4397_v0 = vrot.slane %v4396_v30, 2  ;;  %v4385_v37 = vrot.slane %v4384_v41, 1  ;;  %v4428_v35 = vsel %vm611_vm3, %v4379_v22, %v4427_v31  ;;  %v15387_v22 = vld [vmem:[#allocation313_spill] sm:$0xff] }
 0x7da   : > { %v4398_v27 = vadd.f32 %v4397_v0, %v4396_v30  ;;  %v4386_v8 = vadd.f32 %v4385_v37, %v4384_v41 }
 0x7dc   : > { %v4901_v21 = vpop.permute.xlu0 %4900  ;;  %v4399_v50 = vrot.slane %v4398_v27, 1  ;;  %v4429_v40 = vsel %vm614_vm4, %v4386_v8, %v4428_v35 }
 0x7dd   : > { %v4938_v61 = vmul.f32 %v15385_v24, %v4901_v21  ;;  %v4430_v47 = vsel %vm617_vm5, %v4393_v19, %v4429_v40  ;;  %v5382_v21 = vpop.permute.xlu1 %5381  ;;  %v15388_v19 = vld [vmem:[#allocation79_spill] sm:$0xff] }
 0x7de   : > { %v4400_v34 = vadd.f32 %v4399_v50, %v4398_v27 }
 0x7df   : > { %v4946_v45 = vsel %vm465_vm1, %v4938_v61, 0.0 }
 0x7e0   : > { %v4947_v53 = vrot.slane %v4946_v45, 4  ;;  %v4906_v62 = vpop.permute.xlu0 %4905  ;;  %v13459_v7 = vsel %vm620_vm6, %v4400_v34, %v4430_v47 }
 0x7e1   : > { %v4939_v30 = vmul.f32 %v15386_v33, %v4906_v62 }
 0x7e2   : > { %v4948_v37 = vadd.f32 %v4947_v53, %v4946_v45 }
 0x7e3   : > { %v4953_v9 = vsel %vm465_vm1, %v4939_v30, 0.0 }
 0x7e4   : > { %v4949_v38 = vrot.slane %v4948_v37, 2  ;;  %v4954_v41 = vrot.slane %v4953_v9, 4  ;;  %v4911_v0 = vpop.permute.xlu0 %4910 }
 0x7e5   : > { %v4940_v3 = vmul.f32 %v15387_v22, %v4911_v0 }
 0x7e6   : > { %v4950_v50 = vadd.f32 %v4949_v38, %v4948_v37  ;;  %v4955_v27 = vadd.f32 %v4954_v41, %v4953_v9  ;;  %v5385_v37 = vpop.permute.xlu1 %5384 }
 0x7e7   : > { %v4960_v24 = vsel %vm465_vm1, %v4940_v3, 0.0 }
 0x7e8   : > { %v4956_v61 = vrot.slane %v4955_v27, 2  ;;  %v4961_v31 = vrot.slane %v4960_v24, 4  ;;  %v4916_v8 = vpop.permute.xlu0 %4915  ;;  %v4951_v40 = vrot.slane %v4950_v50, 1 }
 0x7e9   : > { %v4941_v35 = vmul.f32 %v15388_v19, %v4916_v8 }
 0x7ea   : > { %v4957_v34 = vadd.f32 %v4956_v61, %v4955_v27  ;;  %v4962_v45 = vadd.f32 %v4961_v31, %v4960_v24  ;;  %v4952_v9 = vadd.f32 %v4951_v40, %v4950_v50 }
 0x7eb   : > { %v4967_v53 = vsel %vm465_vm1, %v4941_v35, 0.0 }
 0x7ec   : > { %v4958_v62 = vrot.slane %v4957_v34, 1  ;;  %v4963_v47 = vrot.slane %v4962_v45, 2  ;;  %v4968_v33 = vrot.slane %v4967_v53, 4  ;;  %v13466_v30 = vpop.permute.xlu0 %4925 }
 0x7ee   : > { %v4959_v38 = vadd.f32 %v4958_v62, %v4957_v34  ;;  %v4964_v41 = vadd.f32 %v4963_v47, %v4962_v45  ;;  %v4969_v0 = vadd.f32 %v4968_v33, %v4967_v53 }
 0x7f0   : > { %v5014_v22 = vsel %vm608_vm2, %v4959_v38, %v4952_v9  ;;  %v4965_v3 = vrot.slane %v4964_v41, 1  ;;  %v4970_v13 = vrot.slane %v4969_v0, 2  ;;  %v13469_v8 = vpop.permute.xlu0 %4930  ;;  %v5399_v9 = vrot.slane %v13372_v5, %v11807_v52 }
 0x7f1   : > { %v6544_v27 = vpop.permute.xlu1 %6543 }
 0x7f2   : > { %v4966_v24 = vadd.f32 %v4965_v3, %v4964_v41  ;;  %v4971_v61 = vadd.f32 %v4970_v13, %v4969_v0  ;;  %v5395_v13 = vrot.slane %v13368_v23, %v11807_v52  ;;  %v5403_v41 = vrot.slane %v13375_v59, %v11807_v52 }
 0x7f3   : > { %v5411_v0 = vrot.slane %v5382_v21, %v11807_v52 }
 0x7f4   : > { %v5015_v31 = vsel %vm611_vm3, %v4966_v24, %v5014_v22  ;;  %v4972_v19 = vrot.slane %v4971_v61, 1  ;;  %v13472_v35 = vpop.permute.xlu0 %4935  ;;  %v5424_v3 = vsel %vm608_vm2, %v5399_v9, %v5395_v13  ;;  %v5415_v24 = vrot.slane %v5385_v37, %v11807_v52 }
 0x7f5   : > { %v5388_v43 = vpop.permute.xlu1 %5387 }
 0x7f6   : > { %v4973_v15 = vadd.f32 %v4972_v19, %v4971_v61  ;;  %v5425_v61 = vsel %vm611_vm3, %v5403_v41, %v5424_v3  ;;  %v5419_v23 = vrot.slane %v5388_v43, %v11807_v52  ;;  %v5982_v3 = vrot.slane %v13454_v48, %v11807_v52 }
 0x7f8   : > { %v13475_v50 = vsel %vm614_vm4, %v4973_v15, %v5015_v31  ;;  %v5960_v40 = vpop.permute.xlu0 %5959  ;;  %v5407_v15 = vrot.slane %v13382_v54, %v11807_v52 }
 0x7f9   : > { %v6550_v34 = vpop.permute.xlu1 %6549  ;;  %v5986_v43 = vrot.slane %v5960_v40, %v11807_v52 }
 0x7fa   : > { %v5426_v5 = vsel %vm614_vm4, %v5407_v15, %v5425_v61  ;;  %v6569_v61 = vrot.slane %v6544_v27, %v11807_v52  ;;  %v15389_v27 = vld [vmem:[#allocation86_spill] sm:$0xff] }
 0x7fb   : > { %v5427_v59 = vsel %vm617_vm5, %v5411_v0, %v5426_v5  ;;  %v6011_v5 = vsel %vm608_vm2, %v5986_v43, %v5982_v3 }
 0x7fc   : > { %v5963_v45 = vpop.permute.xlu0 %5962  ;;  %v5428_v54 = vsel %vm620_vm6, %v5415_v24, %v5427_v59 }
 0x7fd   : > { %v5972_v53 = vpop.permute.xlu1 %5971  ;;  %v5429_v1 = vsel %vm623_vm7, %v5419_v23, %v5428_v54  ;;  %v5990_v15 = vrot.slane %v5963_v45, %v11807_v52 }
 0x7ff   : > { %v6012_v59 = vsel %vm611_vm3, %v5990_v15, %v6011_v5 }
 0x800   : > { %v5966_v62 = vpop.permute.xlu0 %5965 }
 0x801   : > { %v13477_v47 = vpop.permute.xlu1 %7130  ;;  %v5994_v24 = vrot.slane %v5966_v62, %v11807_v52 }
 0x803   : > { %v6013_v48 = vsel %vm614_vm4, %v5994_v24, %v6012_v59  ;;  %v15391_v24 = vld [vmem:[#allocation205_spill] sm:$0xff] }
 0x804   : > { %v6547_v33 = vpop.permute.xlu0 %6546 }
 0x805   : > { %v5975_v38 = vpop.permute.xlu1 %5974  ;;  %v6573_v0 = vrot.slane %v6547_v33, %v11807_v52  ;;  %v6577_v33 = vrot.slane %v6550_v34, %v11807_v52  ;;  %v15390_v34 = vld [vmem:[#allocation171_spill] sm:$0xff] }
 0x806   : > { %v3764_v15 = vmul.f32 %v15390_v34, %v13386_v4 }
 0x807   : > { %v6598_v40 = vsel %vm608_vm2, %v6573_v0, %v6569_v61 }
 0x808   : > { %v5969_v22 = vpop.permute.xlu0 %5968 }
 0x809   : > { %v13492_v31 = vpop.permute.xlu1 %7136 }
 0x80c   : > { %v5391_v19 = vpop.permute.xlu0 %5390 }
 0x80d   : > { %v5423_v21 = vrot.slane %v5391_v19, %v11807_v52  ;;  %v6559_v37 = vpop.permute.xlu1 %6558 }
 0x80e   : > { %v6589_v43 = vrot.slane %v6559_v37, %v11807_v52 }
 0x80f   : > { %v5430_v13 = vsel %vm625_vm8, %v5423_v21, %v5429_v1  ;;  %v5998_v1 = vrot.slane %v5969_v22, %v11807_v52  ;;  %v3765_v22 = vmul.f32 %v15389_v27, %v13392_v20  ;;  %v6002_v21 = vrot.slane %v5972_v53, %v11807_v52 }
 0x810   : > { %v6553_v9 = vpop.permute.xlu0 %6552  ;;  %v5432_v41 = vsel %vm872_vm10, %v5430_v13, 0.0  ;;  %v6599_v13 = vsel %vm611_vm3, %v6577_v33, %v6598_v40  ;;  %v3766_v20 = vmul.f32 %v15391_v24, %v13399_v2  ;;  %v6006_v53 = vrot.slane %v5975_v38, %v11807_v52  ;;  %v15392_v40 = vld [vmem:[#allocation101_spill] sm:$0xff]  ;;  %v15393_v33 = vld [vmem:[#allocation70_spill] sm:$0xff] }
 0x811   : > { %5433 = vadd.xlane.f32.xlu1 %v5432_v41  ;;  %v6581_v45 = vrot.slane %v6553_v9, %v11807_v52  ;;  %v6562_v19 = vpop.permute.xlu1 %6561  ;;  %v6014_v62 = vsel %vm617_vm5, %v5998_v1, %v6013_v48  ;;  %v3779_v59 = vsel %vm465_vm1, %v3765_v22, 0.0  ;;  %v3767_v4 = vmul.f32 %v15392_v40, %v13404_v12  ;;  %v15394_v2 = vld [vmem:[#allocation34_spill] sm:$0xff] }
 0x812   : > { %v6015_v3 = vsel %vm620_vm6, %v6002_v21, %v6014_v62  ;;  %v6593_v61 = vrot.slane %v6562_v19, %v11807_v52  ;;  %v3183_v48 = vmul.f32 %v15393_v33, %v13421_v11  ;;  %v3768_v62 = vmul.f32 %v15394_v2, %v13426_v14 }
 0x813   : > { %v6600_v9 = vsel %vm614_vm4, %v6581_v45, %v6599_v13  ;;  %v6016_v38 = vsel %vm623_vm7, %v6006_v53, %v6015_v3  ;;  %v3772_v22 = vsel %vm465_vm1, %v3764_v15, 0.0  ;;  %v3780_v21 = vrot.slane %v3779_v59, 4  ;;  %v15395_v15 = vld [vmem:[#allocation75_spill] sm:$0xff] }
 0x814   : > { %v7134_v23 = vpop.permute.xlu0 %7133  ;;  %v3786_v12 = vsel %vm465_vm1, %v3766_v20, 0.0  ;;  %v3793_v11 = vsel %vm465_vm1, %v3767_v4, 0.0  ;;  %v3800_v34 = vsel %vm465_vm1, %v3768_v62, 0.0  ;;  %v3769_v24 = vmul.f32 %v15395_v15, %v13408_v25 }
 0x815   : > { %v6565_v1 = vpop.permute.xlu1 %6564  ;;  %v7160_v14 = vrot.slane %v7134_v23, %v11807_v52  ;;  %v3787_v3 = vrot.slane %v3786_v12, 4  ;;  %v7156_v20 = vrot.slane %v13477_v47, %v11807_v52  ;;  %v3781_v53 = vadd.f32 %v3780_v21, %v3779_v59 }
 0x816   : > { %v3801_v4 = vrot.slane %v3800_v34, 4  ;;  %v7164_v25 = vrot.slane %v13492_v31, %v11807_v52  ;;  %v3807_v2 = vsel %vm465_vm1, %v3769_v24, 0.0 }
 0x818   : > { %v6556_v54 = vpop.permute.xlu0 %6555 }
 0x819   : > { %v6585_v41 = vrot.slane %v6556_v54, %v11807_v52  ;;  %v6597_v54 = vrot.slane %v6565_v1, %v11807_v52  ;;  %v15396_v1 = vld [vmem:[#allocation190_spill] sm:$0xff] }
 0x81a   : > { %v3770_v23 = vmul.f32 %v15396_v1, %v13411_v29  ;;  %v15397_v29 = vld [vmem:[#allocation65_spill] sm:$0xff] }
 0x81b   : > { %v6601_v0 = vsel %vm617_vm5, %v6585_v41, %v6600_v9  ;;  %v3233_v9 = vsel %vm465_vm1, %v3183_v48, 0.0  ;;  %v3788_v48 = vadd.f32 %v3787_v3, %v3786_v12  ;;  %v3771_v62 = vmul.f32 %v15397_v29, %v13417_v44 }
 0x81c   : > { %v5978_v5 = vpop.permute.xlu0 %5977  ;;  %v6602_v37 = vsel %vm620_vm6, %v6589_v43, %v6601_v0  ;;  %v3773_v0 = vrot.slane %v3772_v22, 4  ;;  %v3234_v40 = vrot.slane %v3233_v9, 4  ;;  %v3808_v12 = vrot.slane %v3807_v2, 4 }
 0x81d   : > { %v6010_v45 = vrot.slane %v5978_v5, %v11807_v52  ;;  %v6603_v19 = vsel %vm623_vm7, %v6593_v61, %v6602_v37  ;;  %v3794_v61 = vrot.slane %v3793_v11, 4  ;;  %v3821_v44 = vsel %vm465_vm1, %v3771_v62, 0.0 }
 0x81e   : > { %v6604_v43 = vsel %vm625_vm8, %v6597_v54, %v6603_v19  ;;  %v3774_v59 = vadd.f32 %v3773_v0, %v3772_v22  ;;  %v3814_v54 = vsel %vm465_vm1, %v3770_v23, 0.0  ;;  %v3789_v0 = vrot.slane %v3788_v48, 2 }
 0x81f   : > { %v6017_v27 = vsel %vm625_vm8, %v6010_v45, %v6016_v38  ;;  %v6606_v37 = vsel %vm872_vm10, %v6604_v43, 0.0  ;;  %v7185_v45 = vsel %vm608_vm2, %v7160_v14, %v7156_v20  ;;  %v3782_v38 = vrot.slane %v3781_v53, 2  ;;  %v7149_v14 = vpop.permute.xlu1 %7148 }
 0x820   : > { %v7140_v13 = vpop.permute.xlu0 %7139  ;;  %v6019_v41 = vsel %vm872_vm10, %v6017_v27, 0.0  ;;  %v3795_v19 = vadd.f32 %v3794_v61, %v3793_v11  ;;  %v7186_v27 = vsel %vm611_vm3, %v7164_v25, %v7185_v45  ;;  %v3775_v3 = vrot.slane %v3774_v59, 2 }
 0x821   : > { %6020 = vadd.xlane.f32.xlu0 %v6019_v41  ;;  %v7168_v33 = vrot.slane %v7140_v13, %v11807_v52  ;;  %v3235_v13 = vadd.f32 %v3234_v40, %v3233_v9  ;;  %v3802_v41 = vadd.f32 %v3801_v4, %v3800_v34  ;;  %v3815_v24 = vrot.slane %v3814_v54, 4 }
 0x822   : > { %v3796_v15 = vrot.slane %v3795_v19, 2  ;;  %v7180_v20 = vrot.slane %v7149_v14, %v11807_v52  ;;  %v3783_v34 = vadd.f32 %v3782_v38, %v3781_v53  ;;  %v3790_v4 = vadd.f32 %v3789_v0, %v3788_v48 }
 0x823   : > { %v7187_v31 = vsel %vm614_vm4, %v7168_v33, %v7186_v27  ;;  %v3236_v61 = vrot.slane %v3235_v13, 2  ;;  %v3803_v1 = vrot.slane %v3802_v41, 2  ;;  %v3776_v33 = vadd.f32 %v3775_v3, %v3774_v59 }
 0x824   : > { %v7143_v5 = vpop.permute.xlu0 %7142  ;;  %v3797_v25 = vadd.f32 %v3796_v15, %v3795_v19  ;;  %v3784_v62 = vrot.slane %v3783_v34, 1  ;;  %v3791_v14 = vrot.slane %v3790_v4, 1 }
 0x825   : > { %6607 = vadd.xlane.f32.xlu0 %v6606_v37  ;;  %v7172_v47 = vrot.slane %v7143_v5, %v11807_v52  ;;  %v3809_v5 = vadd.f32 %v3808_v12, %v3807_v2  ;;  %v3822_v37 = vrot.slane %v3821_v44, 4  ;;  %v3237_v27 = vadd.f32 %v3236_v61, %v3235_v13  ;;  %v15399_v13 = vld [vmem:[#allocation234_spill] sm:$0xff] }
 0x826   : > { %v3785_v12 = vadd.f32 %v3784_v62, %v3783_v34 }
 0x827   : > { %v7188_v43 = vsel %vm617_vm5, %v7172_v47, %v7187_v31  ;;  %v3816_v47 = vadd.f32 %v3815_v24, %v3814_v54  ;;  %v3810_v53 = vrot.slane %v3809_v5, 2  ;;  %v3823_v38 = vadd.f32 %v3822_v37, %v3821_v44 }
 0x828   : > { %v7146_v21 = vpop.permute.xlu0 %7145  ;;  %v3777_v31 = vrot.slane %v3776_v33, 1 }
 0x829   : > { %v7176_v22 = vrot.slane %v7146_v21, %v11807_v52  ;;  %v3804_v21 = vadd.f32 %v3803_v1, %v3802_v41  ;;  %v3817_v48 = vrot.slane %v3816_v47, 2  ;;  %v3811_v19 = vadd.f32 %v3810_v53, %v3809_v5 }
 0x82a   : > { %v3824_v54 = vrot.slane %v3823_v38, 2  ;;  %v4358_v41 = vmul.f32 %v15399_v13, %v13445_v36  ;;  %v3778_v3 = vadd.f32 %v3777_v31, %v3776_v33 }
 0x82b   : > { %v7189_v11 = vsel %vm620_vm6, %v7176_v22, %v7188_v43  ;;  %v3798_v22 = vrot.slane %v3797_v25, 1  ;;  %v3238_v43 = vrot.slane %v3237_v27, 1  ;;  %v3805_v59 = vrot.slane %v3804_v21, 1 }
 0x82c   : > { %v7152_v9 = vpop.permute.xlu0 %7151  ;;  %v7190_v40 = vsel %vm623_vm7, %v7180_v20, %v7189_v11  ;;  %v3792_v11 = vadd.f32 %v3791_v14, %v3790_v4  ;;  %v3818_v15 = vadd.f32 %v3817_v48, %v3816_v47  ;;  %v3812_v61 = vrot.slane %v3811_v19, 1  ;;  %v15400_v14 = vld [vmem:[#allocation241_spill] sm:$0xff] }
 0x82d   : > { %v7184_v23 = vrot.slane %v7152_v9, %v11807_v52  ;;  %v15398_v52 = vld [vmem:[#allocation277_spill] sm:$0xff]  ;;  %v3799_v44 = vadd.f32 %v3798_v22, %v3797_v25  ;;  %v3239_v24 = vadd.f32 %v3238_v43, %v3237_v27  ;;  %v3840_v9 = vsel %vm608_vm2, %v3785_v12, %v3778_v3  ;;  %v15401_v22 = vld [vmem:[#allocation71_spill] sm:$0xff] }
 0x82e   : > { %v4357_v2 = vmul.f32 %v15398_v52, %v13443_v42  ;;  %v3806_v42 = vadd.f32 %v3805_v59, %v3804_v21  ;;  %v3825_v34 = vadd.f32 %v3824_v54, %v3823_v38  ;;  %v4408_v1 = vsel %vm465_vm1, %v4358_v41, 0.0  ;;  %v15403_v54 = vld [vmem:[#allocation32_spill] sm:$0xff] }
 0x82f   : > { %v7191_v45 = vsel %vm625_vm8, %v7184_v23, %v7190_v40  ;;  %v3841_v23 = vsel %vm611_vm3, %v3792_v11, %v3840_v9  ;;  %v3819_v37 = vrot.slane %v3818_v15, 1  ;;  %v4409_v4 = vrot.slane %v4408_v1, 4 }
 0x830   : > { %v7193_v29 = vsel %vm872_vm10, %v7191_v45, 0.0  ;;  %v4401_v0 = vsel %vm465_vm1, %v4357_v2, 0.0  ;;  %v3842_v5 = vsel %vm614_vm4, %v3799_v44, %v3841_v23  ;;  %v3259_v45 = vsel %vm625_vm8, %v3239_v24, %v13436_v6  ;;  %v15402_v6 = vld [vmem:[#allocation104_spill] sm:$0xff]  ;;  %v15404_v44 = vld [vmem:[#allocation275_spill] sm:$0xff] }
 0x831   : > { %7194 = vadd.xlane.f32.xlu0 %v7193_v29  ;;  %v4402_v20 = vrot.slane %v4401_v0, 4  ;;  %v3843_v36 = vsel %vm617_vm5, %v3806_v42, %v3842_v5  ;;  %v3813_v33 = vadd.f32 %v3812_v61, %v3811_v19  ;;  %v3826_v25 = vrot.slane %v3825_v34, 1  ;;  %v15405_v61 = vld [vmem:[#allocation235_spill] sm:$0xff] }
 0x832   : > { %v3820_v29 = vadd.f32 %v3819_v37, %v3818_v15  ;;  %v4410_v27 = vadd.f32 %v4409_v4, %v4408_v1  ;;  %v3261_v31 = vmul.f32 %v3259_v45, %v15400_v14  ;;  %v4942_v43 = vmul.f32 %v15402_v6, %v13447_v51 }
 0x833   : > { %v4403_v40 = vadd.f32 %v4402_v20, %v4401_v0  ;;  %v3844_v47 = vsel %vm620_vm6, %v3813_v33, %v3843_v36  ;;  %v3827_v21 = vadd.f32 %v3826_v25, %v3825_v34  ;;  %v4943_v0 = vmul.f32 %v15403_v54, %v13466_v30  ;;  %v15406_v36 = vld [vmem:[#allocation285_spill] sm:$0xff] }
 0x834   : > { %v3845_v53 = vsel %vm623_vm7, %v3820_v29, %v3844_v47  ;;  %v4411_v2 = vrot.slane %v4410_v27, 2  ;;  %v4974_v13 = vsel %vm465_vm1, %v4942_v43, 0.0  ;;  %v4944_v15 = vmul.f32 %v15404_v44, %v13469_v8 }
 0x835   : > { %v4404_v62 = vrot.slane %v4403_v40, 2  ;;  %v3846_v38 = vsel %vm625_vm8, %v3827_v21, %v3845_v53  ;;  %v4981_v3 = vsel %vm465_vm1, %v4943_v0, 0.0  ;;  %v4975_v24 = vrot.slane %v4974_v13, 4 }
 0x836   : > { %v3848_v48 = vmul.f32 %v3846_v38, %v15401_v22  ;;  %v4412_v19 = vadd.f32 %v4411_v2, %v4410_v27  ;;  %v4982_v20 = vrot.slane %v4981_v3, 4  ;;  %v4988_v9 = vsel %vm465_vm1, %v4944_v15, 0.0 }
 0x837   : > { %v4405_v52 = vadd.f32 %v4404_v62, %v4403_v40  ;;  %v4945_v30 = vmul.f32 %v15405_v61, %v13472_v35  ;;  %v4976_v34 = vadd.f32 %v4975_v24, %v4974_v13  ;;  %v4989_v23 = vrot.slane %v4988_v9, 4 }
 0x838   : > { %v3849_v12 = vadd.f32 %v3848_v48, %v3261_v31  ;;  %v4413_v11 = vrot.slane %v4412_v19, 1  ;;  %v4983_v1 = vadd.f32 %v4982_v20, %v4981_v3 }
 0x839   : > { %v4406_v59 = vrot.slane %v4405_v52, 1  ;;  %v4995_v37 = vsel %vm465_vm1, %v4945_v30, 0.0  ;;  %v4977_v40 = vrot.slane %v4976_v34, 2  ;;  %v4990_v33 = vadd.f32 %v4989_v23, %v4988_v9 }
 0x83a   : > { %v4414_v42 = vadd.f32 %v4413_v11, %v4412_v19  ;;  %v4984_v45 = vrot.slane %v4983_v1, 2  ;;  %v4996_v25 = vrot.slane %v4995_v37, 4  ;;  %v15407_v19 = vld [vmem:[#allocation145_spill] sm:$0xff] }
 0x83b   : > { %v4407_v41 = vadd.f32 %v4406_v59, %v4405_v52  ;;  %v4991_v29 = vrot.slane %v4990_v33, 2 }
 0x83c   : > { %v4985_v47 = vadd.f32 %v4984_v45, %v4983_v1  ;;  %v4997_v62 = vadd.f32 %v4996_v25, %v4995_v37  ;;  %v15409_v45 = vld [vmem:[#allocation260_spill] sm:$0xff] }
 0x83d   : > { %v4432_v51 = vsel %vm623_vm7, %v4407_v41, %v13459_v7  ;;  %v4978_v7 = vadd.f32 %v4977_v40, %v4976_v34  ;;  %v4992_v21 = vadd.f32 %v4991_v29, %v4990_v33  ;;  %v15412_v29 = vld [vmem:[#allocation150_spill] sm:$0xff] }
 0x83e   : > { %v4433_v5 = vsel %vm625_vm8, %v4414_v42, %v4432_v51  ;;  %v4986_v35 = vrot.slane %v4985_v47, 1  ;;  %v4998_v53 = vrot.slane %v4997_v62, 2 }
 0x83f   : > { %v4435_v8 = vmul.f32 %v4433_v5, %v15406_v36  ;;  %v4979_v27 = vrot.slane %v4978_v7, 1  ;;  %v4993_v2 = vrot.slane %v4992_v21, 1 }
 0x840   : > { %v4987_v52 = vadd.f32 %v4986_v35, %v4985_v47  ;;  %v4999_v14 = vadd.f32 %v4998_v53, %v4997_v62  ;;  %v15414_v53 = vld [vmem:[#allocation337_spill] sm:$0xff] }
 0x841   : > { %v4436_v4 = vadd.f32 %v4435_v8, %v3849_v12  ;;  %v4980_v38 = vadd.f32 %v4979_v27, %v4978_v7  ;;  %v4994_v22 = vadd.f32 %v4993_v2, %v4992_v21  ;;  %v15410_v7 = vld [vmem:[#allocation53_spill] sm:$0xff]  ;;  %v15413_v27 = vld [vmem:[#allocation58_spill] sm:$0xff] }
 0x842   : > { %v5000_v48 = vrot.slane %v4999_v14, 1 }
 0x843   : > { %v5017_v31 = vsel %vm617_vm5, %v4980_v38, %v13475_v50 }
 0x844   : > { %v5018_v12 = vsel %vm620_vm6, %v4987_v52, %v5017_v31  ;;  %v5001_v6 = vadd.f32 %v5000_v48, %v4999_v14  ;;  %v15415_v52 = vld [vmem:[#allocation349_spill] sm:$0xff] }
 0x845   : > { %v5019_v43 = vsel %vm623_vm7, %v4994_v22, %v5018_v12  ;;  %v15416_v48 = vld [vmem:[#allocation181_spill] sm:$0xff] }
 0x846   : > { %v5020_v59 = vsel %vm625_vm8, %v5001_v6, %v5019_v43  ;;  %v15417_v6 = vld [vmem:[#allocation90_spill] sm:$0xff] }
 0x847   : > { %v5022_v54 = vmul.f32 %v5020_v59, %v15407_v19 }
 0x849   : > { %v13618_v0 = vadd.f32 %v5022_v54, %v4436_v4  ;;  %v15418_v54 = vld [vmem:[#allocation91_spill] sm:$0xff] }
 0x89e   : > { %v5434_v13 = vpop.xlane.xlu1 %5433 }
 0x89f   : > { %8556 = vrcp.f32 %v5434_v13 }
 0x8a9   : > { %v8557_v41 = vpop.eup %8556 }
 0x8aa   : > { %v5440_v11 = vrot.slane %v8557_v41, %v15306_v57  ;;  %v5444_v50 = vrot.slane %v8557_v41, %v15307_v16  ;;  %v5448_v15 = vrot.slane %v8557_v41, %v15308_v28  ;;  %v5452_v20 = vrot.slane %v8557_v41, %v15309_v18 }
 0x8ab   : > { %v5460_v37 = vrot.slane %v8557_v41, %v15320_v39  ;;  %v5464_v47 = vrot.slane %v8557_v41, %v15410_v7  ;;  %v5468_v35 = vrot.slane %v8557_v41, %v15413_v27 }
 0x8ac   : > { %v5477_v3 = vmul.f32 %v13105_v60, %v5440_v11  ;;  %v5478_v44 = vmul.f32 %v13109_v49, %v5444_v50  ;;  %v5479_v42 = vmul.f32 %v13113_v63, %v5448_v15  ;;  %v5480_v9 = vmul.f32 %v13121_v56, %v5452_v20  ;;  %v15422_v20 = vld [vmem:[#allocation254_spill] sm:$0xff] }
 0x8ad   : > { %v5456_v63 = vrot.slane %v8557_v41, %v15318_v10  ;;  %v5482_v8 = vmul.f32 %v13204_v32, %v5460_v37  ;;  %v15411_v32 = vld [vmem:[#allocation152_spill] sm:$0xff]  ;;  %v5483_v62 = vmul.f32 %v15412_v29, %v5464_v47  ;;  %v5484_v38 = vmul.f32 %v15414_v53, %v5468_v35  ;;  %v15419_v41 = vld [vmem:[#allocation253_spill] sm:$0xff] }
 0x8ae   : > { %5487 = vperm.xlu1 %8259, %v5477_v3   ;;  %5492 = vperm.xlu0 %8264, %v5478_v44   ;;  %v6021_v24 = vpop.xlane.xlu0 %6020  ;;  %v15420_v44 = vld [vmem:[#allocation154_spill] sm:$0xff]  ;;  %v15427_v37 = vld [vmem:[#allocation153_spill] sm:$0xff]  ;;  %v8782_v29 = vmov 39  }
 0x8af   : > { %8558 = vrcp.f32 %v6021_v24  ;;  %v5481_v56 = vmul.f32 %v13199_v46, %v5456_v63  ;;  %v15408_v46 = vld [vmem:[#allocation300_spill] sm:$0xff] }
 0x8b0   : > { %v15421_v24 = vld [vmem:[#allocation180_spill] sm:$0xff] }
 0x8b1   : > { %v15425_v63 = vld [vmem:[#allocation232_spill] sm:$0xff] }
 0x8b2   : > { %5497 = vperm.xlu1 %8259, %v5479_v42   ;;  %v6608_v51 = vpop.xlane.xlu0 %6607 }
 0x8b3   : > { %8560 = vrcp.f32 %v6608_v51 }
 0x8b6   : > { %5502 = vperm.xlu1 %8259, %v5480_v9   ;;  %v15423_v9 = vld [vmem:[#allocation336_spill] sm:$0xff] }
 0x8b9   : > { %v8559_v61 = vpop.eup %8558 }
 0x8ba   : > { %v6031_v60 = vrot.slane %v8559_v61, %v15307_v16  ;;  %v6027_v49 = vrot.slane %v8559_v61, %v15306_v57  ;;  %v6035_v1 = vrot.slane %v8559_v61, %v15308_v28  ;;  %v6039_v5 = vrot.slane %v8559_v61, %v15309_v18 }
 0x8bb   : > { %v6043_v25 = vrot.slane %v8559_v61, %v15318_v10  ;;  %v6047_v31 = vrot.slane %v8559_v61, %v15320_v39  ;;  %v6051_v3 = vrot.slane %v8559_v61, %v15410_v7 }
 0x8bc   : > { %v6065_v30 = vmul.f32 %v13279_v26, %v6031_v60  ;;  %v6064_v34 = vmul.f32 %v13194_v55, %v6027_v49  ;;  %v6066_v23 = vmul.f32 %v13291_v17, %v6035_v1  ;;  %v6067_v55 = vmul.f32 %v13303_v58, %v6039_v5 }
 0x8bd   : > { %v13638_v36 = vpop.eup %8560  ;;  %v6068_v58 = vmul.f32 %v15411_v32, %v6043_v25  ;;  %v6069_v43 = vmul.f32 %v15417_v6, %v6047_v31  ;;  %v6070_v42 = vmul.f32 %v15421_v24, %v6051_v3  ;;  %v15431_v25 = vld [vmem:[#allocation302_spill] sm:$0xff]  ;;  %v15432_v32 = vld [vmem:[#allocation172_spill] sm:$0xff] }
 0x8be   : > { %6079 = vperm.xlu0 %8264, %v6065_v30   ;;  %6074 = vperm.xlu1 %8259, %v6064_v34   ;;  %v7195_v26 = vpop.xlane.xlu0 %7194  ;;  %v6618_v40 = vrot.slane %v13638_v36, %v15307_v16  ;;  %v6614_v17 = vrot.slane %v13638_v36, %v15306_v57  ;;  %v6622_v21 = vrot.slane %v13638_v36, %v15308_v28  ;;  %v15424_v34 = vld [vmem:[#allocation182_spill] sm:$0xff] }
 0x8bf   : > { %8562 = vrcp.f32 %v7195_v26  ;;  %v6626_v14 = vrot.slane %v13638_v36, %v15309_v18  ;;  %v6630_v50 = vrot.slane %v13638_v36, %v15318_v10  ;;  %v6634_v30 = vrot.slane %v13638_v36, %v15320_v39 }
 0x8c0   : > { %v6652_v4 = vmul.f32 %v15408_v46, %v6618_v40  ;;  %v6651_v33 = vmul.f32 %v15409_v45, %v6614_v17  ;;  %v6653_v2 = vmul.f32 %v15415_v52, %v6622_v21  ;;  %v15429_v17 = vld [vmem:[#allocation350_spill] sm:$0xff]  ;;  %v15430_v45 = vld [vmem:[#allocation92_spill] sm:$0xff] }
 0x8c1   : > { %v6654_v12 = vmul.f32 %v15416_v48, %v6626_v14  ;;  %v6655_v15 = vmul.f32 %v15420_v44, %v6630_v50  ;;  %v15434_v21 = vld [vmem:[#allocation284_spill] sm:$0xff] }
 0x8c2   : > { %6084 = vperm.xlu0 %8264, %v6066_v23   ;;  %5507 = vperm.xlu1 %8259, %v5481_v56   ;;  %v6656_v23 = vmul.f32 %v15425_v63, %v6634_v30  ;;  %v15426_v56 = vld [vmem:[#allocation301_spill] sm:$0xff]  ;;  %v15437_v30 = vld [vmem:[#allocation216_spill] sm:$0xff] }
 0x8c6   : > { %6089 = vperm.xlu0 %8264, %v6067_v55   ;;  %5512 = vperm.xlu1 %8259, %v5482_v8   ;;  %v6642_v55 = vrot.slane %v13638_v36, %v15413_v27  ;;  %v15428_v8 = vld [vmem:[#allocation156_spill] sm:$0xff] }
 0x8c9   : > { %v8563_v22 = vpop.eup %8562 }
 0x8ca   : > { %6666 = vperm.xlu0 %8264, %v6652_v4   ;;  %6661 = vperm.xlu1 %8259, %v6651_v33   ;;  %v7205_v59 = vrot.slane %v8563_v22, %v15307_v16  ;;  %v7201_v19 = vrot.slane %v8563_v22, %v15306_v57  ;;  %v6055_v16 = vrot.slane %v8559_v61, %v15413_v27 }
 0x8cb   : > { %v7209_v57 = vrot.slane %v8563_v22, %v15308_v28  ;;  %v7213_v49 = vrot.slane %v8563_v22, %v15309_v18  ;;  %v7217_v61 = vrot.slane %v8563_v22, %v15318_v10  ;;  %v6638_v28 = vrot.slane %v13638_v36, %v15410_v7 }
 0x8cc   : > { %v7239_v13 = vmul.f32 %v15418_v54, %v7205_v59  ;;  %v7238_v11 = vmul.f32 %v15419_v41, %v7201_v19  ;;  %v6071_v51 = vmul.f32 %v15422_v20, %v6055_v16  ;;  %v7221_v26 = vrot.slane %v8563_v22, %v15320_v39  ;;  %v15436_v41 = vld [vmem:[#allocation239_spill] sm:$0xff] }
 0x8cd   : > { %v7240_v60 = vmul.f32 %v15423_v9, %v7209_v57  ;;  %v7241_v1 = vmul.f32 %v15424_v34, %v7213_v49  ;;  %v7242_v5 = vmul.f32 %v15426_v56, %v7217_v61  ;;  %v6657_v18 = vmul.f32 %v15427_v37, %v6638_v28 }
 0x8ce   : > { %6094 = vperm.xlu0 %8264, %v6068_v58   ;;  %5517 = vperm.xlu1 %8259, %v5483_v62   ;;  %v7243_v40 = vmul.f32 %v15428_v8, %v7221_v26  ;;  %v6658_v10 = vmul.f32 %v15429_v17, %v6642_v55  ;;  %v7229_v46 = vrot.slane %v8563_v22, %v15413_v27  ;;  %v8779_v39 = vmov 37   ;;  %v15433_v27 = vld [vmem:[#allocation332_spill] sm:$0xff] }
 0x8cf   : > { %v7225_v4 = vrot.slane %v8563_v22, %v15410_v7  ;;  %v8780_v36 = vmov 36   ;;  %v8781_v58 = vmov 38   ;;  %v15435_v22 = vld [vmem:[#allocation221_spill] sm:$0xff] }
 0x8d0   : > { %v7245_v33 = vmul.f32 %v15430_v45, %v7229_v46 }
 0x8d1   : > { %v7244_v47 = vmul.f32 %v15431_v25, %v7225_v4 }
 0x8d2   : > { %5522 = vperm.xlu0 %8264, %v5484_v38   ;;  %6671 = vperm.xlu1 %8259, %v6653_v2  }
 0x8d6   : > { %6676 = vperm.xlu0 %8264, %v6654_v12   ;;  %6099 = vperm.xlu1 %8259, %v6069_v43  }
 0x8da   : > { %7253 = vperm.xlu0 %8264, %v7239_v13   ;;  %7248 = vperm.xlu1 %8259, %v7238_v11  }
 0x8de   : > { %6681 = vperm.xlu0 %8264, %v6655_v15   ;;  %6104 = vperm.xlu1 %8259, %v6070_v42  }
 0x8e2   : > { %6109 = vperm.xlu0 %8264, %v6071_v51   ;;  %7258 = vperm.xlu1 %8259, %v7240_v60  }
 0x8e6   : > { %7263 = vperm.xlu0 %8264, %v7241_v1   ;;  %6686 = vperm.xlu1 %8259, %v6656_v23   ;;  %v15438_v1 = vld [vmem:[#allocation220_spill] sm:$0xff] }
 0x8ea   : > { %7268 = vperm.xlu0 %8264, %v7242_v5   ;;  %6691 = vperm.xlu1 %8259, %v6657_v18  }
 0x8ee   : > { %7273 = vperm.xlu0 %8264, %v7243_v40   ;;  %6696 = vperm.xlu1 %8259, %v6658_v10   ;;  %v15439_v40 = vld [vmem:[#allocation138_spill] sm:$0xff] }
 0x8ef   : > { %v15440_v10 = vld [vmem:[#allocation134_spill] sm:$0xff] }
 0x8f2   : > { %7283 = vperm.xlu0 %8264, %v7245_v33   ;;  %7278 = vperm.xlu1 %8259, %v7244_v47  }
 0x8f6   : > { %8266 = vset.pattern.permute.xlu0 %v8779_v39  ;;  %8265 = vset.pattern.permute.xlu1 %v8780_v36 }
 0x8f7   : > { %6177 = vperm.xlu0 %8266, %v15432_v32   ;;  %5590 = vperm.xlu1 %8265, %v15432_v32  }
 0x8fb   : > { %8267 = vset.pattern.permute.xlu1 %v8781_v58  ;;  %8269 = vset.pattern.permute.xlu0 %v8782_v29 }
 0x8fc   : > { %6764 = vperm.xlu1 %8267, %v15432_v32  }
 0x900   : > { %8268 = vset.pattern.permute.xlu1 %v8782_v29 }
 0x901   : > { %7351 = vperm.xlu1 %8268, %v15432_v32  }
 0x92d   : > { %v5488_v7 = vpop.permute.xlu1 %5487  ;;  %v5493_v62 = vpop.permute.xlu0 %5492 }
 0x92e   : > { %v5525_v35 = vmul.f32 %v15433_v27, %v5488_v7  ;;  %v5526_v53 = vmul.f32 %v15434_v21, %v5493_v62 }
 0x930   : > { %v5533_v38 = vsel %vm465_vm1, %v5525_v35, 0.0  ;;  %v5540_v52 = vsel %vm465_vm1, %v5526_v53, 0.0  ;;  %v15441_v35 = vld [vmem:[#allocation116_spill] sm:$0xff]  ;;  %v15442_v53 = vld [vmem:[#allocation283_spill] sm:$0xff] }
 0x931   : > { %v5534_v2 = vrot.slane %v5533_v38, 4  ;;  %v5541_v14 = vrot.slane %v5540_v52, 4  ;;  %v5498_v31 = vpop.permute.xlu1 %5497 }
 0x932   : > { %v5527_v48 = vmul.f32 %v15435_v22, %v5498_v31 }
 0x933   : > { %v5535_v12 = vadd.f32 %v5534_v2, %v5533_v38  ;;  %v5542_v6 = vadd.f32 %v5541_v14, %v5540_v52 }
 0x934   : > { %v5547_v43 = vsel %vm465_vm1, %v5527_v48, 0.0 }
 0x935   : > { %v5536_v59 = vrot.slane %v5535_v12, 2  ;;  %v5548_v19 = vrot.slane %v5547_v43, 4  ;;  %v5503_v54 = vpop.permute.xlu1 %5502  ;;  %v5543_v13 = vrot.slane %v5542_v6, 2 }
 0x936   : > { %v5528_v11 = vmul.f32 %v15436_v41, %v5503_v54 }
 0x937   : > { %v5549_v50 = vadd.f32 %v5548_v19, %v5547_v43  ;;  %v5537_v44 = vadd.f32 %v5536_v59, %v5535_v12  ;;  %v5544_v42 = vadd.f32 %v5543_v13, %v5542_v6 }
 0x938   : > { %v5554_v3 = vsel %vm465_vm1, %v5528_v11, 0.0 }
 0x939   : > { %v5550_v15 = vrot.slane %v5549_v50, 2  ;;  %v5555_v24 = vrot.slane %v5554_v3, 4  ;;  %v5538_v20 = vrot.slane %v5537_v44, 1  ;;  %v5545_v60 = vrot.slane %v5544_v42, 1 }
 0x93b   : > { %v5556_v16 = vadd.f32 %v5555_v24, %v5554_v3  ;;  %v5551_v57 = vadd.f32 %v5550_v15, %v5549_v50  ;;  %v5539_v56 = vadd.f32 %v5538_v20, %v5537_v44  ;;  %v5546_v55 = vadd.f32 %v5545_v60, %v5544_v42  ;;  %v15443_v50 = vld [vmem:[#allocation286_spill] sm:$0xff]  ;;  %v15444_v44 = vld [vmem:[#allocation215_spill] sm:$0xff] }
 0x93d   : > { %v6075_v51 = vpop.permute.xlu1 %6074  ;;  %v6080_v9 = vpop.permute.xlu0 %6079  ;;  %v5557_v49 = vrot.slane %v5556_v16, 2  ;;  %v5552_v23 = vrot.slane %v5551_v57, 1  ;;  %v5601_v62 = vsel %vm608_vm2, %v5546_v55, %v5539_v56 }
 0x93e   : > { %v6112_v34 = vmul.f32 %v15437_v30, %v6075_v51  ;;  %v6113_v63 = vmul.f32 %v15438_v1, %v6080_v9 }
 0x93f   : > { %v5558_v8 = vadd.f32 %v5557_v49, %v5556_v16  ;;  %v5553_v33 = vadd.f32 %v5552_v23, %v5551_v57 }
 0x940   : > { %v6120_v61 = vsel %vm465_vm1, %v6112_v34, 0.0  ;;  %v6127_v28 = vsel %vm465_vm1, %v6113_v63, 0.0 }
 0x941   : > { %v6121_v5 = vrot.slane %v6120_v61, 4  ;;  %v6128_v37 = vrot.slane %v6127_v28, 4  ;;  %v5508_v18 = vpop.permute.xlu1 %5507  ;;  %v6085_v26 = vpop.permute.xlu0 %6084  ;;  %v5559_v27 = vrot.slane %v5558_v8, 1  ;;  %v5602_v22 = vsel %vm611_vm3, %v5553_v33, %v5601_v62 }
 0x942   : > { %v5529_v17 = vmul.f32 %v15439_v40, %v5508_v18  ;;  %v6114_v46 = vmul.f32 %v15440_v10, %v6085_v26  ;;  %v15446_v26 = vld [vmem:[#allocation115_spill] sm:$0xff] }
 0x943   : > { %v6122_v4 = vadd.f32 %v6121_v5, %v6120_v61  ;;  %v6129_v45 = vadd.f32 %v6128_v37, %v6127_v28  ;;  %v5560_v24 = vadd.f32 %v5559_v27, %v5558_v8  ;;  %v15445_v5 = vld [vmem:[#allocation250_spill] sm:$0xff] }
 0x944   : > { %v5561_v25 = vsel %vm465_vm1, %v5529_v17, 0.0  ;;  %v6134_v47 = vsel %vm465_vm1, %v6114_v46, 0.0  ;;  %v15447_v27 = vld [vmem:[#allocation334_spill] sm:$0xff] }
 0x945   : > { %v6123_v39 = vrot.slane %v6122_v4, 2  ;;  %v6130_v36 = vrot.slane %v6129_v45, 2  ;;  %v5562_v32 = vrot.slane %v5561_v25, 4  ;;  %v6135_v58 = vrot.slane %v6134_v47, 4  ;;  %v5513_v29 = vpop.permute.xlu1 %5512  ;;  %v6090_v7 = vpop.permute.xlu0 %6089 }
 0x946   : > { %v5530_v21 = vmul.f32 %v15441_v35, %v5513_v29  ;;  %v6115_v38 = vmul.f32 %v15442_v53, %v6090_v7  ;;  %v5603_v8 = vsel %vm614_vm4, %v5560_v24, %v5602_v22 }
 0x947   : > { %v6124_v52 = vadd.f32 %v6123_v39, %v6122_v4  ;;  %v6131_v2 = vadd.f32 %v6130_v36, %v6129_v45  ;;  %v5563_v14 = vadd.f32 %v5562_v32, %v5561_v25  ;;  %v6136_v31 = vadd.f32 %v6135_v58, %v6134_v47 }
 0x948   : > { %v5568_v48 = vsel %vm465_vm1, %v5530_v21, 0.0  ;;  %v6141_v12 = vsel %vm465_vm1, %v6115_v38, 0.0  ;;  %v15448_v21 = vld [vmem:[#allocation279_spill] sm:$0xff] }
 0x949   : > { %v6125_v6 = vrot.slane %v6124_v52, 1  ;;  %v6132_v43 = vrot.slane %v6131_v2, 1  ;;  %v5564_v59 = vrot.slane %v5563_v14, 2  ;;  %v6137_v19 = vrot.slane %v6136_v31, 2  ;;  %v6662_v54 = vpop.permute.xlu1 %6661  ;;  %v6667_v13 = vpop.permute.xlu0 %6666 }
 0x94a   : > { %v5569_v41 = vrot.slane %v5568_v48, 4  ;;  %v6142_v11 = vrot.slane %v6141_v12, 4  ;;  %v6699_v3 = vmul.f32 %v15443_v50, %v6662_v54  ;;  %v6700_v15 = vmul.f32 %v15444_v44, %v6667_v13  ;;  %v15449_v50 = vld [vmem:[#allocation174_spill] sm:$0xff]  ;;  %v15450_v44 = vld [vmem:[#allocation136_spill] sm:$0xff] }
 0x94b   : > { %v6126_v42 = vadd.f32 %v6125_v6, %v6124_v52  ;;  %v5565_v16 = vadd.f32 %v5564_v59, %v5563_v14  ;;  %v6138_v57 = vadd.f32 %v6137_v19, %v6136_v31  ;;  %v6133_v49 = vadd.f32 %v6132_v43, %v6131_v2 }
 0x94c   : > { %v5570_v20 = vadd.f32 %v5569_v41, %v5568_v48  ;;  %v6143_v51 = vadd.f32 %v6142_v11, %v6141_v12  ;;  %v6707_v9 = vsel %vm465_vm1, %v6699_v3, 0.0  ;;  %v6714_v60 = vsel %vm465_vm1, %v6700_v15, 0.0 }
 0x94d   : > { %v5566_v30 = vrot.slane %v5565_v16, 1  ;;  %v6139_v34 = vrot.slane %v6138_v57, 1  ;;  %v6708_v1 = vrot.slane %v6707_v9, 4  ;;  %v5518_v63 = vpop.permute.xlu1 %5517  ;;  %v6095_v23 = vpop.permute.xlu0 %6094  ;;  %v6715_v56 = vrot.slane %v6714_v60, 4 }
 0x94e   : > { %v5571_v61 = vrot.slane %v5570_v20, 2  ;;  %v6144_v28 = vrot.slane %v6143_v51, 2  ;;  %v5531_v37 = vmul.f32 %v15445_v5, %v5518_v63  ;;  %v6116_v55 = vmul.f32 %v15446_v26, %v6095_v23 }
 0x94f   : > { %v6709_v18 = vadd.f32 %v6708_v1, %v6707_v9  ;;  %v6716_v10 = vadd.f32 %v6715_v56, %v6714_v60  ;;  %v6188_v4 = vsel %vm608_vm2, %v6133_v49, %v6126_v42  ;;  %v5567_v36 = vadd.f32 %v5566_v30, %v5565_v16  ;;  %v15451_v56 = vld [vmem:[#allocation324_spill] sm:$0xff] }
 0x950   : > { %v5572_v40 = vadd.f32 %v5571_v61, %v5570_v20  ;;  %v6145_v17 = vadd.f32 %v6144_v28, %v6143_v51  ;;  %v5575_v46 = vsel %vm465_vm1, %v5531_v37, 0.0  ;;  %v6148_v25 = vsel %vm465_vm1, %v6116_v55, 0.0 }
 0x951   : > { %v6710_v45 = vrot.slane %v6709_v18, 2  ;;  %v5576_v33 = vrot.slane %v5575_v46, 4  ;;  %v6672_v47 = vpop.permute.xlu1 %6671  ;;  %v5523_v39 = vpop.permute.xlu0 %5522  ;;  %v6140_v32 = vadd.f32 %v6139_v34, %v6138_v57  ;;  %v6717_v58 = vrot.slane %v6716_v10, 2 }
 0x952   : > { %v6149_v29 = vrot.slane %v6148_v25, 4  ;;  %v6701_v35 = vmul.f32 %v15447_v27, %v6672_v47  ;;  %v5532_v53 = vmul.f32 %v15448_v21, %v5523_v39  ;;  %v5573_v38 = vrot.slane %v5572_v40, 1 }
 0x953   : > { %v6711_v7 = vadd.f32 %v6710_v45, %v6709_v18  ;;  %v5577_v62 = vadd.f32 %v5576_v33, %v5575_v46  ;;  %v6146_v52 = vrot.slane %v6145_v17, 1  ;;  %v6718_v2 = vadd.f32 %v6717_v58, %v6716_v10 }
 0x954   : > { %v6150_v14 = vadd.f32 %v6149_v29, %v6148_v25  ;;  %v6721_v48 = vsel %vm465_vm1, %v6701_v35, 0.0  ;;  %v5582_v12 = vsel %vm465_vm1, %v5532_v53, 0.0  ;;  %v13735_v41 = vsel %vm611_vm3, %v6140_v32, %v6188_v4  ;;  %v15454_v53 = vld [vmem:[#allocation173_spill] sm:$0xff] }
 0x955   : > { %v6712_v31 = vrot.slane %v6711_v7, 1  ;;  %v5578_v22 = vrot.slane %v5577_v62, 2  ;;  %v6100_v6 = vpop.permute.xlu1 %6099  ;;  %v6677_v43 = vpop.permute.xlu0 %6676  ;;  %v6719_v59 = vrot.slane %v6718_v2, 1  ;;  %v6722_v54 = vrot.slane %v6721_v48, 4 }
 0x956   : > { %v6151_v19 = vrot.slane %v6150_v14, 2  ;;  %v5583_v13 = vrot.slane %v5582_v12, 4  ;;  %v6117_v3 = vmul.f32 %v15449_v50, %v6100_v6  ;;  %v6702_v15 = vmul.f32 %v15450_v44, %v6677_v43  ;;  %v15455_v44 = vld [vmem:[#allocation217_spill] sm:$0xff] }
 0x957   : > { %v5579_v11 = vadd.f32 %v5578_v22, %v5577_v62  ;;  %v5574_v24 = vadd.f32 %v5573_v38, %v5572_v40  ;;  %v6723_v16 = vadd.f32 %v6722_v54, %v6721_v48  ;;  %v6713_v20 = vadd.f32 %v6712_v31, %v6711_v7  ;;  %v15452_v40 = vld [vmem:[#allocation333_spill] sm:$0xff] }
 0x958   : > { %v6152_v42 = vadd.f32 %v6151_v19, %v6150_v14  ;;  %v5584_v57 = vadd.f32 %v5583_v13, %v5582_v12  ;;  %v6720_v51 = vadd.f32 %v6719_v59, %v6718_v2  ;;  %v6155_v9 = vsel %vm465_vm1, %v6117_v3, 0.0  ;;  %v15453_v7 = vld [vmem:[#allocation141_spill] sm:$0xff] }
 0x959   : > { %v6728_v60 = vsel %vm465_vm1, %v6702_v15, 0.0  ;;  %v7249_v49 = vpop.permute.xlu1 %7248  ;;  %v7254_v30 = vpop.permute.xlu0 %7253  ;;  %v13741_v34 = vadd.f32 %v6146_v52, %v6145_v17  ;;  %v5580_v1 = vrot.slane %v5579_v11, 1  ;;  %v6724_v63 = vrot.slane %v6723_v16, 2 }
 0x95a   : > { %v5585_v23 = vrot.slane %v5584_v57, 2  ;;  %v6156_v61 = vrot.slane %v6155_v9, 4  ;;  %v6729_v28 = vrot.slane %v6728_v60, 4  ;;  %v7286_v5 = vmul.f32 %v15451_v56, %v7249_v49 }
 0x95b   : > { %v5604_v37 = vsel %vm617_vm5, %v5567_v36, %v5603_v8  ;;  %v6153_v18 = vrot.slane %v6152_v42, 1  ;;  %v6725_v26 = vadd.f32 %v6724_v63, %v6723_v16  ;;  %v7287_v10 = vmul.f32 %v15452_v40, %v7254_v30 }
 0x95c   : > { %v5586_v55 = vadd.f32 %v5585_v23, %v5584_v57  ;;  %v6775_v46 = vsel %vm608_vm2, %v6720_v51, %v6713_v20  ;;  %v6157_v4 = vadd.f32 %v6156_v61, %v6155_v9  ;;  %v6730_v45 = vadd.f32 %v6729_v28, %v6728_v60 }
 0x95d   : > { %v7294_v17 = vsel %vm465_vm1, %v7286_v5, 0.0  ;;  %v6105_v33 = vpop.permute.xlu1 %6104  ;;  %v6682_v25 = vpop.permute.xlu0 %6681  ;;  %v6726_v47 = vrot.slane %v6725_v26, 1  ;;  %v7301_v58 = vsel %vm465_vm1, %v7287_v10, 0.0  ;;  %v13750_v27 = vadd.f32 %v5580_v1, %v5579_v11 }
 0x95e   : > { %v5587_v39 = vrot.slane %v5586_v55, 1  ;;  %v7295_v32 = vrot.slane %v7294_v17, 4  ;;  %v6158_v29 = vrot.slane %v6157_v4, 2  ;;  %v6731_v8 = vrot.slane %v6730_v45, 2 }
 0x95f   : > { %v7302_v36 = vrot.slane %v7301_v58, 4  ;;  %v6118_v62 = vmul.f32 %v15453_v7, %v6105_v33  ;;  %v13752_v35 = vadd.f32 %v6153_v18, %v6152_v42  ;;  %v6703_v38 = vmul.f32 %v15454_v53, %v6682_v25  ;;  %v15456_v42 = vld [vmem:[#allocation323_spill] sm:$0xff]  ;;  %v15457_v18 = vld [vmem:[#allocation222_spill] sm:$0xff] }
 0x960   : > { %v7296_v21 = vadd.f32 %v7295_v32, %v7294_v17  ;;  %v6159_v52 = vadd.f32 %v6158_v29, %v6157_v4  ;;  %v6732_v2 = vadd.f32 %v6731_v8, %v6730_v45  ;;  %v13758_v59 = vsel %vm620_vm6, %v5574_v24, %v5604_v37 }
 0x961   : > { %v7303_v14 = vadd.f32 %v7302_v36, %v7301_v58  ;;  %v6162_v31 = vsel %vm465_vm1, %v6118_v62, 0.0  ;;  %v7259_v22 = vpop.permute.xlu1 %7258  ;;  %v6110_v48 = vpop.permute.xlu0 %6109  ;;  %v6735_v43 = vsel %vm465_vm1, %v6703_v38, 0.0  ;;  %v6727_v19 = vadd.f32 %v6726_v47, %v6725_v26  ;;  %v15459_v58 = vld [vmem:[#allocation142_spill] sm:$0xff] }
 0x962   : > { %v7297_v12 = vrot.slane %v7296_v21, 2  ;;  %v6163_v6 = vrot.slane %v6162_v31, 4  ;;  %v6736_v13 = vrot.slane %v6735_v43, 4  ;;  %v13760_v11 = vadd.f32 %v5587_v39, %v5586_v55  ;;  %v15458_v55 = vld [vmem:[#allocation240_spill] sm:$0xff] }
 0x963   : > { %v7304_v54 = vrot.slane %v7303_v14, 2  ;;  %v7288_v15 = vmul.f32 %v15455_v44, %v7259_v22  ;;  %v6119_v16 = vmul.f32 %v15456_v42, %v6110_v48  ;;  %v6160_v57 = vrot.slane %v6159_v52, 1 }
 0x964   : > { %v7298_v50 = vadd.f32 %v7297_v12, %v7296_v21  ;;  %v6164_v3 = vadd.f32 %v6163_v6, %v6162_v31  ;;  %v6733_v20 = vrot.slane %v6732_v2, 1  ;;  %v6737_v9 = vadd.f32 %v6736_v13, %v6735_v43  ;;  %v15461_v13 = vld [vmem:[#allocation249_spill] sm:$0xff] }
 0x965   : > { %v7305_v51 = vadd.f32 %v7304_v54, %v7303_v14  ;;  %v6687_v60 = vpop.permute.xlu1 %6686  ;;  %v7264_v49 = vpop.permute.xlu0 %7263  ;;  %v7308_v1 = vsel %vm465_vm1, %v7288_v15, 0.0  ;;  %v6169_v63 = vsel %vm465_vm1, %v6119_v16, 0.0  ;;  %v13769_v47 = vsel %vm611_vm3, %v6727_v19, %v6775_v46  ;;  %v15460_v19 = vld [vmem:[#allocation137_spill] sm:$0xff]  ;;  %v15462_v15 = vld [vmem:[#allocation120_spill] sm:$0xff] }
 0x966   : > { %v7299_v30 = vrot.slane %v7298_v50, 1  ;;  %v6165_v24 = vrot.slane %v6164_v3, 2  ;;  %v6738_v61 = vrot.slane %v6737_v9, 2  ;;  %v7309_v28 = vrot.slane %v7308_v1, 4 }
 0x967   : > { %v7306_v23 = vrot.slane %v7305_v51, 1  ;;  %v6170_v56 = vrot.slane %v6169_v63, 4  ;;  %v6704_v26 = vmul.f32 %v15457_v18, %v6687_v60  ;;  %v7289_v40 = vmul.f32 %v15458_v55, %v7264_v49 }
 0x968   : > { %v7300_v5 = vadd.f32 %v7299_v30, %v7298_v50  ;;  %v6166_v37 = vadd.f32 %v6165_v24, %v6164_v3  ;;  %v6739_v4 = vadd.f32 %v6738_v61, %v6737_v9  ;;  %v7310_v45 = vadd.f32 %v7309_v28, %v7308_v1  ;;  %v15463_v61 = vld [vmem:[#allocation177_spill] sm:$0xff] }
 0x969   : > { %v7307_v10 = vadd.f32 %v7306_v23, %v7305_v51  ;;  %v6171_v17 = vadd.f32 %v6170_v56, %v6169_v63  ;;  %v6692_v33 = vpop.permute.xlu1 %6691  ;;  %v7269_v25 = vpop.permute.xlu0 %7268  ;;  %v6742_v39 = vsel %vm465_vm1, %v6704_v26, 0.0  ;;  %v7315_v32 = vsel %vm465_vm1, %v7289_v40, 0.0 }
 0x96a   : > { %v6705_v29 = vmul.f32 %v15459_v58, %v6692_v33  ;;  %v13774_v8 = vadd.f32 %v6160_v57, %v6159_v52  ;;  %v6167_v36 = vrot.slane %v6166_v37, 1  ;;  %v7311_v7 = vrot.slane %v7310_v45, 2 }
 0x96b   : > { %v6172_v62 = vrot.slane %v6171_v17, 2  ;;  %v13776_v21 = vadd.f32 %v6733_v20, %v6732_v2  ;;  %v6743_v53 = vrot.slane %v6742_v39, 4  ;;  %v7316_v38 = vrot.slane %v7315_v32, 4 }
 0x96c   : > { %v6749_v14 = vsel %vm465_vm1, %v6705_v29, 0.0  ;;  %v13780_v46 = vsel %vm608_vm2, %v7307_v10, %v7300_v5  ;;  %v6740_v31 = vrot.slane %v6739_v4, 1  ;;  %v7312_v22 = vadd.f32 %v7311_v7, %v7310_v45 }
 0x96d   : > { %v6750_v48 = vrot.slane %v6749_v14, 4  ;;  %v6697_v12 = vpop.permute.xlu1 %6696  ;;  %v7274_v6 = vpop.permute.xlu0 %7273  ;;  %v6744_v43 = vadd.f32 %v6743_v53, %v6742_v39  ;;  %v7317_v52 = vadd.f32 %v7316_v38, %v7315_v32  ;;  %v7290_v54 = vmul.f32 %v15460_v19, %v7269_v25 }
 0x96e   : > { %v6706_v50 = vmul.f32 %v15461_v13, %v6697_v12  ;;  %v13784_v2 = vadd.f32 %v6167_v36, %v6166_v37  ;;  %v6173_v3 = vadd.f32 %v6172_v62, %v6171_v17  ;;  %v7291_v42 = vmul.f32 %v15462_v15, %v7274_v6  ;;  %v15464_v36 = vld [vmem:[#allocation291_spill] sm:$0xff] }
 0x96f   : > { %v6751_v44 = vadd.f32 %v6750_v48, %v6749_v14  ;;  %v6745_v16 = vrot.slane %v6744_v43, 2  ;;  %v7318_v57 = vrot.slane %v7317_v52, 2  ;;  %v7322_v20 = vsel %vm465_vm1, %v7290_v54, 0.0 }
 0x970   : > { %v6756_v51 = vsel %vm465_vm1, %v6706_v50, 0.0  ;;  %v7313_v9 = vrot.slane %v7312_v22, 1  ;;  %v7323_v49 = vrot.slane %v7322_v20, 4  ;;  %v7329_v23 = vsel %vm465_vm1, %v7291_v42, 0.0 }
 0x971   : > { %v6752_v60 = vrot.slane %v6751_v44, 2  ;;  %v6757_v30 = vrot.slane %v6756_v51, 4  ;;  %v7279_v24 = vpop.permute.xlu1 %7278  ;;  %v6746_v1 = vadd.f32 %v6745_v16, %v6744_v43  ;;  %v7319_v63 = vadd.f32 %v7318_v57, %v7317_v52  ;;  %v7284_v26 = vpop.permute.xlu0 %7283 }
 0x972   : > { %v7292_v28 = vmul.f32 %v15463_v61, %v7279_v24  ;;  %v6741_v56 = vadd.f32 %v6740_v31, %v6739_v4  ;;  %v7324_v37 = vadd.f32 %v7323_v49, %v7322_v20  ;;  %v7330_v10 = vrot.slane %v7329_v23, 4 }
 0x973   : > { %v6753_v5 = vadd.f32 %v6752_v60, %v6751_v44  ;;  %v6758_v18 = vadd.f32 %v6757_v30, %v6756_v51  ;;  %v6747_v55 = vrot.slane %v6746_v1, 1  ;;  %v7320_v40 = vrot.slane %v7319_v63, 1 }
 0x974   : > { %v7336_v45 = vsel %vm465_vm1, %v7292_v28, 0.0  ;;  %v6174_v17 = vrot.slane %v6173_v3, 1  ;;  %v7325_v33 = vrot.slane %v7324_v37, 2  ;;  %v7314_v32 = vadd.f32 %v7313_v9, %v7312_v22 }
 0x975   : > { %v6759_v25 = vrot.slane %v6758_v18, 2  ;;  %v7337_v39 = vrot.slane %v7336_v45, 4  ;;  %v6754_v58 = vrot.slane %v6753_v5, 1  ;;  %v7331_v29 = vadd.f32 %v7330_v10, %v7329_v23 }
 0x976   : > { %v7293_v7 = vmul.f32 %v15464_v36, %v7284_v26  ;;  %v6748_v62 = vadd.f32 %v6747_v55, %v6746_v1  ;;  %v7326_v4 = vadd.f32 %v7325_v33, %v7324_v37  ;;  %v7321_v14 = vadd.f32 %v7320_v40, %v7319_v63  ;;  %v5591_v19 = vpop.permute.xlu1 %5590  ;;  %v6178_v24 = vpop.permute.xlu0 %6177  ;;  %v7414_v36 = vld [vmem:[%s15465_s7 + $0x10] sm:$0xff] }
 0x977   : > { %v6760_v53 = vadd.f32 %v6759_v25, %v6758_v18  ;;  %v7338_v38 = vadd.f32 %v7337_v39, %v7336_v45  ;;  %v7332_v31 = vrot.slane %v7331_v29, 2  ;;  %v5606_v12 = vsel %vm623_vm7, %v13750_v27, %v13758_v59 }
 0x978   : > { %v7343_v48 = vsel %vm465_vm1, %v7293_v7, 0.0  ;;  %v7327_v6 = vrot.slane %v7326_v4, 1  ;;  %v6755_v54 = vadd.f32 %v6754_v58, %v6753_v5  ;;  %v5607_v50 = vsel %vm625_vm8, %v13760_v11, %v5606_v12  ;;  %v7412_v58 = vld [vmem:[%s15465_s7] sm:$0xff] }
 0x979   : > { %v6761_v43 = vrot.slane %v6760_v53, 1  ;;  %v7339_v52 = vrot.slane %v7338_v38, 2  ;;  %v7344_v22 = vrot.slane %v7343_v48, 4  ;;  %v7333_v13 = vadd.f32 %v7332_v31, %v7331_v29  ;;  %v7413_v29 = vld [vmem:[%s15465_s7 + $0x8] sm:$0xff] }
 0x97a   : > { %v6175_v44 = vadd.f32 %v6174_v17, %v6173_v3  ;;  %v6190_v16 = vsel %vm614_vm4, %v13741_v34, %v13735_v41  ;;  %v6777_v27 = vsel %vm614_vm4, %v13776_v21, %v13769_v47  ;;  %v7328_v59 = vadd.f32 %v7327_v6, %v7326_v4  ;;  %v15468_v12 = vld [vmem:[#allocation306_spill] sm:$0xff] }
 0x97b   : > { %v7340_v15 = vadd.f32 %v7339_v52, %v7338_v38  ;;  %v7345_v42 = vadd.f32 %v7344_v22, %v7343_v48  ;;  %v7334_v57 = vrot.slane %v7333_v13, 1  ;;  %v5609_v20 = vmul.f32 %v5607_v50, %v5591_v19  ;;  %v6765_v1 = vpop.permute.xlu1 %6764  ;;  %v15467_v48 = vld [vmem:[#allocation203_spill] sm:$0xff]  ;;  %v15470_v52 = vld [vmem:[#allocation164_spill] sm:$0xff]  ;;  %v15471_v19 = vld [vmem:[#allocation186_spill] sm:$0xff] }
 0x97c   : > { %v6762_v51 = vadd.f32 %v6761_v43, %v6760_v53  ;;  %v6191_v11 = vsel %vm617_vm5, %v13752_v35, %v6190_v16  ;;  %v6778_v3 = vsel %vm617_vm5, %v6741_v56, %v6777_v27  ;;  %v7363_v49 = vsel %vm611_vm3, %v7314_v32, %v13780_v46  ;;  %v15469_v43 = vld [vmem:[#allocation30_spill] sm:$0xff]  ;;  %v15473_v50 = vld [vmem:[#allocation88_spill] sm:$0xff]  ;;  %v15475_v16 = vld [vmem:[#allocation187_spill] sm:$0xff] }
 0x97d   : > { %v7341_v9 = vrot.slane %v7340_v15, 1  ;;  %v7346_v60 = vrot.slane %v7345_v42, 2  ;;  %v7335_v30 = vadd.f32 %v7334_v57, %v7333_v13  ;;  %v6192_v41 = vsel %vm620_vm6, %v13774_v8, %v6191_v11  ;;  %v15476_v27 = vld [vmem:[#allocation326_spill] sm:$0xff] }
 0x97e   : > { %v6779_v34 = vsel %vm620_vm6, %v6748_v62, %v6778_v3  ;;  %v7364_v23 = vsel %vm614_vm4, %v7321_v14, %v7363_v49  ;;  %v5610_v35 = vadd.f32 %v5609_v20, %v13618_v0  ;;  %v6193_v61 = vsel %vm623_vm7, %v13784_v2, %v6192_v41  ;;  %v7415_v62 = vld [vmem:[%s15465_s7 + $0x18] sm:$0xff]  ;;  %v15477_v20 = vld [vmem:[#allocation27_spill] sm:$0xff] }
 0x97f   : > { %v7342_v47 = vadd.f32 %v7341_v9, %v7340_v15  ;;  %v7347_v21 = vadd.f32 %v7346_v60, %v7345_v42  ;;  %v6780_v63 = vsel %vm623_vm7, %v6755_v54, %v6779_v34  ;;  %v7365_v28 = vsel %vm617_vm5, %v7328_v59, %v7364_v23  ;;  %v15472_v54 = vld [vmem:[#allocation178_spill] sm:$0xff]  ;;  %v15479_v41 = vld [vmem:[#allocation100_spill] sm:$0xff] }
 0x980   : > { %v6781_v46 = vsel %vm625_vm8, %v6762_v51, %v6780_v63  ;;  %v6194_v56 = vsel %vm625_vm8, %v6175_v44, %v6193_v61  ;;  %v7366_v5 = vsel %vm620_vm6, %v7335_v30, %v7365_v28  ;;  %v7352_v10 = vpop.permute.xlu1 %7351  ;;  %v8137_v7 = vpack.c.bf16 %v7413_v29, %v7412_v58  ;;  %v15474_v44 = vld [vmem:[#allocation298_spill] sm:$0xff]  ;;  %v15478_v51 = vld [vmem:[#allocation229_spill] sm:$0xff]  ;;  %v15482_v61 = vld [vmem:[#allocation252_spill] sm:$0xff] }
 0x981   : > { %v7348_v8 = vrot.slane %v7347_v21, 1  ;;  %v6196_v37 = vmul.f32 %v6194_v56, %v6178_v24  ;;  %v6783_v18 = vmul.f32 %v6781_v46, %v6765_v1  ;;  %v7367_v26 = vsel %vm623_vm7, %v7342_v47, %v7366_v5  ;;  %v15480_v34 = vld [vmem:[#allocation66_spill] sm:$0xff] }
 0x982   : > { %8138 = vmatpush3.bf16.msra.mxu1 %v8137_v7  ;;  %v8140_v53 = vpack.c.bf16 %v7415_v62, %v7414_v36  ;;  %v15466_v14 = vmov 0.0|0.0   ;;  %v1108_v6 = vmul.f32 %v15468_v12, %v15467_v48  ;;  %v1107_v22 = vmul.f32 %v15470_v52, %v15469_v43 }
 0x983   : > { %v7349_v55 = vadd.f32 %v7348_v8, %v7347_v21  ;;  %v6197_v40 = vadd.f32 %v6196_v37, %v5610_v35  ;;  %8139 = vmatprep.subr.bf16.mxu1 %v15466_v14  ;;  %v1106_v13 = vmul.f32 %v15472_v54, %v15471_v19  ;;  %v1109_v15 = vmul.f32 %v15474_v44, %v15473_v50  ;;  %v15481_v35 = vld [vmem:[#allocation185_spill] sm:$0xff] }
 0x984   : > { %v1129_v42 = vsel %vm1114_vm11, %v1108_v6, 0.0  ;;  %v1110_v59 = vmul.f32 %v15476_v27, %v15475_v16  ;;  %v1122_v57 = vsel %vm1114_vm11, %v1107_v22, 0.0  ;;  %v1111_v9 = vmul.f32 %v15478_v51, %v15477_v20 }
 0x985   : > { %v7368_v0 = vsel %vm625_vm8, %v7349_v55, %v7367_v26  ;;  %v6784_v45 = vadd.f32 %v6783_v18, %v6197_v40  ;;  %v1115_v60 = vsel %vm1114_vm11, %v1106_v13, 0.0  ;;  %v1130_v11 = vrot.slane %v1129_v42, 4 }
 0x986   : > { %v7370_v2 = vmul.f32 %v7368_v0, %v7352_v10  ;;  %8141 = vmatpush3.bf16.msra.mxu1 %v8140_v53  ;;  %v1136_v3 = vsel %vm1114_vm11, %v1109_v15, 0.0  ;;  %v1123_v49 = vrot.slane %v1122_v57, 4  ;;  %v1143_v30 = vsel %vm1114_vm11, %v1110_v59, 0.0 }
 0x987   : > { %v1112_v47 = vmul.f32 %v15480_v34, %v15479_v41  ;;  %v1116_v21 = vrot.slane %v1115_v60, 4  ;;  %v1137_v24 = vrot.slane %v1136_v3, 4  ;;  %v1150_v1 = vsel %vm1114_vm11, %v1111_v9, 0.0 }
 0x988   : > { %v7371_v17 = vadd.f32 %v7370_v2, %v6784_v45  ;;  %v1131_v63 = vadd.f32 %v1130_v11, %v1129_v42  ;;  %v1144_v23 = vrot.slane %v1143_v30, 4  ;;  %v1113_v46 = vmul.f32 %v15482_v61, %v15481_v35 }
 0x989   : > { %v1124_v28 = vadd.f32 %v1123_v49, %v1122_v57  ;;  %v1151_v8 = vrot.slane %v1150_v1, 4  ;;  %v1157_v56 = vsel %vm1114_vm11, %v1112_v47, 0.0  ;;  %v1117_v5 = vadd.f32 %v1116_v21, %v1115_v60 }
 0x98a   : > { %7380 = vrot.lane.b32.xlu0 %v7371_v17, %s8783_s16  ;;  %v7374_v33 = vrot.slane %v7371_v17, 2  ;;  %v7373_v25 = vrot.slane %v7371_v17, 1  ;;  %v7375_v39 = vrot.slane %v7371_v17, 3  ;;  %v7376_v32 = vrot.slane %v7371_v17, 4 }
 0x98b   : > { %v7377_v4 = vrot.slane %v7371_v17, 5  ;;  %v7378_v38 = vrot.slane %v7371_v17, 6  ;;  %v7379_v31 = vrot.slane %v7371_v17, 7  ;;  %v1138_v37 = vadd.f32 %v1137_v24, %v1136_v3 }
 0x98c   : > { %7384 = vrot.lane.b32.xlu1 %v7374_v33, %s8783_s16  ;;  %v1145_v18 = vadd.f32 %v1144_v23, %v1143_v30  ;;  %v1164_v26 = vsel %vm1114_vm11, %v1113_v46, 0.0  ;;  %v1132_v55 = vrot.slane %v1131_v63, 2  ;;  %v1158_v40 = vrot.slane %v1157_v56, 4 }
 0x98d   : > { %v1125_v10 = vrot.slane %v1124_v28, 2  ;;  %v1152_v0 = vadd.f32 %v1151_v8, %v1150_v1  ;;  %v1165_v45 = vrot.slane %v1164_v26, 4  ;;  %v1118_v2 = vrot.slane %v1117_v5, 2 }
 0x98e   : > { %7382 = vrot.lane.b32.xlu0 %v7373_v25, %s8783_s16  ;;  %v1139_v17 = vrot.slane %v1138_v37, 2  ;;  %v1133_v33 = vadd.f32 %v1132_v55, %v1131_v63  ;;  %v1146_v25 = vrot.slane %v1145_v18, 2 }
 0x98f   : > { %v1153_v58 = vrot.slane %v1152_v0, 2  ;;  %v1166_v29 = vadd.f32 %v1165_v45, %v1164_v26  ;;  %v1119_v36 = vadd.f32 %v1118_v2, %v1117_v5  ;;  %v7731_v45 = vld [vmem:[#allocation8] ss:$0 sm:$0xff] }
 0x990   : > { %7386 = vrot.lane.b32.xlu1 %v7375_v39, %s8783_s16  ;;  %v1159_v39 = vadd.f32 %v1158_v40, %v1157_v56  ;;  %v1140_v7 = vadd.f32 %v1139_v17, %v1138_v37  ;;  %v1134_v62 = vrot.slane %v1133_v33, 1 }
 0x991   : > { %v1120_v48 = vrot.slane %v1119_v36, 1  ;;  %v1167_v6 = vrot.slane %v1166_v29, 2 }
 0x992   : > { %7388 = vrot.lane.b32.xlu0 %v7376_v32, %s8783_s16  ;;  %v1126_v32 = vadd.f32 %v1125_v10, %v1124_v28  ;;  %v1141_v12 = vrot.slane %v1140_v7, 1  ;;  %v1135_v43 = vadd.f32 %v1134_v62, %v1133_v33 }
 0x993   : > { %v1121_v15 = vadd.f32 %v1120_v48, %v1119_v36  ;;  %v1168_v27 = vadd.f32 %v1167_v6, %v1166_v29 }
 0x994   : > { %7390 = vrot.lane.b32.xlu1 %v7377_v4, %s8783_s16  ;;  %v1147_v4 = vadd.f32 %v1146_v25, %v1145_v18  ;;  %v1127_v53 = vrot.slane %v1126_v32, 1  ;;  %v1142_v16 = vadd.f32 %v1141_v12, %v1140_v7 }
 0x995   : > { %v1169_v47 = vrot.slane %v1168_v27, 1 }
 0x996   : > { %7392 = vrot.lane.b32.xlu0 %v7378_v38, %s8783_s16  ;;  %v1160_v38 = vrot.slane %v1159_v39, 2  ;;  %v1148_v22 = vrot.slane %v1147_v4, 1  ;;  %v1128_v19 = vadd.f32 %v1127_v53, %v1126_v32 }
 0x997   : > { %v1170_v56 = vadd.f32 %v1169_v47, %v1168_v27 }
 0x998   : > { %7394 = vrot.lane.b32.xlu1 %v7379_v31, %s8783_s16  ;;  %v1154_v31 = vadd.f32 %v1153_v58, %v1152_v0  ;;  %v1161_v54 = vadd.f32 %v1160_v38, %v1159_v39  ;;  %v1149_v57 = vadd.f32 %v1148_v22, %v1147_v4  ;;  %s7534_s16 = sshll.u32 %s444_s15, 4  ;;  %s13877_s16 = int_to_ptr.vmem [resolvable:$true] %s7534_s16 }
 0x999   : > { %s8680_s26 = scalar_lea.vmem %s13877_s16, 128  ;;  %p8687_p12 = scmp.lt.s32.totalorder %s13877_s16, %s8685_s13 }
 0x99a   : > { %v1155_v44 = vrot.slane %v1154_v31, 1  ;;  %v1162_v60 = vrot.slane %v1161_v54, 1  ;;  %p8681_p10 = scmp.ne.s32.totalorder %s13877_s16, %s8680_s26  ;;  %p8688_p1 = scmp.lt.s32.totalorder %s8686_s14, %s8680_s26 }
 0x99c   : > { %v1156_v49 = vadd.f32 %v1155_v44, %v1154_v31  ;;  %v1163_v35 = vadd.f32 %v1162_v60, %v1161_v54  ;;  %p8682_p3 = pnand %p8681_p10, %p8993_p5  ;;  %p8689_p2 = por %p8688_p1, %p8687_p12 }
 0x99e   : > { %p8683_p7 = pneg %p8682_p3 }
 0x9a0   : > { %p8690_p4 = pnand %p8689_p2, %p8683_p7 }
 0x9fc   : > { %v7381_v14 = vpop.permute.xlu0 %7380 }
 0x9fd   : > { %v7404_v20 = vadd.f32 %v7381_v14, %v1121_v15 }
 0x9fe   : > { %v7385_v52 = vpop.permute.xlu1 %7384 }
 0x9ff   : > { %v7406_v13 = vadd.f32 %v7385_v52, %v1135_v43 }
 0xa00   : > { %v7383_v50 = vpop.permute.xlu0 %7382 }
 0xa01   : > { %v7405_v42 = vadd.f32 %v7383_v50, %v1128_v19  ;;  %v7433_v11 = vrot.slane %v7406_v13, 6 }
 0xa02   : > { %v7387_v59 = vpop.permute.xlu1 %7386 }
 0xa03   : > { %v7431_v51 = vrot.slane %v7405_v42, 7  ;;  %v7407_v9 = vadd.f32 %v7387_v59, %v1142_v16 }
 0xa04   : > { %v7389_v3 = vpop.permute.xlu0 %7388 }
 0xa05   : > { %v7432_v30 = vsel %vm608_vm2, %v7431_v51, %v7404_v20  ;;  %v7435_v41 = vrot.slane %v7407_v9, 5  ;;  %v7408_v34 = vadd.f32 %v7389_v3, %v1149_v57 }
 0xa06   : > { %v7434_v21 = vsel %vm611_vm3, %v7433_v11, %v7432_v30  ;;  %v7391_v24 = vpop.permute.xlu1 %7390 }
 0xa07   : > { %v7436_v1 = vsel %vm614_vm4, %v7435_v41, %v7434_v21  ;;  %v7437_v63 = vrot.slane %v7408_v34, 4  ;;  %v7409_v23 = vadd.f32 %v7391_v24, %v1156_v49 }
 0xa08   : > { %v7393_v61 = vpop.permute.xlu0 %7392 }
 0xa09   : > { %v7438_v46 = vsel %vm617_vm5, %v7437_v63, %v7436_v1  ;;  %v7439_v28 = vrot.slane %v7409_v23, 3  ;;  %v7410_v8 = vadd.f32 %v7393_v61, %v1163_v35 }
 0xa0a   : > { %v7395_v5 = vpop.permute.xlu1 %7394 }
 0xa0b   : > { %v7440_v37 = vsel %vm620_vm6, %v7439_v28, %v7438_v46  ;;  %v7441_v18 = vrot.slane %v7410_v8, 2  ;;  %v7411_v26 = vadd.f32 %v7395_v5, %v1170_v56 }
 0xa0d   : > { %v7442_v55 = vsel %vm623_vm7, %v7441_v18, %v7440_v37  ;;  %v7443_v40 = vrot.slane %v7411_v26, 1 }
 0xa0f   : > { %v7444_v10 = vsel %vm625_vm8, %v7443_v40, %v7442_v55 }
 0xa10   : > { %7445 = vrot.lane.b32.xlu0 %v7444_v10, %s8774_s23  ;;  %s7521_s23 = scalar_lea.sflag [#allocation4], %s9044_s28 }
 0xa82   : > { %v7446_v0 = vpop.permute.xlu0 %7445 }
 0xa83   : > { %8056 = vmatmul.mubr.msk.f32.vlgmr.msra.gmra.mrb[34].mxu1 %vm465_vm1, %v7446_v0 }
 0xb56   : > { %v7515_v2 = vpop.f32.mrb[34].mxu1 }
 0xb57   : > { %v7516_v17 = vadd.f32 %v7731_v45, %v7515_v2  ;;  %v8057_v33 = vpop.f32.mrb[35].mxu1 }
 0xb59   : > { %7519 = vst [vmem:[%s444_s15] sm:$0xff] %v7516_v17 }
 0xb5a   : > { %8693 = shalt.err (!%p8690_p4)
}
 0xb5b   : > { %s8694_s28 = scalar_lea.hbm %s13875_s29, 128  ;;  %s8698_s25 = scalar_lea.hbm %s15483_s11, 256 }
 0xb5c   : > { %p8695_p9 = scmp.ne.s32.totalorder %s13875_s29, %s8694_s28  ;;  %p8699_p8 = scmp.lt.u32.totalorder %s13875_s29, %s15483_s11 }
 0xb5d   : > { %p8700_p13 = scmp.lt.u32.totalorder %s8698_s25, %s8694_s28  ;;  %p8702_p10 = scmp.lt.u32.totalorder %s8694_s28, %s13875_s29 }
 0xb5e   : > { %p8696_p0 = pnand %p8695_p9, %p8993_p5 }
 0xb5f   : > { %p8701_p6 = por %p8700_p13, %p8699_p8 }
 0xb60   : > { %p8697_p11 = pneg %p8696_p0 }
 0xb61   : > { %p8703_p3 = por %p8702_p10, %p8701_p6 }
 0xb63   : > { %p8704_p7 = pnand %p8703_p3, %p8697_p11 }
 0xb65   : > { %8707 = shalt.err (!%p8704_p7)
}
 0xb66   : > { %8156 = dma.vmem_to_hbm [thread:$0]  (%p8993_p5), %s13877_s16, 128, %s13875_s29, %s7521_s23  }
 0xb67 PF: > { %s15484_s2 = sld [smem:[#allocation15_spill]]  ;;  %s15485_s26 = sld [smem:[#allocation16_spill]] }
 0xb68   : > { %p15487_p1 = scmp.ge.s32.totalorder %s8754_s20, 2 }
 0xb6d   : > { %s7546_s21 = sand.u32 1, %s15484_s2   ;;  %p15486_p12 = scmp.ne.s32.totalorder %s15485_s26, 0 }
 0xb6e   : > { %s7547_s13 = scalar_lea.sflag [#allocation4], %s7546_s21 }
 0xb6f   : > { %p8173_p2 = pnand %p15487_p1, %p15486_p12 }
 0xb71   : > { %8737 = dma.done.wait (!%p8173_p2), %s7547_s13, 128  }
 0xb72   : > { %8739 = vsyncadd (!%p8173_p2), %s7547_s13, 4294967168  ;;  %s15488_s14 = smov %s8989_s17  ;;  %p26_p4 = scmp.ge.s32.totalorder %s8979_s24, 4  }
 0xb73   : > { %s15489_s17 = smov %s8746_s18  ;;  %s15490_s18 = smov %s8750_s19 }
 0xb74   : > { %s15491_s19 = smov %s15488_s14  ;;  %s15492_s20 = smov %s8979_s24 }
 0xb75   :  { %28 = sbr.rel (!%p26_p4) target bundleno = 11 (0xb), region = 128 }
 0xb7c   :  { %7552 = vsyncpa [#allocation3], 1 }
 0xb7d   :  { %7554 = vsyncpa [#allocation3 + $0x1], 1 }
 0xb7e   :  { %7555 = vsyncpa [#allocation6], 1 }
 0xb7f   :  { %7556 = vsyncpa [#allocation9], 1 }
 0xb80   :  { %7557 = vsyncpa [#allocation4], 1 }
 0xb81   :  { %7559 = vsyncpa [#allocation4 + $0x1], 1 }

</bundles_post_ra>
